<compile_context>
chip_gen: v7x
topology: tpu7x:2x2x1
jax: 0.10.0
libtpu: 0.0.40
codegen_flags: <defaults>
</compile_context>

<pallas_src>
import functools

import numpy as np
import jax
import jax.numpy as jnp
from jax import lax
from jax.experimental import pallas as pl
from jax.experimental.pallas import tpu as pltpu


# --------------------------------------------------------------------------
# Wrapper-side (numpy, trace-time) spatial operators
# --------------------------------------------------------------------------
def _shift_mats(H, W):
    """9 (HW, HW) 0/1 matrices: (x_flat @ S[t])[p] = x[h+dh, w+dw] or 0."""
    HW = H * W
    mats = np.zeros((9, HW, HW), np.float32)
    for kh in range(3):
        for kw in range(3):
            t = kh * 3 + kw
            dh, dw = kh - 1, kw - 1
            for h in range(H):
                hs = h + dh
                if not (0 <= hs < H):
                    continue
                for w in range(W):
                    ws = w + dw
                    if not (0 <= ws < W):
                        continue
                    mats[t, hs * W + ws, h * W + w] = 1.0
    return mats


def _upsample_mat(H, W):
    """(HW, 4*HW) 0/1 matrix: x_flat @ U = nearest-neighbour x2 upsample."""
    Hn, Wn = 2 * H, 2 * W
    U = np.zeros((H * W, Hn * Wn), np.float32)
    for hn in range(Hn):
        for wn in range(Wn):
            U[(hn // 2) * W + (wn // 2), hn * Wn + wn] = 1.0
    return U


# --------------------------------------------------------------------------
# Fused decoder kernel
# --------------------------------------------------------------------------
def _elu(x):
    # ELU(alpha=1): x if x > 0 else exp(x) - 1  (clamp exp arg for safety)
    return jnp.where(x > 0.0, x, jnp.exp(jnp.minimum(x, 0.0)) - 1.0)


def _decoder_kernel(noise_ref, fcw_ref, fcb_ref, wstk_ref, bstk_ref,
                    wout_ref, bout_ref, p01_ref, p2_ref, p3_ref, p4_ref,
                    p56_ref, o_ref, *, sub_batch, noise_size):
    """One grid step processes `sub_batch` images, all work resident in VMEM.

    Activation layout: (C, H*W)  -- channels on sublanes, spatial on lanes.
    """

    def conv3x3(x, p_ref, w_of_tap, bias_col, act):
        # x: (Cin, HWin) f32;  p_ref: (9, HWin, HWout) bf16 shift/mask mats;
        # w_of_tap(t): (Cout, Cin) bf16;  bias_col: (Cout, 1) f32.
        xb = x.astype(jnp.bfloat16)
        acc = None
        for t in range(9):
            xs = jnp.dot(xb, p_ref[t],
                         preferred_element_type=jnp.float32).astype(jnp.bfloat16)
            yt = jnp.dot(w_of_tap(t), xs, preferred_element_type=jnp.float32)
            acc = yt if acc is None else acc + yt
        y = acc + bias_col
        return _elu(y) if act == "elu" else jnp.tanh(y)

    step = pl.program_id(0)
    for b in range(sub_batch):
        img = step * sub_batch + b

        # fc (no activation): x0[c, hw] = sum_k noise[img,k] * fcw[k,c,hw] + fcb
        x = fcb_ref[...]                                    # (hidden, m*m) f32
        for k in range(noise_size):
            x = x + noise_ref[img, k] * fcw_ref[k]

        # first_layer: conv,ELU,conv,ELU  (4x4); upsample folded into conv2's P
        x = conv3x3(x, p01_ref, lambda t: wstk_ref[0, t], bstk_ref[:, 0:1], "elu")
        x = conv3x3(x, p01_ref, lambda t: wstk_ref[1, t], bstk_ref[:, 1:2], "elu")
        # second_layer: conv,ELU,conv,ELU (8x8); upsample folded into conv4's P
        x = conv3x3(x, p2_ref,  lambda t: wstk_ref[2, t], bstk_ref[:, 2:3], "elu")
        x = conv3x3(x, p3_ref,  lambda t: wstk_ref[3, t], bstk_ref[:, 3:4], "elu")
        # third_layer: conv,ELU,conv,ELU,conv,tanh (16x16)
        x = conv3x3(x, p4_ref,  lambda t: wstk_ref[4, t], bstk_ref[:, 4:5], "elu")
        x = conv3x3(x, p56_ref, lambda t: wstk_ref[5, t], bstk_ref[:, 5:6], "elu")
        y = conv3x3(x, p56_ref, lambda t: wout_ref[t],    bout_ref[...],   "tanh")

        o_ref[b] = y                       # (C, H*W) lane-dense, NCHW-ordered


# --------------------------------------------------------------------------
# Wrapper
# --------------------------------------------------------------------------
def generator_forward(params, noise, hidden_size, multiplier):
    B, K = noise.shape
    hidden = hidden_size
    m = multiplier
    C = params["conv6_w"].shape[-1]
    img_size = 4 * m
    mm, hw2, hw3 = m * m, (2 * m) ** 2, (4 * m) ** 2

    # ---- spatial operators (numpy constants at trace time), bf16 = exact 0/1
    s1 = _shift_mats(m, m)
    s2 = _shift_mats(2 * m, 2 * m)
    s3 = _shift_mats(4 * m, 4 * m)
    u1 = _upsample_mat(m, m)
    u2 = _upsample_mat(2 * m, 2 * m)
    p01 = jnp.asarray(s1, jnp.bfloat16)                              # (9,mm,mm)
    p2 = jnp.asarray(np.einsum("qr,trp->tqp", u1, s2), jnp.bfloat16)  # (9,mm,hw2)
    p3 = jnp.asarray(s2, jnp.bfloat16)                               # (9,hw2,hw2)
    p4 = jnp.asarray(np.einsum("qr,trp->tqp", u2, s3), jnp.bfloat16)  # (9,hw2,hw3)
    p56 = jnp.asarray(s3, jnp.bfloat16)                              # (9,hw3,hw3)

    # ---- fc weights: torch column order is already channel-major (c, h, w)
    fcw3 = params["fc_w"].reshape(K, hidden, mm).astype(jnp.float32)
    fcb2 = params["fc_b"].reshape(hidden, mm).astype(jnp.float32)

    # ---- conv weights per tap: W_t[o, i] = w[kh, kw, i, o]
    def taps(w):
        cin, cout = w.shape[2], w.shape[3]
        return jnp.transpose(w.reshape(9, cin, cout), (0, 2, 1))

    wstk = jnp.stack([taps(params[f"conv{i}_w"]) for i in range(6)]
                     ).astype(jnp.bfloat16)                # (6, 9, hidden, hidden)
    bstk = jnp.stack([params[f"conv{i}_b"] for i in range(6)],
                     axis=1).astype(jnp.float32)           # (hidden, 6)
    wout = taps(params["conv6_w"]).astype(jnp.bfloat16)    # (9, C, hidden)
    bout = params["conv6_b"].reshape(C, 1).astype(jnp.float32)

    # grid=(2,) keeps both v7x TensorCores busy; on v5e/v6e the 2-step serial
    # loop costs <1 us.  Each step handles B/2 images resident in VMEM.
    num_steps = 2 if (B % 2 == 0 and B >= 2) else 1
    sub = B // num_steps

    kernel = functools.partial(_decoder_kernel, sub_batch=sub, noise_size=K)
    out = pl.pallas_call(
        kernel,
        out_shape=jax.ShapeDtypeStruct((B, C, hw3), jnp.float32),
        grid=(num_steps,),
        in_specs=[
            pl.BlockSpec(memory_space=pltpu.MemorySpace.SMEM),       # noise (B,K)
            pl.BlockSpec((K, hidden, mm), lambda i: (0, 0, 0)),      # fcw3
            pl.BlockSpec((hidden, mm), lambda i: (0, 0)),            # fcb2
            pl.BlockSpec((6, 9, hidden, hidden), lambda i: (0, 0, 0, 0)),  # wstk
            pl.BlockSpec((hidden, 6), lambda i: (0, 0)),             # bstk
            pl.BlockSpec((9, C, hidden), lambda i: (0, 0, 0)),       # wout
            pl.BlockSpec((C, 1), lambda i: (0, 0)),                  # bout
            pl.BlockSpec((9, mm, mm), lambda i: (0, 0, 0)),          # p01
            pl.BlockSpec((9, mm, hw2), lambda i: (0, 0, 0)),         # p2 (+up)
            pl.BlockSpec((9, hw2, hw2), lambda i: (0, 0, 0)),        # p3
            pl.BlockSpec((9, hw2, hw3), lambda i: (0, 0, 0)),        # p4 (+up)
            pl.BlockSpec((9, hw3, hw3), lambda i: (0, 0, 0)),        # p56
        ],
        out_specs=pl.BlockSpec((sub, C, hw3), lambda i: (i, 0, 0)),
        compiler_params=pltpu.CompilerParams(
            dimension_semantics=("parallel",)),
    )(noise, fcw3, fcb2, wstk, bstk, wout, bout, p01, p2, p3, p4, p56)

    # (B, C, H*W) is already NCHW order -> pure reshape, no transpose.
    return out.reshape(B, C, img_size, img_size)


# --------------------------------------------------------------------------
# Parameter construction (PyTorch-convention layouts)
# --------------------------------------------------------------------------
def init_generator_params(key, num_channels, hidden_size, noise_size, image_size):
    multiplier = image_size // 4
    ks = jax.random.split(key, 16)
    s = 0.1  # small deterministic scale

    def conv_w(k, cin, cout):
        return s * jax.random.normal(k, (3, 3, cin, cout), jnp.float32)

    params = {
        "fc_w": s * jax.random.normal(
            ks[0], (noise_size, hidden_size * multiplier ** 2), jnp.float32),
        "fc_b": s * jax.random.normal(
            ks[1], (hidden_size * multiplier ** 2,), jnp.float32),
    }
    cins = [hidden_size] * 7
    couts = [hidden_size] * 6 + [num_channels]
    for i, (ci, co) in enumerate(zip(cins, couts)):
        params[f"conv{i}_w"] = conv_w(ks[2 + 2 * i], ci, co)
        params[f"conv{i}_b"] = s * jax.random.normal(
            ks[3 + 2 * i], (co,), jnp.float32)
    return params, multiplier


# --------------------------------------------------------------------------
# Pure-JAX reference (for correctness check)
# --------------------------------------------------------------------------
def _conv_ref(x, w, b, act):
    y = lax.conv_general_dilated(
        x, w, (1, 1), "SAME",
        dimension_numbers=("NHWC", "HWIO", "NHWC")) + b
    if act == "elu":
        y = jnp.where(y > 0.0, y, jnp.exp(jnp.minimum(y, 0.0)) - 1.0)
    elif act == "tanh":
        y = jnp.tanh(y)
    return y


def _upsample_ref(x):
    x = jnp.repeat(x, 2, axis=1)
    x = jnp.repeat(x, 2, axis=2)
    return x


def generator_ref(params, noise, hidden_size, multiplier):
    out = noise @ params["fc_w"] + params["fc_b"]
    B = noise.shape[0]
    out = out.reshape(B, hidden_size, multiplier, multiplier)
    out = jnp.transpose(out, (0, 2, 3, 1))
    out = _conv_ref(out, params["conv0_w"], params["conv0_b"], "elu")
    out = _conv_ref(out, params["conv1_w"], params["conv1_b"], "elu")
    out = _upsample_ref(out)
    out = _conv_ref(out, params["conv2_w"], params["conv2_b"], "elu")
    out = _conv_ref(out, params["conv3_w"], params["conv3_b"], "elu")
    out = _upsample_ref(out)
    out = _conv_ref(out, params["conv4_w"], params["conv4_b"], "elu")
    out = _conv_ref(out, params["conv5_w"], params["conv5_b"], "elu")
    out = _conv_ref(out, params["conv6_w"], params["conv6_b"], "tanh")
    return jnp.transpose(out, (0, 3, 1, 2))


# --------------------------------------------------------------------------
if __name__ == "__main__":
    batch = 2
    num_channels = 3
    hidden_size = 32
    noise_size = 8
    image_size = 16  # multiplier = 4 -> 4x4 -> 8x8 -> 16x16

    key = jax.random.PRNGKey(0)
    kp, kn = jax.random.split(key)
    params, multiplier = init_generator_params(
        kp, num_channels, hidden_size, noise_size, image_size)
    noise = jax.random.normal(kn, (batch, noise_size), jnp.float32)

    fwd = jax.jit(
        lambda p, n: generator_forward(p, n, hidden_size, multiplier))
    out = fwd(params, noise)
    out = jax.block_until_ready(out)

    assert out.shape == (batch, num_channels, image_size, image_size), out.shape

    ref = generator_ref(params, noise, hidden_size, multiplier)
    max_err = float(jnp.max(jnp.abs(out - ref)))
    rel_l2 = float(jnp.linalg.norm(out - ref) / jnp.linalg.norm(ref))
    # bf16 matmul operands (f32 accumulation) -> tolerance per perf review
    assert max_err < 5e-2 and rel_l2 < 3e-2, (max_err, rel_l2)

    print("KERNEL_OK")
</pallas_src>

<mosaic_0001>
module attributes {stable_mosaic.version = 11 : i64} {
  func.func @_decoder_kernel(%arg0: i32, %arg1: memref<2x8xf32, #tpu.memory_space<smem>>, %arg2: memref<8x32x16xf32, #tpu.memory_space<vmem>>, %arg3: memref<32x16xf32, #tpu.memory_space<vmem>>, %arg4: memref<6x9x32x32xbf16, #tpu.memory_space<vmem>>, %arg5: memref<32x6xf32, #tpu.memory_space<vmem>>, %arg6: memref<9x3x32xbf16, #tpu.memory_space<vmem>>, %arg7: memref<3x1xf32, #tpu.memory_space<vmem>>, %arg8: memref<9x16x16xbf16, #tpu.memory_space<vmem>>, %arg9: memref<9x16x64xbf16, #tpu.memory_space<vmem>>, %arg10: memref<9x64x64xbf16, #tpu.memory_space<vmem>>, %arg11: memref<9x64x256xbf16, #tpu.memory_space<vmem>>, %arg12: memref<9x256x256xbf16, #tpu.memory_space<vmem>>, %arg13: memref<1x3x256xf32, #tpu.memory_space<vmem>>) attributes {dimension_semantics = [#tpu.dimension_semantics<parallel>], iteration_bounds = array<i64: 2>, scalar_prefetch = 0 : i64, scratch_operands = 0 : i64, tpu.core_type = #tpu.core_type<tc>, window_params = [{transform_indices = @transform_0, window_bounds = array<i64: 2, 8>}, {pipeline_mode = #tpu.pipeline_mode<synchronous>, transform_indices = @transform_1, window_bounds = array<i64: 8, 32, 16>}, {pipeline_mode = #tpu.pipeline_mode<synchronous>, transform_indices = @transform_2, window_bounds = array<i64: 32, 16>}, {pipeline_mode = #tpu.pipeline_mode<synchronous>, transform_indices = @transform_3, window_bounds = array<i64: 6, 9, 32, 32>}, {pipeline_mode = #tpu.pipeline_mode<synchronous>, transform_indices = @transform_4, window_bounds = array<i64: 32, 6>}, {pipeline_mode = #tpu.pipeline_mode<synchronous>, transform_indices = @transform_5, window_bounds = array<i64: 9, 3, 32>}, {pipeline_mode = #tpu.pipeline_mode<synchronous>, transform_indices = @transform_6, window_bounds = array<i64: 3, 1>}, {pipeline_mode = #tpu.pipeline_mode<synchronous>, transform_indices = @transform_7, window_bounds = array<i64: 9, 16, 16>}, {pipeline_mode = #tpu.pipeline_mode<synchronous>, transform_indices = @transform_8, window_bounds = array<i64: 9, 16, 64>}, {pipeline_mode = #tpu.pipeline_mode<synchronous>, transform_indices = @transform_9, window_bounds = array<i64: 9, 64, 64>}, {pipeline_mode = #tpu.pipeline_mode<synchronous>, transform_indices = @transform_10, window_bounds = array<i64: 9, 64, 256>}, {pipeline_mode = #tpu.pipeline_mode<synchronous>, transform_indices = @transform_11, window_bounds = array<i64: 9, 256, 256>}, {transform_indices = @transform_12, window_bounds = array<i64: 1, 3, 256>}]} {
    %c1_i32 = arith.constant 1 : i32
    %0 = arith.muli %arg0, %c1_i32 : i32
    %c0_i32 = arith.constant 0 : i32
    %1 = arith.addi %0, %c0_i32 : i32
    %c0 = arith.constant 0 : index
    %c0_0 = arith.constant 0 : index
    %2 = vector.load %arg3[%c0, %c0_0] : memref<32x16xf32, #tpu.memory_space<vmem>>, vector<32x16xf32>
    %3 = arith.index_cast %1 : i32 to index
    %c0_1 = arith.constant 0 : index
    %4 = memref.load %arg1[%3, %c0_1] : memref<2x8xf32, #tpu.memory_space<smem>>
    %c0_2 = arith.constant 0 : index
    %c0_3 = arith.constant 0 : index
    %c0_4 = arith.constant 0 : index
    %5 = vector.load %arg2[%c0_2, %c0_3, %c0_4] : memref<8x32x16xf32, #tpu.memory_space<vmem>>, vector<1x32x16xf32>
    %6 = vector.shape_cast %5 : vector<1x32x16xf32> to vector<32x16xf32>
    %7 = vector.broadcast %4 : f32 to vector<32x16xf32>
    %8 = arith.mulf %7, %6 : vector<32x16xf32>
    %9 = arith.addf %2, %8 : vector<32x16xf32>
    %10 = arith.index_cast %1 : i32 to index
    %c1 = arith.constant 1 : index
    %11 = memref.load %arg1[%10, %c1] : memref<2x8xf32, #tpu.memory_space<smem>>
    %c1_5 = arith.constant 1 : index
    %c0_6 = arith.constant 0 : index
    %c0_7 = arith.constant 0 : index
    %12 = vector.load %arg2[%c1_5, %c0_6, %c0_7] : memref<8x32x16xf32, #tpu.memory_space<vmem>>, vector<1x32x16xf32>
    %13 = vector.shape_cast %12 : vector<1x32x16xf32> to vector<32x16xf32>
    %14 = vector.broadcast %11 : f32 to vector<32x16xf32>
    %15 = arith.mulf %14, %13 : vector<32x16xf32>
    %16 = arith.addf %9, %15 : vector<32x16xf32>
    %17 = arith.index_cast %1 : i32 to index
    %c2 = arith.constant 2 : index
    %18 = memref.load %arg1[%17, %c2] : memref<2x8xf32, #tpu.memory_space<smem>>
    %c2_8 = arith.constant 2 : index
    %c0_9 = arith.constant 0 : index
    %c0_10 = arith.constant 0 : index
    %19 = vector.load %arg2[%c2_8, %c0_9, %c0_10] : memref<8x32x16xf32, #tpu.memory_space<vmem>>, vector<1x32x16xf32>
    %20 = vector.shape_cast %19 : vector<1x32x16xf32> to vector<32x16xf32>
    %21 = vector.broadcast %18 : f32 to vector<32x16xf32>
    %22 = arith.mulf %21, %20 : vector<32x16xf32>
    %23 = arith.addf %16, %22 : vector<32x16xf32>
    %24 = arith.index_cast %1 : i32 to index
    %c3 = arith.constant 3 : index
    %25 = memref.load %arg1[%24, %c3] : memref<2x8xf32, #tpu.memory_space<smem>>
    %c3_11 = arith.constant 3 : index
    %c0_12 = arith.constant 0 : index
    %c0_13 = arith.constant 0 : index
    %26 = vector.load %arg2[%c3_11, %c0_12, %c0_13] : memref<8x32x16xf32, #tpu.memory_space<vmem>>, vector<1x32x16xf32>
    %27 = vector.shape_cast %26 : vector<1x32x16xf32> to vector<32x16xf32>
    %28 = vector.broadcast %25 : f32 to vector<32x16xf32>
    %29 = arith.mulf %28, %27 : vector<32x16xf32>
    %30 = arith.addf %23, %29 : vector<32x16xf32>
    %31 = arith.index_cast %1 : i32 to index
    %c4 = arith.constant 4 : index
    %32 = memref.load %arg1[%31, %c4] : memref<2x8xf32, #tpu.memory_space<smem>>
    %c4_14 = arith.constant 4 : index
    %c0_15 = arith.constant 0 : index
    %c0_16 = arith.constant 0 : index
    %33 = vector.load %arg2[%c4_14, %c0_15, %c0_16] : memref<8x32x16xf32, #tpu.memory_space<vmem>>, vector<1x32x16xf32>
    %34 = vector.shape_cast %33 : vector<1x32x16xf32> to vector<32x16xf32>
    %35 = vector.broadcast %32 : f32 to vector<32x16xf32>
    %36 = arith.mulf %35, %34 : vector<32x16xf32>
    %37 = arith.addf %30, %36 : vector<32x16xf32>
    %38 = arith.index_cast %1 : i32 to index
    %c5 = arith.constant 5 : index
    %39 = memref.load %arg1[%38, %c5] : memref<2x8xf32, #tpu.memory_space<smem>>
    %c5_17 = arith.constant 5 : index
    %c0_18 = arith.constant 0 : index
    %c0_19 = arith.constant 0 : index
    %40 = vector.load %arg2[%c5_17, %c0_18, %c0_19] : memref<8x32x16xf32, #tpu.memory_space<vmem>>, vector<1x32x16xf32>
    %41 = vector.shape_cast %40 : vector<1x32x16xf32> to vector<32x16xf32>
    %42 = vector.broadcast %39 : f32 to vector<32x16xf32>
    %43 = arith.mulf %42, %41 : vector<32x16xf32>
    %44 = arith.addf %37, %43 : vector<32x16xf32>
    %45 = arith.index_cast %1 : i32 to index
    %c6 = arith.constant 6 : index
    %46 = memref.load %arg1[%45, %c6] : memref<2x8xf32, #tpu.memory_space<smem>>
    %c6_20 = arith.constant 6 : index
    %c0_21 = arith.constant 0 : index
    %c0_22 = arith.constant 0 : index
    %47 = vector.load %arg2[%c6_20, %c0_21, %c0_22] : memref<8x32x16xf32, #tpu.memory_space<vmem>>, vector<1x32x16xf32>
    %48 = vector.shape_cast %47 : vector<1x32x16xf32> to vector<32x16xf32>
    %49 = vector.broadcast %46 : f32 to vector<32x16xf32>
    %50 = arith.mulf %49, %48 : vector<32x16xf32>
    %51 = arith.addf %44, %50 : vector<32x16xf32>
    %52 = arith.index_cast %1 : i32 to index
    %c7 = arith.constant 7 : index
    %53 = memref.load %arg1[%52, %c7] : memref<2x8xf32, #tpu.memory_space<smem>>
    %c7_23 = arith.constant 7 : index
    %c0_24 = arith.constant 0 : index
    %c0_25 = arith.constant 0 : index
    %54 = vector.load %arg2[%c7_23, %c0_24, %c0_25] : memref<8x32x16xf32, #tpu.memory_space<vmem>>, vector<1x32x16xf32>
    %55 = vector.shape_cast %54 : vector<1x32x16xf32> to vector<32x16xf32>
    %56 = vector.broadcast %53 : f32 to vector<32x16xf32>
    %57 = arith.mulf %56, %55 : vector<32x16xf32>
    %58 = arith.addf %51, %57 : vector<32x16xf32>
    %c0_26 = arith.constant 0 : index
    %c0_27 = arith.constant 0 : index
    %59 = vector.load %arg5[%c0_26, %c0_27] : memref<32x6xf32, #tpu.memory_space<vmem>>, vector<32x1xf32>
    %60 = arith.truncf %58 : vector<32x16xf32> to vector<32x16xbf16>
    %c0_28 = arith.constant 0 : index
    %c0_29 = arith.constant 0 : index
    %c0_30 = arith.constant 0 : index
    %61 = vector.load %arg8[%c0_28, %c0_29, %c0_30] : memref<9x16x16xbf16, #tpu.memory_space<vmem>>, vector<1x16x16xbf16>
    %62 = vector.shape_cast %61 : vector<1x16x16xbf16> to vector<16x16xbf16>
    %cst = arith.constant dense<0.000000e+00> : vector<32x16xf32>
    %63 = tpu.matmul %60, %62, %cst {dimension_numbers = #tpu.dot_dimension_numbers<[1], [0], [0], [1], [0, 0, 1, 1], [], []>} : vector<32x16xbf16>, vector<16x16xbf16>, vector<32x16xf32> -> vector<32x16xf32>
    %64 = arith.truncf %63 : vector<32x16xf32> to vector<32x16xbf16>
    %c0_31 = arith.constant 0 : index
    %c0_32 = arith.constant 0 : index
    %c0_33 = arith.constant 0 : index
    %c0_34 = arith.constant 0 : index
    %65 = vector.load %arg4[%c0_31, %c0_32, %c0_33, %c0_34] : memref<6x9x32x32xbf16, #tpu.memory_space<vmem>>, vector<1x1x32x32xbf16>
    %66 = vector.shape_cast %65 : vector<1x1x32x32xbf16> to vector<32x32xbf16>
    %cst_35 = arith.constant dense<0.000000e+00> : vector<32x16xf32>
    %67 = tpu.matmul %66, %64, %cst_35 {dimension_numbers = #tpu.dot_dimension_numbers<[1], [0], [0], [1], [0, 0, 1, 1], [], []>} : vector<32x32xbf16>, vector<32x16xbf16>, vector<32x16xf32> -> vector<32x16xf32>
    %c1_36 = arith.constant 1 : index
    %c0_37 = arith.constant 0 : index
    %c0_38 = arith.constant 0 : index
    %68 = vector.load %arg8[%c1_36, %c0_37, %c0_38] : memref<9x16x16xbf16, #tpu.memory_space<vmem>>, vector<1x16x16xbf16>
    %69 = vector.shape_cast %68 : vector<1x16x16xbf16> to vector<16x16xbf16>
    %cst_39 = arith.constant dense<0.000000e+00> : vector<32x16xf32>
    %70 = tpu.matmul %60, %69, %cst_39 {dimension_numbers = #tpu.dot_dimension_numbers<[1], [0], [0], [1], [0, 0, 1, 1], [], []>} : vector<32x16xbf16>, vector<16x16xbf16>, vector<32x16xf32> -> vector<32x16xf32>
    %71 = arith.truncf %70 : vector<32x16xf32> to vector<32x16xbf16>
    %c0_40 = arith.constant 0 : index
    %c1_41 = arith.constant 1 : index
    %c0_42 = arith.constant 0 : index
    %c0_43 = arith.constant 0 : index
    %72 = vector.load %arg4[%c0_40, %c1_41, %c0_42, %c0_43] : memref<6x9x32x32xbf16, #tpu.memory_space<vmem>>, vector<1x1x32x32xbf16>
    %73 = vector.shape_cast %72 : vector<1x1x32x32xbf16> to vector<32x32xbf16>
    %cst_44 = arith.constant dense<0.000000e+00> : vector<32x16xf32>
    %74 = tpu.matmul %73, %71, %cst_44 {dimension_numbers = #tpu.dot_dimension_numbers<[1], [0], [0], [1], [0, 0, 1, 1], [], []>} : vector<32x32xbf16>, vector<32x16xbf16>, vector<32x16xf32> -> vector<32x16xf32>
    %75 = arith.addf %67, %74 : vector<32x16xf32>
    %c2_45 = arith.constant 2 : index
    %c0_46 = arith.constant 0 : index
    %c0_47 = arith.constant 0 : index
    %76 = vector.load %arg8[%c2_45, %c0_46, %c0_47] : memref<9x16x16xbf16, #tpu.memory_space<vmem>>, vector<1x16x16xbf16>
    %77 = vector.shape_cast %76 : vector<1x16x16xbf16> to vector<16x16xbf16>
    %cst_48 = arith.constant dense<0.000000e+00> : vector<32x16xf32>
    %78 = tpu.matmul %60, %77, %cst_48 {dimension_numbers = #tpu.dot_dimension_numbers<[1], [0], [0], [1], [0, 0, 1, 1], [], []>} : vector<32x16xbf16>, vector<16x16xbf16>, vector<32x16xf32> -> vector<32x16xf32>
    %79 = arith.truncf %78 : vector<32x16xf32> to vector<32x16xbf16>
    %c0_49 = arith.constant 0 : index
    %c2_50 = arith.constant 2 : index
    %c0_51 = arith.constant 0 : index
    %c0_52 = arith.constant 0 : index
    %80 = vector.load %arg4[%c0_49, %c2_50, %c0_51, %c0_52] : memref<6x9x32x32xbf16, #tpu.memory_space<vmem>>, vector<1x1x32x32xbf16>
    %81 = vector.shape_cast %80 : vector<1x1x32x32xbf16> to vector<32x32xbf16>
    %cst_53 = arith.constant dense<0.000000e+00> : vector<32x16xf32>
    %82 = tpu.matmul %81, %79, %cst_53 {dimension_numbers = #tpu.dot_dimension_numbers<[1], [0], [0], [1], [0, 0, 1, 1], [], []>} : vector<32x32xbf16>, vector<32x16xbf16>, vector<32x16xf32> -> vector<32x16xf32>
    %83 = arith.addf %75, %82 : vector<32x16xf32>
    %c3_54 = arith.constant 3 : index
    %c0_55 = arith.constant 0 : index
    %c0_56 = arith.constant 0 : index
    %84 = vector.load %arg8[%c3_54, %c0_55, %c0_56] : memref<9x16x16xbf16, #tpu.memory_space<vmem>>, vector<1x16x16xbf16>
    %85 = vector.shape_cast %84 : vector<1x16x16xbf16> to vector<16x16xbf16>
    %cst_57 = arith.constant dense<0.000000e+00> : vector<32x16xf32>
    %86 = tpu.matmul %60, %85, %cst_57 {dimension_numbers = #tpu.dot_dimension_numbers<[1], [0], [0], [1], [0, 0, 1, 1], [], []>} : vector<32x16xbf16>, vector<16x16xbf16>, vector<32x16xf32> -> vector<32x16xf32>
    %87 = arith.truncf %86 : vector<32x16xf32> to vector<32x16xbf16>
    %c0_58 = arith.constant 0 : index
    %c3_59 = arith.constant 3 : index
    %c0_60 = arith.constant 0 : index
    %c0_61 = arith.constant 0 : index
    %88 = vector.load %arg4[%c0_58, %c3_59, %c0_60, %c0_61] : memref<6x9x32x32xbf16, #tpu.memory_space<vmem>>, vector<1x1x32x32xbf16>
    %89 = vector.shape_cast %88 : vector<1x1x32x32xbf16> to vector<32x32xbf16>
    %cst_62 = arith.constant dense<0.000000e+00> : vector<32x16xf32>
    %90 = tpu.matmul %89, %87, %cst_62 {dimension_numbers = #tpu.dot_dimension_numbers<[1], [0], [0], [1], [0, 0, 1, 1], [], []>} : vector<32x32xbf16>, vector<32x16xbf16>, vector<32x16xf32> -> vector<32x16xf32>
    %91 = arith.addf %83, %90 : vector<32x16xf32>
    %c4_63 = arith.constant 4 : index
    %c0_64 = arith.constant 0 : index
    %c0_65 = arith.constant 0 : index
    %92 = vector.load %arg8[%c4_63, %c0_64, %c0_65] : memref<9x16x16xbf16, #tpu.memory_space<vmem>>, vector<1x16x16xbf16>
    %93 = vector.shape_cast %92 : vector<1x16x16xbf16> to vector<16x16xbf16>
    %cst_66 = arith.constant dense<0.000000e+00> : vector<32x16xf32>
    %94 = tpu.matmul %60, %93, %cst_66 {dimension_numbers = #tpu.dot_dimension_numbers<[1], [0], [0], [1], [0, 0, 1, 1], [], []>} : vector<32x16xbf16>, vector<16x16xbf16>, vector<32x16xf32> -> vector<32x16xf32>
    %95 = arith.truncf %94 : vector<32x16xf32> to vector<32x16xbf16>
    %c0_67 = arith.constant 0 : index
    %c4_68 = arith.constant 4 : index
    %c0_69 = arith.constant 0 : index
    %c0_70 = arith.constant 0 : index
    %96 = vector.load %arg4[%c0_67, %c4_68, %c0_69, %c0_70] : memref<6x9x32x32xbf16, #tpu.memory_space<vmem>>, vector<1x1x32x32xbf16>
    %97 = vector.shape_cast %96 : vector<1x1x32x32xbf16> to vector<32x32xbf16>
    %cst_71 = arith.constant dense<0.000000e+00> : vector<32x16xf32>
    %98 = tpu.matmul %97, %95, %cst_71 {dimension_numbers = #tpu.dot_dimension_numbers<[1], [0], [0], [1], [0, 0, 1, 1], [], []>} : vector<32x32xbf16>, vector<32x16xbf16>, vector<32x16xf32> -> vector<32x16xf32>
    %99 = arith.addf %91, %98 : vector<32x16xf32>
    %c5_72 = arith.constant 5 : index
    %c0_73 = arith.constant 0 : index
    %c0_74 = arith.constant 0 : index
    %100 = vector.load %arg8[%c5_72, %c0_73, %c0_74] : memref<9x16x16xbf16, #tpu.memory_space<vmem>>, vector<1x16x16xbf16>
    %101 = vector.shape_cast %100 : vector<1x16x16xbf16> to vector<16x16xbf16>
    %cst_75 = arith.constant dense<0.000000e+00> : vector<32x16xf32>
    %102 = tpu.matmul %60, %101, %cst_75 {dimension_numbers = #tpu.dot_dimension_numbers<[1], [0], [0], [1], [0, 0, 1, 1], [], []>} : vector<32x16xbf16>, vector<16x16xbf16>, vector<32x16xf32> -> vector<32x16xf32>
    %103 = arith.truncf %102 : vector<32x16xf32> to vector<32x16xbf16>
    %c0_76 = arith.constant 0 : index
    %c5_77 = arith.constant 5 : index
    %c0_78 = arith.constant 0 : index
    %c0_79 = arith.constant 0 : index
    %104 = vector.load %arg4[%c0_76, %c5_77, %c0_78, %c0_79] : memref<6x9x32x32xbf16, #tpu.memory_space<vmem>>, vector<1x1x32x32xbf16>
    %105 = vector.shape_cast %104 : vector<1x1x32x32xbf16> to vector<32x32xbf16>
    %cst_80 = arith.constant dense<0.000000e+00> : vector<32x16xf32>
    %106 = tpu.matmul %105, %103, %cst_80 {dimension_numbers = #tpu.dot_dimension_numbers<[1], [0], [0], [1], [0, 0, 1, 1], [], []>} : vector<32x32xbf16>, vector<32x16xbf16>, vector<32x16xf32> -> vector<32x16xf32>
    %107 = arith.addf %99, %106 : vector<32x16xf32>
    %c6_81 = arith.constant 6 : index
    %c0_82 = arith.constant 0 : index
    %c0_83 = arith.constant 0 : index
    %108 = vector.load %arg8[%c6_81, %c0_82, %c0_83] : memref<9x16x16xbf16, #tpu.memory_space<vmem>>, vector<1x16x16xbf16>
    %109 = vector.shape_cast %108 : vector<1x16x16xbf16> to vector<16x16xbf16>
    %cst_84 = arith.constant dense<0.000000e+00> : vector<32x16xf32>
    %110 = tpu.matmul %60, %109, %cst_84 {dimension_numbers = #tpu.dot_dimension_numbers<[1], [0], [0], [1], [0, 0, 1, 1], [], []>} : vector<32x16xbf16>, vector<16x16xbf16>, vector<32x16xf32> -> vector<32x16xf32>
    %111 = arith.truncf %110 : vector<32x16xf32> to vector<32x16xbf16>
    %c0_85 = arith.constant 0 : index
    %c6_86 = arith.constant 6 : index
    %c0_87 = arith.constant 0 : index
    %c0_88 = arith.constant 0 : index
    %112 = vector.load %arg4[%c0_85, %c6_86, %c0_87, %c0_88] : memref<6x9x32x32xbf16, #tpu.memory_space<vmem>>, vector<1x1x32x32xbf16>
    %113 = vector.shape_cast %112 : vector<1x1x32x32xbf16> to vector<32x32xbf16>
    %cst_89 = arith.constant dense<0.000000e+00> : vector<32x16xf32>
    %114 = tpu.matmul %113, %111, %cst_89 {dimension_numbers = #tpu.dot_dimension_numbers<[1], [0], [0], [1], [0, 0, 1, 1], [], []>} : vector<32x32xbf16>, vector<32x16xbf16>, vector<32x16xf32> -> vector<32x16xf32>
    %115 = arith.addf %107, %114 : vector<32x16xf32>
    %c7_90 = arith.constant 7 : index
    %c0_91 = arith.constant 0 : index
    %c0_92 = arith.constant 0 : index
    %116 = vector.load %arg8[%c7_90, %c0_91, %c0_92] : memref<9x16x16xbf16, #tpu.memory_space<vmem>>, vector<1x16x16xbf16>
    %117 = vector.shape_cast %116 : vector<1x16x16xbf16> to vector<16x16xbf16>
    %cst_93 = arith.constant dense<0.000000e+00> : vector<32x16xf32>
    %118 = tpu.matmul %60, %117, %cst_93 {dimension_numbers = #tpu.dot_dimension_numbers<[1], [0], [0], [1], [0, 0, 1, 1], [], []>} : vector<32x16xbf16>, vector<16x16xbf16>, vector<32x16xf32> -> vector<32x16xf32>
    %119 = arith.truncf %118 : vector<32x16xf32> to vector<32x16xbf16>
    %c0_94 = arith.constant 0 : index
    %c7_95 = arith.constant 7 : index
    %c0_96 = arith.constant 0 : index
    %c0_97 = arith.constant 0 : index
    %120 = vector.load %arg4[%c0_94, %c7_95, %c0_96, %c0_97] : memref<6x9x32x32xbf16, #tpu.memory_space<vmem>>, vector<1x1x32x32xbf16>
    %121 = vector.shape_cast %120 : vector<1x1x32x32xbf16> to vector<32x32xbf16>
    %cst_98 = arith.constant dense<0.000000e+00> : vector<32x16xf32>
    %122 = tpu.matmul %121, %119, %cst_98 {dimension_numbers = #tpu.dot_dimension_numbers<[1], [0], [0], [1], [0, 0, 1, 1], [], []>} : vector<32x32xbf16>, vector<32x16xbf16>, vector<32x16xf32> -> vector<32x16xf32>
    %123 = arith.addf %115, %122 : vector<32x16xf32>
    %c8 = arith.constant 8 : index
    %c0_99 = arith.constant 0 : index
    %c0_100 = arith.constant 0 : index
    %124 = vector.load %arg8[%c8, %c0_99, %c0_100] : memref<9x16x16xbf16, #tpu.memory_space<vmem>>, vector<1x16x16xbf16>
    %125 = vector.shape_cast %124 : vector<1x16x16xbf16> to vector<16x16xbf16>
    %cst_101 = arith.constant dense<0.000000e+00> : vector<32x16xf32>
    %126 = tpu.matmul %60, %125, %cst_101 {dimension_numbers = #tpu.dot_dimension_numbers<[1], [0], [0], [1], [0, 0, 1, 1], [], []>} : vector<32x16xbf16>, vector<16x16xbf16>, vector<32x16xf32> -> vector<32x16xf32>
    %127 = arith.truncf %126 : vector<32x16xf32> to vector<32x16xbf16>
    %c0_102 = arith.constant 0 : index
    %c8_103 = arith.constant 8 : index
    %c0_104 = arith.constant 0 : index
    %c0_105 = arith.constant 0 : index
    %128 = vector.load %arg4[%c0_102, %c8_103, %c0_104, %c0_105] : memref<6x9x32x32xbf16, #tpu.memory_space<vmem>>, vector<1x1x32x32xbf16>
    %129 = vector.shape_cast %128 : vector<1x1x32x32xbf16> to vector<32x32xbf16>
    %cst_106 = arith.constant dense<0.000000e+00> : vector<32x16xf32>
    %130 = tpu.matmul %129, %127, %cst_106 {dimension_numbers = #tpu.dot_dimension_numbers<[1], [0], [0], [1], [0, 0, 1, 1], [], []>} : vector<32x32xbf16>, vector<32x16xbf16>, vector<32x16xf32> -> vector<32x16xf32>
    %131 = arith.addf %123, %130 : vector<32x16xf32>
    %132 = vector.broadcast %59 : vector<32x1xf32> to vector<32x16xf32>
    %133 = arith.addf %131, %132 : vector<32x16xf32>
    %cst_107 = arith.constant 0.000000e+00 : f32
    %134 = vector.broadcast %cst_107 : f32 to vector<32x16xf32>
    %135 = arith.cmpf ogt, %133, %134 : vector<32x16xf32>
    %cst_108 = arith.constant 0.000000e+00 : f32
    %136 = vector.broadcast %cst_108 : f32 to vector<32x16xf32>
    %137 = arith.minimumf %133, %136 : vector<32x16xf32>
    %138 = math.exp %137 : vector<32x16xf32>
    %cst_109 = arith.constant 1.000000e+00 : f32
    %139 = vector.broadcast %cst_109 : f32 to vector<32x16xf32>
    %140 = arith.subf %138, %139 : vector<32x16xf32>
    %141 = arith.select %135, %133, %140 : vector<32x16xi1>, vector<32x16xf32>
    %c0_110 = arith.constant 0 : index
    %c1_111 = arith.constant 1 : index
    %142 = vector.load %arg5[%c0_110, %c1_111] : memref<32x6xf32, #tpu.memory_space<vmem>>, vector<32x1xf32>
    %143 = arith.truncf %141 : vector<32x16xf32> to vector<32x16xbf16>
    %c0_112 = arith.constant 0 : index
    %c0_113 = arith.constant 0 : index
    %c0_114 = arith.constant 0 : index
    %144 = vector.load %arg8[%c0_112, %c0_113, %c0_114] : memref<9x16x16xbf16, #tpu.memory_space<vmem>>, vector<1x16x16xbf16>
    %145 = vector.shape_cast %144 : vector<1x16x16xbf16> to vector<16x16xbf16>
    %cst_115 = arith.constant dense<0.000000e+00> : vector<32x16xf32>
    %146 = tpu.matmul %143, %145, %cst_115 {dimension_numbers = #tpu.dot_dimension_numbers<[1], [0], [0], [1], [0, 0, 1, 1], [], []>} : vector<32x16xbf16>, vector<16x16xbf16>, vector<32x16xf32> -> vector<32x16xf32>
    %147 = arith.truncf %146 : vector<32x16xf32> to vector<32x16xbf16>
    %c1_116 = arith.constant 1 : index
    %c0_117 = arith.constant 0 : index
    %c0_118 = arith.constant 0 : index
    %c0_119 = arith.constant 0 : index
    %148 = vector.load %arg4[%c1_116, %c0_117, %c0_118, %c0_119] : memref<6x9x32x32xbf16, #tpu.memory_space<vmem>>, vector<1x1x32x32xbf16>
    %149 = vector.shape_cast %148 : vector<1x1x32x32xbf16> to vector<32x32xbf16>
    %cst_120 = arith.constant dense<0.000000e+00> : vector<32x16xf32>
    %150 = tpu.matmul %149, %147, %cst_120 {dimension_numbers = #tpu.dot_dimension_numbers<[1], [0], [0], [1], [0, 0, 1, 1], [], []>} : vector<32x32xbf16>, vector<32x16xbf16>, vector<32x16xf32> -> vector<32x16xf32>
    %c1_121 = arith.constant 1 : index
    %c0_122 = arith.constant 0 : index
    %c0_123 = arith.constant 0 : index
    %151 = vector.load %arg8[%c1_121, %c0_122, %c0_123] : memref<9x16x16xbf16, #tpu.memory_space<vmem>>, vector<1x16x16xbf16>
    %152 = vector.shape_cast %151 : vector<1x16x16xbf16> to vector<16x16xbf16>
    %cst_124 = arith.constant dense<0.000000e+00> : vector<32x16xf32>
    %153 = tpu.matmul %143, %152, %cst_124 {dimension_numbers = #tpu.dot_dimension_numbers<[1], [0], [0], [1], [0, 0, 1, 1], [], []>} : vector<32x16xbf16>, vector<16x16xbf16>, vector<32x16xf32> -> vector<32x16xf32>
    %154 = arith.truncf %153 : vector<32x16xf32> to vector<32x16xbf16>
    %c1_125 = arith.constant 1 : index
    %c1_126 = arith.constant 1 : index
    %c0_127 = arith.constant 0 : index
    %c0_128 = arith.constant 0 : index
    %155 = vector.load %arg4[%c1_125, %c1_126, %c0_127, %c0_128] : memref<6x9x32x32xbf16, #tpu.memory_space<vmem>>, vector<1x1x32x32xbf16>
    %156 = vector.shape_cast %155 : vector<1x1x32x32xbf16> to vector<32x32xbf16>
    %cst_129 = arith.constant dense<0.000000e+00> : vector<32x16xf32>
    %157 = tpu.matmul %156, %154, %cst_129 {dimension_numbers = #tpu.dot_dimension_numbers<[1], [0], [0], [1], [0, 0, 1, 1], [], []>} : vector<32x32xbf16>, vector<32x16xbf16>, vector<32x16xf32> -> vector<32x16xf32>
    %158 = arith.addf %150, %157 : vector<32x16xf32>
    %c2_130 = arith.constant 2 : index
    %c0_131 = arith.constant 0 : index
    %c0_132 = arith.constant 0 : index
    %159 = vector.load %arg8[%c2_130, %c0_131, %c0_132] : memref<9x16x16xbf16, #tpu.memory_space<vmem>>, vector<1x16x16xbf16>
    %160 = vector.shape_cast %159 : vector<1x16x16xbf16> to vector<16x16xbf16>
    %cst_133 = arith.constant dense<0.000000e+00> : vector<32x16xf32>
    %161 = tpu.matmul %143, %160, %cst_133 {dimension_numbers = #tpu.dot_dimension_numbers<[1], [0], [0], [1], [0, 0, 1, 1], [], []>} : vector<32x16xbf16>, vector<16x16xbf16>, vector<32x16xf32> -> vector<32x16xf32>
    %162 = arith.truncf %161 : vector<32x16xf32> to vector<32x16xbf16>
    %c1_134 = arith.constant 1 : index
    %c2_135 = arith.constant 2 : index
    %c0_136 = arith.constant 0 : index
    %c0_137 = arith.constant 0 : index
    %163 = vector.load %arg4[%c1_134, %c2_135, %c0_136, %c0_137] : memref<6x9x32x32xbf16, #tpu.memory_space<vmem>>, vector<1x1x32x32xbf16>
    %164 = vector.shape_cast %163 : vector<1x1x32x32xbf16> to vector<32x32xbf16>
    %cst_138 = arith.constant dense<0.000000e+00> : vector<32x16xf32>
    %165 = tpu.matmul %164, %162, %cst_138 {dimension_numbers = #tpu.dot_dimension_numbers<[1], [0], [0], [1], [0, 0, 1, 1], [], []>} : vector<32x32xbf16>, vector<32x16xbf16>, vector<32x16xf32> -> vector<32x16xf32>
    %166 = arith.addf %158, %165 : vector<32x16xf32>
    %c3_139 = arith.constant 3 : index
    %c0_140 = arith.constant 0 : index
    %c0_141 = arith.constant 0 : index
    %167 = vector.load %arg8[%c3_139, %c0_140, %c0_141] : memref<9x16x16xbf16, #tpu.memory_space<vmem>>, vector<1x16x16xbf16>
    %168 = vector.shape_cast %167 : vector<1x16x16xbf16> to vector<16x16xbf16>
    %cst_142 = arith.constant dense<0.000000e+00> : vector<32x16xf32>
    %169 = tpu.matmul %143, %168, %cst_142 {dimension_numbers = #tpu.dot_dimension_numbers<[1], [0], [0], [1], [0, 0, 1, 1], [], []>} : vector<32x16xbf16>, vector<16x16xbf16>, vector<32x16xf32> -> vector<32x16xf32>
    %170 = arith.truncf %169 : vector<32x16xf32> to vector<32x16xbf16>
    %c1_143 = arith.constant 1 : index
    %c3_144 = arith.constant 3 : index
    %c0_145 = arith.constant 0 : index
    %c0_146 = arith.constant 0 : index
    %171 = vector.load %arg4[%c1_143, %c3_144, %c0_145, %c0_146] : memref<6x9x32x32xbf16, #tpu.memory_space<vmem>>, vector<1x1x32x32xbf16>
    %172 = vector.shape_cast %171 : vector<1x1x32x32xbf16> to vector<32x32xbf16>
    %cst_147 = arith.constant dense<0.000000e+00> : vector<32x16xf32>
    %173 = tpu.matmul %172, %170, %cst_147 {dimension_numbers = #tpu.dot_dimension_numbers<[1], [0], [0], [1], [0, 0, 1, 1], [], []>} : vector<32x32xbf16>, vector<32x16xbf16>, vector<32x16xf32> -> vector<32x16xf32>
    %174 = arith.addf %166, %173 : vector<32x16xf32>
    %c4_148 = arith.constant 4 : index
    %c0_149 = arith.constant 0 : index
    %c0_150 = arith.constant 0 : index
    %175 = vector.load %arg8[%c4_148, %c0_149, %c0_150] : memref<9x16x16xbf16, #tpu.memory_space<vmem>>, vector<1x16x16xbf16>
    %176 = vector.shape_cast %175 : vector<1x16x16xbf16> to vector<16x16xbf16>
    %cst_151 = arith.constant dense<0.000000e+00> : vector<32x16xf32>
    %177 = tpu.matmul %143, %176, %cst_151 {dimension_numbers = #tpu.dot_dimension_numbers<[1], [0], [0], [1], [0, 0, 1, 1], [], []>} : vector<32x16xbf16>, vector<16x16xbf16>, vector<32x16xf32> -> vector<32x16xf32>
    %178 = arith.truncf %177 : vector<32x16xf32> to vector<32x16xbf16>
    %c1_152 = arith.constant 1 : index
    %c4_153 = arith.constant 4 : index
    %c0_154 = arith.constant 0 : index
    %c0_155 = arith.constant 0 : index
    %179 = vector.load %arg4[%c1_152, %c4_153, %c0_154, %c0_155] : memref<6x9x32x32xbf16, #tpu.memory_space<vmem>>, vector<1x1x32x32xbf16>
    %180 = vector.shape_cast %179 : vector<1x1x32x32xbf16> to vector<32x32xbf16>
    %cst_156 = arith.constant dense<0.000000e+00> : vector<32x16xf32>
    %181 = tpu.matmul %180, %178, %cst_156 {dimension_numbers = #tpu.dot_dimension_numbers<[1], [0], [0], [1], [0, 0, 1, 1], [], []>} : vector<32x32xbf16>, vector<32x16xbf16>, vector<32x16xf32> -> vector<32x16xf32>
    %182 = arith.addf %174, %181 : vector<32x16xf32>
    %c5_157 = arith.constant 5 : index
    %c0_158 = arith.constant 0 : index
    %c0_159 = arith.constant 0 : index
    %183 = vector.load %arg8[%c5_157, %c0_158, %c0_159] : memref<9x16x16xbf16, #tpu.memory_space<vmem>>, vector<1x16x16xbf16>
    %184 = vector.shape_cast %183 : vector<1x16x16xbf16> to vector<16x16xbf16>
    %cst_160 = arith.constant dense<0.000000e+00> : vector<32x16xf32>
    %185 = tpu.matmul %143, %184, %cst_160 {dimension_numbers = #tpu.dot_dimension_numbers<[1], [0], [0], [1], [0, 0, 1, 1], [], []>} : vector<32x16xbf16>, vector<16x16xbf16>, vector<32x16xf32> -> vector<32x16xf32>
    %186 = arith.truncf %185 : vector<32x16xf32> to vector<32x16xbf16>
    %c1_161 = arith.constant 1 : index
    %c5_162 = arith.constant 5 : index
    %c0_163 = arith.constant 0 : index
    %c0_164 = arith.constant 0 : index
    %187 = vector.load %arg4[%c1_161, %c5_162, %c0_163, %c0_164] : memref<6x9x32x32xbf16, #tpu.memory_space<vmem>>, vector<1x1x32x32xbf16>
    %188 = vector.shape_cast %187 : vector<1x1x32x32xbf16> to vector<32x32xbf16>
    %cst_165 = arith.constant dense<0.000000e+00> : vector<32x16xf32>
    %189 = tpu.matmul %188, %186, %cst_165 {dimension_numbers = #tpu.dot_dimension_numbers<[1], [0], [0], [1], [0, 0, 1, 1], [], []>} : vector<32x32xbf16>, vector<32x16xbf16>, vector<32x16xf32> -> vector<32x16xf32>
    %190 = arith.addf %182, %189 : vector<32x16xf32>
    %c6_166 = arith.constant 6 : index
    %c0_167 = arith.constant 0 : index
    %c0_168 = arith.constant 0 : index
    %191 = vector.load %arg8[%c6_166, %c0_167, %c0_168] : memref<9x16x16xbf16, #tpu.memory_space<vmem>>, vector<1x16x16xbf16>
    %192 = vector.shape_cast %191 : vector<1x16x16xbf16> to vector<16x16xbf16>
    %cst_169 = arith.constant dense<0.000000e+00> : vector<32x16xf32>
    %193 = tpu.matmul %143, %192, %cst_169 {dimension_numbers = #tpu.dot_dimension_numbers<[1], [0], [0], [1], [0, 0, 1, 1], [], []>} : vector<32x16xbf16>, vector<16x16xbf16>, vector<32x16xf32> -> vector<32x16xf32>
    %194 = arith.truncf %193 : vector<32x16xf32> to vector<32x16xbf16>
    %c1_170 = arith.constant 1 : index
    %c6_171 = arith.constant 6 : index
    %c0_172 = arith.constant 0 : index
    %c0_173 = arith.constant 0 : index
    %195 = vector.load %arg4[%c1_170, %c6_171, %c0_172, %c0_173] : memref<6x9x32x32xbf16, #tpu.memory_space<vmem>>, vector<1x1x32x32xbf16>
    %196 = vector.shape_cast %195 : vector<1x1x32x32xbf16> to vector<32x32xbf16>
    %cst_174 = arith.constant dense<0.000000e+00> : vector<32x16xf32>
    %197 = tpu.matmul %196, %194, %cst_174 {dimension_numbers = #tpu.dot_dimension_numbers<[1], [0], [0], [1], [0, 0, 1, 1], [], []>} : vector<32x32xbf16>, vector<32x16xbf16>, vector<32x16xf32> -> vector<32x16xf32>
    %198 = arith.addf %190, %197 : vector<32x16xf32>
    %c7_175 = arith.constant 7 : index
    %c0_176 = arith.constant 0 : index
    %c0_177 = arith.constant 0 : index
    %199 = vector.load %arg8[%c7_175, %c0_176, %c0_177] : memref<9x16x16xbf16, #tpu.memory_space<vmem>>, vector<1x16x16xbf16>
    %200 = vector.shape_cast %199 : vector<1x16x16xbf16> to vector<16x16xbf16>
    %cst_178 = arith.constant dense<0.000000e+00> : vector<32x16xf32>
    %201 = tpu.matmul %143, %200, %cst_178 {dimension_numbers = #tpu.dot_dimension_numbers<[1], [0], [0], [1], [0, 0, 1, 1], [], []>} : vector<32x16xbf16>, vector<16x16xbf16>, vector<32x16xf32> -> vector<32x16xf32>
    %202 = arith.truncf %201 : vector<32x16xf32> to vector<32x16xbf16>
    %c1_179 = arith.constant 1 : index
    %c7_180 = arith.constant 7 : index
    %c0_181 = arith.constant 0 : index
    %c0_182 = arith.constant 0 : index
    %203 = vector.load %arg4[%c1_179, %c7_180, %c0_181, %c0_182] : memref<6x9x32x32xbf16, #tpu.memory_space<vmem>>, vector<1x1x32x32xbf16>
    %204 = vector.shape_cast %203 : vector<1x1x32x32xbf16> to vector<32x32xbf16>
    %cst_183 = arith.constant dense<0.000000e+00> : vector<32x16xf32>
    %205 = tpu.matmul %204, %202, %cst_183 {dimension_numbers = #tpu.dot_dimension_numbers<[1], [0], [0], [1], [0, 0, 1, 1], [], []>} : vector<32x32xbf16>, vector<32x16xbf16>, vector<32x16xf32> -> vector<32x16xf32>
    %206 = arith.addf %198, %205 : vector<32x16xf32>
    %c8_184 = arith.constant 8 : index
    %c0_185 = arith.constant 0 : index
    %c0_186 = arith.constant 0 : index
    %207 = vector.load %arg8[%c8_184, %c0_185, %c0_186] : memref<9x16x16xbf16, #tpu.memory_space<vmem>>, vector<1x16x16xbf16>
    %208 = vector.shape_cast %207 : vector<1x16x16xbf16> to vector<16x16xbf16>
    %cst_187 = arith.constant dense<0.000000e+00> : vector<32x16xf32>
    %209 = tpu.matmul %143, %208, %cst_187 {dimension_numbers = #tpu.dot_dimension_numbers<[1], [0], [0], [1], [0, 0, 1, 1], [], []>} : vector<32x16xbf16>, vector<16x16xbf16>, vector<32x16xf32> -> vector<32x16xf32>
    %210 = arith.truncf %209 : vector<32x16xf32> to vector<32x16xbf16>
    %c1_188 = arith.constant 1 : index
    %c8_189 = arith.constant 8 : index
    %c0_190 = arith.constant 0 : index
    %c0_191 = arith.constant 0 : index
    %211 = vector.load %arg4[%c1_188, %c8_189, %c0_190, %c0_191] : memref<6x9x32x32xbf16, #tpu.memory_space<vmem>>, vector<1x1x32x32xbf16>
    %212 = vector.shape_cast %211 : vector<1x1x32x32xbf16> to vector<32x32xbf16>
    %cst_192 = arith.constant dense<0.000000e+00> : vector<32x16xf32>
    %213 = tpu.matmul %212, %210, %cst_192 {dimension_numbers = #tpu.dot_dimension_numbers<[1], [0], [0], [1], [0, 0, 1, 1], [], []>} : vector<32x32xbf16>, vector<32x16xbf16>, vector<32x16xf32> -> vector<32x16xf32>
    %214 = arith.addf %206, %213 : vector<32x16xf32>
    %215 = vector.broadcast %142 : vector<32x1xf32> to vector<32x16xf32>
    %216 = arith.addf %214, %215 : vector<32x16xf32>
    %cst_193 = arith.constant 0.000000e+00 : f32
    %217 = vector.broadcast %cst_193 : f32 to vector<32x16xf32>
    %218 = arith.cmpf ogt, %216, %217 : vector<32x16xf32>
    %cst_194 = arith.constant 0.000000e+00 : f32
    %219 = vector.broadcast %cst_194 : f32 to vector<32x16xf32>
    %220 = arith.minimumf %216, %219 : vector<32x16xf32>
    %221 = math.exp %220 : vector<32x16xf32>
    %cst_195 = arith.constant 1.000000e+00 : f32
    %222 = vector.broadcast %cst_195 : f32 to vector<32x16xf32>
    %223 = arith.subf %221, %222 : vector<32x16xf32>
    %224 = arith.select %218, %216, %223 : vector<32x16xi1>, vector<32x16xf32>
    %c0_196 = arith.constant 0 : index
    %c2_197 = arith.constant 2 : index
    %225 = vector.load %arg5[%c0_196, %c2_197] : memref<32x6xf32, #tpu.memory_space<vmem>>, vector<32x1xf32>
    %226 = arith.truncf %224 : vector<32x16xf32> to vector<32x16xbf16>
    %c0_198 = arith.constant 0 : index
    %c0_199 = arith.constant 0 : index
    %c0_200 = arith.constant 0 : index
    %227 = vector.load %arg9[%c0_198, %c0_199, %c0_200] : memref<9x16x64xbf16, #tpu.memory_space<vmem>>, vector<1x16x64xbf16>
    %228 = vector.shape_cast %227 : vector<1x16x64xbf16> to vector<16x64xbf16>
    %cst_201 = arith.constant dense<0.000000e+00> : vector<32x64xf32>
    %229 = tpu.matmul %226, %228, %cst_201 {dimension_numbers = #tpu.dot_dimension_numbers<[1], [0], [0], [1], [0, 0, 1, 1], [], []>} : vector<32x16xbf16>, vector<16x64xbf16>, vector<32x64xf32> -> vector<32x64xf32>
    %230 = arith.truncf %229 : vector<32x64xf32> to vector<32x64xbf16>
    %c2_202 = arith.constant 2 : index
    %c0_203 = arith.constant 0 : index
    %c0_204 = arith.constant 0 : index
    %c0_205 = arith.constant 0 : index
    %231 = vector.load %arg4[%c2_202, %c0_203, %c0_204, %c0_205] : memref<6x9x32x32xbf16, #tpu.memory_space<vmem>>, vector<1x1x32x32xbf16>
    %232 = vector.shape_cast %231 : vector<1x1x32x32xbf16> to vector<32x32xbf16>
    %cst_206 = arith.constant dense<0.000000e+00> : vector<32x64xf32>
    %233 = tpu.matmul %232, %230, %cst_206 {dimension_numbers = #tpu.dot_dimension_numbers<[1], [0], [0], [1], [0, 0, 1, 1], [], []>} : vector<32x32xbf16>, vector<32x64xbf16>, vector<32x64xf32> -> vector<32x64xf32>
    %c1_207 = arith.constant 1 : index
    %c0_208 = arith.constant 0 : index
    %c0_209 = arith.constant 0 : index
    %234 = vector.load %arg9[%c1_207, %c0_208, %c0_209] : memref<9x16x64xbf16, #tpu.memory_space<vmem>>, vector<1x16x64xbf16>
    %235 = vector.shape_cast %234 : vector<1x16x64xbf16> to vector<16x64xbf16>
    %cst_210 = arith.constant dense<0.000000e+00> : vector<32x64xf32>
    %236 = tpu.matmul %226, %235, %cst_210 {dimension_numbers = #tpu.dot_dimension_numbers<[1], [0], [0], [1], [0, 0, 1, 1], [], []>} : vector<32x16xbf16>, vector<16x64xbf16>, vector<32x64xf32> -> vector<32x64xf32>
    %237 = arith.truncf %236 : vector<32x64xf32> to vector<32x64xbf16>
    %c2_211 = arith.constant 2 : index
    %c1_212 = arith.constant 1 : index
    %c0_213 = arith.constant 0 : index
    %c0_214 = arith.constant 0 : index
    %238 = vector.load %arg4[%c2_211, %c1_212, %c0_213, %c0_214] : memref<6x9x32x32xbf16, #tpu.memory_space<vmem>>, vector<1x1x32x32xbf16>
    %239 = vector.shape_cast %238 : vector<1x1x32x32xbf16> to vector<32x32xbf16>
    %cst_215 = arith.constant dense<0.000000e+00> : vector<32x64xf32>
    %240 = tpu.matmul %239, %237, %cst_215 {dimension_numbers = #tpu.dot_dimension_numbers<[1], [0], [0], [1], [0, 0, 1, 1], [], []>} : vector<32x32xbf16>, vector<32x64xbf16>, vector<32x64xf32> -> vector<32x64xf32>
    %241 = arith.addf %233, %240 : vector<32x64xf32>
    %c2_216 = arith.constant 2 : index
    %c0_217 = arith.constant 0 : index
    %c0_218 = arith.constant 0 : index
    %242 = vector.load %arg9[%c2_216, %c0_217, %c0_218] : memref<9x16x64xbf16, #tpu.memory_space<vmem>>, vector<1x16x64xbf16>
    %243 = vector.shape_cast %242 : vector<1x16x64xbf16> to vector<16x64xbf16>
    %cst_219 = arith.constant dense<0.000000e+00> : vector<32x64xf32>
    %244 = tpu.matmul %226, %243, %cst_219 {dimension_numbers = #tpu.dot_dimension_numbers<[1], [0], [0], [1], [0, 0, 1, 1], [], []>} : vector<32x16xbf16>, vector<16x64xbf16>, vector<32x64xf32> -> vector<32x64xf32>
    %245 = arith.truncf %244 : vector<32x64xf32> to vector<32x64xbf16>
    %c2_220 = arith.constant 2 : index
    %c2_221 = arith.constant 2 : index
    %c0_222 = arith.constant 0 : index
    %c0_223 = arith.constant 0 : index
    %246 = vector.load %arg4[%c2_220, %c2_221, %c0_222, %c0_223] : memref<6x9x32x32xbf16, #tpu.memory_space<vmem>>, vector<1x1x32x32xbf16>
    %247 = vector.shape_cast %246 : vector<1x1x32x32xbf16> to vector<32x32xbf16>
    %cst_224 = arith.constant dense<0.000000e+00> : vector<32x64xf32>
    %248 = tpu.matmul %247, %245, %cst_224 {dimension_numbers = #tpu.dot_dimension_numbers<[1], [0], [0], [1], [0, 0, 1, 1], [], []>} : vector<32x32xbf16>, vector<32x64xbf16>, vector<32x64xf32> -> vector<32x64xf32>
    %249 = arith.addf %241, %248 : vector<32x64xf32>
    %c3_225 = arith.constant 3 : index
    %c0_226 = arith.constant 0 : index
    %c0_227 = arith.constant 0 : index
    %250 = vector.load %arg9[%c3_225, %c0_226, %c0_227] : memref<9x16x64xbf16, #tpu.memory_space<vmem>>, vector<1x16x64xbf16>
    %251 = vector.shape_cast %250 : vector<1x16x64xbf16> to vector<16x64xbf16>
    %cst_228 = arith.constant dense<0.000000e+00> : vector<32x64xf32>
    %252 = tpu.matmul %226, %251, %cst_228 {dimension_numbers = #tpu.dot_dimension_numbers<[1], [0], [0], [1], [0, 0, 1, 1], [], []>} : vector<32x16xbf16>, vector<16x64xbf16>, vector<32x64xf32> -> vector<32x64xf32>
    %253 = arith.truncf %252 : vector<32x64xf32> to vector<32x64xbf16>
    %c2_229 = arith.constant 2 : index
    %c3_230 = arith.constant 3 : index
    %c0_231 = arith.constant 0 : index
    %c0_232 = arith.constant 0 : index
    %254 = vector.load %arg4[%c2_229, %c3_230, %c0_231, %c0_232] : memref<6x9x32x32xbf16, #tpu.memory_space<vmem>>, vector<1x1x32x32xbf16>
    %255 = vector.shape_cast %254 : vector<1x1x32x32xbf16> to vector<32x32xbf16>
    %cst_233 = arith.constant dense<0.000000e+00> : vector<32x64xf32>
    %256 = tpu.matmul %255, %253, %cst_233 {dimension_numbers = #tpu.dot_dimension_numbers<[1], [0], [0], [1], [0, 0, 1, 1], [], []>} : vector<32x32xbf16>, vector<32x64xbf16>, vector<32x64xf32> -> vector<32x64xf32>
    %257 = arith.addf %249, %256 : vector<32x64xf32>
    %c4_234 = arith.constant 4 : index
    %c0_235 = arith.constant 0 : index
    %c0_236 = arith.constant 0 : index
    %258 = vector.load %arg9[%c4_234, %c0_235, %c0_236] : memref<9x16x64xbf16, #tpu.memory_space<vmem>>, vector<1x16x64xbf16>
    %259 = vector.shape_cast %258 : vector<1x16x64xbf16> to vector<16x64xbf16>
    %cst_237 = arith.constant dense<0.000000e+00> : vector<32x64xf32>
    %260 = tpu.matmul %226, %259, %cst_237 {dimension_numbers = #tpu.dot_dimension_numbers<[1], [0], [0], [1], [0, 0, 1, 1], [], []>} : vector<32x16xbf16>, vector<16x64xbf16>, vector<32x64xf32> -> vector<32x64xf32>
    %261 = arith.truncf %260 : vector<32x64xf32> to vector<32x64xbf16>
    %c2_238 = arith.constant 2 : index
    %c4_239 = arith.constant 4 : index
    %c0_240 = arith.constant 0 : index
    %c0_241 = arith.constant 0 : index
    %262 = vector.load %arg4[%c2_238, %c4_239, %c0_240, %c0_241] : memref<6x9x32x32xbf16, #tpu.memory_space<vmem>>, vector<1x1x32x32xbf16>
    %263 = vector.shape_cast %262 : vector<1x1x32x32xbf16> to vector<32x32xbf16>
    %cst_242 = arith.constant dense<0.000000e+00> : vector<32x64xf32>
    %264 = tpu.matmul %263, %261, %cst_242 {dimension_numbers = #tpu.dot_dimension_numbers<[1], [0], [0], [1], [0, 0, 1, 1], [], []>} : vector<32x32xbf16>, vector<32x64xbf16>, vector<32x64xf32> -> vector<32x64xf32>
    %265 = arith.addf %257, %264 : vector<32x64xf32>
    %c5_243 = arith.constant 5 : index
    %c0_244 = arith.constant 0 : index
    %c0_245 = arith.constant 0 : index
    %266 = vector.load %arg9[%c5_243, %c0_244, %c0_245] : memref<9x16x64xbf16, #tpu.memory_space<vmem>>, vector<1x16x64xbf16>
    %267 = vector.shape_cast %266 : vector<1x16x64xbf16> to vector<16x64xbf16>
    %cst_246 = arith.constant dense<0.000000e+00> : vector<32x64xf32>
    %268 = tpu.matmul %226, %267, %cst_246 {dimension_numbers = #tpu.dot_dimension_numbers<[1], [0], [0], [1], [0, 0, 1, 1], [], []>} : vector<32x16xbf16>, vector<16x64xbf16>, vector<32x64xf32> -> vector<32x64xf32>
    %269 = arith.truncf %268 : vector<32x64xf32> to vector<32x64xbf16>
    %c2_247 = arith.constant 2 : index
    %c5_248 = arith.constant 5 : index
    %c0_249 = arith.constant 0 : index
    %c0_250 = arith.constant 0 : index
    %270 = vector.load %arg4[%c2_247, %c5_248, %c0_249, %c0_250] : memref<6x9x32x32xbf16, #tpu.memory_space<vmem>>, vector<1x1x32x32xbf16>
    %271 = vector.shape_cast %270 : vector<1x1x32x32xbf16> to vector<32x32xbf16>
    %cst_251 = arith.constant dense<0.000000e+00> : vector<32x64xf32>
    %272 = tpu.matmul %271, %269, %cst_251 {dimension_numbers = #tpu.dot_dimension_numbers<[1], [0], [0], [1], [0, 0, 1, 1], [], []>} : vector<32x32xbf16>, vector<32x64xbf16>, vector<32x64xf32> -> vector<32x64xf32>
    %273 = arith.addf %265, %272 : vector<32x64xf32>
    %c6_252 = arith.constant 6 : index
    %c0_253 = arith.constant 0 : index
    %c0_254 = arith.constant 0 : index
    %274 = vector.load %arg9[%c6_252, %c0_253, %c0_254] : memref<9x16x64xbf16, #tpu.memory_space<vmem>>, vector<1x16x64xbf16>
    %275 = vector.shape_cast %274 : vector<1x16x64xbf16> to vector<16x64xbf16>
    %cst_255 = arith.constant dense<0.000000e+00> : vector<32x64xf32>
    %276 = tpu.matmul %226, %275, %cst_255 {dimension_numbers = #tpu.dot_dimension_numbers<[1], [0], [0], [1], [0, 0, 1, 1], [], []>} : vector<32x16xbf16>, vector<16x64xbf16>, vector<32x64xf32> -> vector<32x64xf32>
    %277 = arith.truncf %276 : vector<32x64xf32> to vector<32x64xbf16>
    %c2_256 = arith.constant 2 : index
    %c6_257 = arith.constant 6 : index
    %c0_258 = arith.constant 0 : index
    %c0_259 = arith.constant 0 : index
    %278 = vector.load %arg4[%c2_256, %c6_257, %c0_258, %c0_259] : memref<6x9x32x32xbf16, #tpu.memory_space<vmem>>, vector<1x1x32x32xbf16>
    %279 = vector.shape_cast %278 : vector<1x1x32x32xbf16> to vector<32x32xbf16>
    %cst_260 = arith.constant dense<0.000000e+00> : vector<32x64xf32>
    %280 = tpu.matmul %279, %277, %cst_260 {dimension_numbers = #tpu.dot_dimension_numbers<[1], [0], [0], [1], [0, 0, 1, 1], [], []>} : vector<32x32xbf16>, vector<32x64xbf16>, vector<32x64xf32> -> vector<32x64xf32>
    %281 = arith.addf %273, %280 : vector<32x64xf32>
    %c7_261 = arith.constant 7 : index
    %c0_262 = arith.constant 0 : index
    %c0_263 = arith.constant 0 : index
    %282 = vector.load %arg9[%c7_261, %c0_262, %c0_263] : memref<9x16x64xbf16, #tpu.memory_space<vmem>>, vector<1x16x64xbf16>
    %283 = vector.shape_cast %282 : vector<1x16x64xbf16> to vector<16x64xbf16>
    %cst_264 = arith.constant dense<0.000000e+00> : vector<32x64xf32>
    %284 = tpu.matmul %226, %283, %cst_264 {dimension_numbers = #tpu.dot_dimension_numbers<[1], [0], [0], [1], [0, 0, 1, 1], [], []>} : vector<32x16xbf16>, vector<16x64xbf16>, vector<32x64xf32> -> vector<32x64xf32>
    %285 = arith.truncf %284 : vector<32x64xf32> to vector<32x64xbf16>
    %c2_265 = arith.constant 2 : index
    %c7_266 = arith.constant 7 : index
    %c0_267 = arith.constant 0 : index
    %c0_268 = arith.constant 0 : index
    %286 = vector.load %arg4[%c2_265, %c7_266, %c0_267, %c0_268] : memref<6x9x32x32xbf16, #tpu.memory_space<vmem>>, vector<1x1x32x32xbf16>
    %287 = vector.shape_cast %286 : vector<1x1x32x32xbf16> to vector<32x32xbf16>
    %cst_269 = arith.constant dense<0.000000e+00> : vector<32x64xf32>
    %288 = tpu.matmul %287, %285, %cst_269 {dimension_numbers = #tpu.dot_dimension_numbers<[1], [0], [0], [1], [0, 0, 1, 1], [], []>} : vector<32x32xbf16>, vector<32x64xbf16>, vector<32x64xf32> -> vector<32x64xf32>
    %289 = arith.addf %281, %288 : vector<32x64xf32>
    %c8_270 = arith.constant 8 : index
    %c0_271 = arith.constant 0 : index
    %c0_272 = arith.constant 0 : index
    %290 = vector.load %arg9[%c8_270, %c0_271, %c0_272] : memref<9x16x64xbf16, #tpu.memory_space<vmem>>, vector<1x16x64xbf16>
    %291 = vector.shape_cast %290 : vector<1x16x64xbf16> to vector<16x64xbf16>
    %cst_273 = arith.constant dense<0.000000e+00> : vector<32x64xf32>
    %292 = tpu.matmul %226, %291, %cst_273 {dimension_numbers = #tpu.dot_dimension_numbers<[1], [0], [0], [1], [0, 0, 1, 1], [], []>} : vector<32x16xbf16>, vector<16x64xbf16>, vector<32x64xf32> -> vector<32x64xf32>
    %293 = arith.truncf %292 : vector<32x64xf32> to vector<32x64xbf16>
    %c2_274 = arith.constant 2 : index
    %c8_275 = arith.constant 8 : index
    %c0_276 = arith.constant 0 : index
    %c0_277 = arith.constant 0 : index
    %294 = vector.load %arg4[%c2_274, %c8_275, %c0_276, %c0_277] : memref<6x9x32x32xbf16, #tpu.memory_space<vmem>>, vector<1x1x32x32xbf16>
    %295 = vector.shape_cast %294 : vector<1x1x32x32xbf16> to vector<32x32xbf16>
    %cst_278 = arith.constant dense<0.000000e+00> : vector<32x64xf32>
    %296 = tpu.matmul %295, %293, %cst_278 {dimension_numbers = #tpu.dot_dimension_numbers<[1], [0], [0], [1], [0, 0, 1, 1], [], []>} : vector<32x32xbf16>, vector<32x64xbf16>, vector<32x64xf32> -> vector<32x64xf32>
    %297 = arith.addf %289, %296 : vector<32x64xf32>
    %298 = vector.broadcast %225 : vector<32x1xf32> to vector<32x64xf32>
    %299 = arith.addf %297, %298 : vector<32x64xf32>
    %cst_279 = arith.constant 0.000000e+00 : f32
    %300 = vector.broadcast %cst_279 : f32 to vector<32x64xf32>
    %301 = arith.cmpf ogt, %299, %300 : vector<32x64xf32>
    %cst_280 = arith.constant 0.000000e+00 : f32
    %302 = vector.broadcast %cst_280 : f32 to vector<32x64xf32>
    %303 = arith.minimumf %299, %302 : vector<32x64xf32>
    %304 = math.exp %303 : vector<32x64xf32>
    %cst_281 = arith.constant 1.000000e+00 : f32
    %305 = vector.broadcast %cst_281 : f32 to vector<32x64xf32>
    %306 = arith.subf %304, %305 : vector<32x64xf32>
    %307 = arith.select %301, %299, %306 : vector<32x64xi1>, vector<32x64xf32>
    %c0_282 = arith.constant 0 : index
    %c3_283 = arith.constant 3 : index
    %308 = vector.load %arg5[%c0_282, %c3_283] : memref<32x6xf32, #tpu.memory_space<vmem>>, vector<32x1xf32>
    %309 = arith.truncf %307 : vector<32x64xf32> to vector<32x64xbf16>
    %c0_284 = arith.constant 0 : index
    %c0_285 = arith.constant 0 : index
    %c0_286 = arith.constant 0 : index
    %310 = vector.load %arg10[%c0_284, %c0_285, %c0_286] : memref<9x64x64xbf16, #tpu.memory_space<vmem>>, vector<1x64x64xbf16>
    %311 = vector.shape_cast %310 : vector<1x64x64xbf16> to vector<64x64xbf16>
    %cst_287 = arith.constant dense<0.000000e+00> : vector<32x64xf32>
    %312 = tpu.matmul %309, %311, %cst_287 {dimension_numbers = #tpu.dot_dimension_numbers<[1], [0], [0], [1], [0, 0, 1, 1], [], []>} : vector<32x64xbf16>, vector<64x64xbf16>, vector<32x64xf32> -> vector<32x64xf32>
    %313 = arith.truncf %312 : vector<32x64xf32> to vector<32x64xbf16>
    %c3_288 = arith.constant 3 : index
    %c0_289 = arith.constant 0 : index
    %c0_290 = arith.constant 0 : index
    %c0_291 = arith.constant 0 : index
    %314 = vector.load %arg4[%c3_288, %c0_289, %c0_290, %c0_291] : memref<6x9x32x32xbf16, #tpu.memory_space<vmem>>, vector<1x1x32x32xbf16>
    %315 = vector.shape_cast %314 : vector<1x1x32x32xbf16> to vector<32x32xbf16>
    %cst_292 = arith.constant dense<0.000000e+00> : vector<32x64xf32>
    %316 = tpu.matmul %315, %313, %cst_292 {dimension_numbers = #tpu.dot_dimension_numbers<[1], [0], [0], [1], [0, 0, 1, 1], [], []>} : vector<32x32xbf16>, vector<32x64xbf16>, vector<32x64xf32> -> vector<32x64xf32>
    %c1_293 = arith.constant 1 : index
    %c0_294 = arith.constant 0 : index
    %c0_295 = arith.constant 0 : index
    %317 = vector.load %arg10[%c1_293, %c0_294, %c0_295] : memref<9x64x64xbf16, #tpu.memory_space<vmem>>, vector<1x64x64xbf16>
    %318 = vector.shape_cast %317 : vector<1x64x64xbf16> to vector<64x64xbf16>
    %cst_296 = arith.constant dense<0.000000e+00> : vector<32x64xf32>
    %319 = tpu.matmul %309, %318, %cst_296 {dimension_numbers = #tpu.dot_dimension_numbers<[1], [0], [0], [1], [0, 0, 1, 1], [], []>} : vector<32x64xbf16>, vector<64x64xbf16>, vector<32x64xf32> -> vector<32x64xf32>
    %320 = arith.truncf %319 : vector<32x64xf32> to vector<32x64xbf16>
    %c3_297 = arith.constant 3 : index
    %c1_298 = arith.constant 1 : index
    %c0_299 = arith.constant 0 : index
    %c0_300 = arith.constant 0 : index
    %321 = vector.load %arg4[%c3_297, %c1_298, %c0_299, %c0_300] : memref<6x9x32x32xbf16, #tpu.memory_space<vmem>>, vector<1x1x32x32xbf16>
    %322 = vector.shape_cast %321 : vector<1x1x32x32xbf16> to vector<32x32xbf16>
    %cst_301 = arith.constant dense<0.000000e+00> : vector<32x64xf32>
    %323 = tpu.matmul %322, %320, %cst_301 {dimension_numbers = #tpu.dot_dimension_numbers<[1], [0], [0], [1], [0, 0, 1, 1], [], []>} : vector<32x32xbf16>, vector<32x64xbf16>, vector<32x64xf32> -> vector<32x64xf32>
    %324 = arith.addf %316, %323 : vector<32x64xf32>
    %c2_302 = arith.constant 2 : index
    %c0_303 = arith.constant 0 : index
    %c0_304 = arith.constant 0 : index
    %325 = vector.load %arg10[%c2_302, %c0_303, %c0_304] : memref<9x64x64xbf16, #tpu.memory_space<vmem>>, vector<1x64x64xbf16>
    %326 = vector.shape_cast %325 : vector<1x64x64xbf16> to vector<64x64xbf16>
    %cst_305 = arith.constant dense<0.000000e+00> : vector<32x64xf32>
    %327 = tpu.matmul %309, %326, %cst_305 {dimension_numbers = #tpu.dot_dimension_numbers<[1], [0], [0], [1], [0, 0, 1, 1], [], []>} : vector<32x64xbf16>, vector<64x64xbf16>, vector<32x64xf32> -> vector<32x64xf32>
    %328 = arith.truncf %327 : vector<32x64xf32> to vector<32x64xbf16>
    %c3_306 = arith.constant 3 : index
    %c2_307 = arith.constant 2 : index
    %c0_308 = arith.constant 0 : index
    %c0_309 = arith.constant 0 : index
    %329 = vector.load %arg4[%c3_306, %c2_307, %c0_308, %c0_309] : memref<6x9x32x32xbf16, #tpu.memory_space<vmem>>, vector<1x1x32x32xbf16>
    %330 = vector.shape_cast %329 : vector<1x1x32x32xbf16> to vector<32x32xbf16>
    %cst_310 = arith.constant dense<0.000000e+00> : vector<32x64xf32>
    %331 = tpu.matmul %330, %328, %cst_310 {dimension_numbers = #tpu.dot_dimension_numbers<[1], [0], [0], [1], [0, 0, 1, 1], [], []>} : vector<32x32xbf16>, vector<32x64xbf16>, vector<32x64xf32> -> vector<32x64xf32>
    %332 = arith.addf %324, %331 : vector<32x64xf32>
    %c3_311 = arith.constant 3 : index
    %c0_312 = arith.constant 0 : index
    %c0_313 = arith.constant 0 : index
    %333 = vector.load %arg10[%c3_311, %c0_312, %c0_313] : memref<9x64x64xbf16, #tpu.memory_space<vmem>>, vector<1x64x64xbf16>
    %334 = vector.shape_cast %333 : vector<1x64x64xbf16> to vector<64x64xbf16>
    %cst_314 = arith.constant dense<0.000000e+00> : vector<32x64xf32>
    %335 = tpu.matmul %309, %334, %cst_314 {dimension_numbers = #tpu.dot_dimension_numbers<[1], [0], [0], [1], [0, 0, 1, 1], [], []>} : vector<32x64xbf16>, vector<64x64xbf16>, vector<32x64xf32> -> vector<32x64xf32>
    %336 = arith.truncf %335 : vector<32x64xf32> to vector<32x64xbf16>
    %c3_315 = arith.constant 3 : index
    %c3_316 = arith.constant 3 : index
    %c0_317 = arith.constant 0 : index
    %c0_318 = arith.constant 0 : index
    %337 = vector.load %arg4[%c3_315, %c3_316, %c0_317, %c0_318] : memref<6x9x32x32xbf16, #tpu.memory_space<vmem>>, vector<1x1x32x32xbf16>
    %338 = vector.shape_cast %337 : vector<1x1x32x32xbf16> to vector<32x32xbf16>
    %cst_319 = arith.constant dense<0.000000e+00> : vector<32x64xf32>
    %339 = tpu.matmul %338, %336, %cst_319 {dimension_numbers = #tpu.dot_dimension_numbers<[1], [0], [0], [1], [0, 0, 1, 1], [], []>} : vector<32x32xbf16>, vector<32x64xbf16>, vector<32x64xf32> -> vector<32x64xf32>
    %340 = arith.addf %332, %339 : vector<32x64xf32>
    %c4_320 = arith.constant 4 : index
    %c0_321 = arith.constant 0 : index
    %c0_322 = arith.constant 0 : index
    %341 = vector.load %arg10[%c4_320, %c0_321, %c0_322] : memref<9x64x64xbf16, #tpu.memory_space<vmem>>, vector<1x64x64xbf16>
    %342 = vector.shape_cast %341 : vector<1x64x64xbf16> to vector<64x64xbf16>
    %cst_323 = arith.constant dense<0.000000e+00> : vector<32x64xf32>
    %343 = tpu.matmul %309, %342, %cst_323 {dimension_numbers = #tpu.dot_dimension_numbers<[1], [0], [0], [1], [0, 0, 1, 1], [], []>} : vector<32x64xbf16>, vector<64x64xbf16>, vector<32x64xf32> -> vector<32x64xf32>
    %344 = arith.truncf %343 : vector<32x64xf32> to vector<32x64xbf16>
    %c3_324 = arith.constant 3 : index
    %c4_325 = arith.constant 4 : index
    %c0_326 = arith.constant 0 : index
    %c0_327 = arith.constant 0 : index
    %345 = vector.load %arg4[%c3_324, %c4_325, %c0_326, %c0_327] : memref<6x9x32x32xbf16, #tpu.memory_space<vmem>>, vector<1x1x32x32xbf16>
    %346 = vector.shape_cast %345 : vector<1x1x32x32xbf16> to vector<32x32xbf16>
    %cst_328 = arith.constant dense<0.000000e+00> : vector<32x64xf32>
    %347 = tpu.matmul %346, %344, %cst_328 {dimension_numbers = #tpu.dot_dimension_numbers<[1], [0], [0], [1], [0, 0, 1, 1], [], []>} : vector<32x32xbf16>, vector<32x64xbf16>, vector<32x64xf32> -> vector<32x64xf32>
    %348 = arith.addf %340, %347 : vector<32x64xf32>
    %c5_329 = arith.constant 5 : index
    %c0_330 = arith.constant 0 : index
    %c0_331 = arith.constant 0 : index
    %349 = vector.load %arg10[%c5_329, %c0_330, %c0_331] : memref<9x64x64xbf16, #tpu.memory_space<vmem>>, vector<1x64x64xbf16>
    %350 = vector.shape_cast %349 : vector<1x64x64xbf16> to vector<64x64xbf16>
    %cst_332 = arith.constant dense<0.000000e+00> : vector<32x64xf32>
    %351 = tpu.matmul %309, %350, %cst_332 {dimension_numbers = #tpu.dot_dimension_numbers<[1], [0], [0], [1], [0, 0, 1, 1], [], []>} : vector<32x64xbf16>, vector<64x64xbf16>, vector<32x64xf32> -> vector<32x64xf32>
    %352 = arith.truncf %351 : vector<32x64xf32> to vector<32x64xbf16>
    %c3_333 = arith.constant 3 : index
    %c5_334 = arith.constant 5 : index
    %c0_335 = arith.constant 0 : index
    %c0_336 = arith.constant 0 : index
    %353 = vector.load %arg4[%c3_333, %c5_334, %c0_335, %c0_336] : memref<6x9x32x32xbf16, #tpu.memory_space<vmem>>, vector<1x1x32x32xbf16>
    %354 = vector.shape_cast %353 : vector<1x1x32x32xbf16> to vector<32x32xbf16>
    %cst_337 = arith.constant dense<0.000000e+00> : vector<32x64xf32>
    %355 = tpu.matmul %354, %352, %cst_337 {dimension_numbers = #tpu.dot_dimension_numbers<[1], [0], [0], [1], [0, 0, 1, 1], [], []>} : vector<32x32xbf16>, vector<32x64xbf16>, vector<32x64xf32> -> vector<32x64xf32>
    %356 = arith.addf %348, %355 : vector<32x64xf32>
    %c6_338 = arith.constant 6 : index
    %c0_339 = arith.constant 0 : index
    %c0_340 = arith.constant 0 : index
    %357 = vector.load %arg10[%c6_338, %c0_339, %c0_340] : memref<9x64x64xbf16, #tpu.memory_space<vmem>>, vector<1x64x64xbf16>
    %358 = vector.shape_cast %357 : vector<1x64x64xbf16> to vector<64x64xbf16>
    %cst_341 = arith.constant dense<0.000000e+00> : vector<32x64xf32>
    %359 = tpu.matmul %309, %358, %cst_341 {dimension_numbers = #tpu.dot_dimension_numbers<[1], [0], [0], [1], [0, 0, 1, 1], [], []>} : vector<32x64xbf16>, vector<64x64xbf16>, vector<32x64xf32> -> vector<32x64xf32>
    %360 = arith.truncf %359 : vector<32x64xf32> to vector<32x64xbf16>
    %c3_342 = arith.constant 3 : index
    %c6_343 = arith.constant 6 : index
    %c0_344 = arith.constant 0 : index
    %c0_345 = arith.constant 0 : index
    %361 = vector.load %arg4[%c3_342, %c6_343, %c0_344, %c0_345] : memref<6x9x32x32xbf16, #tpu.memory_space<vmem>>, vector<1x1x32x32xbf16>
    %362 = vector.shape_cast %361 : vector<1x1x32x32xbf16> to vector<32x32xbf16>
    %cst_346 = arith.constant dense<0.000000e+00> : vector<32x64xf32>
    %363 = tpu.matmul %362, %360, %cst_346 {dimension_numbers = #tpu.dot_dimension_numbers<[1], [0], [0], [1], [0, 0, 1, 1], [], []>} : vector<32x32xbf16>, vector<32x64xbf16>, vector<32x64xf32> -> vector<32x64xf32>
    %364 = arith.addf %356, %363 : vector<32x64xf32>
    %c7_347 = arith.constant 7 : index
    %c0_348 = arith.constant 0 : index
    %c0_349 = arith.constant 0 : index
    %365 = vector.load %arg10[%c7_347, %c0_348, %c0_349] : memref<9x64x64xbf16, #tpu.memory_space<vmem>>, vector<1x64x64xbf16>
    %366 = vector.shape_cast %365 : vector<1x64x64xbf16> to vector<64x64xbf16>
    %cst_350 = arith.constant dense<0.000000e+00> : vector<32x64xf32>
    %367 = tpu.matmul %309, %366, %cst_350 {dimension_numbers = #tpu.dot_dimension_numbers<[1], [0], [0], [1], [0, 0, 1, 1], [], []>} : vector<32x64xbf16>, vector<64x64xbf16>, vector<32x64xf32> -> vector<32x64xf32>
    %368 = arith.truncf %367 : vector<32x64xf32> to vector<32x64xbf16>
    %c3_351 = arith.constant 3 : index
    %c7_352 = arith.constant 7 : index
    %c0_353 = arith.constant 0 : index
    %c0_354 = arith.constant 0 : index
    %369 = vector.load %arg4[%c3_351, %c7_352, %c0_353, %c0_354] : memref<6x9x32x32xbf16, #tpu.memory_space<vmem>>, vector<1x1x32x32xbf16>
    %370 = vector.shape_cast %369 : vector<1x1x32x32xbf16> to vector<32x32xbf16>
    %cst_355 = arith.constant dense<0.000000e+00> : vector<32x64xf32>
    %371 = tpu.matmul %370, %368, %cst_355 {dimension_numbers = #tpu.dot_dimension_numbers<[1], [0], [0], [1], [0, 0, 1, 1], [], []>} : vector<32x32xbf16>, vector<32x64xbf16>, vector<32x64xf32> -> vector<32x64xf32>
    %372 = arith.addf %364, %371 : vector<32x64xf32>
    %c8_356 = arith.constant 8 : index
    %c0_357 = arith.constant 0 : index
    %c0_358 = arith.constant 0 : index
    %373 = vector.load %arg10[%c8_356, %c0_357, %c0_358] : memref<9x64x64xbf16, #tpu.memory_space<vmem>>, vector<1x64x64xbf16>
    %374 = vector.shape_cast %373 : vector<1x64x64xbf16> to vector<64x64xbf16>
    %cst_359 = arith.constant dense<0.000000e+00> : vector<32x64xf32>
    %375 = tpu.matmul %309, %374, %cst_359 {dimension_numbers = #tpu.dot_dimension_numbers<[1], [0], [0], [1], [0, 0, 1, 1], [], []>} : vector<32x64xbf16>, vector<64x64xbf16>, vector<32x64xf32> -> vector<32x64xf32>
    %376 = arith.truncf %375 : vector<32x64xf32> to vector<32x64xbf16>
    %c3_360 = arith.constant 3 : index
    %c8_361 = arith.constant 8 : index
    %c0_362 = arith.constant 0 : index
    %c0_363 = arith.constant 0 : index
    %377 = vector.load %arg4[%c3_360, %c8_361, %c0_362, %c0_363] : memref<6x9x32x32xbf16, #tpu.memory_space<vmem>>, vector<1x1x32x32xbf16>
    %378 = vector.shape_cast %377 : vector<1x1x32x32xbf16> to vector<32x32xbf16>
    %cst_364 = arith.constant dense<0.000000e+00> : vector<32x64xf32>
    %379 = tpu.matmul %378, %376, %cst_364 {dimension_numbers = #tpu.dot_dimension_numbers<[1], [0], [0], [1], [0, 0, 1, 1], [], []>} : vector<32x32xbf16>, vector<32x64xbf16>, vector<32x64xf32> -> vector<32x64xf32>
    %380 = arith.addf %372, %379 : vector<32x64xf32>
    %381 = vector.broadcast %308 : vector<32x1xf32> to vector<32x64xf32>
    %382 = arith.addf %380, %381 : vector<32x64xf32>
    %cst_365 = arith.constant 0.000000e+00 : f32
    %383 = vector.broadcast %cst_365 : f32 to vector<32x64xf32>
    %384 = arith.cmpf ogt, %382, %383 : vector<32x64xf32>
    %cst_366 = arith.constant 0.000000e+00 : f32
    %385 = vector.broadcast %cst_366 : f32 to vector<32x64xf32>
    %386 = arith.minimumf %382, %385 : vector<32x64xf32>
    %387 = math.exp %386 : vector<32x64xf32>
    %cst_367 = arith.constant 1.000000e+00 : f32
    %388 = vector.broadcast %cst_367 : f32 to vector<32x64xf32>
    %389 = arith.subf %387, %388 : vector<32x64xf32>
    %390 = arith.select %384, %382, %389 : vector<32x64xi1>, vector<32x64xf32>
    %c0_368 = arith.constant 0 : index
    %c4_369 = arith.constant 4 : index
    %391 = vector.load %arg5[%c0_368, %c4_369] : memref<32x6xf32, #tpu.memory_space<vmem>>, vector<32x1xf32>
    %392 = arith.truncf %390 : vector<32x64xf32> to vector<32x64xbf16>
    %c0_370 = arith.constant 0 : index
    %c0_371 = arith.constant 0 : index
    %c0_372 = arith.constant 0 : index
    %393 = vector.load %arg11[%c0_370, %c0_371, %c0_372] : memref<9x64x256xbf16, #tpu.memory_space<vmem>>, vector<1x64x256xbf16>
    %394 = vector.shape_cast %393 : vector<1x64x256xbf16> to vector<64x256xbf16>
    %cst_373 = arith.constant dense<0.000000e+00> : vector<32x256xf32>
    %395 = tpu.matmul %392, %394, %cst_373 {dimension_numbers = #tpu.dot_dimension_numbers<[1], [0], [0], [1], [0, 0, 1, 1], [], []>} : vector<32x64xbf16>, vector<64x256xbf16>, vector<32x256xf32> -> vector<32x256xf32>
    %396 = arith.truncf %395 : vector<32x256xf32> to vector<32x256xbf16>
    %c4_374 = arith.constant 4 : index
    %c0_375 = arith.constant 0 : index
    %c0_376 = arith.constant 0 : index
    %c0_377 = arith.constant 0 : index
    %397 = vector.load %arg4[%c4_374, %c0_375, %c0_376, %c0_377] : memref<6x9x32x32xbf16, #tpu.memory_space<vmem>>, vector<1x1x32x32xbf16>
    %398 = vector.shape_cast %397 : vector<1x1x32x32xbf16> to vector<32x32xbf16>
    %cst_378 = arith.constant dense<0.000000e+00> : vector<32x256xf32>
    %399 = tpu.matmul %398, %396, %cst_378 {dimension_numbers = #tpu.dot_dimension_numbers<[1], [0], [0], [1], [0, 0, 1, 1], [], []>} : vector<32x32xbf16>, vector<32x256xbf16>, vector<32x256xf32> -> vector<32x256xf32>
    %c1_379 = arith.constant 1 : index
    %c0_380 = arith.constant 0 : index
    %c0_381 = arith.constant 0 : index
    %400 = vector.load %arg11[%c1_379, %c0_380, %c0_381] : memref<9x64x256xbf16, #tpu.memory_space<vmem>>, vector<1x64x256xbf16>
    %401 = vector.shape_cast %400 : vector<1x64x256xbf16> to vector<64x256xbf16>
    %cst_382 = arith.constant dense<0.000000e+00> : vector<32x256xf32>
    %402 = tpu.matmul %392, %401, %cst_382 {dimension_numbers = #tpu.dot_dimension_numbers<[1], [0], [0], [1], [0, 0, 1, 1], [], []>} : vector<32x64xbf16>, vector<64x256xbf16>, vector<32x256xf32> -> vector<32x256xf32>
    %403 = arith.truncf %402 : vector<32x256xf32> to vector<32x256xbf16>
    %c4_383 = arith.constant 4 : index
    %c1_384 = arith.constant 1 : index
    %c0_385 = arith.constant 0 : index
    %c0_386 = arith.constant 0 : index
    %404 = vector.load %arg4[%c4_383, %c1_384, %c0_385, %c0_386] : memref<6x9x32x32xbf16, #tpu.memory_space<vmem>>, vector<1x1x32x32xbf16>
    %405 = vector.shape_cast %404 : vector<1x1x32x32xbf16> to vector<32x32xbf16>
    %cst_387 = arith.constant dense<0.000000e+00> : vector<32x256xf32>
    %406 = tpu.matmul %405, %403, %cst_387 {dimension_numbers = #tpu.dot_dimension_numbers<[1], [0], [0], [1], [0, 0, 1, 1], [], []>} : vector<32x32xbf16>, vector<32x256xbf16>, vector<32x256xf32> -> vector<32x256xf32>
    %407 = arith.addf %399, %406 : vector<32x256xf32>
    %c2_388 = arith.constant 2 : index
    %c0_389 = arith.constant 0 : index
    %c0_390 = arith.constant 0 : index
    %408 = vector.load %arg11[%c2_388, %c0_389, %c0_390] : memref<9x64x256xbf16, #tpu.memory_space<vmem>>, vector<1x64x256xbf16>
    %409 = vector.shape_cast %408 : vector<1x64x256xbf16> to vector<64x256xbf16>
    %cst_391 = arith.constant dense<0.000000e+00> : vector<32x256xf32>
    %410 = tpu.matmul %392, %409, %cst_391 {dimension_numbers = #tpu.dot_dimension_numbers<[1], [0], [0], [1], [0, 0, 1, 1], [], []>} : vector<32x64xbf16>, vector<64x256xbf16>, vector<32x256xf32> -> vector<32x256xf32>
    %411 = arith.truncf %410 : vector<32x256xf32> to vector<32x256xbf16>
    %c4_392 = arith.constant 4 : index
    %c2_393 = arith.constant 2 : index
    %c0_394 = arith.constant 0 : index
    %c0_395 = arith.constant 0 : index
    %412 = vector.load %arg4[%c4_392, %c2_393, %c0_394, %c0_395] : memref<6x9x32x32xbf16, #tpu.memory_space<vmem>>, vector<1x1x32x32xbf16>
    %413 = vector.shape_cast %412 : vector<1x1x32x32xbf16> to vector<32x32xbf16>
    %cst_396 = arith.constant dense<0.000000e+00> : vector<32x256xf32>
    %414 = tpu.matmul %413, %411, %cst_396 {dimension_numbers = #tpu.dot_dimension_numbers<[1], [0], [0], [1], [0, 0, 1, 1], [], []>} : vector<32x32xbf16>, vector<32x256xbf16>, vector<32x256xf32> -> vector<32x256xf32>
    %415 = arith.addf %407, %414 : vector<32x256xf32>
    %c3_397 = arith.constant 3 : index
    %c0_398 = arith.constant 0 : index
    %c0_399 = arith.constant 0 : index
    %416 = vector.load %arg11[%c3_397, %c0_398, %c0_399] : memref<9x64x256xbf16, #tpu.memory_space<vmem>>, vector<1x64x256xbf16>
    %417 = vector.shape_cast %416 : vector<1x64x256xbf16> to vector<64x256xbf16>
    %cst_400 = arith.constant dense<0.000000e+00> : vector<32x256xf32>
    %418 = tpu.matmul %392, %417, %cst_400 {dimension_numbers = #tpu.dot_dimension_numbers<[1], [0], [0], [1], [0, 0, 1, 1], [], []>} : vector<32x64xbf16>, vector<64x256xbf16>, vector<32x256xf32> -> vector<32x256xf32>
    %419 = arith.truncf %418 : vector<32x256xf32> to vector<32x256xbf16>
    %c4_401 = arith.constant 4 : index
    %c3_402 = arith.constant 3 : index
    %c0_403 = arith.constant 0 : index
    %c0_404 = arith.constant 0 : index
    %420 = vector.load %arg4[%c4_401, %c3_402, %c0_403, %c0_404] : memref<6x9x32x32xbf16, #tpu.memory_space<vmem>>, vector<1x1x32x32xbf16>
    %421 = vector.shape_cast %420 : vector<1x1x32x32xbf16> to vector<32x32xbf16>
    %cst_405 = arith.constant dense<0.000000e+00> : vector<32x256xf32>
    %422 = tpu.matmul %421, %419, %cst_405 {dimension_numbers = #tpu.dot_dimension_numbers<[1], [0], [0], [1], [0, 0, 1, 1], [], []>} : vector<32x32xbf16>, vector<32x256xbf16>, vector<32x256xf32> -> vector<32x256xf32>
    %423 = arith.addf %415, %422 : vector<32x256xf32>
    %c4_406 = arith.constant 4 : index
    %c0_407 = arith.constant 0 : index
    %c0_408 = arith.constant 0 : index
    %424 = vector.load %arg11[%c4_406, %c0_407, %c0_408] : memref<9x64x256xbf16, #tpu.memory_space<vmem>>, vector<1x64x256xbf16>
    %425 = vector.shape_cast %424 : vector<1x64x256xbf16> to vector<64x256xbf16>
    %cst_409 = arith.constant dense<0.000000e+00> : vector<32x256xf32>
    %426 = tpu.matmul %392, %425, %cst_409 {dimension_numbers = #tpu.dot_dimension_numbers<[1], [0], [0], [1], [0, 0, 1, 1], [], []>} : vector<32x64xbf16>, vector<64x256xbf16>, vector<32x256xf32> -> vector<32x256xf32>
    %427 = arith.truncf %426 : vector<32x256xf32> to vector<32x256xbf16>
    %c4_410 = arith.constant 4 : index
    %c4_411 = arith.constant 4 : index
    %c0_412 = arith.constant 0 : index
    %c0_413 = arith.constant 0 : index
    %428 = vector.load %arg4[%c4_410, %c4_411, %c0_412, %c0_413] : memref<6x9x32x32xbf16, #tpu.memory_space<vmem>>, vector<1x1x32x32xbf16>
    %429 = vector.shape_cast %428 : vector<1x1x32x32xbf16> to vector<32x32xbf16>
    %cst_414 = arith.constant dense<0.000000e+00> : vector<32x256xf32>
    %430 = tpu.matmul %429, %427, %cst_414 {dimension_numbers = #tpu.dot_dimension_numbers<[1], [0], [0], [1], [0, 0, 1, 1], [], []>} : vector<32x32xbf16>, vector<32x256xbf16>, vector<32x256xf32> -> vector<32x256xf32>
    %431 = arith.addf %423, %430 : vector<32x256xf32>
    %c5_415 = arith.constant 5 : index
    %c0_416 = arith.constant 0 : index
    %c0_417 = arith.constant 0 : index
    %432 = vector.load %arg11[%c5_415, %c0_416, %c0_417] : memref<9x64x256xbf16, #tpu.memory_space<vmem>>, vector<1x64x256xbf16>
    %433 = vector.shape_cast %432 : vector<1x64x256xbf16> to vector<64x256xbf16>
    %cst_418 = arith.constant dense<0.000000e+00> : vector<32x256xf32>
    %434 = tpu.matmul %392, %433, %cst_418 {dimension_numbers = #tpu.dot_dimension_numbers<[1], [0], [0], [1], [0, 0, 1, 1], [], []>} : vector<32x64xbf16>, vector<64x256xbf16>, vector<32x256xf32> -> vector<32x256xf32>
    %435 = arith.truncf %434 : vector<32x256xf32> to vector<32x256xbf16>
    %c4_419 = arith.constant 4 : index
    %c5_420 = arith.constant 5 : index
    %c0_421 = arith.constant 0 : index
    %c0_422 = arith.constant 0 : index
    %436 = vector.load %arg4[%c4_419, %c5_420, %c0_421, %c0_422] : memref<6x9x32x32xbf16, #tpu.memory_space<vmem>>, vector<1x1x32x32xbf16>
    %437 = vector.shape_cast %436 : vector<1x1x32x32xbf16> to vector<32x32xbf16>
    %cst_423 = arith.constant dense<0.000000e+00> : vector<32x256xf32>
    %438 = tpu.matmul %437, %435, %cst_423 {dimension_numbers = #tpu.dot_dimension_numbers<[1], [0], [0], [1], [0, 0, 1, 1], [], []>} : vector<32x32xbf16>, vector<32x256xbf16>, vector<32x256xf32> -> vector<32x256xf32>
    %439 = arith.addf %431, %438 : vector<32x256xf32>
    %c6_424 = arith.constant 6 : index
    %c0_425 = arith.constant 0 : index
    %c0_426 = arith.constant 0 : index
    %440 = vector.load %arg11[%c6_424, %c0_425, %c0_426] : memref<9x64x256xbf16, #tpu.memory_space<vmem>>, vector<1x64x256xbf16>
    %441 = vector.shape_cast %440 : vector<1x64x256xbf16> to vector<64x256xbf16>
    %cst_427 = arith.constant dense<0.000000e+00> : vector<32x256xf32>
    %442 = tpu.matmul %392, %441, %cst_427 {dimension_numbers = #tpu.dot_dimension_numbers<[1], [0], [0], [1], [0, 0, 1, 1], [], []>} : vector<32x64xbf16>, vector<64x256xbf16>, vector<32x256xf32> -> vector<32x256xf32>
    %443 = arith.truncf %442 : vector<32x256xf32> to vector<32x256xbf16>
    %c4_428 = arith.constant 4 : index
    %c6_429 = arith.constant 6 : index
    %c0_430 = arith.constant 0 : index
    %c0_431 = arith.constant 0 : index
    %444 = vector.load %arg4[%c4_428, %c6_429, %c0_430, %c0_431] : memref<6x9x32x32xbf16, #tpu.memory_space<vmem>>, vector<1x1x32x32xbf16>
    %445 = vector.shape_cast %444 : vector<1x1x32x32xbf16> to vector<32x32xbf16>
    %cst_432 = arith.constant dense<0.000000e+00> : vector<32x256xf32>
    %446 = tpu.matmul %445, %443, %cst_432 {dimension_numbers = #tpu.dot_dimension_numbers<[1], [0], [0], [1], [0, 0, 1, 1], [], []>} : vector<32x32xbf16>, vector<32x256xbf16>, vector<32x256xf32> -> vector<32x256xf32>
    %447 = arith.addf %439, %446 : vector<32x256xf32>
    %c7_433 = arith.constant 7 : index
    %c0_434 = arith.constant 0 : index
    %c0_435 = arith.constant 0 : index
    %448 = vector.load %arg11[%c7_433, %c0_434, %c0_435] : memref<9x64x256xbf16, #tpu.memory_space<vmem>>, vector<1x64x256xbf16>
    %449 = vector.shape_cast %448 : vector<1x64x256xbf16> to vector<64x256xbf16>
    %cst_436 = arith.constant dense<0.000000e+00> : vector<32x256xf32>
    %450 = tpu.matmul %392, %449, %cst_436 {dimension_numbers = #tpu.dot_dimension_numbers<[1], [0], [0], [1], [0, 0, 1, 1], [], []>} : vector<32x64xbf16>, vector<64x256xbf16>, vector<32x256xf32> -> vector<32x256xf32>
    %451 = arith.truncf %450 : vector<32x256xf32> to vector<32x256xbf16>
    %c4_437 = arith.constant 4 : index
    %c7_438 = arith.constant 7 : index
    %c0_439 = arith.constant 0 : index
    %c0_440 = arith.constant 0 : index
    %452 = vector.load %arg4[%c4_437, %c7_438, %c0_439, %c0_440] : memref<6x9x32x32xbf16, #tpu.memory_space<vmem>>, vector<1x1x32x32xbf16>
    %453 = vector.shape_cast %452 : vector<1x1x32x32xbf16> to vector<32x32xbf16>
    %cst_441 = arith.constant dense<0.000000e+00> : vector<32x256xf32>
    %454 = tpu.matmul %453, %451, %cst_441 {dimension_numbers = #tpu.dot_dimension_numbers<[1], [0], [0], [1], [0, 0, 1, 1], [], []>} : vector<32x32xbf16>, vector<32x256xbf16>, vector<32x256xf32> -> vector<32x256xf32>
    %455 = arith.addf %447, %454 : vector<32x256xf32>
    %c8_442 = arith.constant 8 : index
    %c0_443 = arith.constant 0 : index
    %c0_444 = arith.constant 0 : index
    %456 = vector.load %arg11[%c8_442, %c0_443, %c0_444] : memref<9x64x256xbf16, #tpu.memory_space<vmem>>, vector<1x64x256xbf16>
    %457 = vector.shape_cast %456 : vector<1x64x256xbf16> to vector<64x256xbf16>
    %cst_445 = arith.constant dense<0.000000e+00> : vector<32x256xf32>
    %458 = tpu.matmul %392, %457, %cst_445 {dimension_numbers = #tpu.dot_dimension_numbers<[1], [0], [0], [1], [0, 0, 1, 1], [], []>} : vector<32x64xbf16>, vector<64x256xbf16>, vector<32x256xf32> -> vector<32x256xf32>
    %459 = arith.truncf %458 : vector<32x256xf32> to vector<32x256xbf16>
    %c4_446 = arith.constant 4 : index
    %c8_447 = arith.constant 8 : index
    %c0_448 = arith.constant 0 : index
    %c0_449 = arith.constant 0 : index
    %460 = vector.load %arg4[%c4_446, %c8_447, %c0_448, %c0_449] : memref<6x9x32x32xbf16, #tpu.memory_space<vmem>>, vector<1x1x32x32xbf16>
    %461 = vector.shape_cast %460 : vector<1x1x32x32xbf16> to vector<32x32xbf16>
    %cst_450 = arith.constant dense<0.000000e+00> : vector<32x256xf32>
    %462 = tpu.matmul %461, %459, %cst_450 {dimension_numbers = #tpu.dot_dimension_numbers<[1], [0], [0], [1], [0, 0, 1, 1], [], []>} : vector<32x32xbf16>, vector<32x256xbf16>, vector<32x256xf32> -> vector<32x256xf32>
    %463 = arith.addf %455, %462 : vector<32x256xf32>
    %464 = vector.broadcast %391 : vector<32x1xf32> to vector<32x256xf32>
    %465 = arith.addf %463, %464 : vector<32x256xf32>
    %cst_451 = arith.constant 0.000000e+00 : f32
    %466 = vector.broadcast %cst_451 : f32 to vector<32x256xf32>
    %467 = arith.cmpf ogt, %465, %466 : vector<32x256xf32>
    %cst_452 = arith.constant 0.000000e+00 : f32
    %468 = vector.broadcast %cst_452 : f32 to vector<32x256xf32>
    %469 = arith.minimumf %465, %468 : vector<32x256xf32>
    %470 = math.exp %469 : vector<32x256xf32>
    %cst_453 = arith.constant 1.000000e+00 : f32
    %471 = vector.broadcast %cst_453 : f32 to vector<32x256xf32>
    %472 = arith.subf %470, %471 : vector<32x256xf32>
    %473 = arith.select %467, %465, %472 : vector<32x256xi1>, vector<32x256xf32>
    %c0_454 = arith.constant 0 : index
    %c5_455 = arith.constant 5 : index
    %474 = vector.load %arg5[%c0_454, %c5_455] : memref<32x6xf32, #tpu.memory_space<vmem>>, vector<32x1xf32>
    %475 = arith.truncf %473 : vector<32x256xf32> to vector<32x256xbf16>
    %c0_456 = arith.constant 0 : index
    %c0_457 = arith.constant 0 : index
    %c0_458 = arith.constant 0 : index
    %476 = vector.load %arg12[%c0_456, %c0_457, %c0_458] : memref<9x256x256xbf16, #tpu.memory_space<vmem>>, vector<1x256x256xbf16>
    %477 = vector.shape_cast %476 : vector<1x256x256xbf16> to vector<256x256xbf16>
    %cst_459 = arith.constant dense<0.000000e+00> : vector<32x256xf32>
    %478 = tpu.matmul %475, %477, %cst_459 {dimension_numbers = #tpu.dot_dimension_numbers<[1], [0], [0], [1], [0, 0, 1, 1], [], []>} : vector<32x256xbf16>, vector<256x256xbf16>, vector<32x256xf32> -> vector<32x256xf32>
    %479 = arith.truncf %478 : vector<32x256xf32> to vector<32x256xbf16>
    %c5_460 = arith.constant 5 : index
    %c0_461 = arith.constant 0 : index
    %c0_462 = arith.constant 0 : index
    %c0_463 = arith.constant 0 : index
    %480 = vector.load %arg4[%c5_460, %c0_461, %c0_462, %c0_463] : memref<6x9x32x32xbf16, #tpu.memory_space<vmem>>, vector<1x1x32x32xbf16>
    %481 = vector.shape_cast %480 : vector<1x1x32x32xbf16> to vector<32x32xbf16>
    %cst_464 = arith.constant dense<0.000000e+00> : vector<32x256xf32>
    %482 = tpu.matmul %481, %479, %cst_464 {dimension_numbers = #tpu.dot_dimension_numbers<[1], [0], [0], [1], [0, 0, 1, 1], [], []>} : vector<32x32xbf16>, vector<32x256xbf16>, vector<32x256xf32> -> vector<32x256xf32>
    %c1_465 = arith.constant 1 : index
    %c0_466 = arith.constant 0 : index
    %c0_467 = arith.constant 0 : index
    %483 = vector.load %arg12[%c1_465, %c0_466, %c0_467] : memref<9x256x256xbf16, #tpu.memory_space<vmem>>, vector<1x256x256xbf16>
    %484 = vector.shape_cast %483 : vector<1x256x256xbf16> to vector<256x256xbf16>
    %cst_468 = arith.constant dense<0.000000e+00> : vector<32x256xf32>
    %485 = tpu.matmul %475, %484, %cst_468 {dimension_numbers = #tpu.dot_dimension_numbers<[1], [0], [0], [1], [0, 0, 1, 1], [], []>} : vector<32x256xbf16>, vector<256x256xbf16>, vector<32x256xf32> -> vector<32x256xf32>
    %486 = arith.truncf %485 : vector<32x256xf32> to vector<32x256xbf16>
    %c5_469 = arith.constant 5 : index
    %c1_470 = arith.constant 1 : index
    %c0_471 = arith.constant 0 : index
    %c0_472 = arith.constant 0 : index
    %487 = vector.load %arg4[%c5_469, %c1_470, %c0_471, %c0_472] : memref<6x9x32x32xbf16, #tpu.memory_space<vmem>>, vector<1x1x32x32xbf16>
    %488 = vector.shape_cast %487 : vector<1x1x32x32xbf16> to vector<32x32xbf16>
    %cst_473 = arith.constant dense<0.000000e+00> : vector<32x256xf32>
    %489 = tpu.matmul %488, %486, %cst_473 {dimension_numbers = #tpu.dot_dimension_numbers<[1], [0], [0], [1], [0, 0, 1, 1], [], []>} : vector<32x32xbf16>, vector<32x256xbf16>, vector<32x256xf32> -> vector<32x256xf32>
    %490 = arith.addf %482, %489 : vector<32x256xf32>
    %c2_474 = arith.constant 2 : index
    %c0_475 = arith.constant 0 : index
    %c0_476 = arith.constant 0 : index
    %491 = vector.load %arg12[%c2_474, %c0_475, %c0_476] : memref<9x256x256xbf16, #tpu.memory_space<vmem>>, vector<1x256x256xbf16>
    %492 = vector.shape_cast %491 : vector<1x256x256xbf16> to vector<256x256xbf16>
    %cst_477 = arith.constant dense<0.000000e+00> : vector<32x256xf32>
    %493 = tpu.matmul %475, %492, %cst_477 {dimension_numbers = #tpu.dot_dimension_numbers<[1], [0], [0], [1], [0, 0, 1, 1], [], []>} : vector<32x256xbf16>, vector<256x256xbf16>, vector<32x256xf32> -> vector<32x256xf32>
    %494 = arith.truncf %493 : vector<32x256xf32> to vector<32x256xbf16>
    %c5_478 = arith.constant 5 : index
    %c2_479 = arith.constant 2 : index
    %c0_480 = arith.constant 0 : index
    %c0_481 = arith.constant 0 : index
    %495 = vector.load %arg4[%c5_478, %c2_479, %c0_480, %c0_481] : memref<6x9x32x32xbf16, #tpu.memory_space<vmem>>, vector<1x1x32x32xbf16>
    %496 = vector.shape_cast %495 : vector<1x1x32x32xbf16> to vector<32x32xbf16>
    %cst_482 = arith.constant dense<0.000000e+00> : vector<32x256xf32>
    %497 = tpu.matmul %496, %494, %cst_482 {dimension_numbers = #tpu.dot_dimension_numbers<[1], [0], [0], [1], [0, 0, 1, 1], [], []>} : vector<32x32xbf16>, vector<32x256xbf16>, vector<32x256xf32> -> vector<32x256xf32>
    %498 = arith.addf %490, %497 : vector<32x256xf32>
    %c3_483 = arith.constant 3 : index
    %c0_484 = arith.constant 0 : index
    %c0_485 = arith.constant 0 : index
    %499 = vector.load %arg12[%c3_483, %c0_484, %c0_485] : memref<9x256x256xbf16, #tpu.memory_space<vmem>>, vector<1x256x256xbf16>
    %500 = vector.shape_cast %499 : vector<1x256x256xbf16> to vector<256x256xbf16>
    %cst_486 = arith.constant dense<0.000000e+00> : vector<32x256xf32>
    %501 = tpu.matmul %475, %500, %cst_486 {dimension_numbers = #tpu.dot_dimension_numbers<[1], [0], [0], [1], [0, 0, 1, 1], [], []>} : vector<32x256xbf16>, vector<256x256xbf16>, vector<32x256xf32> -> vector<32x256xf32>
    %502 = arith.truncf %501 : vector<32x256xf32> to vector<32x256xbf16>
    %c5_487 = arith.constant 5 : index
    %c3_488 = arith.constant 3 : index
    %c0_489 = arith.constant 0 : index
    %c0_490 = arith.constant 0 : index
    %503 = vector.load %arg4[%c5_487, %c3_488, %c0_489, %c0_490] : memref<6x9x32x32xbf16, #tpu.memory_space<vmem>>, vector<1x1x32x32xbf16>
    %504 = vector.shape_cast %503 : vector<1x1x32x32xbf16> to vector<32x32xbf16>
    %cst_491 = arith.constant dense<0.000000e+00> : vector<32x256xf32>
    %505 = tpu.matmul %504, %502, %cst_491 {dimension_numbers = #tpu.dot_dimension_numbers<[1], [0], [0], [1], [0, 0, 1, 1], [], []>} : vector<32x32xbf16>, vector<32x256xbf16>, vector<32x256xf32> -> vector<32x256xf32>
    %506 = arith.addf %498, %505 : vector<32x256xf32>
    %c4_492 = arith.constant 4 : index
    %c0_493 = arith.constant 0 : index
    %c0_494 = arith.constant 0 : index
    %507 = vector.load %arg12[%c4_492, %c0_493, %c0_494] : memref<9x256x256xbf16, #tpu.memory_space<vmem>>, vector<1x256x256xbf16>
    %508 = vector.shape_cast %507 : vector<1x256x256xbf16> to vector<256x256xbf16>
    %cst_495 = arith.constant dense<0.000000e+00> : vector<32x256xf32>
    %509 = tpu.matmul %475, %508, %cst_495 {dimension_numbers = #tpu.dot_dimension_numbers<[1], [0], [0], [1], [0, 0, 1, 1], [], []>} : vector<32x256xbf16>, vector<256x256xbf16>, vector<32x256xf32> -> vector<32x256xf32>
    %510 = arith.truncf %509 : vector<32x256xf32> to vector<32x256xbf16>
    %c5_496 = arith.constant 5 : index
    %c4_497 = arith.constant 4 : index
    %c0_498 = arith.constant 0 : index
    %c0_499 = arith.constant 0 : index
    %511 = vector.load %arg4[%c5_496, %c4_497, %c0_498, %c0_499] : memref<6x9x32x32xbf16, #tpu.memory_space<vmem>>, vector<1x1x32x32xbf16>
    %512 = vector.shape_cast %511 : vector<1x1x32x32xbf16> to vector<32x32xbf16>
    %cst_500 = arith.constant dense<0.000000e+00> : vector<32x256xf32>
    %513 = tpu.matmul %512, %510, %cst_500 {dimension_numbers = #tpu.dot_dimension_numbers<[1], [0], [0], [1], [0, 0, 1, 1], [], []>} : vector<32x32xbf16>, vector<32x256xbf16>, vector<32x256xf32> -> vector<32x256xf32>
    %514 = arith.addf %506, %513 : vector<32x256xf32>
    %c5_501 = arith.constant 5 : index
    %c0_502 = arith.constant 0 : index
    %c0_503 = arith.constant 0 : index
    %515 = vector.load %arg12[%c5_501, %c0_502, %c0_503] : memref<9x256x256xbf16, #tpu.memory_space<vmem>>, vector<1x256x256xbf16>
    %516 = vector.shape_cast %515 : vector<1x256x256xbf16> to vector<256x256xbf16>
    %cst_504 = arith.constant dense<0.000000e+00> : vector<32x256xf32>
    %517 = tpu.matmul %475, %516, %cst_504 {dimension_numbers = #tpu.dot_dimension_numbers<[1], [0], [0], [1], [0, 0, 1, 1], [], []>} : vector<32x256xbf16>, vector<256x256xbf16>, vector<32x256xf32> -> vector<32x256xf32>
    %518 = arith.truncf %517 : vector<32x256xf32> to vector<32x256xbf16>
    %c5_505 = arith.constant 5 : index
    %c5_506 = arith.constant 5 : index
    %c0_507 = arith.constant 0 : index
    %c0_508 = arith.constant 0 : index
    %519 = vector.load %arg4[%c5_505, %c5_506, %c0_507, %c0_508] : memref<6x9x32x32xbf16, #tpu.memory_space<vmem>>, vector<1x1x32x32xbf16>
    %520 = vector.shape_cast %519 : vector<1x1x32x32xbf16> to vector<32x32xbf16>
    %cst_509 = arith.constant dense<0.000000e+00> : vector<32x256xf32>
    %521 = tpu.matmul %520, %518, %cst_509 {dimension_numbers = #tpu.dot_dimension_numbers<[1], [0], [0], [1], [0, 0, 1, 1], [], []>} : vector<32x32xbf16>, vector<32x256xbf16>, vector<32x256xf32> -> vector<32x256xf32>
    %522 = arith.addf %514, %521 : vector<32x256xf32>
    %c6_510 = arith.constant 6 : index
    %c0_511 = arith.constant 0 : index
    %c0_512 = arith.constant 0 : index
    %523 = vector.load %arg12[%c6_510, %c0_511, %c0_512] : memref<9x256x256xbf16, #tpu.memory_space<vmem>>, vector<1x256x256xbf16>
    %524 = vector.shape_cast %523 : vector<1x256x256xbf16> to vector<256x256xbf16>
    %cst_513 = arith.constant dense<0.000000e+00> : vector<32x256xf32>
    %525 = tpu.matmul %475, %524, %cst_513 {dimension_numbers = #tpu.dot_dimension_numbers<[1], [0], [0], [1], [0, 0, 1, 1], [], []>} : vector<32x256xbf16>, vector<256x256xbf16>, vector<32x256xf32> -> vector<32x256xf32>
    %526 = arith.truncf %525 : vector<32x256xf32> to vector<32x256xbf16>
    %c5_514 = arith.constant 5 : index
    %c6_515 = arith.constant 6 : index
    %c0_516 = arith.constant 0 : index
    %c0_517 = arith.constant 0 : index
    %527 = vector.load %arg4[%c5_514, %c6_515, %c0_516, %c0_517] : memref<6x9x32x32xbf16, #tpu.memory_space<vmem>>, vector<1x1x32x32xbf16>
    %528 = vector.shape_cast %527 : vector<1x1x32x32xbf16> to vector<32x32xbf16>
    %cst_518 = arith.constant dense<0.000000e+00> : vector<32x256xf32>
    %529 = tpu.matmul %528, %526, %cst_518 {dimension_numbers = #tpu.dot_dimension_numbers<[1], [0], [0], [1], [0, 0, 1, 1], [], []>} : vector<32x32xbf16>, vector<32x256xbf16>, vector<32x256xf32> -> vector<32x256xf32>
    %530 = arith.addf %522, %529 : vector<32x256xf32>
    %c7_519 = arith.constant 7 : index
    %c0_520 = arith.constant 0 : index
    %c0_521 = arith.constant 0 : index
    %531 = vector.load %arg12[%c7_519, %c0_520, %c0_521] : memref<9x256x256xbf16, #tpu.memory_space<vmem>>, vector<1x256x256xbf16>
    %532 = vector.shape_cast %531 : vector<1x256x256xbf16> to vector<256x256xbf16>
    %cst_522 = arith.constant dense<0.000000e+00> : vector<32x256xf32>
    %533 = tpu.matmul %475, %532, %cst_522 {dimension_numbers = #tpu.dot_dimension_numbers<[1], [0], [0], [1], [0, 0, 1, 1], [], []>} : vector<32x256xbf16>, vector<256x256xbf16>, vector<32x256xf32> -> vector<32x256xf32>
    %534 = arith.truncf %533 : vector<32x256xf32> to vector<32x256xbf16>
    %c5_523 = arith.constant 5 : index
    %c7_524 = arith.constant 7 : index
    %c0_525 = arith.constant 0 : index
    %c0_526 = arith.constant 0 : index
    %535 = vector.load %arg4[%c5_523, %c7_524, %c0_525, %c0_526] : memref<6x9x32x32xbf16, #tpu.memory_space<vmem>>, vector<1x1x32x32xbf16>
    %536 = vector.shape_cast %535 : vector<1x1x32x32xbf16> to vector<32x32xbf16>
    %cst_527 = arith.constant dense<0.000000e+00> : vector<32x256xf32>
    %537 = tpu.matmul %536, %534, %cst_527 {dimension_numbers = #tpu.dot_dimension_numbers<[1], [0], [0], [1], [0, 0, 1, 1], [], []>} : vector<32x32xbf16>, vector<32x256xbf16>, vector<32x256xf32> -> vector<32x256xf32>
    %538 = arith.addf %530, %537 : vector<32x256xf32>
    %c8_528 = arith.constant 8 : index
    %c0_529 = arith.constant 0 : index
    %c0_530 = arith.constant 0 : index
    %539 = vector.load %arg12[%c8_528, %c0_529, %c0_530] : memref<9x256x256xbf16, #tpu.memory_space<vmem>>, vector<1x256x256xbf16>
    %540 = vector.shape_cast %539 : vector<1x256x256xbf16> to vector<256x256xbf16>
    %cst_531 = arith.constant dense<0.000000e+00> : vector<32x256xf32>
    %541 = tpu.matmul %475, %540, %cst_531 {dimension_numbers = #tpu.dot_dimension_numbers<[1], [0], [0], [1], [0, 0, 1, 1], [], []>} : vector<32x256xbf16>, vector<256x256xbf16>, vector<32x256xf32> -> vector<32x256xf32>
    %542 = arith.truncf %541 : vector<32x256xf32> to vector<32x256xbf16>
    %c5_532 = arith.constant 5 : index
    %c8_533 = arith.constant 8 : index
    %c0_534 = arith.constant 0 : index
    %c0_535 = arith.constant 0 : index
    %543 = vector.load %arg4[%c5_532, %c8_533, %c0_534, %c0_535] : memref<6x9x32x32xbf16, #tpu.memory_space<vmem>>, vector<1x1x32x32xbf16>
    %544 = vector.shape_cast %543 : vector<1x1x32x32xbf16> to vector<32x32xbf16>
    %cst_536 = arith.constant dense<0.000000e+00> : vector<32x256xf32>
    %545 = tpu.matmul %544, %542, %cst_536 {dimension_numbers = #tpu.dot_dimension_numbers<[1], [0], [0], [1], [0, 0, 1, 1], [], []>} : vector<32x32xbf16>, vector<32x256xbf16>, vector<32x256xf32> -> vector<32x256xf32>
    %546 = arith.addf %538, %545 : vector<32x256xf32>
    %547 = vector.broadcast %474 : vector<32x1xf32> to vector<32x256xf32>
    %548 = arith.addf %546, %547 : vector<32x256xf32>
    %cst_537 = arith.constant 0.000000e+00 : f32
    %549 = vector.broadcast %cst_537 : f32 to vector<32x256xf32>
    %550 = arith.cmpf ogt, %548, %549 : vector<32x256xf32>
    %cst_538 = arith.constant 0.000000e+00 : f32
    %551 = vector.broadcast %cst_538 : f32 to vector<32x256xf32>
    %552 = arith.minimumf %548, %551 : vector<32x256xf32>
    %553 = math.exp %552 : vector<32x256xf32>
    %cst_539 = arith.constant 1.000000e+00 : f32
    %554 = vector.broadcast %cst_539 : f32 to vector<32x256xf32>
    %555 = arith.subf %553, %554 : vector<32x256xf32>
    %556 = arith.select %550, %548, %555 : vector<32x256xi1>, vector<32x256xf32>
    %c0_540 = arith.constant 0 : index
    %c0_541 = arith.constant 0 : index
    %557 = vector.load %arg7[%c0_540, %c0_541] : memref<3x1xf32, #tpu.memory_space<vmem>>, vector<3x1xf32>
    %558 = arith.truncf %556 : vector<32x256xf32> to vector<32x256xbf16>
    %c0_542 = arith.constant 0 : index
    %c0_543 = arith.constant 0 : index
    %c0_544 = arith.constant 0 : index
    %559 = vector.load %arg12[%c0_542, %c0_543, %c0_544] : memref<9x256x256xbf16, #tpu.memory_space<vmem>>, vector<1x256x256xbf16>
    %560 = vector.shape_cast %559 : vector<1x256x256xbf16> to vector<256x256xbf16>
    %cst_545 = arith.constant dense<0.000000e+00> : vector<32x256xf32>
    %561 = tpu.matmul %558, %560, %cst_545 {dimension_numbers = #tpu.dot_dimension_numbers<[1], [0], [0], [1], [0, 0, 1, 1], [], []>} : vector<32x256xbf16>, vector<256x256xbf16>, vector<32x256xf32> -> vector<32x256xf32>
    %562 = arith.truncf %561 : vector<32x256xf32> to vector<32x256xbf16>
    %c0_546 = arith.constant 0 : index
    %c0_547 = arith.constant 0 : index
    %c0_548 = arith.constant 0 : index
    %563 = vector.load %arg6[%c0_546, %c0_547, %c0_548] : memref<9x3x32xbf16, #tpu.memory_space<vmem>>, vector<1x3x32xbf16>
    %564 = vector.shape_cast %563 : vector<1x3x32xbf16> to vector<3x32xbf16>
    %cst_549 = arith.constant dense<0.000000e+00> : vector<3x256xf32>
    %565 = tpu.matmul %564, %562, %cst_549 {dimension_numbers = #tpu.dot_dimension_numbers<[1], [0], [0], [1], [0, 0, 1, 1], [], []>} : vector<3x32xbf16>, vector<32x256xbf16>, vector<3x256xf32> -> vector<3x256xf32>
    %c1_550 = arith.constant 1 : index
    %c0_551 = arith.constant 0 : index
    %c0_552 = arith.constant 0 : index
    %566 = vector.load %arg12[%c1_550, %c0_551, %c0_552] : memref<9x256x256xbf16, #tpu.memory_space<vmem>>, vector<1x256x256xbf16>
    %567 = vector.shape_cast %566 : vector<1x256x256xbf16> to vector<256x256xbf16>
    %cst_553 = arith.constant dense<0.000000e+00> : vector<32x256xf32>
    %568 = tpu.matmul %558, %567, %cst_553 {dimension_numbers = #tpu.dot_dimension_numbers<[1], [0], [0], [1], [0, 0, 1, 1], [], []>} : vector<32x256xbf16>, vector<256x256xbf16>, vector<32x256xf32> -> vector<32x256xf32>
    %569 = arith.truncf %568 : vector<32x256xf32> to vector<32x256xbf16>
    %c1_554 = arith.constant 1 : index
    %c0_555 = arith.constant 0 : index
    %c0_556 = arith.constant 0 : index
    %570 = vector.load %arg6[%c1_554, %c0_555, %c0_556] : memref<9x3x32xbf16, #tpu.memory_space<vmem>>, vector<1x3x32xbf16>
    %571 = vector.shape_cast %570 : vector<1x3x32xbf16> to vector<3x32xbf16>
    %cst_557 = arith.constant dense<0.000000e+00> : vector<3x256xf32>
    %572 = tpu.matmul %571, %569, %cst_557 {dimension_numbers = #tpu.dot_dimension_numbers<[1], [0], [0], [1], [0, 0, 1, 1], [], []>} : vector<3x32xbf16>, vector<32x256xbf16>, vector<3x256xf32> -> vector<3x256xf32>
    %573 = arith.addf %565, %572 : vector<3x256xf32>
    %c2_558 = arith.constant 2 : index
    %c0_559 = arith.constant 0 : index
    %c0_560 = arith.constant 0 : index
    %574 = vector.load %arg12[%c2_558, %c0_559, %c0_560] : memref<9x256x256xbf16, #tpu.memory_space<vmem>>, vector<1x256x256xbf16>
    %575 = vector.shape_cast %574 : vector<1x256x256xbf16> to vector<256x256xbf16>
    %cst_561 = arith.constant dense<0.000000e+00> : vector<32x256xf32>
    %576 = tpu.matmul %558, %575, %cst_561 {dimension_numbers = #tpu.dot_dimension_numbers<[1], [0], [0], [1], [0, 0, 1, 1], [], []>} : vector<32x256xbf16>, vector<256x256xbf16>, vector<32x256xf32> -> vector<32x256xf32>
    %577 = arith.truncf %576 : vector<32x256xf32> to vector<32x256xbf16>
    %c2_562 = arith.constant 2 : index
    %c0_563 = arith.constant 0 : index
    %c0_564 = arith.constant 0 : index
    %578 = vector.load %arg6[%c2_562, %c0_563, %c0_564] : memref<9x3x32xbf16, #tpu.memory_space<vmem>>, vector<1x3x32xbf16>
    %579 = vector.shape_cast %578 : vector<1x3x32xbf16> to vector<3x32xbf16>
    %cst_565 = arith.constant dense<0.000000e+00> : vector<3x256xf32>
    %580 = tpu.matmul %579, %577, %cst_565 {dimension_numbers = #tpu.dot_dimension_numbers<[1], [0], [0], [1], [0, 0, 1, 1], [], []>} : vector<3x32xbf16>, vector<32x256xbf16>, vector<3x256xf32> -> vector<3x256xf32>
    %581 = arith.addf %573, %580 : vector<3x256xf32>
    %c3_566 = arith.constant 3 : index
    %c0_567 = arith.constant 0 : index
    %c0_568 = arith.constant 0 : index
    %582 = vector.load %arg12[%c3_566, %c0_567, %c0_568] : memref<9x256x256xbf16, #tpu.memory_space<vmem>>, vector<1x256x256xbf16>
    %583 = vector.shape_cast %582 : vector<1x256x256xbf16> to vector<256x256xbf16>
    %cst_569 = arith.constant dense<0.000000e+00> : vector<32x256xf32>
    %584 = tpu.matmul %558, %583, %cst_569 {dimension_numbers = #tpu.dot_dimension_numbers<[1], [0], [0], [1], [0, 0, 1, 1], [], []>} : vector<32x256xbf16>, vector<256x256xbf16>, vector<32x256xf32> -> vector<32x256xf32>
    %585 = arith.truncf %584 : vector<32x256xf32> to vector<32x256xbf16>
    %c3_570 = arith.constant 3 : index
    %c0_571 = arith.constant 0 : index
    %c0_572 = arith.constant 0 : index
    %586 = vector.load %arg6[%c3_570, %c0_571, %c0_572] : memref<9x3x32xbf16, #tpu.memory_space<vmem>>, vector<1x3x32xbf16>
    %587 = vector.shape_cast %586 : vector<1x3x32xbf16> to vector<3x32xbf16>
    %cst_573 = arith.constant dense<0.000000e+00> : vector<3x256xf32>
    %588 = tpu.matmul %587, %585, %cst_573 {dimension_numbers = #tpu.dot_dimension_numbers<[1], [0], [0], [1], [0, 0, 1, 1], [], []>} : vector<3x32xbf16>, vector<32x256xbf16>, vector<3x256xf32> -> vector<3x256xf32>
    %589 = arith.addf %581, %588 : vector<3x256xf32>
    %c4_574 = arith.constant 4 : index
    %c0_575 = arith.constant 0 : index
    %c0_576 = arith.constant 0 : index
    %590 = vector.load %arg12[%c4_574, %c0_575, %c0_576] : memref<9x256x256xbf16, #tpu.memory_space<vmem>>, vector<1x256x256xbf16>
    %591 = vector.shape_cast %590 : vector<1x256x256xbf16> to vector<256x256xbf16>
    %cst_577 = arith.constant dense<0.000000e+00> : vector<32x256xf32>
    %592 = tpu.matmul %558, %591, %cst_577 {dimension_numbers = #tpu.dot_dimension_numbers<[1], [0], [0], [1], [0, 0, 1, 1], [], []>} : vector<32x256xbf16>, vector<256x256xbf16>, vector<32x256xf32> -> vector<32x256xf32>
    %593 = arith.truncf %592 : vector<32x256xf32> to vector<32x256xbf16>
    %c4_578 = arith.constant 4 : index
    %c0_579 = arith.constant 0 : index
    %c0_580 = arith.constant 0 : index
    %594 = vector.load %arg6[%c4_578, %c0_579, %c0_580] : memref<9x3x32xbf16, #tpu.memory_space<vmem>>, vector<1x3x32xbf16>
    %595 = vector.shape_cast %594 : vector<1x3x32xbf16> to vector<3x32xbf16>
    %cst_581 = arith.constant dense<0.000000e+00> : vector<3x256xf32>
    %596 = tpu.matmul %595, %593, %cst_581 {dimension_numbers = #tpu.dot_dimension_numbers<[1], [0], [0], [1], [0, 0, 1, 1], [], []>} : vector<3x32xbf16>, vector<32x256xbf16>, vector<3x256xf32> -> vector<3x256xf32>
    %597 = arith.addf %589, %596 : vector<3x256xf32>
    %c5_582 = arith.constant 5 : index
    %c0_583 = arith.constant 0 : index
    %c0_584 = arith.constant 0 : index
    %598 = vector.load %arg12[%c5_582, %c0_583, %c0_584] : memref<9x256x256xbf16, #tpu.memory_space<vmem>>, vector<1x256x256xbf16>
    %599 = vector.shape_cast %598 : vector<1x256x256xbf16> to vector<256x256xbf16>
    %cst_585 = arith.constant dense<0.000000e+00> : vector<32x256xf32>
    %600 = tpu.matmul %558, %599, %cst_585 {dimension_numbers = #tpu.dot_dimension_numbers<[1], [0], [0], [1], [0, 0, 1, 1], [], []>} : vector<32x256xbf16>, vector<256x256xbf16>, vector<32x256xf32> -> vector<32x256xf32>
    %601 = arith.truncf %600 : vector<32x256xf32> to vector<32x256xbf16>
    %c5_586 = arith.constant 5 : index
    %c0_587 = arith.constant 0 : index
    %c0_588 = arith.constant 0 : index
    %602 = vector.load %arg6[%c5_586, %c0_587, %c0_588] : memref<9x3x32xbf16, #tpu.memory_space<vmem>>, vector<1x3x32xbf16>
    %603 = vector.shape_cast %602 : vector<1x3x32xbf16> to vector<3x32xbf16>
    %cst_589 = arith.constant dense<0.000000e+00> : vector<3x256xf32>
    %604 = tpu.matmul %603, %601, %cst_589 {dimension_numbers = #tpu.dot_dimension_numbers<[1], [0], [0], [1], [0, 0, 1, 1], [], []>} : vector<3x32xbf16>, vector<32x256xbf16>, vector<3x256xf32> -> vector<3x256xf32>
    %605 = arith.addf %597, %604 : vector<3x256xf32>
    %c6_590 = arith.constant 6 : index
    %c0_591 = arith.constant 0 : index
    %c0_592 = arith.constant 0 : index
    %606 = vector.load %arg12[%c6_590, %c0_591, %c0_592] : memref<9x256x256xbf16, #tpu.memory_space<vmem>>, vector<1x256x256xbf16>
    %607 = vector.shape_cast %606 : vector<1x256x256xbf16> to vector<256x256xbf16>
    %cst_593 = arith.constant dense<0.000000e+00> : vector<32x256xf32>
    %608 = tpu.matmul %558, %607, %cst_593 {dimension_numbers = #tpu.dot_dimension_numbers<[1], [0], [0], [1], [0, 0, 1, 1], [], []>} : vector<32x256xbf16>, vector<256x256xbf16>, vector<32x256xf32> -> vector<32x256xf32>
    %609 = arith.truncf %608 : vector<32x256xf32> to vector<32x256xbf16>
    %c6_594 = arith.constant 6 : index
    %c0_595 = arith.constant 0 : index
    %c0_596 = arith.constant 0 : index
    %610 = vector.load %arg6[%c6_594, %c0_595, %c0_596] : memref<9x3x32xbf16, #tpu.memory_space<vmem>>, vector<1x3x32xbf16>
    %611 = vector.shape_cast %610 : vector<1x3x32xbf16> to vector<3x32xbf16>
    %cst_597 = arith.constant dense<0.000000e+00> : vector<3x256xf32>
    %612 = tpu.matmul %611, %609, %cst_597 {dimension_numbers = #tpu.dot_dimension_numbers<[1], [0], [0], [1], [0, 0, 1, 1], [], []>} : vector<3x32xbf16>, vector<32x256xbf16>, vector<3x256xf32> -> vector<3x256xf32>
    %613 = arith.addf %605, %612 : vector<3x256xf32>
    %c7_598 = arith.constant 7 : index
    %c0_599 = arith.constant 0 : index
    %c0_600 = arith.constant 0 : index
    %614 = vector.load %arg12[%c7_598, %c0_599, %c0_600] : memref<9x256x256xbf16, #tpu.memory_space<vmem>>, vector<1x256x256xbf16>
    %615 = vector.shape_cast %614 : vector<1x256x256xbf16> to vector<256x256xbf16>
    %cst_601 = arith.constant dense<0.000000e+00> : vector<32x256xf32>
    %616 = tpu.matmul %558, %615, %cst_601 {dimension_numbers = #tpu.dot_dimension_numbers<[1], [0], [0], [1], [0, 0, 1, 1], [], []>} : vector<32x256xbf16>, vector<256x256xbf16>, vector<32x256xf32> -> vector<32x256xf32>
    %617 = arith.truncf %616 : vector<32x256xf32> to vector<32x256xbf16>
    %c7_602 = arith.constant 7 : index
    %c0_603 = arith.constant 0 : index
    %c0_604 = arith.constant 0 : index
    %618 = vector.load %arg6[%c7_602, %c0_603, %c0_604] : memref<9x3x32xbf16, #tpu.memory_space<vmem>>, vector<1x3x32xbf16>
    %619 = vector.shape_cast %618 : vector<1x3x32xbf16> to vector<3x32xbf16>
    %cst_605 = arith.constant dense<0.000000e+00> : vector<3x256xf32>
    %620 = tpu.matmul %619, %617, %cst_605 {dimension_numbers = #tpu.dot_dimension_numbers<[1], [0], [0], [1], [0, 0, 1, 1], [], []>} : vector<3x32xbf16>, vector<32x256xbf16>, vector<3x256xf32> -> vector<3x256xf32>
    %621 = arith.addf %613, %620 : vector<3x256xf32>
    %c8_606 = arith.constant 8 : index
    %c0_607 = arith.constant 0 : index
    %c0_608 = arith.constant 0 : index
    %622 = vector.load %arg12[%c8_606, %c0_607, %c0_608] : memref<9x256x256xbf16, #tpu.memory_space<vmem>>, vector<1x256x256xbf16>
    %623 = vector.shape_cast %622 : vector<1x256x256xbf16> to vector<256x256xbf16>
    %cst_609 = arith.constant dense<0.000000e+00> : vector<32x256xf32>
    %624 = tpu.matmul %558, %623, %cst_609 {dimension_numbers = #tpu.dot_dimension_numbers<[1], [0], [0], [1], [0, 0, 1, 1], [], []>} : vector<32x256xbf16>, vector<256x256xbf16>, vector<32x256xf32> -> vector<32x256xf32>
    %625 = arith.truncf %624 : vector<32x256xf32> to vector<32x256xbf16>
    %c8_610 = arith.constant 8 : index
    %c0_611 = arith.constant 0 : index
    %c0_612 = arith.constant 0 : index
    %626 = vector.load %arg6[%c8_610, %c0_611, %c0_612] : memref<9x3x32xbf16, #tpu.memory_space<vmem>>, vector<1x3x32xbf16>
    %627 = vector.shape_cast %626 : vector<1x3x32xbf16> to vector<3x32xbf16>
    %cst_613 = arith.constant dense<0.000000e+00> : vector<3x256xf32>
    %628 = tpu.matmul %627, %625, %cst_613 {dimension_numbers = #tpu.dot_dimension_numbers<[1], [0], [0], [1], [0, 0, 1, 1], [], []>} : vector<3x32xbf16>, vector<32x256xbf16>, vector<3x256xf32> -> vector<3x256xf32>
    %629 = arith.addf %621, %628 : vector<3x256xf32>
    %630 = vector.broadcast %557 : vector<3x1xf32> to vector<3x256xf32>
    %631 = arith.addf %629, %630 : vector<3x256xf32>
    %632 = math.tanh %631 : vector<3x256xf32>
    %c0_614 = arith.constant 0 : index
    %c0_615 = arith.constant 0 : index
    %c0_616 = arith.constant 0 : index
    %633 = vector.load %arg13[%c0_614, %c0_615, %c0_616] : memref<1x3x256xf32, #tpu.memory_space<vmem>>, vector<1x3x256xf32>
    %634 = vector.shape_cast %633 : vector<1x3x256xf32> to vector<3x256xf32>
    %635 = vector.shape_cast %632 : vector<3x256xf32> to vector<1x3x256xf32>
    tpu.vector_store %arg13[%c0_614, %c0_615, %c0_616], %635 {strides = array<i32>} : memref<1x3x256xf32, #tpu.memory_space<vmem>>, vector<1x3x256xf32>,
    return
  }
  func.func @transform_0(%arg0: i32) -> (i32, i32) {
    %c0_i32 = arith.constant 0 : i32
    %c0_i32_0 = arith.constant 0 : i32
    %c0_i32_1 = arith.constant 0 : i32
    return %c0_i32, %c0_i32_0 : i32, i32
  }
  func.func @transform_1(%arg0: i32) -> (i32, i32, i32) {
    %c0_i32 = arith.constant 0 : i32
    %c0_i32_0 = arith.constant 0 : i32
    %c0_i32_1 = arith.constant 0 : i32
    %c0_i32_2 = arith.constant 0 : i32
    return %c0_i32, %c0_i32_0, %c0_i32_1 : i32, i32, i32
  }
  func.func @transform_2(%arg0: i32) -> (i32, i32) {
    %c0_i32 = arith.constant 0 : i32
    %c0_i32_0 = arith.constant 0 : i32
    %c0_i32_1 = arith.constant 0 : i32
    return %c0_i32, %c0_i32_0 : i32, i32
  }
  func.func @transform_3(%arg0: i32) -> (i32, i32, i32, i32) {
    %c0_i32 = arith.constant 0 : i32
    %c0_i32_0 = arith.constant 0 : i32
    %c0_i32_1 = arith.constant 0 : i32
    %c0_i32_2 = arith.constant 0 : i32
    %c0_i32_3 = arith.constant 0 : i32
    return %c0_i32, %c0_i32_0, %c0_i32_1, %c0_i32_2 : i32, i32, i32, i32
  }
  func.func @transform_4(%arg0: i32) -> (i32, i32) {
    %c0_i32 = arith.constant 0 : i32
    %c0_i32_0 = arith.constant 0 : i32
    %c0_i32_1 = arith.constant 0 : i32
    return %c0_i32, %c0_i32_0 : i32, i32
  }
  func.func @transform_5(%arg0: i32) -> (i32, i32, i32) {
    %c0_i32 = arith.constant 0 : i32
    %c0_i32_0 = arith.constant 0 : i32
    %c0_i32_1 = arith.constant 0 : i32
    %c0_i32_2 = arith.constant 0 : i32
    return %c0_i32, %c0_i32_0, %c0_i32_1 : i32, i32, i32
  }
  func.func @transform_6(%arg0: i32) -> (i32, i32) {
    %c0_i32 = arith.constant 0 : i32
    %c0_i32_0 = arith.constant 0 : i32
    %c0_i32_1 = arith.constant 0 : i32
    return %c0_i32, %c0_i32_0 : i32, i32
  }
  func.func @transform_7(%arg0: i32) -> (i32, i32, i32) {
    %c0_i32 = arith.constant 0 : i32
    %c0_i32_0 = arith.constant 0 : i32
    %c0_i32_1 = arith.constant 0 : i32
    %c0_i32_2 = arith.constant 0 : i32
    return %c0_i32, %c0_i32_0, %c0_i32_1 : i32, i32, i32
  }
  func.func @transform_8(%arg0: i32) -> (i32, i32, i32) {
    %c0_i32 = arith.constant 0 : i32
    %c0_i32_0 = arith.constant 0 : i32
    %c0_i32_1 = arith.constant 0 : i32
    %c0_i32_2 = arith.constant 0 : i32
    return %c0_i32, %c0_i32_0, %c0_i32_1 : i32, i32, i32
  }
  func.func @transform_9(%arg0: i32) -> (i32, i32, i32) {
    %c0_i32 = arith.constant 0 : i32
    %c0_i32_0 = arith.constant 0 : i32
    %c0_i32_1 = arith.constant 0 : i32
    %c0_i32_2 = arith.constant 0 : i32
    return %c0_i32, %c0_i32_0, %c0_i32_1 : i32, i32, i32
  }
  func.func @transform_10(%arg0: i32) -> (i32, i32, i32) {
    %c0_i32 = arith.constant 0 : i32
    %c0_i32_0 = arith.constant 0 : i32
    %c0_i32_1 = arith.constant 0 : i32
    %c0_i32_2 = arith.constant 0 : i32
    return %c0_i32, %c0_i32_0, %c0_i32_1 : i32, i32, i32
  }
  func.func @transform_11(%arg0: i32) -> (i32, i32, i32) {
    %c0_i32 = arith.constant 0 : i32
    %c0_i32_0 = arith.constant 0 : i32
    %c0_i32_1 = arith.constant 0 : i32
    %c0_i32_2 = arith.constant 0 : i32
    return %c0_i32, %c0_i32_0, %c0_i32_1 : i32, i32, i32
  }
  func.func @transform_12(%arg0: i32) -> (i32, i32, i32) {
    %c0_i32 = arith.constant 0 : i32
    %c0_i32_0 = arith.constant 0 : i32
    %c0_i32_1 = arith.constant 0 : i32
    return %arg0, %c0_i32, %c0_i32_0 : i32, i32, i32
  }
}

</mosaic_0001>

<bundles_post_ra>
// kernel: _lambda_.1
= control target key start
LH: loop header
LB: loop body
LE: loop exit
PB: predicated region body
PF: predicated region fallthrough
CT: control target
= control target key end

     0   :  { %s18511_s0 = inlined_call_operand.vmem [shape: f32[2,8], index: 0, kind: input, shape index: {}]   ;;  %s18512_s1 = inlined_call_operand.vmem [shape: f32[8,32,16], index: 1, kind: input, shape index: {}]   ;;  %s18513_s2 = inlined_call_operand.vmem [shape: f32[32,16], index: 2, kind: input, shape index: {}]   ;;  %s18514_s3 = inlined_call_operand.vmem [shape: bf16[6,9,32,32], index: 3, kind: input, shape index: {}]   ;;  %s18515_s4 = inlined_call_operand.vmem [shape: f32[32,6], index: 4, kind: input, shape index: {}]   ;;  %s18516_s5 = inlined_call_operand.vmem [shape: bf16[9,3,32], index: 5, kind: input, shape index: {}]   ;;  %s18517_s6 = inlined_call_operand.vmem [shape: f32[3,1], index: 6, kind: input, shape index: {}]   ;;  %s18518_s7 = inlined_call_operand.vmem [shape: bf16[9,16,16], index: 7, kind: input, shape index: {}]   ;;  %s18519_s8 = inlined_call_operand.vmem [shape: bf16[9,16,64], index: 8, kind: input, shape index: {}]   ;;  %s18520_s9 = inlined_call_operand.vmem [shape: bf16[9,64,64], index: 9, kind: input, shape index: {}]   ;;  %s18521_s10 = inlined_call_operand.vmem [shape: bf16[9,64,256], index: 10, kind: input, shape index: {}]   ;;  %s18522_s11 = inlined_call_operand.vmem [shape: bf16[9,256,256], index: 11, kind: input, shape index: {}]   ;;  %s18523_s12 = inlined_call_operand.vmem [shape: f32[2,3,256], index: 12, kind: output, shape index: {}]  }
   0x1   :  { %18525 = sst [smem:[#allocation6_spill]] %s18511_s0 }
   0x2   :  { %18526 = sst [smem:[#allocation7_spill]] %s18523_s12 }
   0x3   :  { %17 = vsyncpa [#allocation3], 0  ;;  %s15228_s21 = smov 0  }
   0x4 LB: > { %18527 = sst [smem:[#allocation5_spill]] %s15154_s21  ;;  %s15234_s22 = sadd.s32 4294967295, %s15154_s21   ;;  %s15154_s21 = sphi %s15228_s21, %s23_s21  }
   0x5   : > { %p11500_p0 = scmp.ge.s32.totalorder %s15154_s21, 1  ;;  %p306_p1 = scmp.lt.s32.totalorder %s15154_s21, 3 }
   0x6   : > { %s18528_s0 = sld [smem:[#allocation6_spill]]  ;;  %p14036_p3 = scmp.eq.s32.totalorder %s15234_s22, 0 }
   0x7   : > { %p15241_p2 = pnand %p11500_p0, %p306_p1 }
   0x9   : > { %p14032_p4 = pneg %p15241_p2 }
   0xb   : > { %p14033_p5 = pnand %p14036_p3, %p14032_p4 }
   0xc   : > { %s319_s25 = sshll.u32 %s18528_s0, 4  ;;  %s320_s25 = int_to_ptr.vmem [resolvable:$true] %s319_s25 }
   0xd   : > { %s15129_s27 = scalar_lea.vmem %s320_s25, 32  ;;  %p15131_p7 = pneg %p14033_p5 }
   0xe   : > { %p15130_p6 = scmp.ne.s32.totalorder %s320_s25, %s15129_s27  ;;  %p15137_p10 = scmp.lt.s32.totalorder %s320_s25, %s320_s25 }
   0xf   : > { %p15138_p11 = scmp.lt.s32.totalorder %s15129_s27, %s15129_s27 }
  0x10   : > { %p15132_p8 = pnand %p15131_p7, %p15130_p6 }
  0x11   : > { %p15139_p12 = por %p15138_p11, %p15137_p10 }
  0x12   : > { %p15133_p9 = pneg %p15132_p8 }
  0x14   : > { %p15140_p13 = pnand %p15139_p12, %p15133_p9 }
  0x16   : > { %15143 = shalt.err (!%p15140_p13)
}
  0x17   : > { %s15156_s28 = smov [#allocation2]   ;;  %365 = sbr.rel (%p15241_p2) target bundleno = 7062 (0x1b96), region = 68 }
  0x18   : > { %14035 = dma.vmem_to_smem (!%p14033_p5), %s320_s25, 32, %s15156_s28, [#allocation3]  }
  0x1e   : > { %15149 = dma.done.wait (%p14036_p3), [#allocation3], 32  }
  0x1f   : > { %15151 = vsyncadd (%p14036_p3), [#allocation3], 4294967264 }
  0x20   : > { %371 = sfence }
  0x21   : > { %v15259_v0 = vld [vmem:[%s18518_s7 + $0x8] sm:$0xff]   ;;  %s15262_s13 = sshll.u32 %s15234_s22, 7  ;;  %v409_v1 = vld [vmem:[%s18513_s2] sm:$0xff]  ;;  %v417_v10 = vld [vmem:[%s18512_s1 + $0x10] sm:$0xff]  ;;  %vm554_vm0 = vcmask 130048   ;;  %vm691_vm1 = vcmask 261120  }
  0x22   : > { %s414_s14 = sld [smem:[#allocation2 + %s15262_s13]]  ;;  %s428_s15 = sadd.s32 1, %s15262_s13  ;;  %13220 = vmatprep.subr.bf16.mxu1 %v15259_v0  ;;  %v415_v2 = vld [vmem:[%s18512_s1] sm:$0xff]  ;;  %v416_v3 = vld [vmem:[%s18512_s1 + $0x8] sm:$0xff]  ;;  %v418_v15 = vld [vmem:[%s18512_s1 + $0x18] sm:$0xff]  ;;  %vm4250_vm14 = vcmask 523264  }
  0x23   : > { %s429_s16 = sld [smem:[#allocation2 + %s428_s15]]  ;;  %s444_s17 = sadd.s32 2, %s15262_s13  ;;  %13221 = vmatpush3.bf16.msra.mxu1 %v15259_v0  ;;  %v410_v4 = vld [vmem:[%s18513_s2 + $0x8] sm:$0xff]  ;;  %v11507_v5 = vld [vmem:[%s18512_s1 + $0x20] sm:$0xff]  ;;  %v411_v29 = vld [vmem:[%s18513_s2 + $0x10] sm:$0xff] }
  0x24   : > { %s445_s18 = sld [smem:[#allocation2 + %s444_s17]]  ;;  %s460_s19 = sadd.s32 3, %s15262_s13  ;;  %v11508_v6 = vld [vmem:[%s18512_s1 + $0x28] sm:$0xff]  ;;  %v11511_v8 = vld [vmem:[%s18512_s1 + $0x40] sm:$0xff]  ;;  %v412_v33 = vld [vmem:[%s18513_s2 + $0x18] sm:$0xff] }
  0x25   : > { %s15270_s20 = sld [smem:[#allocation2 + %s460_s19]]  ;;  %s476_s23 = sadd.s32 4, %s15262_s13  ;;  %v11512_v9 = vld [vmem:[%s18512_s1 + $0x48] sm:$0xff]  ;;  %v11515_v14 = vld [vmem:[%s18512_s1 + $0x60] sm:$0xff]  ;;  %v11509_v35 = vld [vmem:[%s18512_s1 + $0x30] sm:$0xff] }
  0x26   : > { %s15282_s30 = sld [smem:[#allocation2 + %s476_s23]]  ;;  %s492_s15 = sadd.s32 5, %s15262_s13  ;;  %v11516_v19 = vld [vmem:[%s18512_s1 + $0x68] sm:$0xff]  ;;  %v11519_v20 = vld [vmem:[%s18512_s1 + $0x80] sm:$0xff]  ;;  %v11510_v40 = vld [vmem:[%s18512_s1 + $0x38] sm:$0xff] }
  0x27   : > { %s15294_s26 = sld [smem:[#allocation2 + %s492_s15]]  ;;  %s508_s27 = sadd.s32 6, %s15262_s13  ;;  %v11520_v21 = vld [vmem:[%s18512_s1 + $0x88] sm:$0xff]  ;;  %v11523_v27 = vld [vmem:[%s18512_s1 + $0xa0] sm:$0xff]  ;;  %v11513_v41 = vld [vmem:[%s18512_s1 + $0x50] sm:$0xff] }
  0x28   : > { %v419_v7 = vstv %s414_s14  ;;  %s15303_s17 = sld [smem:[#allocation2 + %s508_s27]]  ;;  %s524_s0 = sadd.s32 7, %s15262_s13  ;;  %v11524_v28 = vld [vmem:[%s18512_s1 + $0xa8] sm:$0xff]  ;;  %v11527_v32 = vld [vmem:[%s18512_s1 + $0xc0] sm:$0xff]  ;;  %v11514_v42 = vld [vmem:[%s18512_s1 + $0x58] sm:$0xff] }
  0x29   : > { %v420_v11 = vmul.f32 %v419_v7, %v415_v2  ;;  %v421_v12 = vmul.f32 %v419_v7, %v416_v3  ;;  %v435_v13 = vstv %s429_s16  ;;  %s15312_s24 = sld [smem:[#allocation2 + %s524_s0]]  ;;  %v422_v22 = vmul.f32 %v419_v7, %v417_v10  ;;  %v11528_v44 = vld [vmem:[%s18512_s1 + $0xc8] sm:$0xff]  ;;  %v11517_v47 = vld [vmem:[%s18512_s1 + $0x70] sm:$0xff]  ;;  %v11518_v52 = vld [vmem:[%s18512_s1 + $0x78] sm:$0xff]  ;;  %p403_p0 = scmp.lt.s32.totalorder %s15234_s22, 1 }
  0x2a   : > { %v436_v16 = vmul.f32 %v11507_v5, %v435_v13  ;;  %v437_v17 = vmul.f32 %v11508_v6, %v435_v13  ;;  %v451_v18 = vstv %s445_s18  ;;  %v423_v34 = vmul.f32 %v419_v7, %v418_v15  ;;  %v11521_v53 = vld [vmem:[%s18512_s1 + $0x90] sm:$0xff]  ;;  %v15372_v54 = vld [vmem:[%s18518_s7] sm:$0xff]   ;;  %v11532_v58 = vld [vmem:[%s18512_s1 + $0xe8] sm:$0xff]  ;;  %s18530_s27 = sld [smem:[#allocation7_spill]] }
  0x2b   : > { %v424_v23 = vadd.f32 %v420_v11, %v409_v1  ;;  %v425_v24 = vadd.f32 %v421_v12, %v410_v4  ;;  %v452_v25 = vmul.f32 %v11511_v8, %v451_v18  ;;  %v453_v26 = vmul.f32 %v11512_v9, %v451_v18  ;;  %v11531_v57 = vld [vmem:[%s18512_s1 + $0xe0] sm:$0xff]  ;;  %v14069_v61 = vld [vmem:[%s18518_s7 + $0x10] sm:$0xff]   ;;  %v11522_v3 = vld [vmem:[%s18512_s1 + $0x98] sm:$0xff]  ;;  %13214 = vmatprep.subr.bf16.mxu0 %v15372_v54  ;;  %s18533_s22 = smov (!%p403_p0, %s15234_s22), 1 }
  0x2c   : > { %v467_v30 = vstv %s15270_s20  ;;  %v483_v31 = vstv %s15282_s30  ;;  %v426_v46 = vadd.f32 %v422_v22, %v411_v29  ;;  %v427_v59 = vadd.f32 %v423_v34, %v412_v33  ;;  %v11525_v8 = vld [vmem:[%s18512_s1 + $0xb0] sm:$0xff]  ;;  %13215 = vmatpush3.bf16.msra.mxu0 %v15372_v54  ;;  %13242 = vmatprep.subr.bf16.mxu1 %v14069_v61  ;;  %s12934_s13 = sshll.u32 %s18533_s22, 3 }
  0x2d   : > { %v440_v36 = vadd.f32 %v436_v16, %v424_v23  ;;  %v441_v37 = vadd.f32 %v437_v17, %v425_v24  ;;  %v468_v38 = vmul.f32 %v11515_v14, %v467_v30  ;;  %v469_v39 = vmul.f32 %v11516_v19, %v467_v30  ;;  %v11526_v14 = vld [vmem:[%s18512_s1 + $0xb8] sm:$0xff] }
  0x2e   : > { %v499_v43 = vstv %s15294_s26  ;;  %v515_v45 = vstv %s15303_s17  ;;  %v484_v50 = vmul.f32 %v11519_v20, %v483_v31  ;;  %v485_v51 = vmul.f32 %v11520_v21, %v483_v31  ;;  %v11530_v23 = vld [vmem:[%s18512_s1 + $0xd8] sm:$0xff] }
  0x2f   : > { %v456_v48 = vadd.f32 %v452_v25, %v440_v36  ;;  %v457_v49 = vadd.f32 %v453_v26, %v441_v37  ;;  %v500_v55 = vmul.f32 %v11523_v27, %v499_v43  ;;  %v501_v56 = vmul.f32 %v11524_v28, %v499_v43  ;;  %v11533_v28 = vld [vmem:[%s18512_s1 + $0xf0] sm:$0xff] }
  0x30   : > { %v438_v60 = vmul.f32 %v11509_v35, %v435_v13  ;;  %v516_v1 = vmul.f32 %v11527_v32, %v515_v45  ;;  %v531_v2 = vstv %s15312_s24  ;;  %v439_v4 = vmul.f32 %v11510_v40, %v435_v13  ;;  %v11534_v32 = vld [vmem:[%s18512_s1 + $0xf8] sm:$0xff]  ;;  %s407_s23 = scalar_lea.vmem %s18530_s27, %s12934_s13 }
  0x31   : > { %v472_v62 = vadd.f32 %v468_v38, %v456_v48  ;;  %v473_v63 = vadd.f32 %v469_v39, %v457_v49  ;;  %v454_v6 = vmul.f32 %v11513_v41, %v451_v18  ;;  %v455_v7 = vmul.f32 %v11514_v42, %v451_v18  ;;  %v11529_v18 = vld [vmem:[%s18512_s1 + $0xd0] sm:$0xff] }
  0x32   : > { %v442_v5 = vadd.f32 %v438_v60, %v426_v46  ;;  %v517_v11 = vmul.f32 %v11528_v44, %v515_v45  ;;  %v470_v12 = vmul.f32 %v11517_v47, %v467_v30  ;;  %v443_v15 = vadd.f32 %v439_v4, %v427_v59  ;;  %v15458_v59 = vld [vmem:[%s18515_s4 + $0x10] sm:$0xff]  ;;  %v15470_v60 = vld [vmem:[%s18515_s4 + $0x18] sm:$0xff] }
  0x33   : > { %v488_v9 = vadd.f32 %v484_v50, %v472_v62  ;;  %v489_v10 = vadd.f32 %v485_v51, %v473_v63  ;;  %v471_v16 = vmul.f32 %v11518_v52, %v467_v30  ;;  %v486_v17 = vmul.f32 %v11521_v53, %v483_v31  ;;  %v14072_v52 = vld [vmem:[%s18518_s7 + $0x28] sm:$0xff]   ;;  %v14073_v53 = vld [vmem:[%s18518_s7 + $0x30] sm:$0xff]  }
  0x34   : > { %v458_v13 = vadd.f32 %v454_v6, %v442_v5  ;;  %v532_v21 = vmul.f32 %v11531_v57, %v531_v2  ;;  %v533_v22 = vmul.f32 %v11532_v58, %v531_v2  ;;  %v459_v24 = vadd.f32 %v455_v7, %v443_v15  ;;  %v14076_v57 = vld [vmem:[%s18514_s3 + $0x10] sm:$0xff]   ;;  %v15453_v58 = vld [vmem:[%s18515_s4] sm:$0xff] }
  0x35   : > { %v504_v19 = vadd.f32 %v500_v55, %v488_v9  ;;  %v505_v20 = vadd.f32 %v501_v56, %v489_v10  ;;  %v487_v26 = vmul.f32 %v11522_v3, %v483_v31  ;;  %v502_v27 = vmul.f32 %v11525_v8, %v499_v43  ;;  %v14074_v55 = vld [vmem:[%s18518_s7 + $0x38] sm:$0xff]   ;;  %v14075_v56 = vld [vmem:[%s18518_s7 + $0x40] sm:$0xff]  }
  0x36   : > { %v474_v25 = vadd.f32 %v470_v12, %v458_v13  ;;  %v475_v33 = vadd.f32 %v471_v16, %v459_v24  ;;  %v503_v35 = vmul.f32 %v11526_v14, %v499_v43  ;;  %v518_v36 = vmul.f32 %v11529_v18, %v515_v45  ;;  %v14070_v43 = vld [vmem:[%s18518_s7 + $0x18] sm:$0xff]   ;;  %v14078_v16 = vld [vmem:[%s18514_s3] sm:$0xff]   ;;  %v14079_v24 = vld [vmem:[%s18514_s3 + $0x8] sm:$0xff]  }
  0x37   : > { %v520_v29 = vadd.f32 %v516_v1, %v504_v19  ;;  %v521_v30 = vadd.f32 %v517_v11, %v505_v20  ;;  %v519_v31 = vmul.f32 %v11530_v23, %v515_v45  ;;  %v534_v41 = vmul.f32 %v11533_v28, %v531_v2  ;;  %v14071_v45 = vld [vmem:[%s18518_s7 + $0x20] sm:$0xff]   ;;  %v14077_v12 = vld [vmem:[%s18514_s3 + $0x18] sm:$0xff]  }
  0x38   : > { %v490_v34 = vadd.f32 %v486_v17, %v474_v25  ;;  %v491_v39 = vadd.f32 %v487_v26, %v475_v33  ;;  %v535_v47 = vmul.f32 %v11534_v32, %v531_v2  ;;  %v14080_v25 = vld [vmem:[%s18514_s3 + $0x20] sm:$0xff]  }
  0x39   : > { %v536_v37 = vadd.f32 %v532_v21, %v520_v29  ;;  %v537_v38 = vadd.f32 %v533_v22, %v521_v30 }
  0x3a   : > { %v506_v40 = vadd.f32 %v502_v27, %v490_v34  ;;  %v507_v44 = vadd.f32 %v503_v35, %v491_v39  ;;  %v14081_v35 = vld [vmem:[%s18514_s3 + $0x28] sm:$0xff]  }
  0x3b   : > { %v544_v42 = vpack.c.bf16 %v537_v38, %v536_v37  ;;  %v14082_v37 = vld [vmem:[%s18514_s3 + $0x30] sm:$0xff]  }
  0x3c   : > { %v522_v46 = vadd.f32 %v518_v36, %v506_v40  ;;  %v523_v48 = vadd.f32 %v519_v31, %v507_v44 }
  0x3d   : > { %13222 = vmatprep.mubr.msk.bf16.mxu1 %vm554_vm0, %v544_v42  ;;  %13216 = vmatprep.mubr.msk.bf16.mxu0 %vm554_vm0, %v544_v42 }
  0x3e   : > { %v538_v49 = vadd.f32 %v534_v41, %v522_v46  ;;  %v539_v50 = vadd.f32 %v535_v47, %v523_v48  ;;  %v14083_v48 = vld [vmem:[%s18514_s3 + $0x38] sm:$0xff]  }
  0x40   : > { %v545_v51 = vpack.c.bf16 %v539_v50, %v538_v49  ;;  %v14084_v49 = vld [vmem:[%s18514_s3 + $0x40] sm:$0xff]  }
  0x42   : > { %13223 = vmatmul.mubr.msk.bf16.vlgmr.msra.gmra.mrb[0].mxu1 %vm554_vm0, %v545_v51  ;;  %13217 = vmatmul.mubr.msk.bf16.vlgmr.msra.gmra.mrb[0].mxu0 %vm554_vm0, %v545_v51 }
  0x43   : > { %13243 = vmatpush3.bf16.msra.mxu1 %v14069_v61  ;;  %13244 = vmatprep.mubr.msk.bf16.mxu1 %vm554_vm0, %v544_v42 }
  0x44   : > { %13256 = vmatprep.subr.bf16.mxu1 %v14070_v43  ;;  %13230 = vmatprep.mubr.msk.bf16.mxu0 %vm691_vm1, %v14076_v57  ;;  %v14085_v57 = vld [vmem:[%s18514_s3 + $0x48] sm:$0xff]  }
  0x4a   : > { %13245 = vmatmul.mubr.msk.bf16.vlgmr.msra.gmra.mrb[4].mxu1 %vm554_vm0, %v545_v51 }
  0x4b   : > { %13257 = vmatpush3.bf16.msra.mxu1 %v14070_v43  ;;  %13258 = vmatprep.mubr.msk.bf16.mxu1 %vm554_vm0, %v544_v42 }
  0x4c   : > { %13270 = vmatprep.subr.bf16.mxu1 %v14071_v45 }
  0x52   : > { %13259 = vmatmul.mubr.msk.bf16.vlgmr.msra.gmra.mrb[8].mxu1 %vm554_vm0, %v545_v51 }
  0x53   : > { %13271 = vmatpush3.bf16.msra.mxu1 %v14071_v45  ;;  %13272 = vmatprep.mubr.msk.bf16.mxu1 %vm554_vm0, %v544_v42 }
  0x54   : > { %13284 = vmatprep.subr.bf16.mxu1 %v14072_v52 }
  0x5a   : > { %13273 = vmatmul.mubr.msk.bf16.vlgmr.msra.gmra.mrb[12].mxu1 %vm554_vm0, %v545_v51 }
  0x5b   : > { %13285 = vmatpush3.bf16.msra.mxu1 %v14072_v52  ;;  %13286 = vmatprep.mubr.msk.bf16.mxu1 %vm554_vm0, %v544_v42 }
  0x5c   : > { %13298 = vmatprep.subr.bf16.mxu1 %v14073_v53 }
  0x62   : > { %13287 = vmatmul.mubr.msk.bf16.vlgmr.msra.gmra.mrb[16].mxu1 %vm554_vm0, %v545_v51 }
  0x63   : > { %13299 = vmatpush3.bf16.msra.mxu1 %v14073_v53  ;;  %13300 = vmatprep.mubr.msk.bf16.mxu1 %vm554_vm0, %v544_v42 }
  0x64   : > { %13312 = vmatprep.subr.bf16.mxu1 %v14074_v55 }
  0x6a   : > { %13301 = vmatmul.mubr.msk.bf16.vlgmr.msra.gmra.mrb[20].mxu1 %vm554_vm0, %v545_v51 }
  0x6b   : > { %13313 = vmatpush3.bf16.msra.mxu1 %v14074_v55  ;;  %13314 = vmatprep.mubr.msk.bf16.mxu1 %vm554_vm0, %v544_v42 }
  0x6c   : > { %13326 = vmatprep.subr.bf16.mxu1 %v14075_v56 }
  0x72   : > { %13315 = vmatmul.mubr.msk.bf16.vlgmr.msra.gmra.mrb[24].mxu1 %vm554_vm0, %v545_v51 }
  0x73   : > { %13327 = vmatpush3.bf16.msra.mxu1 %v14075_v56  ;;  %13328 = vmatprep.mubr.msk.bf16.mxu1 %vm554_vm0, %v544_v42 }
  0x74   : > { %13340 = vmatprep.subr.bf16.mxu1 %v15372_v54 }
  0x7a   : > { %13329 = vmatmul.mubr.msk.bf16.vlgmr.msra.gmra.mrb[28].mxu1 %vm554_vm0, %v545_v51 }
  0x7b   : > { %13341 = vmatpush3.bf16.msra.mxu1 %v15372_v54  ;;  %v15157_v54 = vmov 0  }
  0x7c   : > { %13346 = vmatprep.subr.bf16.mxu1 %v15259_v0  ;;  %14053 = vset.pattern.permute.xlu0 %v15157_v54  ;;  %v15465_v0 = vld [vmem:[%s18515_s4 + $0x8] sm:$0xff] }
  0x7d   : > { %14054 = vset.pattern.permute.xlu1 %v15157_v54  ;;  %1752 = vperm.xlu0 %14053, %v15453_v58  }
  0x7e   : > { %1762 = vperm.xlu1 %14054, %v15458_v59  }
  0x81   : > { %1757 = vperm.xlu0 %14053, %v15465_v0  }
  0x82   : > { %1767 = vperm.xlu1 %14054, %v15470_v60  }
 0x115   : > { %v13224_v61 = vpop.f32.mrb[0].mxu1  ;;  %v13218_v62 = vpop.f32.mrb[0].mxu0 }
 0x116   : > { %v659_v63 = vpop.f32.mrb[1].mxu1  ;;  %v595_v1 = vpop.f32.mrb[1].mxu0 }
 0x117   : > { %v13225_v2 = vpop.f32.mrb[2].mxu1  ;;  %v13219_v3 = vpop.f32.mrb[2].mxu0 }
 0x118   : > { %v675_v4 = vpack.c.bf16 %v13225_v2, %v13224_v61  ;;  %v662_v5 = vpop.f32.mrb[3].mxu1  ;;  %v611_v6 = vpack.c.bf16 %v13219_v3, %v13218_v62  ;;  %v598_v7 = vpop.f32.mrb[3].mxu0  ;;  %v14086_v62 = vld [vmem:[%s18514_s3 + $0x50] sm:$0xff]   ;;  %v14087_v3 = vld [vmem:[%s18514_s3 + $0x58] sm:$0xff]  }
 0x119   : > { %v674_v8 = vpack.c.bf16 %v662_v5, %v659_v63  ;;  %v610_v9 = vpack.c.bf16 %v598_v7, %v595_v1  ;;  %v14089_v5 = vld [vmem:[%s18514_s3 + $0x68] sm:$0xff]   ;;  %v14091_v7 = vld [vmem:[%s18514_s3 + $0x78] sm:$0xff]  }
 0x11b   : > { %13226 = vmatprep.subr.bf16.mxu0 %v674_v8 }
 0x11c   : > { %13227 = vmatpush3.bf16.msra.mxu0 %v674_v8  ;;  %v14092_v8 = vld [vmem:[%s18514_s3 + $0x80] sm:$0xff]  }
 0x11d   : > { %13228 = vmatprep.subr.bf16.mxu0 %v675_v4  ;;  %v13246_v10 = vpop.f32.mrb[4].mxu1 }
 0x11e   : > { %v855_v11 = vpop.f32.mrb[5].mxu1 }
 0x11f   : > { %v13247_v14 = vpop.f32.mrb[6].mxu1 }
 0x120   : > { %13229 = vmatpush3.bf16.msra.mxu0 %v675_v4  ;;  %v871_v15 = vpack.c.bf16 %v13247_v14, %v13246_v10  ;;  %v858_v13 = vpop.f32.mrb[7].mxu1  ;;  %v14088_v4 = vld [vmem:[%s18514_s3 + $0x60] sm:$0xff]   ;;  %v1763_v10 = vpop.permute.xlu1 %1762 }
 0x121   : > { %13234 = vmatprep.subr.bf16.mxu0 %v610_v9  ;;  %v870_v17 = vpack.c.bf16 %v858_v13, %v855_v11  ;;  %v1753_v11 = vpop.permute.xlu0 %1752 }
 0x123   : > { %13231 = vmatmul.mubr.msk.bf16.vlgmr.msra.gmra.mrb[4].mxu0 %vm691_vm1, %v14077_v12 }
 0x124   : > { %13235 = vmatpush3.bf16.msra.mxu0 %v610_v9  ;;  %13238 = vmatprep.mubr.msk.bf16.mxu0 %vm691_vm1, %v14078_v16  ;;  %v14093_v9 = vld [vmem:[%s18514_s3 + $0x88] sm:$0xff]   ;;  %v1768_v13 = vpop.permute.xlu1 %1767 }
 0x125   : > { %13236 = vmatprep.subr.bf16.mxu0 %v611_v6  ;;  %v13260_v18 = vpop.f32.mrb[8].mxu1 }
 0x126   : > { %v989_v19 = vpop.f32.mrb[9].mxu1 }
 0x127   : > { %v13261_v20 = vpop.f32.mrb[10].mxu1 }
 0x128   : > { %13237 = vmatpush3.bf16.msra.mxu0 %v611_v6  ;;  %v1005_v21 = vpack.c.bf16 %v13261_v20, %v13260_v18  ;;  %v992_v22 = vpop.f32.mrb[11].mxu1  ;;  %v14090_v6 = vld [vmem:[%s18514_s3 + $0x70] sm:$0xff]   ;;  %v1758_v18 = vpop.permute.xlu0 %1757 }
 0x129   : > { %13248 = vmatprep.subr.bf16.mxu0 %v870_v17  ;;  %v1004_v23 = vpack.c.bf16 %v992_v22, %v989_v19 }
 0x12d   : > { %v13274_v26 = vpop.f32.mrb[12].mxu1 }
 0x12e   : > { %v1123_v27 = vpop.f32.mrb[13].mxu1 }
 0x12f   : > { %13239 = vmatmul.mubr.msk.bf16.vlgmr.msra.gmra.mrb[4].mxu0 %vm691_vm1, %v14079_v24  ;;  %v13275_v28 = vpop.f32.mrb[14].mxu1 }
 0x130   : > { %13249 = vmatpush3.bf16.msra.mxu0 %v870_v17  ;;  %13252 = vmatprep.mubr.msk.bf16.mxu0 %vm691_vm1, %v14080_v25  ;;  %v1139_v29 = vpack.c.bf16 %v13275_v28, %v13274_v26  ;;  %v1126_v30 = vpop.f32.mrb[15].mxu1 }
 0x131   : > { %13250 = vmatprep.subr.bf16.mxu0 %v871_v15  ;;  %v1138_v32 = vpack.c.bf16 %v1126_v30, %v1123_v27 }
 0x134   : > { %13251 = vmatpush3.bf16.msra.mxu0 %v871_v15 }
 0x135   : > { %13262 = vmatprep.subr.bf16.mxu0 %v1004_v23  ;;  %v13288_v33 = vpop.f32.mrb[16].mxu1 }
 0x136   : > { %v1257_v34 = vpop.f32.mrb[17].mxu1 }
 0x137   : > { %v13289_v36 = vpop.f32.mrb[18].mxu1 }
 0x138   : > { %v1273_v38 = vpack.c.bf16 %v13289_v36, %v13288_v33  ;;  %v1260_v39 = vpop.f32.mrb[19].mxu1 }
 0x139   : > { %v1272_v40 = vpack.c.bf16 %v1260_v39, %v1257_v34 }
 0x13b   : > { %13253 = vmatmul.mubr.msk.bf16.vlgmr.msra.gmra.mrb[4].mxu0 %vm691_vm1, %v14081_v35 }
 0x13c   : > { %13263 = vmatpush3.bf16.msra.mxu0 %v1004_v23  ;;  %13266 = vmatprep.mubr.msk.bf16.mxu0 %vm691_vm1, %v14082_v37 }
 0x13d   : > { %13264 = vmatprep.subr.bf16.mxu0 %v1005_v21  ;;  %v13302_v31 = vpop.f32.mrb[20].mxu1 }
 0x13e   : > { %v1391_v41 = vpop.f32.mrb[21].mxu1 }
 0x13f   : > { %v13303_v42 = vpop.f32.mrb[22].mxu1 }
 0x140   : > { %13265 = vmatpush3.bf16.msra.mxu0 %v1005_v21  ;;  %v1407_v44 = vpack.c.bf16 %v13303_v42, %v13302_v31  ;;  %v1394_v46 = vpop.f32.mrb[23].mxu1 }
 0x141   : > { %13276 = vmatprep.subr.bf16.mxu0 %v1138_v32  ;;  %v1406_v47 = vpack.c.bf16 %v1394_v46, %v1391_v41  ;;  %v14837_v46 = vld [vmem:[%s18518_s7 + $0x8] sm:$0xff]  }
 0x145   : > { %v13316_v50 = vpop.f32.mrb[24].mxu1 }
 0x146   : > { %v1525_v43 = vpop.f32.mrb[25].mxu1 }
 0x147   : > { %13267 = vmatmul.mubr.msk.bf16.vlgmr.msra.gmra.mrb[4].mxu0 %vm691_vm1, %v14083_v48  ;;  %v13317_v51 = vpop.f32.mrb[26].mxu1  ;;  %v14839_v48 = vld [vmem:[%s18518_s7 + $0x18] sm:$0xff]  }
 0x148   : > { %13277 = vmatpush3.bf16.msra.mxu0 %v1138_v32  ;;  %13280 = vmatprep.mubr.msk.bf16.mxu0 %vm691_vm1, %v14084_v49  ;;  %v1541_v45 = vpack.c.bf16 %v13317_v51, %v13316_v50  ;;  %v1528_v52 = vpop.f32.mrb[27].mxu1  ;;  %v14840_v49 = vld [vmem:[%s18518_s7 + $0x20] sm:$0xff]   ;;  %v14841_v50 = vld [vmem:[%s18518_s7 + $0x28] sm:$0xff]   ;;  %v14843_v51 = vld [vmem:[%s18518_s7 + $0x38] sm:$0xff]  }
 0x149   : > { %13278 = vmatprep.subr.bf16.mxu0 %v1139_v29  ;;  %v1540_v53 = vpack.c.bf16 %v1528_v52, %v1525_v43  ;;  %v14842_v43 = vld [vmem:[%s18518_s7 + $0x30] sm:$0xff]   ;;  %v14094_v52 = vld [vmem:[%s18514_s3 + $0xa0] sm:$0xff]  }
 0x14c   : > { %13279 = vmatpush3.bf16.msra.mxu0 %v1139_v29 }
 0x14d   : > { %13290 = vmatprep.subr.bf16.mxu0 %v1272_v40  ;;  %v13330_v55 = vpop.f32.mrb[28].mxu1 }
 0x14e   : > { %v1659_v56 = vpop.f32.mrb[29].mxu1 }
 0x14f   : > { %v13331_v61 = vpop.f32.mrb[30].mxu1 }
 0x150   : > { %v1675_v63 = vpack.c.bf16 %v13331_v61, %v13330_v55  ;;  %v1662_v1 = vpop.f32.mrb[31].mxu1 }
 0x151   : > { %v1674_v2 = vpack.c.bf16 %v1662_v1, %v1659_v56 }
 0x153   : > { %13281 = vmatmul.mubr.msk.bf16.vlgmr.msra.gmra.mrb[4].mxu0 %vm691_vm1, %v14085_v57 }
 0x154   : > { %13291 = vmatpush3.bf16.msra.mxu0 %v1272_v40  ;;  %13294 = vmatprep.mubr.msk.bf16.mxu0 %vm691_vm1, %v14086_v62 }
 0x155   : > { %13292 = vmatprep.subr.bf16.mxu0 %v1273_v38 }
 0x158   : > { %13293 = vmatpush3.bf16.msra.mxu0 %v1273_v38 }
 0x159   : > { %13304 = vmatprep.subr.bf16.mxu0 %v1406_v47 }
 0x15f   : > { %13295 = vmatmul.mubr.msk.bf16.vlgmr.msra.gmra.mrb[4].mxu0 %vm691_vm1, %v14087_v3 }
 0x160   : > { %13305 = vmatpush3.bf16.msra.mxu0 %v1406_v47  ;;  %13308 = vmatprep.mubr.msk.bf16.mxu0 %vm691_vm1, %v14088_v4  ;;  %v14838_v47 = vld [vmem:[%s18518_s7 + $0x10] sm:$0xff]  }
 0x161   : > { %13306 = vmatprep.subr.bf16.mxu0 %v1407_v44 }
 0x164   : > { %13307 = vmatpush3.bf16.msra.mxu0 %v1407_v44 }
 0x165   : > { %13318 = vmatprep.subr.bf16.mxu0 %v1540_v53 }
 0x16b   : > { %13309 = vmatmul.mubr.msk.bf16.vlgmr.msra.gmra.mrb[4].mxu0 %vm691_vm1, %v14089_v5 }
 0x16c   : > { %13319 = vmatpush3.bf16.msra.mxu0 %v1540_v53  ;;  %13322 = vmatprep.mubr.msk.bf16.mxu0 %vm691_vm1, %v14090_v6  ;;  %v15158_v53 = vmov 1  }
 0x16d   : > { %13320 = vmatprep.subr.bf16.mxu0 %v1541_v45  ;;  %14056 = vset.pattern.permute.xlu1 %v15158_v53 }
 0x16e   : > { %14055 = vset.pattern.permute.xlu0 %v15158_v53  ;;  %2928 = vperm.xlu1 %14056, %v15465_v0  }
 0x16f   : > { %2924 = vperm.xlu0 %14055, %v15453_v58  }
 0x170   : > { %13321 = vmatpush3.bf16.msra.mxu0 %v1541_v45  ;;  %v14844_v45 = vld [vmem:[%s18518_s7 + $0x40] sm:$0xff]  }
 0x171   : > { %13332 = vmatprep.subr.bf16.mxu0 %v1674_v2 }
 0x172   : > { %2932 = vperm.xlu1 %14056, %v15458_v59  }
 0x173   : > { %2936 = vperm.xlu0 %14055, %v15470_v60  }
 0x177   : > { %13323 = vmatmul.mubr.msk.bf16.vlgmr.msra.gmra.mrb[4].mxu0 %vm691_vm1, %v14091_v7 }
 0x178   : > { %13333 = vmatpush3.bf16.msra.mxu0 %v1674_v2  ;;  %13336 = vmatprep.mubr.msk.bf16.mxu0 %vm691_vm1, %v14092_v8 }
 0x179   : > { %13334 = vmatprep.subr.bf16.mxu0 %v1675_v63 }
 0x17c   : > { %13335 = vmatpush3.bf16.msra.mxu0 %v1675_v63 }
 0x183   : > { %13337 = vmatmul.mubr.msk.bf16.vlgmr.msra.gmra.mrb[4].mxu0 %vm691_vm1, %v14093_v9 }
 0x184   : > { %13356 = vmatprep.mubr.msk.bf16.mxu0 %vm691_vm1, %v14094_v52 }
 0x256   : > { %v13338_v12 = vpop.f32.mrb[4].mxu0 }
 0x257   : > { %v1772_v14 = vadd.f32 %v13338_v12, %v1763_v10  ;;  %v1731_v15 = vpop.f32.mrb[5].mxu0  ;;  %v14095_v10 = vld [vmem:[%s18514_s3 + $0xa8] sm:$0xff]  }
 0x258   : > { %v1770_v16 = vadd.f32 %v1753_v11, %v1731_v15  ;;  %v13339_v17 = vpop.f32.mrb[6].mxu0 }
 0x259   : > { %v1780_v19 = vmin.f32 %v1772_v14, 0.0  ;;  %v1773_v20 = vadd.f32 %v13339_v17, %v1768_v13  ;;  %v1734_v21 = vpop.f32.mrb[7].mxu0  ;;  %vm1776_vm2 = vcmp.gt.f32.partialorder %v1772_v14, 0.0 }
 0x25a   : > { %v1778_v22 = vmin.f32 %v1770_v16, 0.0  ;;  %v1771_v23 = vadd.f32 %v1758_v18, %v1734_v21  ;;  %vm1774_vm4 = vcmp.gt.f32.partialorder %v1770_v16, 0.0  ;;  %v14097_v21 = vld [vmem:[%s18514_s3 + $0x98] sm:$0xff]  }
 0x25b   : > { %v1786_v24 = vmul.f32 1.442695, %v1780_v19  ;;  %v1781_v25 = vmin.f32 %v1773_v20, 0.0  ;;  %vm1777_vm3 = vcmp.gt.f32.partialorder %v1773_v20, 0.0 }
 0x25c   : > { %v1782_v26 = vmul.f32 1.442695, %v1778_v22  ;;  %v1779_v27 = vmin.f32 %v1771_v23, 0.0  ;;  %vm1775_vm5 = vcmp.gt.f32.partialorder %v1771_v23, 0.0  ;;  %v14098_v22 = vld [vmem:[%s18514_s3 + $0xb0] sm:$0xff]  }
 0x25d   : > { %14769 = vpow2.f32 %v1786_v24  ;;  %v1788_v28 = vmul.f32 1.442695, %v1781_v25 }
 0x25e   : > { %14771 = vpow2.f32 %v1782_v26  ;;  %v1784_v29 = vmul.f32 1.442695, %v1779_v27 }
 0x25f   : > { %14773 = vpow2.f32 %v1788_v28 }
 0x260   : > { %14775 = vpow2.f32 %v1784_v29 }
 0x267   : > { %v14770_v30 = vpop.eup %14769 }
 0x268   : > { %v14772_v32 = vpop.eup %14771  ;;  %v11648_v33 = vadd.f32 -1.0, %v14770_v30 }
 0x269   : > { %v14774_v34 = vpop.eup %14773  ;;  %v11646_v35 = vadd.f32 -1.0, %v14772_v32 }
 0x26a   : > { %v14776_v36 = vpop.eup %14775  ;;  %v11649_v37 = vadd.f32 -1.0, %v14774_v34  ;;  %v1796_v39 = vsel %vm1776_vm2, %v1772_v14, %v11648_v33  ;;  %v14096_v14 = vld [vmem:[%s18514_s3 + $0x90] sm:$0xff]   ;;  %v14099_v33 = vld [vmem:[%s18514_s3 + $0xb8] sm:$0xff]  }
 0x26b   : > { %v11647_v38 = vadd.f32 -1.0, %v14776_v36  ;;  %v1794_v31 = vsel %vm1774_vm4, %v1770_v16, %v11646_v35  ;;  %v14100_v36 = vld [vmem:[%s18514_s3 + $0xc0] sm:$0xff]  }
 0x26c   : > { %v1797_v40 = vsel %vm1777_vm3, %v1773_v20, %v11649_v37 }
 0x26d   : > { %v1799_v41 = vpack.c.bf16 %v1797_v40, %v1796_v39  ;;  %v1795_v42 = vsel %vm1775_vm5, %v1771_v23, %v11647_v38 }
 0x26e   : > { %v1798_v44 = vpack.c.bf16 %v1795_v42, %v1794_v31 }
 0x270   : > { %13342 = vmatprep.mubr.msk.bf16.mxu1 %vm554_vm0, %v1798_v44 }
 0x271   : > { %13343 = vmatmul.mubr.msk.bf16.vlgmr.msra.gmra.mrb[32].mxu1 %vm554_vm0, %v1799_v41 }
 0x272   : > { %13348 = vmatprep.mubr.msk.bf16.mxu1 %vm554_vm0, %v1798_v44  ;;  %13347 = vmatpush3.bf16.msra.mxu1 %v14837_v46  ;;  %v14102_v46 = vld [vmem:[%s18514_s3 + $0xd0] sm:$0xff]  }
 0x273   : > { %13368 = vmatprep.subr.bf16.mxu1 %v14838_v47 }
 0x279   : > { %13349 = vmatmul.mubr.msk.bf16.vlgmr.msra.gmra.mrb[36].mxu1 %vm554_vm0, %v1799_v41 }
 0x27a   : > { %13370 = vmatprep.mubr.msk.bf16.mxu1 %vm554_vm0, %v1798_v44  ;;  %13369 = vmatpush3.bf16.msra.mxu1 %v14838_v47 }
 0x27b   : > { %13382 = vmatprep.subr.bf16.mxu1 %v14839_v48 }
 0x281   : > { %13371 = vmatmul.mubr.msk.bf16.vlgmr.msra.gmra.mrb[40].mxu1 %vm554_vm0, %v1799_v41 }
 0x282   : > { %13384 = vmatprep.mubr.msk.bf16.mxu1 %vm554_vm0, %v1798_v44  ;;  %13383 = vmatpush3.bf16.msra.mxu1 %v14839_v48 }
 0x283   : > { %13396 = vmatprep.subr.bf16.mxu1 %v14840_v49 }
 0x289   : > { %13385 = vmatmul.mubr.msk.bf16.vlgmr.msra.gmra.mrb[44].mxu1 %vm554_vm0, %v1799_v41 }
 0x28a   : > { %13398 = vmatprep.mubr.msk.bf16.mxu1 %vm554_vm0, %v1798_v44  ;;  %13397 = vmatpush3.bf16.msra.mxu1 %v14840_v49 }
 0x28b   : > { %13410 = vmatprep.subr.bf16.mxu1 %v14841_v50 }
 0x291   : > { %13399 = vmatmul.mubr.msk.bf16.vlgmr.msra.gmra.mrb[48].mxu1 %vm554_vm0, %v1799_v41 }
 0x292   : > { %13412 = vmatprep.mubr.msk.bf16.mxu1 %vm554_vm0, %v1798_v44  ;;  %13411 = vmatpush3.bf16.msra.mxu1 %v14841_v50 }
 0x293   : > { %13424 = vmatprep.subr.bf16.mxu1 %v14842_v43 }
 0x299   : > { %13413 = vmatmul.mubr.msk.bf16.vlgmr.msra.gmra.mrb[52].mxu1 %vm554_vm0, %v1799_v41 }
 0x29a   : > { %13426 = vmatprep.mubr.msk.bf16.mxu1 %vm554_vm0, %v1798_v44  ;;  %13425 = vmatpush3.bf16.msra.mxu1 %v14842_v43 }
 0x29b   : > { %13438 = vmatprep.subr.bf16.mxu1 %v14843_v51 }
 0x2a1   : > { %13427 = vmatmul.mubr.msk.bf16.vlgmr.msra.gmra.mrb[56].mxu1 %vm554_vm0, %v1799_v41 }
 0x2a2   : > { %13440 = vmatprep.mubr.msk.bf16.mxu1 %vm554_vm0, %v1798_v44  ;;  %13439 = vmatpush3.bf16.msra.mxu1 %v14843_v51 }
 0x2a3   : > { %13452 = vmatprep.subr.bf16.mxu1 %v14844_v45 }
 0x2a9   : > { %13441 = vmatmul.mubr.msk.bf16.vlgmr.msra.gmra.mrb[60].mxu1 %vm554_vm0, %v1799_v41 }
 0x2aa   : > { %13454 = vmatprep.mubr.msk.bf16.mxu1 %vm554_vm0, %v1798_v44  ;;  %13453 = vmatpush3.bf16.msra.mxu1 %v14844_v45  ;;  %v14101_v44 = vld [vmem:[%s18514_s3 + $0xc8] sm:$0xff]  }
 0x2b1   : > { %13455 = vmatmul.mubr.msk.bf16.vlgmr.msra.gmra.mrb[64].mxu1 %vm554_vm0, %v1799_v41 }
 0x344   : > { %v13344_v55 = vpop.f32.mrb[32].mxu1 }
 0x345   : > { %v1840_v56 = vpop.f32.mrb[33].mxu1 }
 0x346   : > { %v13345_v57 = vpop.f32.mrb[34].mxu1 }
 0x347   : > { %v1856_v61 = vpack.c.bf16 %v13345_v57, %v13344_v55  ;;  %v1843_v62 = vpop.f32.mrb[35].mxu1  ;;  %v14103_v55 = vld [vmem:[%s18514_s3 + $0xd8] sm:$0xff]  }
 0x348   : > { %v1855_v63 = vpack.c.bf16 %v1843_v62, %v1840_v56 }
 0x34c   : > { %v13350_v1 = vpop.f32.mrb[36].mxu1 }
 0x34d   : > { %v1896_v2 = vpop.f32.mrb[37].mxu1 }
 0x34e   : > { %v13351_v3 = vpop.f32.mrb[38].mxu1 }
 0x34f   : > { %v1912_v4 = vpack.c.bf16 %v13351_v3, %v13350_v1  ;;  %v1899_v5 = vpop.f32.mrb[39].mxu1  ;;  %v14106_v1 = vld [vmem:[%s18514_s3 + $0xf0] sm:$0xff]   ;;  %v14108_v3 = vld [vmem:[%s18514_s3 + $0x100] sm:$0xff]  }
 0x350   : > { %v1911_v6 = vpack.c.bf16 %v1899_v5, %v1896_v2  ;;  %v14107_v2 = vld [vmem:[%s18514_s3 + $0xf8] sm:$0xff]   ;;  %v14110_v5 = vld [vmem:[%s18514_s3 + $0x110] sm:$0xff]  }
 0x352   : > { %13352 = vmatprep.subr.bf16.mxu0 %v1911_v6 }
 0x353   : > { %13353 = vmatpush3.bf16.msra.mxu0 %v1911_v6  ;;  %v14111_v6 = vld [vmem:[%s18514_s3 + $0x118] sm:$0xff]  }
 0x354   : > { %13354 = vmatprep.subr.bf16.mxu0 %v1912_v4  ;;  %v13372_v7 = vpop.f32.mrb[40].mxu1 }
 0x355   : > { %v2082_v8 = vpop.f32.mrb[41].mxu1 }
 0x356   : > { %v13373_v9 = vpop.f32.mrb[42].mxu1 }
 0x357   : > { %v2098_v11 = vpack.c.bf16 %v13373_v9, %v13372_v7  ;;  %13355 = vmatpush3.bf16.msra.mxu0 %v1912_v4  ;;  %v2085_v12 = vpop.f32.mrb[43].mxu1  ;;  %v14109_v4 = vld [vmem:[%s18514_s3 + $0x108] sm:$0xff]   ;;  %v14112_v7 = vld [vmem:[%s18519_s8] sm:$0xff]   ;;  %v2929_v9 = vpop.permute.xlu1 %2928 }
 0x358   : > { %v2097_v15 = vpack.c.bf16 %v2085_v12, %v2082_v8  ;;  %13360 = vmatprep.subr.bf16.mxu0 %v1855_v63  ;;  %13466 = vmatprep.subr.bf16.mxu1 %v14112_v7  ;;  %v14113_v8 = vld [vmem:[%s18519_s8 + $0x8] sm:$0xff]  }
 0x359   : > { %13467 = vmatpush3.bf16.msra.mxu1 %v14112_v7  ;;  %v14123_v7 = vld [vmem:[%s18514_s3 + $0x120] sm:$0xff]  }
 0x35a   : > { %13357 = vmatmul.mubr.msk.bf16.vlgmr.msra.gmra.mrb[8].mxu0 %vm691_vm1, %v14095_v10  ;;  %13472 = vmatprep.subr.bf16.mxu1 %v14113_v8  ;;  %v2925_v10 = vpop.permute.xlu0 %2924 }
 0x35b   : > { %13361 = vmatpush3.bf16.msra.mxu0 %v1855_v63  ;;  %13364 = vmatprep.mubr.msk.bf16.mxu0 %vm691_vm1, %v14096_v14  ;;  %v14105_v63 = vld [vmem:[%s18514_s3 + $0xe8] sm:$0xff]  }
 0x35c   : > { %13362 = vmatprep.subr.bf16.mxu0 %v1856_v61  ;;  %v13386_v13 = vpop.f32.mrb[44].mxu1 }
 0x35d   : > { %v2207_v16 = vpop.f32.mrb[45].mxu1 }
 0x35e   : > { %v13387_v17 = vpop.f32.mrb[46].mxu1 }
 0x35f   : > { %v2223_v18 = vpack.c.bf16 %v13387_v17, %v13386_v13  ;;  %13363 = vmatpush3.bf16.msra.mxu0 %v1856_v61  ;;  %v2210_v19 = vpop.f32.mrb[47].mxu1  ;;  %v14104_v61 = vld [vmem:[%s18514_s3 + $0xe0] sm:$0xff]   ;;  %v2937_v13 = vpop.permute.xlu0 %2936 }
 0x360   : > { %v2222_v20 = vpack.c.bf16 %v2210_v19, %v2207_v16  ;;  %13374 = vmatprep.subr.bf16.mxu0 %v2097_v15 }
 0x364   : > { %v13400_v23 = vpop.f32.mrb[48].mxu1 }
 0x365   : > { %v2332_v24 = vpop.f32.mrb[49].mxu1 }
 0x366   : > { %13365 = vmatmul.mubr.msk.bf16.vlgmr.msra.gmra.mrb[8].mxu0 %vm691_vm1, %v14097_v21  ;;  %v13401_v25 = vpop.f32.mrb[50].mxu1 }
 0x367   : > { %13375 = vmatpush3.bf16.msra.mxu0 %v2097_v15  ;;  %v2348_v26 = vpack.c.bf16 %v13401_v25, %v13400_v23  ;;  %v2335_v27 = vpop.f32.mrb[51].mxu1  ;;  %13378 = vmatprep.mubr.msk.bf16.mxu0 %vm691_vm1, %v14098_v22 }
 0x368   : > { %13376 = vmatprep.subr.bf16.mxu0 %v2098_v11  ;;  %v2347_v28 = vpack.c.bf16 %v2335_v27, %v2332_v24 }
 0x36b   : > { %13377 = vmatpush3.bf16.msra.mxu0 %v2098_v11  ;;  %v2933_v11 = vpop.permute.xlu1 %2932 }
 0x36c   : > { %13388 = vmatprep.subr.bf16.mxu0 %v2222_v20  ;;  %v13414_v29 = vpop.f32.mrb[52].mxu1 }
 0x36d   : > { %v2457_v30 = vpop.f32.mrb[53].mxu1 }
 0x36e   : > { %v13415_v32 = vpop.f32.mrb[54].mxu1 }
 0x36f   : > { %v2473_v34 = vpack.c.bf16 %v13415_v32, %v13414_v29  ;;  %v2460_v35 = vpop.f32.mrb[55].mxu1 }
 0x370   : > { %v2472_v37 = vpack.c.bf16 %v2460_v35, %v2457_v30 }
 0x372   : > { %13379 = vmatmul.mubr.msk.bf16.vlgmr.msra.gmra.mrb[8].mxu0 %vm691_vm1, %v14099_v33 }
 0x373   : > { %13389 = vmatpush3.bf16.msra.mxu0 %v2222_v20  ;;  %13392 = vmatprep.mubr.msk.bf16.mxu0 %vm691_vm1, %v14100_v36 }
 0x374   : > { %13390 = vmatprep.subr.bf16.mxu0 %v2223_v18  ;;  %v13428_v38 = vpop.f32.mrb[56].mxu1 }
 0x375   : > { %v2582_v39 = vpop.f32.mrb[57].mxu1 }
 0x376   : > { %v13429_v40 = vpop.f32.mrb[58].mxu1 }
 0x377   : > { %13391 = vmatpush3.bf16.msra.mxu0 %v2223_v18  ;;  %v2598_v31 = vpack.c.bf16 %v13429_v40, %v13428_v38  ;;  %v2585_v41 = vpop.f32.mrb[59].mxu1 }
 0x378   : > { %13402 = vmatprep.subr.bf16.mxu0 %v2347_v28  ;;  %v2597_v42 = vpack.c.bf16 %v2585_v41, %v2582_v39 }
 0x37c   : > { %v13442_v47 = vpop.f32.mrb[60].mxu1 }
 0x37d   : > { %v2707_v48 = vpop.f32.mrb[61].mxu1 }
 0x37e   : > { %13393 = vmatmul.mubr.msk.bf16.vlgmr.msra.gmra.mrb[8].mxu0 %vm691_vm1, %v14101_v44  ;;  %v13443_v49 = vpop.f32.mrb[62].mxu1  ;;  %v14114_v44 = vld [vmem:[%s18519_s8 + $0x10] sm:$0xff]  }
 0x37f   : > { %13403 = vmatpush3.bf16.msra.mxu0 %v2347_v28  ;;  %v2723_v50 = vpack.c.bf16 %v13443_v49, %v13442_v47  ;;  %v2710_v43 = vpop.f32.mrb[63].mxu1  ;;  %13406 = vmatprep.mubr.msk.bf16.mxu0 %vm691_vm1, %v14102_v46  ;;  %v14115_v46 = vld [vmem:[%s18519_s8 + $0x18] sm:$0xff]   ;;  %v14116_v47 = vld [vmem:[%s18519_s8 + $0x20] sm:$0xff]   ;;  %v14118_v49 = vld [vmem:[%s18519_s8 + $0x30] sm:$0xff]  }
 0x380   : > { %13404 = vmatprep.subr.bf16.mxu0 %v2348_v26  ;;  %v2722_v51 = vpack.c.bf16 %v2710_v43, %v2707_v48  ;;  %v14117_v48 = vld [vmem:[%s18519_s8 + $0x28] sm:$0xff]   ;;  %v14120_v43 = vld [vmem:[%s18519_s8 + $0x40] sm:$0xff]  }
 0x383   : > { %13405 = vmatpush3.bf16.msra.mxu0 %v2348_v26 }
 0x384   : > { %13416 = vmatprep.subr.bf16.mxu0 %v2472_v37  ;;  %v13456_v45 = vpop.f32.mrb[64].mxu1 }
 0x385   : > { %v2832_v52 = vpop.f32.mrb[65].mxu1 }
 0x386   : > { %v13457_v53 = vpop.f32.mrb[66].mxu1 }
 0x387   : > { %v2848_v56 = vpack.c.bf16 %v13457_v53, %v13456_v45  ;;  %v2835_v57 = vpop.f32.mrb[67].mxu1  ;;  %v15159_v45 = vmov 2  }
 0x388   : > { %v2847_v62 = vpack.c.bf16 %v2835_v57, %v2832_v52  ;;  %14057 = vset.pattern.permute.xlu1 %v15159_v45  ;;  %14058 = vset.pattern.permute.xlu0 %v15159_v45  ;;  %v14131_v45 = vld [vmem:[%s18514_s3 + $0x170] sm:$0xff]  }
 0x389   : > { %4173 = vperm.xlu1 %14057, %v15453_v58   ;;  %4177 = vperm.xlu0 %14058, %v15465_v0  }
 0x38a   : > { %13407 = vmatmul.mubr.msk.bf16.vlgmr.msra.gmra.mrb[8].mxu0 %vm691_vm1, %v14103_v55 }
 0x38b   : > { %13417 = vmatpush3.bf16.msra.mxu0 %v2472_v37  ;;  %13420 = vmatprep.mubr.msk.bf16.mxu0 %vm691_vm1, %v14104_v61 }
 0x38c   : > { %13418 = vmatprep.subr.bf16.mxu0 %v2473_v34 }
 0x38d   : > { %4181 = vperm.xlu1 %14057, %v15458_v59  }
 0x38f   : > { %13419 = vmatpush3.bf16.msra.mxu0 %v2473_v34 }
 0x390   : > { %13430 = vmatprep.subr.bf16.mxu0 %v2597_v42 }
 0x391   : > { %4185 = vperm.xlu1 %14057, %v15470_v60   ;;  %v14122_v60 = vld [vmem:[%s18514_s3 + $0x138] sm:$0xff]  }
 0x396   : > { %13421 = vmatmul.mubr.msk.bf16.vlgmr.msra.gmra.mrb[8].mxu0 %vm691_vm1, %v14105_v63 }
 0x397   : > { %13431 = vmatpush3.bf16.msra.mxu0 %v2597_v42  ;;  %13434 = vmatprep.mubr.msk.bf16.mxu0 %vm691_vm1, %v14106_v1 }
 0x398   : > { %13432 = vmatprep.subr.bf16.mxu0 %v2598_v31 }
 0x39b   : > { %13433 = vmatpush3.bf16.msra.mxu0 %v2598_v31 }
 0x39c   : > { %13444 = vmatprep.subr.bf16.mxu0 %v2722_v51 }
 0x3a2   : > { %13435 = vmatmul.mubr.msk.bf16.vlgmr.msra.gmra.mrb[8].mxu0 %vm691_vm1, %v14107_v2 }
 0x3a3   : > { %13445 = vmatpush3.bf16.msra.mxu0 %v2722_v51  ;;  %13448 = vmatprep.mubr.msk.bf16.mxu0 %vm691_vm1, %v14108_v3  ;;  %v14121_v51 = vld [vmem:[%s18514_s3 + $0x130] sm:$0xff]  }
 0x3a4   : > { %13446 = vmatprep.subr.bf16.mxu0 %v2723_v50 }
 0x3a7   : > { %13447 = vmatpush3.bf16.msra.mxu0 %v2723_v50  ;;  %v14119_v50 = vld [vmem:[%s18519_s8 + $0x38] sm:$0xff]  }
 0x3a8   : > { %13458 = vmatprep.subr.bf16.mxu0 %v2847_v62 }
 0x3ae   : > { %13449 = vmatmul.mubr.msk.bf16.vlgmr.msra.gmra.mrb[8].mxu0 %vm691_vm1, %v14109_v4 }
 0x3af   : > { %13459 = vmatpush3.bf16.msra.mxu0 %v2847_v62  ;;  %13462 = vmatprep.mubr.msk.bf16.mxu0 %vm691_vm1, %v14110_v5 }
 0x3b0   : > { %13460 = vmatprep.subr.bf16.mxu0 %v2848_v56 }
 0x3b3   : > { %13461 = vmatpush3.bf16.msra.mxu0 %v2848_v56 }
 0x3ba   : > { %13463 = vmatmul.mubr.msk.bf16.vlgmr.msra.gmra.mrb[8].mxu0 %vm691_vm1, %v14111_v6 }
 0x3bb   : > { %13482 = vmatprep.mubr.msk.bf16.mxu0 %vm691_vm1, %v14121_v51 }
 0x48d   : > { %v13464_v12 = vpop.f32.mrb[8].mxu0 }
 0x48e   : > { %v2941_v14 = vadd.f32 %v13464_v12, %v2933_v11  ;;  %v2904_v15 = vpop.f32.mrb[9].mxu0 }
 0x48f   : > { %v2939_v16 = vadd.f32 %v2925_v10, %v2904_v15  ;;  %v13465_v17 = vpop.f32.mrb[10].mxu0 }
 0x490   : > { %v2949_v18 = vmin.f32 %v2941_v14, 0.0  ;;  %v2942_v19 = vadd.f32 %v13465_v17, %v2937_v13  ;;  %v2907_v20 = vpop.f32.mrb[11].mxu0  ;;  %vm2945_vm6 = vcmp.gt.f32.partialorder %v2941_v14, 0.0  ;;  %v14124_v13 = vld [vmem:[%s18514_s3 + $0x128] sm:$0xff]  }
 0x491   : > { %v2947_v21 = vmin.f32 %v2939_v16, 0.0  ;;  %v2940_v22 = vadd.f32 %v2929_v9, %v2907_v20  ;;  %vm2943_vm8 = vcmp.gt.f32.partialorder %v2939_v16, 0.0 }
 0x492   : > { %v2955_v23 = vmul.f32 1.442695, %v2949_v18  ;;  %v2950_v24 = vmin.f32 %v2942_v19, 0.0  ;;  %vm2946_vm7 = vcmp.gt.f32.partialorder %v2942_v19, 0.0 }
 0x493   : > { %v2951_v25 = vmul.f32 1.442695, %v2947_v21  ;;  %v2948_v26 = vmin.f32 %v2940_v22, 0.0  ;;  %vm2944_vm9 = vcmp.gt.f32.partialorder %v2940_v22, 0.0 }
 0x494   : > { %14777 = vpow2.f32 %v2955_v23  ;;  %v2957_v27 = vmul.f32 1.442695, %v2950_v24 }
 0x495   : > { %14779 = vpow2.f32 %v2951_v25  ;;  %v2953_v28 = vmul.f32 1.442695, %v2948_v26  ;;  %v14126_v26 = vld [vmem:[%s18514_s3 + $0x148] sm:$0xff]  }
 0x496   : > { %14781 = vpow2.f32 %v2957_v27 }
 0x497   : > { %14783 = vpow2.f32 %v2953_v28 }
 0x49e   : > { %v14778_v29 = vpop.eup %14777 }
 0x49f   : > { %v14780_v30 = vpop.eup %14779  ;;  %v11742_v32 = vadd.f32 -1.0, %v14778_v29  ;;  %v14127_v29 = vld [vmem:[%s18514_s3 + $0x150] sm:$0xff]  }
 0x4a0   : > { %v14782_v33 = vpop.eup %14781  ;;  %v11740_v34 = vadd.f32 -1.0, %v14780_v30 }
 0x4a1   : > { %v14784_v35 = vpop.eup %14783  ;;  %v11743_v36 = vadd.f32 -1.0, %v14782_v33  ;;  %v2965_v38 = vsel %vm2945_vm6, %v2941_v14, %v11742_v32 }
 0x4a2   : > { %v11741_v37 = vadd.f32 -1.0, %v14784_v35  ;;  %v2963_v40 = vsel %vm2943_vm8, %v2939_v16, %v11740_v34  ;;  %v14125_v16 = vld [vmem:[%s18514_s3 + $0x140] sm:$0xff]  }
 0x4a3   : > { %v2966_v39 = vsel %vm2946_vm7, %v2942_v19, %v11743_v36 }
 0x4a4   : > { %v2968_v31 = vpack.c.bf16 %v2966_v39, %v2965_v38  ;;  %v2964_v41 = vsel %vm2944_vm9, %v2940_v22, %v11741_v37  ;;  %v14128_v38 = vld [vmem:[%s18514_s3 + $0x158] sm:$0xff]   ;;  %v14129_v39 = vld [vmem:[%s18514_s3 + $0x160] sm:$0xff]  }
 0x4a5   : > { %v2967_v42 = vpack.c.bf16 %v2964_v41, %v2963_v40 }
 0x4a7   : > { %13468 = vmatprep.mubr.msk.bf16.mxu1 %vm554_vm0, %v2967_v42 }
 0x4a8   : > { %13469 = vmatmul.mubr.msk.bf16.vlgmr.msra.gmra.mrb[68].mxu1 %vm554_vm0, %v2968_v31 }
 0x4a9   : > { %13474 = vmatprep.mubr.msk.bf16.mxu1 %vm554_vm0, %v2967_v42  ;;  %13473 = vmatpush3.bf16.msra.mxu1 %v14113_v8 }
 0x4aa   : > { %13494 = vmatprep.subr.bf16.mxu1 %v14114_v44 }
 0x4b0   : > { %13475 = vmatmul.mubr.msk.bf16.vlgmr.msra.gmra.mrb[72].mxu1 %vm554_vm0, %v2968_v31 }
 0x4b1   : > { %13496 = vmatprep.mubr.msk.bf16.mxu1 %vm554_vm0, %v2967_v42  ;;  %13495 = vmatpush3.bf16.msra.mxu1 %v14114_v44 }
 0x4b2   : > { %13508 = vmatprep.subr.bf16.mxu1 %v14115_v46 }
 0x4b8   : > { %13497 = vmatmul.mubr.msk.bf16.vlgmr.msra.gmra.mrb[76].mxu1 %vm554_vm0, %v2968_v31 }
 0x4b9   : > { %13510 = vmatprep.mubr.msk.bf16.mxu1 %vm554_vm0, %v2967_v42  ;;  %13509 = vmatpush3.bf16.msra.mxu1 %v14115_v46 }
 0x4ba   : > { %13522 = vmatprep.subr.bf16.mxu1 %v14116_v47 }
 0x4c0   : > { %13511 = vmatmul.mubr.msk.bf16.vlgmr.msra.gmra.mrb[80].mxu1 %vm554_vm0, %v2968_v31 }
 0x4c1   : > { %13524 = vmatprep.mubr.msk.bf16.mxu1 %vm554_vm0, %v2967_v42  ;;  %13523 = vmatpush3.bf16.msra.mxu1 %v14116_v47 }
 0x4c2   : > { %13536 = vmatprep.subr.bf16.mxu1 %v14117_v48 }
 0x4c8   : > { %13525 = vmatmul.mubr.msk.bf16.vlgmr.msra.gmra.mrb[84].mxu1 %vm554_vm0, %v2968_v31 }
 0x4c9   : > { %13538 = vmatprep.mubr.msk.bf16.mxu1 %vm554_vm0, %v2967_v42  ;;  %13537 = vmatpush3.bf16.msra.mxu1 %v14117_v48 }
 0x4ca   : > { %13550 = vmatprep.subr.bf16.mxu1 %v14118_v49 }
 0x4d0   : > { %13539 = vmatmul.mubr.msk.bf16.vlgmr.msra.gmra.mrb[88].mxu1 %vm554_vm0, %v2968_v31 }
 0x4d1   : > { %13552 = vmatprep.mubr.msk.bf16.mxu1 %vm554_vm0, %v2967_v42  ;;  %13551 = vmatpush3.bf16.msra.mxu1 %v14118_v49 }
 0x4d2   : > { %13564 = vmatprep.subr.bf16.mxu1 %v14119_v50 }
 0x4d8   : > { %13553 = vmatmul.mubr.msk.bf16.vlgmr.msra.gmra.mrb[92].mxu1 %vm554_vm0, %v2968_v31 }
 0x4d9   : > { %13566 = vmatprep.mubr.msk.bf16.mxu1 %vm554_vm0, %v2967_v42  ;;  %13565 = vmatpush3.bf16.msra.mxu1 %v14119_v50  ;;  %v14130_v50 = vld [vmem:[%s18514_s3 + $0x168] sm:$0xff]  }
 0x4da   : > { %13578 = vmatprep.subr.bf16.mxu1 %v14120_v43 }
 0x4e0   : > { %13567 = vmatmul.mubr.msk.bf16.vlgmr.msra.gmra.mrb[96].mxu1 %vm554_vm0, %v2968_v31 }
 0x4e1   : > { %13580 = vmatprep.mubr.msk.bf16.mxu1 %vm554_vm0, %v2967_v42  ;;  %13579 = vmatpush3.bf16.msra.mxu1 %v14120_v43 }
 0x4e8   : > { %13581 = vmatmul.mubr.msk.bf16.vlgmr.msra.gmra.mrb[100].mxu1 %vm554_vm0, %v2968_v31 }
 0x57b   : > { %v13470_v52 = vpop.f32.mrb[68].mxu1 }
 0x57c   : > { %v3017_v53 = vpop.f32.mrb[69].mxu1 }
 0x57d   : > { %v13471_v55 = vpop.f32.mrb[70].mxu1 }
 0x57e   : > { %v3033_v56 = vpack.c.bf16 %v13471_v55, %v13470_v52  ;;  %v3020_v57 = vpop.f32.mrb[71].mxu1  ;;  %v14133_v55 = vld [vmem:[%s18514_s3 + $0x180] sm:$0xff]  }
 0x57f   : > { %v3032_v61 = vpack.c.bf16 %v3020_v57, %v3017_v53  ;;  %v14132_v53 = vld [vmem:[%s18514_s3 + $0x178] sm:$0xff]   ;;  %v14135_v57 = vld [vmem:[%s18514_s3 + $0x190] sm:$0xff]  }
 0x583   : > { %v13476_v62 = vpop.f32.mrb[72].mxu1 }
 0x584   : > { %v3082_v63 = vpop.f32.mrb[73].mxu1 }
 0x585   : > { %v13477_v1 = vpop.f32.mrb[74].mxu1 }
 0x586   : > { %v3098_v2 = vpack.c.bf16 %v13477_v1, %v13476_v62  ;;  %v3085_v3 = vpop.f32.mrb[75].mxu1  ;;  %v14137_v62 = vld [vmem:[%s18514_s3 + $0x1a0] sm:$0xff]  }
 0x587   : > { %v3097_v4 = vpack.c.bf16 %v3085_v3, %v3082_v63  ;;  %v14138_v63 = vld [vmem:[%s18514_s3 + $0x1a8] sm:$0xff]   ;;  %v14139_v1 = vld [vmem:[%s18520_s9 + $0x20] sm:$0xff]  }
 0x588   : > { %v14141_v3 = vld [vmem:[%s18520_s9 + $0x28] sm:$0xff]  }
 0x589   : > { %13478 = vmatprep.subr.bf16.mxu0 %v3097_v4 }
 0x58a   : > { %13479 = vmatpush3.bf16.msra.mxu0 %v3097_v4  ;;  %v14142_v4 = vld [vmem:[%s18520_s9 + $0x8] sm:$0xff]  }
 0x58b   : > { %13480 = vmatprep.subr.bf16.mxu0 %v3098_v2  ;;  %v13498_v58 = vpop.f32.mrb[76].mxu1 }
 0x58c   : > { %v3277_v0 = vpop.f32.mrb[77].mxu1 }
 0x58d   : > { %v13499_v59 = vpop.f32.mrb[78].mxu1 }
 0x58e   : > { %v3293_v5 = vpack.c.bf16 %v13499_v59, %v13498_v58  ;;  %13481 = vmatpush3.bf16.msra.mxu0 %v3098_v2  ;;  %v3280_v6 = vpop.f32.mrb[79].mxu1  ;;  %v14140_v2 = vld [vmem:[%s18520_s9] sm:$0xff]   ;;  %v14143_v58 = vld [vmem:[%s18520_s9 + $0x30] sm:$0xff]   ;;  %v14145_v59 = vld [vmem:[%s18520_s9 + $0x38] sm:$0xff]  }
 0x58f   : > { %v3292_v8 = vpack.c.bf16 %v3280_v6, %v3277_v0  ;;  %13486 = vmatprep.subr.bf16.mxu0 %v3032_v61  ;;  %13592 = vmatprep.subr.bf16.mxu1 %v14140_v2  ;;  %v14144_v0 = vld [vmem:[%s18520_s9 + $0x10] sm:$0xff]   ;;  %v4174_v6 = vpop.permute.xlu1 %4173 }
 0x590   : > { %13593 = vmatpush3.bf16.msra.mxu1 %v14140_v2 }
 0x591   : > { %13483 = vmatmul.mubr.msk.bf16.vlgmr.msra.gmra.mrb[12].mxu0 %vm691_vm1, %v14122_v60  ;;  %13594 = vmatprep.subr.bf16.mxu1 %v14142_v4  ;;  %v14146_v60 = vld [vmem:[%s18520_s9 + $0x18] sm:$0xff]  }
 0x592   : > { %13487 = vmatpush3.bf16.msra.mxu0 %v3032_v61  ;;  %13490 = vmatprep.mubr.msk.bf16.mxu0 %vm691_vm1, %v14123_v7  ;;  %v14136_v61 = vld [vmem:[%s18514_s3 + $0x198] sm:$0xff]  }
 0x593   : > { %13488 = vmatprep.subr.bf16.mxu0 %v3033_v56  ;;  %v13512_v9 = vpop.f32.mrb[80].mxu1  ;;  %v4182_v7 = vpop.permute.xlu1 %4181 }
 0x594   : > { %v3411_v10 = vpop.f32.mrb[81].mxu1  ;;  %13595 = vmatpush3.bf16.msra.mxu1 %v14142_v4 }
 0x595   : > { %v13513_v11 = vpop.f32.mrb[82].mxu1  ;;  %13596 = vmatprep.subr.bf16.mxu1 %v14144_v0 }
 0x596   : > { %v3427_v12 = vpack.c.bf16 %v13513_v11, %v13512_v9  ;;  %13489 = vmatpush3.bf16.msra.mxu0 %v3033_v56  ;;  %v3414_v14 = vpop.f32.mrb[83].mxu1  ;;  %v14134_v56 = vld [vmem:[%s18514_s3 + $0x188] sm:$0xff]   ;;  %v4178_v11 = vpop.permute.xlu0 %4177 }
 0x597   : > { %v3426_v15 = vpack.c.bf16 %v3414_v14, %v3411_v10  ;;  %13500 = vmatprep.subr.bf16.mxu0 %v3292_v8 }
 0x598   : > { %13597 = vmatpush3.bf16.msra.mxu1 %v14144_v0 }
 0x599   : > { %13598 = vmatprep.subr.bf16.mxu1 %v14146_v60 }
 0x59b   : > { %v13526_v17 = vpop.f32.mrb[84].mxu1 }
 0x59c   : > { %v3545_v18 = vpop.f32.mrb[85].mxu1  ;;  %13599 = vmatpush3.bf16.msra.mxu1 %v14146_v60 }
 0x59d   : > { %13491 = vmatmul.mubr.msk.bf16.vlgmr.msra.gmra.mrb[12].mxu0 %vm691_vm1, %v14124_v13  ;;  %v13527_v19 = vpop.f32.mrb[86].mxu1 }
 0x59e   : > { %13501 = vmatpush3.bf16.msra.mxu0 %v3292_v8  ;;  %v3561_v20 = vpack.c.bf16 %v13527_v19, %v13526_v17  ;;  %v3548_v21 = vpop.f32.mrb[87].mxu1  ;;  %13504 = vmatprep.mubr.msk.bf16.mxu0 %vm691_vm1, %v14125_v16 }
 0x59f   : > { %13502 = vmatprep.subr.bf16.mxu0 %v3293_v5  ;;  %v3560_v22 = vpack.c.bf16 %v3548_v21, %v3545_v18 }
 0x5a2   : > { %13503 = vmatpush3.bf16.msra.mxu0 %v3293_v5  ;;  %v14147_v5 = vld [vmem:[%s18520_s9 + $0x40] sm:$0xff]  }
 0x5a3   : > { %13514 = vmatprep.subr.bf16.mxu0 %v3426_v15  ;;  %v13540_v23 = vpop.f32.mrb[88].mxu1 }
 0x5a4   : > { %v3679_v24 = vpop.f32.mrb[89].mxu1 }
 0x5a5   : > { %v13541_v25 = vpop.f32.mrb[90].mxu1 }
 0x5a6   : > { %v3695_v27 = vpack.c.bf16 %v13541_v25, %v13540_v23  ;;  %v3682_v28 = vpop.f32.mrb[91].mxu1 }
 0x5a7   : > { %v3694_v30 = vpack.c.bf16 %v3682_v28, %v3679_v24 }
 0x5a9   : > { %13505 = vmatmul.mubr.msk.bf16.vlgmr.msra.gmra.mrb[12].mxu0 %vm691_vm1, %v14126_v26 }
 0x5aa   : > { %13515 = vmatpush3.bf16.msra.mxu0 %v3426_v15  ;;  %13518 = vmatprep.mubr.msk.bf16.mxu0 %vm691_vm1, %v14127_v29 }
 0x5ab   : > { %13516 = vmatprep.subr.bf16.mxu0 %v3427_v12  ;;  %v13554_v32 = vpop.f32.mrb[92].mxu1 }
 0x5ac   : > { %v3813_v33 = vpop.f32.mrb[93].mxu1 }
 0x5ad   : > { %v13555_v34 = vpop.f32.mrb[94].mxu1 }
 0x5ae   : > { %13517 = vmatpush3.bf16.msra.mxu0 %v3427_v12  ;;  %v3829_v35 = vpack.c.bf16 %v13555_v34, %v13554_v32  ;;  %v3816_v36 = vpop.f32.mrb[95].mxu1  ;;  %v4186_v12 = vpop.permute.xlu1 %4185 }
 0x5af   : > { %13528 = vmatprep.subr.bf16.mxu0 %v3560_v22  ;;  %v3828_v37 = vpack.c.bf16 %v3816_v36, %v3813_v33 }
 0x5b3   : > { %v13568_v40 = vpop.f32.mrb[96].mxu1 }
 0x5b4   : > { %v3947_v31 = vpop.f32.mrb[97].mxu1 }
 0x5b5   : > { %13519 = vmatmul.mubr.msk.bf16.vlgmr.msra.gmra.mrb[12].mxu0 %vm691_vm1, %v14128_v38  ;;  %v13569_v41 = vpop.f32.mrb[98].mxu1 }
 0x5b6   : > { %13529 = vmatpush3.bf16.msra.mxu0 %v3560_v22  ;;  %v3963_v42 = vpack.c.bf16 %v13569_v41, %v13568_v40  ;;  %v3950_v44 = vpop.f32.mrb[99].mxu1  ;;  %13532 = vmatprep.mubr.msk.bf16.mxu0 %vm691_vm1, %v14129_v39  ;;  %v14149_v41 = vld [vmem:[%s18520_s9 + $0x50] sm:$0xff]  }
 0x5b7   : > { %13530 = vmatprep.subr.bf16.mxu0 %v3561_v20  ;;  %v3962_v46 = vpack.c.bf16 %v3950_v44, %v3947_v31  ;;  %v14148_v31 = vld [vmem:[%s18520_s9 + $0x48] sm:$0xff]   ;;  %v14151_v44 = vld [vmem:[%s18520_s9 + $0x80] sm:$0xff]  }
 0x5ba   : > { %13531 = vmatpush3.bf16.msra.mxu0 %v3561_v20 }
 0x5bb   : > { %13542 = vmatprep.subr.bf16.mxu0 %v3694_v30  ;;  %v13582_v47 = vpop.f32.mrb[100].mxu1 }
 0x5bc   : > { %v4081_v48 = vpop.f32.mrb[101].mxu1 }
 0x5bd   : > { %v13583_v49 = vpop.f32.mrb[102].mxu1 }
 0x5be   : > { %v4097_v43 = vpack.c.bf16 %v13583_v49, %v13582_v47  ;;  %v4084_v51 = vpop.f32.mrb[103].mxu1  ;;  %v14153_v47 = vld [vmem:[%s18520_s9 + $0x90] sm:$0xff]   ;;  %v14155_v49 = vld [vmem:[%s18520_s9 + $0xa0] sm:$0xff]  }
 0x5bf   : > { %v4096_v52 = vpack.c.bf16 %v4084_v51, %v4081_v48  ;;  %v14154_v48 = vld [vmem:[%s18520_s9 + $0x98] sm:$0xff]  }
 0x5c0   : > { %v14158_v51 = vld [vmem:[%s18520_s9 + $0xb8] sm:$0xff]  }
 0x5c1   : > { %13533 = vmatmul.mubr.msk.bf16.vlgmr.msra.gmra.mrb[12].mxu0 %vm691_vm1, %v14130_v50  ;;  %v14156_v50 = vld [vmem:[%s18520_s9 + $0xa8] sm:$0xff]  }
 0x5c2   : > { %13543 = vmatpush3.bf16.msra.mxu0 %v3694_v30  ;;  %13546 = vmatprep.mubr.msk.bf16.mxu0 %vm691_vm1, %v14131_v45  ;;  %v14159_v45 = vld [vmem:[%s18520_s9 + $0xc0] sm:$0xff]  }
 0x5c3   : > { %13544 = vmatprep.subr.bf16.mxu0 %v3695_v27 }
 0x5c6   : > { %13545 = vmatpush3.bf16.msra.mxu0 %v3695_v27 }
 0x5c7   : > { %13556 = vmatprep.subr.bf16.mxu0 %v3828_v37 }
 0x5cd   : > { %13547 = vmatmul.mubr.msk.bf16.vlgmr.msra.gmra.mrb[12].mxu0 %vm691_vm1, %v14132_v53  ;;  %v14161_v53 = vld [vmem:[%s18520_s9 + $0xd0] sm:$0xff]  }
 0x5ce   : > { %13557 = vmatpush3.bf16.msra.mxu0 %v3828_v37  ;;  %13560 = vmatprep.mubr.msk.bf16.mxu0 %vm691_vm1, %v14133_v55  ;;  %v14162_v55 = vld [vmem:[%s18520_s9 + $0xd8] sm:$0xff]  }
 0x5cf   : > { %13558 = vmatprep.subr.bf16.mxu0 %v3829_v35 }
 0x5d2   : > { %13559 = vmatpush3.bf16.msra.mxu0 %v3829_v35 }
 0x5d3   : > { %13570 = vmatprep.subr.bf16.mxu0 %v3962_v46 }
 0x5d9   : > { %13561 = vmatmul.mubr.msk.bf16.vlgmr.msra.gmra.mrb[12].mxu0 %vm691_vm1, %v14134_v56  ;;  %v14163_v56 = vld [vmem:[%s18520_s9 + $0x100] sm:$0xff]  }
 0x5da   : > { %13571 = vmatpush3.bf16.msra.mxu0 %v3962_v46  ;;  %13574 = vmatprep.mubr.msk.bf16.mxu0 %vm691_vm1, %v14135_v57  ;;  %v14152_v46 = vld [vmem:[%s18520_s9 + $0x88] sm:$0xff]  }
 0x5db   : > { %13572 = vmatprep.subr.bf16.mxu0 %v3963_v42  ;;  %v14164_v57 = vld [vmem:[%s18520_s9 + $0x108] sm:$0xff]  }
 0x5de   : > { %13573 = vmatpush3.bf16.msra.mxu0 %v3963_v42  ;;  %v14150_v42 = vld [vmem:[%s18520_s9 + $0x58] sm:$0xff]  }
 0x5df   : > { %13584 = vmatprep.subr.bf16.mxu0 %v4096_v52 }
 0x5e5   : > { %13575 = vmatmul.mubr.msk.bf16.vlgmr.msra.gmra.mrb[12].mxu0 %vm691_vm1, %v14136_v61  ;;  %v14165_v61 = vld [vmem:[%s18520_s9 + $0x110] sm:$0xff]  }
 0x5e6   : > { %13585 = vmatpush3.bf16.msra.mxu0 %v4096_v52  ;;  %13588 = vmatprep.mubr.msk.bf16.mxu0 %vm691_vm1, %v14137_v62  ;;  %v14160_v52 = vld [vmem:[%s18520_s9 + $0xc8] sm:$0xff]   ;;  %v14166_v62 = vld [vmem:[%s18520_s9 + $0x118] sm:$0xff]  }
 0x5e7   : > { %13586 = vmatprep.subr.bf16.mxu0 %v4097_v43 }
 0x5ea   : > { %13587 = vmatpush3.bf16.msra.mxu0 %v4097_v43  ;;  %v14157_v43 = vld [vmem:[%s18520_s9 + $0xb0] sm:$0xff]  }
 0x5eb   : > { %13604 = vmatprep.subr.bf16.mxu0 %v14139_v1 }
 0x5f1   : > { %13589 = vmatmul.mubr.msk.bf16.vlgmr.msra.gmra.mrb[12].mxu0 %vm691_vm1, %v14138_v63  ;;  %v14167_v63 = vld [vmem:[%s18514_s3 + $0x1c0] sm:$0xff]  }
 0x5f2   : > { %13605 = vmatpush3.bf16.msra.mxu0 %v14139_v1 }
 0x5f3   : > { %13606 = vmatprep.subr.bf16.mxu0 %v14141_v3 }
 0x5f6   : > { %13607 = vmatpush3.bf16.msra.mxu0 %v14141_v3 }
 0x5f7   : > { %13608 = vmatprep.subr.bf16.mxu0 %v14143_v58 }
 0x5fa   : > { %13609 = vmatpush3.bf16.msra.mxu0 %v14143_v58 }
 0x5fb   : > { %13610 = vmatprep.subr.bf16.mxu0 %v14145_v59 }
 0x5fe   : > { %13611 = vmatpush3.bf16.msra.mxu0 %v14145_v59 }
 0x5ff   : > { %13632 = vmatprep.subr.bf16.mxu0 %v14147_v5 }
 0x6c4   : > { %v13590_v8 = vpop.f32.mrb[12].mxu0 }
 0x6c5   : > { %v4190_v9 = vadd.f32 %v13590_v8, %v4182_v7  ;;  %v4153_v10 = vpop.f32.mrb[13].mxu0 }
 0x6c6   : > { %v4188_v14 = vadd.f32 %v4174_v6, %v4153_v10  ;;  %v13591_v15 = vpop.f32.mrb[14].mxu0  ;;  %v14169_v10 = vld [vmem:[%s18514_s3 + $0x1b0] sm:$0xff]  }
 0x6c7   : > { %v4198_v13 = vmin.f32 %v4190_v9, 0.0  ;;  %v4191_v16 = vadd.f32 %v13591_v15, %v4186_v12  ;;  %v4156_v17 = vpop.f32.mrb[15].mxu0  ;;  %vm4194_vm10 = vcmp.gt.f32.partialorder %v4190_v9, 0.0 }
 0x6c8   : > { %v4196_v18 = vmin.f32 %v4188_v14, 0.0  ;;  %v4189_v19 = vadd.f32 %v4178_v11, %v4156_v17  ;;  %vm4192_vm12 = vcmp.gt.f32.partialorder %v4188_v14, 0.0  ;;  %v14170_v17 = vld [vmem:[%s18514_s3 + $0x1b8] sm:$0xff]  }
 0x6c9   : > { %v4204_v20 = vmul.f32 1.442695, %v4198_v13  ;;  %v4199_v21 = vmin.f32 %v4191_v16, 0.0  ;;  %vm4195_vm11 = vcmp.gt.f32.partialorder %v4191_v16, 0.0 }
 0x6ca   : > { %v4200_v22 = vmul.f32 1.442695, %v4196_v18  ;;  %v4197_v23 = vmin.f32 %v4189_v19, 0.0  ;;  %vm4193_vm13 = vcmp.gt.f32.partialorder %v4189_v19, 0.0  ;;  %v14171_v18 = vld [vmem:[%s18514_s3 + $0x1d0] sm:$0xff]  }
 0x6cb   : > { %14785 = vpow2.f32 %v4204_v20  ;;  %v4206_v24 = vmul.f32 1.442695, %v4199_v21 }
 0x6cc   : > { %14787 = vpow2.f32 %v4200_v22  ;;  %v4202_v25 = vmul.f32 1.442695, %v4197_v23  ;;  %v14173_v23 = vld [vmem:[%s18514_s3 + $0x1d8] sm:$0xff]  }
 0x6cd   : > { %14789 = vpow2.f32 %v4206_v24 }
 0x6ce   : > { %14791 = vpow2.f32 %v4202_v25 }
 0x6d5   : > { %v14786_v26 = vpop.eup %14785 }
 0x6d6   : > { %v14788_v27 = vpop.eup %14787  ;;  %v11861_v28 = vadd.f32 -1.0, %v14786_v26 }
 0x6d7   : > { %v14790_v29 = vpop.eup %14789  ;;  %v11859_v30 = vadd.f32 -1.0, %v14788_v27  ;;  %v14174_v27 = vld [vmem:[%s18520_s9 + $0x68] sm:$0xff]  }
 0x6d8   : > { %v14792_v32 = vpop.eup %14791  ;;  %v11862_v33 = vadd.f32 -1.0, %v14790_v29  ;;  %v4214_v35 = vsel %vm4194_vm10, %v4190_v9, %v11861_v28  ;;  %v14168_v9 = vld [vmem:[%s18514_s3 + $0x1c8] sm:$0xff]   ;;  %v14175_v28 = vld [vmem:[%s18520_s9 + $0x70] sm:$0xff]   ;;  %v14176_v29 = vld [vmem:[%s18520_s9 + $0x78] sm:$0xff]  }
 0x6d9   : > { %v11860_v34 = vadd.f32 -1.0, %v14792_v32  ;;  %v4212_v37 = vsel %vm4192_vm12, %v4188_v14, %v11859_v30 }
 0x6da   : > { %v4215_v36 = vsel %vm4195_vm11, %v4191_v16, %v11862_v33 }
 0x6db   : > { %v15810_v38 = vpack.c.bf16 %v4215_v36, %v4214_v35  ;;  %v4213_v39 = vsel %vm4193_vm13, %v4189_v19, %v11860_v34  ;;  %v14172_v19 = vld [vmem:[%s18520_s9 + $0x60] sm:$0xff]  }
 0x6dc   : > { %v15812_v40 = vpack.c.bf16 %v4213_v39, %v4212_v37 }
 0x6de   : > { %13600 = vmatprep.mubr.msk.bf16.mxu1 %vm4250_vm14, %v15812_v40  ;;  %13612 = vmatprep.mubr.msk.bf16.mxu0 %vm4250_vm14, %v15812_v40 }
 0x6df   : > { %13601 = vmatmul.mubr.msk.bf16.vlgmr.msra.gmra.mrb[104].mxu1 %vm4250_vm14, %v15810_v38  ;;  %13613 = vmatmul.mubr.msk.bf16.vlgmr.msra.gmra.mrb[16].mxu0 %vm4250_vm14, %v15810_v38 }
 0x6e0   : > { %13633 = vmatpush3.bf16.msra.mxu0 %v14147_v5  ;;  %13640 = vmatprep.mubr.msk.bf16.mxu0 %vm4250_vm14, %v15812_v40 }
 0x6e1   : > { %13634 = vmatprep.subr.bf16.mxu0 %v14148_v31  ;;  %13620 = vmatprep.mubr.msk.bf16.mxu1 %vm691_vm1, %v14167_v63  ;;  %v14180_v63 = vld [vmem:[%s18514_s3 + $0x1f8] sm:$0xff]  }
 0x6e4   : > { %13635 = vmatpush3.bf16.msra.mxu0 %v14148_v31 }
 0x6e5   : > { %13636 = vmatprep.subr.bf16.mxu0 %v14149_v41 }
 0x6e8   : > { %13637 = vmatpush3.bf16.msra.mxu0 %v14149_v41 }
 0x6e9   : > { %13638 = vmatprep.subr.bf16.mxu0 %v14150_v42 }
 0x6ec   : > { %13639 = vmatpush3.bf16.msra.mxu0 %v14150_v42 }
 0x6ed   : > { %13672 = vmatprep.subr.bf16.mxu0 %v14151_v44 }
 0x6ef   : > { %13641 = vmatmul.mubr.msk.bf16.vlgmr.msra.gmra.mrb[20].mxu0 %vm4250_vm14, %v15810_v38 }
 0x6f0   : > { %13673 = vmatpush3.bf16.msra.mxu0 %v14151_v44  ;;  %13680 = vmatprep.mubr.msk.bf16.mxu0 %vm4250_vm14, %v15812_v40 }
 0x6f1   : > { %13674 = vmatprep.subr.bf16.mxu0 %v14152_v46 }
 0x6f4   : > { %13675 = vmatpush3.bf16.msra.mxu0 %v14152_v46 }
 0x6f5   : > { %13676 = vmatprep.subr.bf16.mxu0 %v14153_v47 }
 0x6f8   : > { %13677 = vmatpush3.bf16.msra.mxu0 %v14153_v47 }
 0x6f9   : > { %13678 = vmatprep.subr.bf16.mxu0 %v14154_v48 }
 0x6fc   : > { %13679 = vmatpush3.bf16.msra.mxu0 %v14154_v48 }
 0x6fd   : > { %13692 = vmatprep.subr.bf16.mxu0 %v14155_v49 }
 0x6ff   : > { %13681 = vmatmul.mubr.msk.bf16.vlgmr.msra.gmra.mrb[24].mxu0 %vm4250_vm14, %v15810_v38 }
 0x700   : > { %13693 = vmatpush3.bf16.msra.mxu0 %v14155_v49  ;;  %13700 = vmatprep.mubr.msk.bf16.mxu0 %vm4250_vm14, %v15812_v40 }
 0x701   : > { %13694 = vmatprep.subr.bf16.mxu0 %v14156_v50 }
 0x704   : > { %13695 = vmatpush3.bf16.msra.mxu0 %v14156_v50 }
 0x705   : > { %13696 = vmatprep.subr.bf16.mxu0 %v14157_v43 }
 0x708   : > { %13697 = vmatpush3.bf16.msra.mxu0 %v14157_v43 }
 0x709   : > { %13698 = vmatprep.subr.bf16.mxu0 %v14158_v51 }
 0x70c   : > { %13699 = vmatpush3.bf16.msra.mxu0 %v14158_v51  ;;  %v14177_v51 = vld [vmem:[%s18514_s3 + $0x1e0] sm:$0xff]  }
 0x70d   : > { %13712 = vmatprep.subr.bf16.mxu0 %v14159_v45 }
 0x70f   : > { %13701 = vmatmul.mubr.msk.bf16.vlgmr.msra.gmra.mrb[28].mxu0 %vm4250_vm14, %v15810_v38 }
 0x710   : > { %13713 = vmatpush3.bf16.msra.mxu0 %v14159_v45  ;;  %13720 = vmatprep.mubr.msk.bf16.mxu0 %vm4250_vm14, %v15812_v40 }
 0x711   : > { %13714 = vmatprep.subr.bf16.mxu0 %v14160_v52 }
 0x714   : > { %13715 = vmatpush3.bf16.msra.mxu0 %v14160_v52 }
 0x715   : > { %13716 = vmatprep.subr.bf16.mxu0 %v14161_v53 }
 0x718   : > { %13717 = vmatpush3.bf16.msra.mxu0 %v14161_v53 }
 0x719   : > { %13718 = vmatprep.subr.bf16.mxu0 %v14162_v55 }
 0x71c   : > { %13719 = vmatpush3.bf16.msra.mxu0 %v14162_v55 }
 0x71d   : > { %13752 = vmatprep.subr.bf16.mxu0 %v14163_v56 }
 0x71f   : > { %13721 = vmatmul.mubr.msk.bf16.vlgmr.msra.gmra.mrb[32].mxu0 %vm4250_vm14, %v15810_v38 }
 0x720   : > { %13753 = vmatpush3.bf16.msra.mxu0 %v14163_v56  ;;  %13760 = vmatprep.mubr.msk.bf16.mxu0 %vm4250_vm14, %v15812_v40 }
 0x721   : > { %13754 = vmatprep.subr.bf16.mxu0 %v14164_v57 }
 0x724   : > { %13755 = vmatpush3.bf16.msra.mxu0 %v14164_v57 }
 0x725   : > { %13756 = vmatprep.subr.bf16.mxu0 %v14165_v61 }
 0x728   : > { %13757 = vmatpush3.bf16.msra.mxu0 %v14165_v61  ;;  %v14178_v61 = vld [vmem:[%s18514_s3 + $0x1e8] sm:$0xff]  }
 0x729   : > { %13758 = vmatprep.subr.bf16.mxu0 %v14166_v62 }
 0x72c   : > { %13759 = vmatpush3.bf16.msra.mxu0 %v14166_v62  ;;  %v14179_v62 = vld [vmem:[%s18514_s3 + $0x1f0] sm:$0xff]  }
 0x72f   : > { %13761 = vmatmul.mubr.msk.bf16.vlgmr.msra.gmra.mrb[36].mxu0 %vm4250_vm14, %v15810_v38 }
 0x730   : > { %5770 = vmatprep.mubr.bf16.mxu0 %v15157_v54 }
 0x7b2   : > { %v13602_v1 = vpop.f32.mrb[104].mxu1  ;;  %v13614_v2 = vpop.f32.mrb[16].mxu0 }
 0x7b3   : > { %v4291_v3 = vpop.f32.mrb[105].mxu1  ;;  %v4380_v4 = vpop.f32.mrb[17].mxu0 }
 0x7b4   : > { %v13603_v58 = vpop.f32.mrb[106].mxu1  ;;  %v13615_v0 = vpop.f32.mrb[18].mxu0 }
 0x7b5   : > { %v4307_v59 = vpack.c.bf16 %v13603_v58, %v13602_v1  ;;  %v4396_v60 = vpack.c.bf16 %v13615_v0, %v13614_v2  ;;  %v4294_v5 = vpop.f32.mrb[107].mxu1  ;;  %v4383_v6 = vpop.f32.mrb[19].mxu0  ;;  %v14181_v1 = vld [vmem:[%s18514_s3 + $0x200] sm:$0xff]   ;;  %v14182_v2 = vld [vmem:[%s18514_s3 + $0x208] sm:$0xff]   ;;  %v14185_v58 = vld [vmem:[%s18514_s3 + $0x218] sm:$0xff]  }
 0x7b6   : > { %v4306_v7 = vpack.c.bf16 %v4294_v5, %v4291_v3  ;;  %v4395_v8 = vpack.c.bf16 %v4383_v6, %v4380_v4  ;;  %v14183_v3 = vld [vmem:[%s18514_s3 + $0x210] sm:$0xff]   ;;  %v14184_v4 = vld [vmem:[%s18520_s9 + $0xe0] sm:$0xff]   ;;  %v14186_v0 = vld [vmem:[%s18520_s9 + $0xe8] sm:$0xff]   ;;  %v15160_v5 = vmov 3  }
 0x7b7   : > { %14060 = vset.pattern.permute.xlu1 %v15160_v5  ;;  %14059 = vset.pattern.permute.xlu0 %v15160_v5  ;;  %v15999_v6 = vld [vmem:[%s18515_s4 + $0x8] sm:$0xff] }
 0x7b8   : > { %13616 = vmatprep.subr.bf16.mxu1 %v4395_v8  ;;  %5643 = vperm.xlu1 %14060, %v15999_v6  }
 0x7b9   : > { %13617 = vmatpush3.bf16.msra.mxu1 %v4395_v8  ;;  %v16017_v8 = vld [vmem:[%s18515_s4 + $0x18] sm:$0xff] }
 0x7ba   : > { %13618 = vmatprep.subr.bf16.mxu1 %v4396_v60 }
 0x7bd   : > { %13619 = vmatpush3.bf16.msra.mxu1 %v4396_v60  ;;  %v14188_v60 = vld [vmem:[%s18520_s9 + $0xf8] sm:$0xff]  }
 0x7be   : > { %13624 = vmatprep.subr.bf16.mxu1 %v4306_v7 }
 0x7c0   : > { %13621 = vmatmul.mubr.msk.bf16.vlgmr.msra.gmra.mrb[108].mxu1 %vm691_vm1, %v14168_v9 }
 0x7c1   : > { %13625 = vmatpush3.bf16.msra.mxu1 %v4306_v7  ;;  %13628 = vmatprep.mubr.msk.bf16.mxu1 %vm691_vm1, %v14169_v10  ;;  %v16011_v7 = vld [vmem:[%s18515_s4 + $0x10] sm:$0xff] }
 0x7c2   : > { %v13642_v11 = vpop.f32.mrb[20].mxu0  ;;  %13626 = vmatprep.subr.bf16.mxu1 %v4307_v59  ;;  %5647 = vperm.xlu1 %14060, %v16011_v7  }
 0x7c3   : > { %v4599_v12 = vpop.f32.mrb[21].mxu0 }
 0x7c4   : > { %v13643_v14 = vpop.f32.mrb[22].mxu0 }
 0x7c5   : > { %v4615_v15 = vpack.c.bf16 %v13643_v14, %v13642_v11  ;;  %v4602_v13 = vpop.f32.mrb[23].mxu0  ;;  %13627 = vmatpush3.bf16.msra.mxu1 %v4307_v59  ;;  %v14187_v59 = vld [vmem:[%s18520_s9 + $0xf0] sm:$0xff]  }
 0x7c6   : > { %v4614_v16 = vpack.c.bf16 %v4602_v13, %v4599_v12  ;;  %v14190_v13 = vld [vmem:[%s18514_s3 + $0x228] sm:$0xff]  }
 0x7c8   : > { %13644 = vmatprep.subr.bf16.mxu1 %v4614_v16 }
 0x7cc   : > { %13629 = vmatmul.mubr.msk.bf16.vlgmr.msra.gmra.mrb[108].mxu1 %vm691_vm1, %v14170_v17  ;;  %v14192_v17 = vld [vmem:[%s18514_s3 + $0x238] sm:$0xff]  }
 0x7cd   : > { %13645 = vmatpush3.bf16.msra.mxu1 %v4614_v16  ;;  %13648 = vmatprep.mubr.msk.bf16.mxu1 %vm691_vm1, %v14171_v18  ;;  %v14191_v16 = vld [vmem:[%s18514_s3 + $0x230] sm:$0xff]   ;;  %v14195_v18 = vld [vmem:[%s18521_s10 + $0x4] ss:$8 sps:$4 sm:$0xff]  }
 0x7ce   : > { %13646 = vmatprep.subr.bf16.mxu1 %v4615_v15  ;;  %5738 = vmatprep.subr.bf16.mxu0 %v14195_v18  ;;  %v14229_v18 = vld [vmem:[%s18521_s10 + $0xc0] ss:$8 sps:$4 sm:$0xff]  }
 0x7d1   : > { %13647 = vmatpush3.bf16.msra.mxu1 %v4615_v15 }
 0x7d2   : > { %v13682_v20 = vpop.f32.mrb[24].mxu0  ;;  %13652 = vmatprep.subr.bf16.mxu1 %v14172_v19 }
 0x7d3   : > { %v4915_v21 = vpop.f32.mrb[25].mxu0 }
 0x7d4   : > { %v13683_v22 = vpop.f32.mrb[26].mxu0 }
 0x7d5   : > { %v4931_v24 = vpack.c.bf16 %v13683_v22, %v13682_v20  ;;  %v4918_v25 = vpop.f32.mrb[27].mxu0  ;;  %v14193_v20 = vld [vmem:[%s18521_s10] ss:$8 sps:$4 sm:$0xff]   ;;  %v14201_v22 = vld [vmem:[%s18521_s10 + $0x14] ss:$8 sps:$4 sm:$0xff]  }
 0x7d6   : > { %v4930_v26 = vpack.c.bf16 %v4918_v25, %v4915_v21  ;;  %v14196_v21 = vld [vmem:[%s18521_s10 + $0x40] ss:$8 sps:$4 sm:$0xff]   ;;  %5739 = vmatpush1.bf16.msra.mxu0 %v14193_v20  ;;  %v14202_v25 = vld [vmem:[%s18521_s10 + $0x50] ss:$8 sps:$4 sm:$0xff]  }
 0x7d7   : > { %5740 = vmatprep.subr.bf16.mxu0 %v14201_v22  ;;  %v14232_v20 = vld [vmem:[%s18521_s10 + $0xd0] ss:$8 sps:$4 sm:$0xff]   ;;  %v14235_v22 = vld [vmem:[%s18521_s10 + $0xe0] ss:$8 sps:$4 sm:$0xff]  }
 0x7d8   : > { %13649 = vmatmul.mubr.msk.bf16.vlgmr.msra.gmra.mrb[108].mxu1 %vm691_vm1, %v14173_v23  ;;  %v14204_v23 = vld [vmem:[%s18521_s10 + $0x54] ss:$8 sps:$4 sm:$0xff]  }
 0x7d9   : > { %13653 = vmatpush3.bf16.msra.mxu1 %v14172_v19  ;;  %13660 = vmatprep.mubr.msk.bf16.mxu1 %vm4250_vm14, %v15812_v40  ;;  %v14198_v19 = vld [vmem:[%s18521_s10 + $0x44] ss:$8 sps:$4 sm:$0xff]  }
 0x7da   : > { %13654 = vmatprep.subr.bf16.mxu1 %v14174_v27 }
 0x7dd   : > { %13655 = vmatpush3.bf16.msra.mxu1 %v14174_v27  ;;  %v14210_v27 = vld [vmem:[%s18521_s10 + $0x64] ss:$8 sps:$4 sm:$0xff]  }
 0x7de   : > { %13656 = vmatprep.subr.bf16.mxu1 %v14175_v28 }
 0x7e1   : > { %13657 = vmatpush3.bf16.msra.mxu1 %v14175_v28  ;;  %v14205_v28 = vld [vmem:[%s18521_s10 + $0x20] ss:$8 sps:$4 sm:$0xff]  }
 0x7e2   : > { %v13702_v30 = vpop.f32.mrb[28].mxu0  ;;  %13658 = vmatprep.subr.bf16.mxu1 %v14176_v29 }
 0x7e3   : > { %v5073_v32 = vpop.f32.mrb[29].mxu0 }
 0x7e4   : > { %v13703_v33 = vpop.f32.mrb[30].mxu0 }
 0x7e5   : > { %v5089_v34 = vpack.c.bf16 %v13703_v33, %v13702_v30  ;;  %13659 = vmatpush3.bf16.msra.mxu1 %v14176_v29  ;;  %v5076_v35 = vpop.f32.mrb[31].mxu0  ;;  %v14208_v29 = vld [vmem:[%s18521_s10 + $0x60] ss:$8 sps:$4 sm:$0xff]   ;;  %v14213_v30 = vld [vmem:[%s18521_s10 + $0x34] ss:$8 sps:$4 sm:$0xff]  }
 0x7e6   : > { %v5088_v36 = vpack.c.bf16 %v5076_v35, %v5073_v32  ;;  %v14216_v32 = vld [vmem:[%s18521_s10 + $0x74] ss:$8 sps:$4 sm:$0xff]   ;;  %v14211_v33 = vld [vmem:[%s18521_s10 + $0x30] ss:$8 sps:$4 sm:$0xff]   ;;  %v14219_v35 = vld [vmem:[%s18521_s10 + $0x84] ss:$8 sps:$4 sm:$0xff]  }
 0x7e8   : > { %13661 = vmatmul.mubr.msk.bf16.vlgmr.msra.gmra.mrb[112].mxu1 %vm4250_vm14, %v15810_v38 }
 0x7e9   : > { %13668 = vmatprep.mubr.msk.bf16.mxu1 %vm691_vm1, %v14177_v51 }
 0x7f2   : > { %v13722_v37 = vpop.f32.mrb[32].mxu0 }
 0x7f3   : > { %v5231_v39 = vpop.f32.mrb[33].mxu0 }
 0x7f4   : > { %v13723_v31 = vpop.f32.mrb[34].mxu0 }
 0x7f5   : > { %v5247_v41 = vpack.c.bf16 %v13723_v31, %v13722_v37  ;;  %v5234_v42 = vpop.f32.mrb[35].mxu0 }
 0x7f6   : > { %v5246_v44 = vpack.c.bf16 %v5234_v42, %v5231_v39 }
 0x802   : > { %v13762_v46 = vpop.f32.mrb[36].mxu0 }
 0x803   : > { %v5547_v47 = vpop.f32.mrb[37].mxu0 }
 0x804   : > { %v13763_v48 = vpop.f32.mrb[38].mxu0 }
 0x805   : > { %v15940_v49 = vpack.c.bf16 %v13763_v48, %v13762_v46  ;;  %v5550_v50 = vpop.f32.mrb[39].mxu0 }
 0x806   : > { %v15942_v43 = vpack.c.bf16 %v5550_v50, %v5547_v47 }
 0x8bb   : > { %v13662_v45 = vpop.f32.mrb[112].mxu1 }
 0x8bc   : > { %v4757_v52 = vpop.f32.mrb[113].mxu1 }
 0x8bd   : > { %v13663_v53 = vpop.f32.mrb[114].mxu1 }
 0x8be   : > { %v4773_v55 = vpack.c.bf16 %v13663_v53, %v13662_v45  ;;  %v4760_v56 = vpop.f32.mrb[115].mxu1 }
 0x8bf   : > { %v4772_v57 = vpack.c.bf16 %v4760_v56, %v4757_v52 }
 0x8c1   : > { %13664 = vmatprep.subr.bf16.mxu1 %v4772_v57 }
 0x8c2   : > { %13665 = vmatpush3.bf16.msra.mxu1 %v4772_v57 }
 0x8c3   : > { %13666 = vmatprep.subr.bf16.mxu1 %v4773_v55 }
 0x8c6   : > { %13667 = vmatpush3.bf16.msra.mxu1 %v4773_v55 }
 0x8c7   : > { %13684 = vmatprep.subr.bf16.mxu1 %v4930_v26 }
 0x8c9   : > { %13669 = vmatmul.mubr.msk.bf16.vlgmr.msra.gmra.mrb[108].mxu1 %vm691_vm1, %v14178_v61 }
 0x8ca   : > { %13685 = vmatpush3.bf16.msra.mxu1 %v4930_v26  ;;  %13688 = vmatprep.mubr.msk.bf16.mxu1 %vm691_vm1, %v14179_v62  ;;  %v14207_v26 = vld [vmem:[%s18521_s10 + $0x24] ss:$8 sps:$4 sm:$0xff]  }
 0x8cb   : > { %13686 = vmatprep.subr.bf16.mxu1 %v4931_v24 }
 0x8ce   : > { %13687 = vmatpush3.bf16.msra.mxu1 %v4931_v24  ;;  %v14199_v24 = vld [vmem:[%s18521_s10 + $0x10] ss:$8 sps:$4 sm:$0xff]  }
 0x8cf   : > { %13704 = vmatprep.subr.bf16.mxu1 %v5088_v36  ;;  %5741 = vmatpush1.bf16.msra.mxu0 %v14199_v24  ;;  %v14238_v24 = vld [vmem:[%s18521_s10 + $0xf0] ss:$8 sps:$4 sm:$0xff]  }
 0x8d0   : > { %5742 = vmatprep.subr.bf16.mxu0 %v14207_v26  ;;  %v14241_v26 = vld [vmem:[%s18521_s10 + $0x100] ss:$8 sps:$4 sm:$0xff]  }
 0x8d3   : > { %5743 = vmatpush1.bf16.msra.mxu0 %v14205_v28  ;;  %v14244_v28 = vld [vmem:[%s18521_s10 + $0x110] ss:$8 sps:$4 sm:$0xff]  }
 0x8d4   : > { %5744 = vmatprep.subr.bf16.mxu0 %v14213_v30  ;;  %v14247_v30 = vld [vmem:[%s18521_s10 + $0x120] ss:$8 sps:$4 sm:$0xff]  }
 0x8d5   : > { %13689 = vmatmul.mubr.msk.bf16.vlgmr.msra.gmra.mrb[108].mxu1 %vm691_vm1, %v14180_v63 }
 0x8d6   : > { %13705 = vmatpush3.bf16.msra.mxu1 %v5088_v36  ;;  %13708 = vmatprep.mubr.msk.bf16.mxu1 %vm691_vm1, %v14181_v1  ;;  %v5644_v36 = vpop.permute.xlu1 %5643 }
 0x8d7   : > { %13706 = vmatprep.subr.bf16.mxu1 %v5089_v34  ;;  %5745 = vmatpush1.bf16.msra.mxu0 %v14211_v33  ;;  %v14250_v33 = vld [vmem:[%s18521_s10 + $0x130] ss:$8 sps:$4 sm:$0xff]  }
 0x8da   : > { %13707 = vmatpush3.bf16.msra.mxu1 %v5089_v34  ;;  %v14214_v34 = vld [vmem:[%s18521_s10 + $0x70] ss:$8 sps:$4 sm:$0xff]   ;;  %v5648_v39 = vpop.permute.xlu1 %5647 }
 0x8db   : > { %13724 = vmatprep.subr.bf16.mxu1 %v5246_v44 }
 0x8e1   : > { %13709 = vmatmul.mubr.msk.bf16.vlgmr.msra.gmra.mrb[108].mxu1 %vm691_vm1, %v14182_v2 }
 0x8e2   : > { %13725 = vmatpush3.bf16.msra.mxu1 %v5246_v44  ;;  %13728 = vmatprep.mubr.msk.bf16.mxu1 %vm691_vm1, %v14183_v3 }
 0x8e3   : > { %13726 = vmatprep.subr.bf16.mxu1 %v5247_v41 }
 0x8e6   : > { %13727 = vmatpush3.bf16.msra.mxu1 %v5247_v41 }
 0x8e7   : > { %13732 = vmatprep.subr.bf16.mxu1 %v14184_v4 }
 0x8ed   : > { %13729 = vmatmul.mubr.msk.bf16.vlgmr.msra.gmra.mrb[108].mxu1 %vm691_vm1, %v14185_v58 }
 0x8ee   : > { %13733 = vmatpush3.bf16.msra.mxu1 %v14184_v4  ;;  %13740 = vmatprep.mubr.msk.bf16.mxu1 %vm4250_vm14, %v15812_v40  ;;  %v14189_v40 = vld [vmem:[%s18514_s3 + $0x220] sm:$0xff]  }
 0x8ef   : > { %13734 = vmatprep.subr.bf16.mxu1 %v14186_v0 }
 0x8f2   : > { %13735 = vmatpush3.bf16.msra.mxu1 %v14186_v0 }
 0x8f3   : > { %13736 = vmatprep.subr.bf16.mxu1 %v14187_v59 }
 0x8f6   : > { %13737 = vmatpush3.bf16.msra.mxu1 %v14187_v59 }
 0x8f7   : > { %13738 = vmatprep.subr.bf16.mxu1 %v14188_v60 }
 0x8fa   : > { %13739 = vmatpush3.bf16.msra.mxu1 %v14188_v60 }
 0x8fd   : > { %13741 = vmatmul.mubr.msk.bf16.vlgmr.msra.gmra.mrb[116].mxu1 %vm4250_vm14, %v15810_v38  ;;  %v16005_v38 = vld [vmem:[%s18515_s4] sm:$0xff] }
 0x8fe   : > { %13748 = vmatprep.mubr.msk.bf16.mxu1 %vm691_vm1, %v14189_v40  ;;  %5639 = vperm.xlu0 %14059, %v16005_v38  }
 0x902   : > { %5651 = vperm.xlu0 %14059, %v16017_v8  }
 0x97d   : > { %v5640_v37 = vpop.permute.xlu0 %5639 }
 0x981   : > { %v5652_v41 = vpop.permute.xlu0 %5651 }
 0x9d0   : > { %v13742_v9 = vpop.f32.mrb[116].mxu1 }
 0x9d1   : > { %v5389_v10 = vpop.f32.mrb[117].mxu1 }
 0x9d2   : > { %v13743_v11 = vpop.f32.mrb[118].mxu1 }
 0x9d3   : > { %v5405_v12 = vpack.c.bf16 %v13743_v11, %v13742_v9  ;;  %v5392_v14 = vpop.f32.mrb[119].mxu1  ;;  %v14217_v9 = vld [vmem:[%s18521_s10 + $0x80] ss:$8 sps:$4 sm:$0xff]   ;;  %v14222_v11 = vld [vmem:[%s18521_s10 + $0x94] ss:$8 sps:$4 sm:$0xff]  }
 0x9d4   : > { %v5404_v15 = vpack.c.bf16 %v5392_v14, %v5389_v10  ;;  %v14225_v14 = vld [vmem:[%s18521_s10 + $0xa4] ss:$8 sps:$4 sm:$0xff]  }
 0x9d6   : > { %13744 = vmatprep.subr.bf16.mxu1 %v5404_v15 }
 0x9d7   : > { %13745 = vmatpush3.bf16.msra.mxu1 %v5404_v15  ;;  %v14223_v15 = vld [vmem:[%s18521_s10 + $0xa0] ss:$8 sps:$4 sm:$0xff]  }
 0x9d8   : > { %13746 = vmatprep.subr.bf16.mxu1 %v5405_v12 }
 0x9db   : > { %13747 = vmatpush3.bf16.msra.mxu1 %v5405_v12  ;;  %v14220_v12 = vld [vmem:[%s18521_s10 + $0x90] ss:$8 sps:$4 sm:$0xff]  }
 0x9dc   : > { %13764 = vmatprep.subr.bf16.mxu1 %v15942_v43 }
 0x9de   : > { %13749 = vmatmul.mubr.msk.bf16.vlgmr.msra.gmra.mrb[108].mxu1 %vm691_vm1, %v14190_v13  ;;  %v14228_v13 = vld [vmem:[%s18521_s10 + $0xb4] ss:$8 sps:$4 sm:$0xff]  }
 0x9df   : > { %13765 = vmatpush3.bf16.msra.mxu1 %v15942_v43  ;;  %13768 = vmatprep.mubr.msk.bf16.mxu1 %vm691_vm1, %v14191_v16  ;;  %v14226_v16 = vld [vmem:[%s18521_s10 + $0xb0] ss:$8 sps:$4 sm:$0xff]  }
 0x9e0   : > { %13766 = vmatprep.subr.bf16.mxu1 %v15940_v49 }
 0x9e3   : > { %13767 = vmatpush3.bf16.msra.mxu1 %v15940_v49 }
 0x9e4   : > { %5849 = vmatprep.subr.bf16.mxu1 %v14198_v19  ;;  %v14234_v19 = vld [vmem:[%s18521_s10 + $0xd4] ss:$8 sps:$4 sm:$0xff]  }
 0x9ea   : > { %13769 = vmatmul.mubr.msk.bf16.vlgmr.msra.gmra.mrb[108].mxu1 %vm691_vm1, %v14192_v17  ;;  %v14231_v17 = vld [vmem:[%s18521_s10 + $0xc4] ss:$8 sps:$4 sm:$0xff]  }
 0x9eb   : > { %5881 = vmatprep.mubr.bf16.mxu1 %v15157_v54  ;;  %5850 = vmatpush1.bf16.msra.mxu1 %v14196_v21  ;;  %v14237_v21 = vld [vmem:[%s18521_s10 + $0xe4] ss:$8 sps:$4 sm:$0xff]  }
 0x9ec   : > { %5851 = vmatprep.subr.bf16.mxu1 %v14204_v23  ;;  %v14240_v23 = vld [vmem:[%s18521_s10 + $0xf4] ss:$8 sps:$4 sm:$0xff]  }
 0x9ef   : > { %5852 = vmatpush1.bf16.msra.mxu1 %v14202_v25  ;;  %v14243_v25 = vld [vmem:[%s18521_s10 + $0x104] ss:$8 sps:$4 sm:$0xff]  }
 0x9f0   : > { %5853 = vmatprep.subr.bf16.mxu1 %v14210_v27  ;;  %v14246_v27 = vld [vmem:[%s18521_s10 + $0x114] ss:$8 sps:$4 sm:$0xff]  }
 0x9f3   : > { %5854 = vmatpush1.bf16.msra.mxu1 %v14208_v29  ;;  %v14249_v29 = vld [vmem:[%s18521_s10 + $0x124] ss:$8 sps:$4 sm:$0xff]  }
 0x9f4   : > { %5855 = vmatprep.subr.bf16.mxu1 %v14216_v32  ;;  %v14252_v32 = vld [vmem:[%s18521_s10 + $0x134] ss:$8 sps:$4 sm:$0xff]  }
 0x9f7   : > { %5856 = vmatpush1.bf16.msra.mxu1 %v14214_v34  ;;  %v14255_v34 = vld [vmem:[%s18521_s10 + $0x144] ss:$8 sps:$4 sm:$0xff]  }
 0x9f8   : > { %6098 = vmatprep.subr.bf16.mxu1 %v14219_v35  ;;  %v14253_v35 = vld [vmem:[%s18521_s10 + $0x140] ss:$8 sps:$4 sm:$0xff]  }
 0xabd   : > { %v13770_v31 = vpop.f32.mrb[108].mxu1 }
 0xabe   : > { %v5656_v42 = vadd.f32 %v13770_v31, %v5648_v39  ;;  %v5619_v44 = vpop.f32.mrb[109].mxu1  ;;  %v14261_v39 = vld [vmem:[%s18521_s10 + $0x164] ss:$8 sps:$4 sm:$0xff]   ;;  %v14259_v31 = vld [vmem:[%s18521_s10 + $0x160] ss:$8 sps:$4 sm:$0xff]  }
 0xabf   : > { %v5654_v46 = vadd.f32 %v5640_v37, %v5619_v44  ;;  %v13771_v47 = vpop.f32.mrb[110].mxu1  ;;  %v14256_v37 = vld [vmem:[%s18521_s10 + $0x150] ss:$8 sps:$4 sm:$0xff]   ;;  %v14267_v44 = vld [vmem:[%s18521_s10 + $0x184] ss:$8 sps:$4 sm:$0xff]  }
 0xac0   : > { %v5664_v48 = vmin.f32 %v5656_v42, 0.0  ;;  %v5657_v49 = vadd.f32 %v13771_v47, %v5652_v41  ;;  %v5622_v50 = vpop.f32.mrb[111].mxu1  ;;  %vm5660_vm15 = vcmp.gt.f32.partialorder %v5656_v42, 0.0  ;;  %v14264_v41 = vld [vmem:[%s18521_s10 + $0x174] ss:$8 sps:$4 sm:$0xff]  }
 0xac1   : > { %v5662_v43 = vmin.f32 %v5654_v46, 0.0  ;;  %v5655_v51 = vadd.f32 %v5644_v36, %v5622_v50  ;;  %vm5658_vm2 = vcmp.gt.f32.partialorder %v5654_v46, 0.0  ;;  %v14258_v36 = vld [vmem:[%s18521_s10 + $0x154] ss:$8 sps:$4 sm:$0xff]   ;;  %v14271_v50 = vld [vmem:[%s18521_s10 + $0x1a0] ss:$8 sps:$4 sm:$0xff]  }
 0xac2   : > { %v5670_v45 = vmul.f32 1.442695, %v5664_v48  ;;  %v5665_v52 = vmin.f32 %v5657_v49, 0.0  ;;  %vm5661_vm0 = vcmp.gt.f32.partialorder %v5657_v49, 0.0  ;;  %v14270_v47 = vld [vmem:[%s18521_s10 + $0x194] ss:$8 sps:$4 sm:$0xff]  }
 0xac3   : > { %v5666_v53 = vmul.f32 1.442695, %v5662_v43  ;;  %v5663_v55 = vmin.f32 %v5655_v51, 0.0  ;;  %vm5659_vm3 = vcmp.gt.f32.partialorder %v5655_v51, 0.0  ;;  %v14268_v48 = vld [vmem:[%s18521_s10 + $0x190] ss:$8 sps:$4 sm:$0xff]  }
 0xac4   : > { %14793 = vpow2.f32 %v5670_v45  ;;  %v5672_v56 = vmul.f32 1.442695, %v5665_v52  ;;  %v14276_v43 = vld [vmem:[%s18521_s10 + $0x1b4] ss:$8 sps:$4 sm:$0xff]   ;;  %v14279_v45 = vld [vmem:[%s18521_s10 + $0x1c4] ss:$8 sps:$4 sm:$0xff]  }
 0xac5   : > { %14795 = vpow2.f32 %v5666_v53  ;;  %v5668_v57 = vmul.f32 1.442695, %v5663_v55  ;;  %v14277_v52 = vld [vmem:[%s18521_s10 + $0x1c0] ss:$8 sps:$4 sm:$0xff]   ;;  %v14282_v53 = vld [vmem:[%s18521_s10 + $0x1d4] ss:$8 sps:$4 sm:$0xff]  }
 0xac6   : > { %14797 = vpow2.f32 %v5672_v56  ;;  %v14280_v55 = vld [vmem:[%s18521_s10 + $0x1d0] ss:$8 sps:$4 sm:$0xff]   ;;  %v14285_v56 = vld [vmem:[%s18521_s10 + $0x1e4] ss:$8 sps:$4 sm:$0xff]  }
 0xac7   : > { %14799 = vpow2.f32 %v5668_v57  ;;  %v14283_v57 = vld [vmem:[%s18521_s10 + $0x1e0] ss:$8 sps:$4 sm:$0xff]  }
 0xace   : > { %v14794_v61 = vpop.eup %14793 }
 0xacf   : > { %v14796_v62 = vpop.eup %14795  ;;  %v12055_v63 = vadd.f32 -1.0, %v14794_v61  ;;  %v14288_v61 = vld [vmem:[%s18521_s10 + $0x1f4] ss:$8 sps:$4 sm:$0xff]  }
 0xad0   : > { %v14798_v1 = vpop.eup %14797  ;;  %v12053_v2 = vadd.f32 -1.0, %v14796_v62  ;;  %v14286_v62 = vld [vmem:[%s18521_s10 + $0x1f0] ss:$8 sps:$4 sm:$0xff]  }
 0xad1   : > { %v14800_v3 = vpop.eup %14799  ;;  %v12056_v4 = vadd.f32 -1.0, %v14798_v1  ;;  %v5680_v0 = vsel %vm5660_vm15, %v5656_v42, %v12055_v63  ;;  %v14262_v42 = vld [vmem:[%s18521_s10 + $0x170] ss:$8 sps:$4 sm:$0xff]   ;;  %v14291_v63 = vld [vmem:[%s18521_s10 + $0x204] ss:$8 sps:$4 sm:$0xff]  }
 0xad2   : > { %v12054_v58 = vadd.f32 -1.0, %v14800_v3  ;;  %v5678_v60 = vsel %vm5658_vm2, %v5654_v46, %v12053_v2  ;;  %v14265_v46 = vld [vmem:[%s18521_s10 + $0x180] ss:$8 sps:$4 sm:$0xff]   ;;  %v14294_v2 = vld [vmem:[%s18521_s10 + $0x214] ss:$8 sps:$4 sm:$0xff]  }
 0xad3   : > { %v5681_v59 = vsel %vm5661_vm0, %v5657_v49, %v12056_v4  ;;  %v14273_v49 = vld [vmem:[%s18521_s10 + $0x1a4] ss:$8 sps:$4 sm:$0xff]   ;;  %v14289_v1 = vld [vmem:[%s18521_s10 + $0x200] ss:$8 sps:$4 sm:$0xff]   ;;  %v14292_v3 = vld [vmem:[%s18521_s10 + $0x210] ss:$8 sps:$4 sm:$0xff]  }
 0xad4   : > { %v16088_v40 = vpack.c.bf16 %v5681_v59, %v5680_v0  ;;  %v5679_v5 = vsel %vm5659_vm3, %v5655_v51, %v12054_v58  ;;  %v14274_v51 = vld [vmem:[%s18521_s10 + $0x1b0] ss:$8 sps:$4 sm:$0xff]   ;;  %v14297_v4 = vld [vmem:[%s18521_s10 + $0x224] ss:$8 sps:$4 sm:$0xff]   ;;  %v14295_v58 = vld [vmem:[%s18521_s10 + $0x220] ss:$8 sps:$4 sm:$0xff]  }
 0xad5   : > { %v16093_v10 = vpack.c.bf16 %v5679_v5, %v5678_v60  ;;  %v14300_v0 = vld [vmem:[%s18521_s10 + $0x234] ss:$8 sps:$4 sm:$0xff]   ;;  %v14298_v59 = vld [vmem:[%s18521_s10 + $0x230] ss:$8 sps:$4 sm:$0xff]  }
 0xad7   : > { %12065 = vmatmul.mubr.msk.bf16.vlgmr.msra.gmra.mrb[40].mxu0 %vm4250_vm14, %v16093_v10  ;;  %12087 = vmatmul.mubr.msk.bf16.vlgmr.msra.gmra.mrb[120].mxu1 %vm4250_vm14, %v16093_v10 }
 0xad8   : > { %6099 = vmatpush1.bf16.msra.mxu1 %v14217_v9  ;;  %5780 = vmatprep.mubr.bf16.mxu0 %v15157_v54 }
 0xad9   : > { %6100 = vmatprep.subr.bf16.mxu1 %v14222_v11  ;;  %5891 = vmatprep.mubr.bf16.mxu1 %v15157_v54 }
 0xadc   : > { %6101 = vmatpush1.bf16.msra.mxu1 %v14220_v12 }
 0xadd   : > { %6102 = vmatprep.subr.bf16.mxu1 %v14225_v14 }
 0xadf   : > { %12066 = vmatmul.mubr.msk.bf16.gmra.mrb[44].mxu0 %vm4250_vm14, %v16088_v40  ;;  %12088 = vmatmul.mubr.msk.bf16.gmra.mrb[124].mxu1 %vm4250_vm14, %v16088_v40 }
 0xae0   : > { %6103 = vmatpush1.bf16.msra.mxu1 %v14223_v15  ;;  %6130 = vmatprep.mubr.bf16.mxu1 %v15157_v54 }
 0xae1   : > { %6104 = vmatprep.subr.bf16.mxu1 %v14228_v13  ;;  %5959 = vmatprep.mubr.bf16.mxu0 %v15157_v54 }
 0xae4   : > { %6105 = vmatpush1.bf16.msra.mxu1 %v14226_v16 }
 0xae5   : > { %6286 = vmatprep.subr.bf16.mxu1 %v14231_v17 }
 0xae7   : > { %12117 = vmatmul.mubr.msk.bf16.vlgmr.msra.gmra.mrb[128].mxu1 %vm4250_vm14, %v16093_v10 }
 0xae8   : > { %6287 = vmatpush1.bf16.msra.mxu1 %v14229_v18  ;;  %6140 = vmatprep.mubr.bf16.mxu1 %v15157_v54 }
 0xae9   : > { %6288 = vmatprep.subr.bf16.mxu1 %v14234_v19 }
 0xaec   : > { %6289 = vmatpush1.bf16.msra.mxu1 %v14232_v20 }
 0xaed   : > { %6290 = vmatprep.subr.bf16.mxu1 %v14237_v21 }
 0xaef   : > { %12118 = vmatmul.mubr.msk.bf16.gmra.mrb[132].mxu1 %vm4250_vm14, %v16088_v40 }
 0xaf0   : > { %6291 = vmatpush1.bf16.msra.mxu1 %v14235_v22  ;;  %6318 = vmatprep.mubr.bf16.mxu1 %v15157_v54 }
 0xaf1   : > { %6292 = vmatprep.subr.bf16.mxu1 %v14240_v23 }
 0xaf4   : > { %6293 = vmatpush1.bf16.msra.mxu1 %v14238_v24 }
 0xaf5   : > { %6474 = vmatprep.subr.bf16.mxu1 %v14243_v25 }
 0xaf7   : > { %12143 = vmatmul.mubr.msk.bf16.vlgmr.msra.gmra.mrb[136].mxu1 %vm4250_vm14, %v16093_v10 }
 0xaf8   : > { %6475 = vmatpush1.bf16.msra.mxu1 %v14241_v26  ;;  %6328 = vmatprep.mubr.bf16.mxu1 %v15157_v54 }
 0xaf9   : > { %6476 = vmatprep.subr.bf16.mxu1 %v14246_v27 }
 0xafc   : > { %6477 = vmatpush1.bf16.msra.mxu1 %v14244_v28 }
 0xafd   : > { %6478 = vmatprep.subr.bf16.mxu1 %v14249_v29 }
 0xaff   : > { %12144 = vmatmul.mubr.msk.bf16.gmra.mrb[140].mxu1 %vm4250_vm14, %v16088_v40 }
 0xb00   : > { %6479 = vmatpush1.bf16.msra.mxu1 %v14247_v30  ;;  %6506 = vmatprep.mubr.bf16.mxu1 %v15157_v54  ;;  %v14301_v30 = vld [vmem:[%s18514_s3 + $0x250] sm:$0xff]  }
 0xb01   : > { %6480 = vmatprep.subr.bf16.mxu1 %v14252_v32 }
 0xb04   : > { %6481 = vmatpush1.bf16.msra.mxu1 %v14250_v33 }
 0xb05   : > { %6662 = vmatprep.subr.bf16.mxu1 %v14255_v34 }
 0xb07   : > { %12169 = vmatmul.mubr.msk.bf16.vlgmr.msra.gmra.mrb[144].mxu1 %vm4250_vm14, %v16093_v10 }
 0xb08   : > { %6663 = vmatpush1.bf16.msra.mxu1 %v14253_v35  ;;  %6516 = vmatprep.mubr.bf16.mxu1 %v15157_v54 }
 0xb09   : > { %6664 = vmatprep.subr.bf16.mxu1 %v14258_v36 }
 0xb0c   : > { %6665 = vmatpush1.bf16.msra.mxu1 %v14256_v37 }
 0xb0d   : > { %6666 = vmatprep.subr.bf16.mxu1 %v14261_v39  ;;  %v14302_v39 = vld [vmem:[%s18514_s3 + $0x258] sm:$0xff]  }
 0xb0f   : > { %12170 = vmatmul.mubr.msk.bf16.gmra.mrb[148].mxu1 %vm4250_vm14, %v16088_v40 }
 0xb10   : > { %6667 = vmatpush1.bf16.msra.mxu1 %v14259_v31  ;;  %6694 = vmatprep.mubr.bf16.mxu1 %v15157_v54 }
 0xb11   : > { %6668 = vmatprep.subr.bf16.mxu1 %v14264_v41 }
 0xb14   : > { %6669 = vmatpush1.bf16.msra.mxu1 %v14262_v42 }
 0xb15   : > { %6850 = vmatprep.subr.bf16.mxu1 %v14267_v44 }
 0xb17   : > { %12195 = vmatmul.mubr.msk.bf16.vlgmr.msra.gmra.mrb[152].mxu1 %vm4250_vm14, %v16093_v10 }
 0xb18   : > { %6851 = vmatpush1.bf16.msra.mxu1 %v14265_v46  ;;  %6704 = vmatprep.mubr.bf16.mxu1 %v15157_v54 }
 0xb19   : > { %6852 = vmatprep.subr.bf16.mxu1 %v14270_v47  ;;  %v15161_v47 = vmov 4  }
 0xb1a   : > { %14061 = vset.pattern.permute.xlu1 %v15161_v47  ;;  %14062 = vset.pattern.permute.xlu0 %v15161_v47 }
 0xb1b   : > { %7366 = vperm.xlu1 %14061, %v16005_v38   ;;  %7370 = vperm.xlu0 %14062, %v15999_v6   ;;  %v14336_v6 = vld [vmem:[%s18522_s11 + $0x24] ss:$8 sps:$4 sm:$0xff]  }
 0xb1c   : > { %6853 = vmatpush1.bf16.msra.mxu1 %v14268_v48  ;;  %v14322_v48 = vld [vmem:[%s18522_s11] ss:$8 sps:$4 sm:$0xff]  }
 0xb1d   : > { %6854 = vmatprep.subr.bf16.mxu1 %v14273_v49  ;;  %v14324_v49 = vld [vmem:[%s18522_s11 + $0x4] ss:$8 sps:$4 sm:$0xff]  }
 0xb1f   : > { %12196 = vmatmul.mubr.msk.bf16.gmra.mrb[156].mxu1 %vm4250_vm14, %v16088_v40  ;;  %7374 = vperm.xlu1 %14061, %v16011_v7   ;;  %v14342_v7 = vld [vmem:[%s18522_s11 + $0x34] ss:$8 sps:$4 sm:$0xff]  }
 0xb20   : > { %6855 = vmatpush1.bf16.msra.mxu1 %v14271_v50  ;;  %6882 = vmatprep.mubr.bf16.mxu1 %v15157_v54 }
 0xb21   : > { %6856 = vmatprep.subr.bf16.mxu1 %v14276_v43  ;;  %v14330_v43 = vld [vmem:[%s18522_s11 + $0x14] ss:$8 sps:$4 sm:$0xff]  }
 0xb23   : > { %7378 = vperm.xlu1 %14061, %v16017_v8  }
 0xb24   : > { %6857 = vmatpush1.bf16.msra.mxu1 %v14274_v51  ;;  %v14303_v51 = vld [vmem:[%s18514_s3 + $0x240] sm:$0xff]  }
 0xb25   : > { %7038 = vmatprep.subr.bf16.mxu1 %v14279_v45  ;;  %v14328_v45 = vld [vmem:[%s18522_s11 + $0x10] ss:$8 sps:$4 sm:$0xff]  }
 0xb27   : > { %12221 = vmatmul.mubr.msk.bf16.vlgmr.msra.gmra.mrb[160].mxu1 %vm4250_vm14, %v16093_v10 }
 0xb28   : > { %7039 = vmatpush1.bf16.msra.mxu1 %v14277_v52  ;;  %6892 = vmatprep.mubr.bf16.mxu1 %v15157_v54 }
 0xb29   : > { %7040 = vmatprep.subr.bf16.mxu1 %v14282_v53 }
 0xb2c   : > { %7041 = vmatpush1.bf16.msra.mxu1 %v14280_v55  ;;  %v14334_v55 = vld [vmem:[%s18522_s11 + $0x20] ss:$8 sps:$4 sm:$0xff]  }
 0xb2d   : > { %7042 = vmatprep.subr.bf16.mxu1 %v14285_v56 }
 0xb2f   : > { %12222 = vmatmul.mubr.msk.bf16.gmra.mrb[164].mxu1 %vm4250_vm14, %v16088_v40 }
 0xb30   : > { %7043 = vmatpush1.bf16.msra.mxu1 %v14283_v57  ;;  %7070 = vmatprep.mubr.bf16.mxu1 %v15157_v54 }
 0xb31   : > { %7044 = vmatprep.subr.bf16.mxu1 %v14288_v61 }
 0xb34   : > { %7045 = vmatpush1.bf16.msra.mxu1 %v14286_v62  ;;  %v14304_v62 = vld [vmem:[%s18514_s3 + $0x248] sm:$0xff]  }
 0xb35   : > { %7226 = vmatprep.subr.bf16.mxu1 %v14291_v63  ;;  %v14340_v63 = vld [vmem:[%s18522_s11 + $0x30] ss:$8 sps:$4 sm:$0xff]  }
 0xb37   : > { %12247 = vmatmul.mubr.msk.bf16.vlgmr.msra.gmra.mrb[168].mxu1 %vm4250_vm14, %v16093_v10 }
 0xb38   : > { %7227 = vmatpush1.bf16.msra.mxu1 %v14289_v1  ;;  %7080 = vmatprep.mubr.bf16.mxu1 %v15157_v54  ;;  %v14348_v1 = vld [vmem:[%s18522_s11 + $0x44] ss:$8 sps:$4 sm:$0xff]  }
 0xb39   : > { %7228 = vmatprep.subr.bf16.mxu1 %v14294_v2 }
 0xb3c   : > { %7229 = vmatpush1.bf16.msra.mxu1 %v14292_v3 }
 0xb3d   : > { %7230 = vmatprep.subr.bf16.mxu1 %v14297_v4  ;;  %v14346_v4 = vld [vmem:[%s18522_s11 + $0x40] ss:$8 sps:$4 sm:$0xff]  }
 0xb3f   : > { %12248 = vmatmul.mubr.msk.bf16.gmra.mrb[172].mxu1 %vm4250_vm14, %v16088_v40 }
 0xb40   : > { %7231 = vmatpush1.bf16.msra.mxu1 %v14295_v58  ;;  %7258 = vmatprep.mubr.bf16.mxu1 %v15157_v54 }
 0xb41   : > { %7232 = vmatprep.subr.bf16.mxu1 %v14300_v0 }
 0xb44   : > { %7233 = vmatpush1.bf16.msra.mxu1 %v14298_v59  ;;  %v14354_v59 = vld [vmem:[%s18522_s11 + $0x54] ss:$8 sps:$4 sm:$0xff]  }
 0xb45   : > { %7633 = vmatprep.subr.bf16.mxu1 %v14324_v49 }
 0xb47   : > { %12273 = vmatmul.mubr.msk.bf16.vlgmr.msra.gmra.mrb[176].mxu1 %vm4250_vm14, %v16093_v10 }
 0xb48   : > { %7268 = vmatprep.mubr.bf16.mxu1 %v15157_v54  ;;  %7634 = vmatpush1.bf16.msra.mxu1 %v14322_v48  ;;  %v14309_v48 = vld [vmem:[%s18514_s3 + $0x280] sm:$0xff]  }
 0xb49   : > { %7635 = vmatprep.subr.bf16.mxu1 %v14330_v43 }
 0xb4c   : > { %7636 = vmatpush1.bf16.msra.mxu1 %v14328_v45 }
 0xb4d   : > { %7637 = vmatprep.subr.bf16.mxu1 %v14336_v6 }
 0xb4f   : > { %12274 = vmatmul.mubr.msk.bf16.gmra.mrb[180].mxu1 %vm4250_vm14, %v16088_v40 }
 0xb50   : > { %7638 = vmatpush1.bf16.msra.mxu1 %v14334_v55 }
 0xb51   : > { %7639 = vmatprep.subr.bf16.mxu1 %v14342_v7 }
 0xb54   : > { %7640 = vmatpush1.bf16.msra.mxu1 %v14340_v63 }
 0xb55   : > { %7641 = vmatprep.subr.bf16.mxu1 %v14348_v1 }
 0xb58   : > { %7642 = vmatpush1.bf16.msra.mxu1 %v14346_v4  ;;  %v14312_v4 = vld [vmem:[%s18514_s3 + $0x298] sm:$0xff]  }
 0xb59   : > { %7643 = vmatprep.subr.bf16.mxu1 %v14354_v59 }
 0xbaa   : > { %v5772_v60 = vpop.f32.mrb[40].mxu0  ;;  %v5883_v5 = vpop.f32.mrb[120].mxu1 }
 0xbab   : > { %v5774_v9 = vpop.f32.mrb[41].mxu0  ;;  %v5885_v11 = vpop.f32.mrb[121].mxu1 }
 0xbac   : > { %v5776_v12 = vpop.f32.mrb[42].mxu0  ;;  %v5887_v14 = vpop.f32.mrb[122].mxu1 }
 0xbad   : > { %v5791_v15 = vpack.c.bf16 %v5776_v12, %v5772_v60  ;;  %v5902_v13 = vpack.c.bf16 %v5887_v14, %v5883_v5  ;;  %v5778_v16 = vpop.f32.mrb[43].mxu0  ;;  %v5889_v17 = vpop.f32.mrb[123].mxu1  ;;  %v14305_v5 = vld [vmem:[%s18514_s3 + $0x260] sm:$0xff]  }
 0xbae   : > { %v5792_v18 = vpack.c.bf16 %v5778_v16, %v5774_v9  ;;  %v5903_v19 = vpack.c.bf16 %v5889_v17, %v5885_v11  ;;  %v14352_v9 = vld [vmem:[%s18522_s11 + $0x50] ss:$8 sps:$4 sm:$0xff]   ;;  %v14360_v12 = vld [vmem:[%s18522_s11 + $0x64] ss:$8 sps:$4 sm:$0xff]  }
 0xbaf   : > { %7644 = vmatpush1.bf16.msra.mxu1 %v14352_v9 }
 0xbb0   : > { %5927 = vmatprep.subr.bf16.mxu0 %v5903_v19  ;;  %7645 = vmatprep.subr.bf16.mxu1 %v14360_v12 }
 0xbb1   : > { %5928 = vmatpush1.bf16.msra.mxu0 %v5902_v13  ;;  %v14358_v13 = vld [vmem:[%s18522_s11 + $0x60] ss:$8 sps:$4 sm:$0xff]  }
 0xbb2   : > { %v5782_v10 = vpop.f32.mrb[44].mxu0  ;;  %v5893_v20 = vpop.f32.mrb[124].mxu1 }
 0xbb3   : > { %v5784_v21 = vpop.f32.mrb[45].mxu0  ;;  %v5895_v22 = vpop.f32.mrb[125].mxu1  ;;  %7646 = vmatpush1.bf16.msra.mxu1 %v14358_v13 }
 0xbb4   : > { %v5786_v23 = vpop.f32.mrb[46].mxu0  ;;  %v5897_v40 = vpop.f32.mrb[126].mxu1 }
 0xbb5   : > { %v5793_v24 = vpack.c.bf16 %v5786_v23, %v5782_v10  ;;  %v5904_v25 = vpack.c.bf16 %v5897_v40, %v5893_v20  ;;  %v5788_v26 = vpop.f32.mrb[47].mxu0  ;;  %v5899_v27 = vpop.f32.mrb[127].mxu1  ;;  %v14306_v10 = vld [vmem:[%s18514_s3 + $0x268] sm:$0xff]   ;;  %v14364_v20 = vld [vmem:[%s18522_s11 + $0x70] ss:$8 sps:$4 sm:$0xff]  }
 0xbb6   : > { %v5794_v28 = vpack.c.bf16 %v5788_v26, %v5784_v21  ;;  %v5905_v29 = vpack.c.bf16 %v5899_v27, %v5895_v22  ;;  %v14372_v21 = vld [vmem:[%s18522_s11 + $0x84] ss:$8 sps:$4 sm:$0xff]   ;;  %v14378_v27 = vld [vmem:[%s18522_s11 + $0x94] ss:$8 sps:$4 sm:$0xff]  }
 0xbb8   : > { %5929 = vmatprep.subr.bf16.mxu0 %v5905_v29  ;;  %v14307_v29 = vld [vmem:[%s18514_s3 + $0x270] sm:$0xff]  }
 0xbb9   : > { %5930 = vmatpush1.bf16.msra.mxu0 %v5904_v25 }
 0xbba   : > { %5996 = vmatprep.subr.bf16.mxu0 %v5792_v18  ;;  %v6132_v32 = vpop.f32.mrb[128].mxu1  ;;  %v14366_v18 = vld [vmem:[%s18522_s11 + $0x74] ss:$8 sps:$4 sm:$0xff]  }
 0xbbb   : > { %v6134_v33 = vpop.f32.mrb[129].mxu1  ;;  %7647 = vmatprep.subr.bf16.mxu1 %v14366_v18  ;;  %v14314_v18 = vld [vmem:[%s18514_s3 + $0x2a8] sm:$0xff]  }
 0xbbc   : > { %12095 = vmatmul.mubr.msk.bf16.vlgmr.msra.gmra.mrb[48].mxu0 %vm691_vm1, %v14301_v30  ;;  %v6136_v34 = vpop.f32.mrb[130].mxu1  ;;  %7648 = vmatpush1.bf16.msra.mxu1 %v14364_v20  ;;  %v14376_v30 = vld [vmem:[%s18522_s11 + $0x90] ss:$8 sps:$4 sm:$0xff]  }
 0xbbd   : > { %v6151_v35 = vpack.c.bf16 %v6136_v34, %v6132_v32  ;;  %5997 = vmatpush1.bf16.msra.mxu0 %v5791_v15  ;;  %v6138_v36 = vpop.f32.mrb[131].mxu1  ;;  %5969 = vmatprep.mubr.bf16.mxu0 %v15157_v54 }
 0xbbe   : > { %v6152_v37 = vpack.c.bf16 %v6138_v36, %v6134_v33  ;;  %5998 = vmatprep.subr.bf16.mxu0 %v5794_v28  ;;  %7649 = vmatprep.subr.bf16.mxu1 %v14372_v21 }
 0xbc1   : > { %5999 = vmatpush1.bf16.msra.mxu0 %v5793_v24  ;;  %v14370_v24 = vld [vmem:[%s18522_s11 + $0x80] ss:$8 sps:$4 sm:$0xff]  }
 0xbc2   : > { %v6142_v31 = vpop.f32.mrb[132].mxu1  ;;  %6176 = vmatprep.subr.bf16.mxu0 %v6152_v37  ;;  %7650 = vmatpush1.bf16.msra.mxu1 %v14370_v24  ;;  %v14321_v24 = vld [vmem:[%s18522_s11 + $0x104] ss:$8 sps:$4 sm:$0xff]  }
 0xbc3   : > { %v6144_v41 = vpop.f32.mrb[133].mxu1  ;;  %7651 = vmatprep.subr.bf16.mxu1 %v14378_v27  ;;  %v14319_v27 = vld [vmem:[%s18522_s11 + $0x100] ss:$8 sps:$4 sm:$0xff]  }
 0xbc4   : > { %12096 = vmatmul.mubr.msk.bf16.gmra.mrb[52].mxu0 %vm691_vm1, %v14302_v39  ;;  %v6146_v42 = vpop.f32.mrb[134].mxu1  ;;  %v14308_v39 = vld [vmem:[%s18514_s3 + $0x278] sm:$0xff]  }
 0xbc5   : > { %v6153_v44 = vpack.c.bf16 %v6146_v42, %v6142_v31  ;;  %v6148_v46 = vpop.f32.mrb[135].mxu1  ;;  %6028 = vmatprep.mubr.bf16.mxu0 %v15157_v54 }
 0xbc6   : > { %v6154_v50 = vpack.c.bf16 %v6148_v46, %v6144_v41  ;;  %7652 = vmatpush1.bf16.msra.mxu1 %v14376_v30  ;;  %v14333_v30 = vld [vmem:[%s18522_s11 + $0x124] ss:$8 sps:$4 sm:$0xff]  }
 0xbca   : > { %v6320_v52 = vpop.f32.mrb[136].mxu1 }
 0xbcb   : > { %v6322_v38 = vpop.f32.mrb[137].mxu1 }
 0xbcc   : > { %12099 = vmatmul.mubr.msk.bf16.vlgmr.msra.gmra.mrb[48].mxu0 %vm691_vm1, %v14303_v51  ;;  %v6324_v53 = vpop.f32.mrb[138].mxu1 }
 0xbcd   : > { %6177 = vmatpush1.bf16.msra.mxu0 %v6151_v35  ;;  %v6339_v56 = vpack.c.bf16 %v6324_v53, %v6320_v52  ;;  %v6326_v57 = vpop.f32.mrb[139].mxu1  ;;  %6038 = vmatprep.mubr.bf16.mxu0 %v15157_v54 }
 0xbce   : > { %6178 = vmatprep.subr.bf16.mxu0 %v6154_v50  ;;  %v6340_v61 = vpack.c.bf16 %v6326_v57, %v6322_v38  ;;  %v14310_v38 = vld [vmem:[%s18514_s3 + $0x288] sm:$0xff]  }
 0xbd1   : > { %6179 = vmatpush1.bf16.msra.mxu0 %v6153_v44 }
 0xbd2   : > { %6364 = vmatprep.subr.bf16.mxu0 %v6340_v61  ;;  %v6330_v2 = vpop.f32.mrb[140].mxu1  ;;  %v14311_v61 = vld [vmem:[%s18514_s3 + $0x290] sm:$0xff]  }
 0xbd3   : > { %v6332_v3 = vpop.f32.mrb[141].mxu1 }
 0xbd4   : > { %12100 = vmatmul.mubr.msk.bf16.gmra.mrb[52].mxu0 %vm691_vm1, %v14304_v62  ;;  %v6334_v8 = vpop.f32.mrb[142].mxu1 }
 0xbd5   : > { %v6341_v58 = vpack.c.bf16 %v6334_v8, %v6330_v2  ;;  %v6336_v0 = vpop.f32.mrb[143].mxu1  ;;  %6208 = vmatprep.mubr.bf16.mxu0 %v15157_v54 }
 0xbd6   : > { %v6342_v60 = vpack.c.bf16 %v6336_v0, %v6332_v3 }
 0xbda   : > { %v6508_v11 = vpop.f32.mrb[144].mxu1 }
 0xbdb   : > { %v6510_v14 = vpop.f32.mrb[145].mxu1 }
 0xbdc   : > { %12125 = vmatmul.mubr.msk.bf16.vlgmr.msra.gmra.mrb[48].mxu0 %vm691_vm1, %v14305_v5  ;;  %v6512_v15 = vpop.f32.mrb[146].mxu1 }
 0xbdd   : > { %6365 = vmatpush1.bf16.msra.mxu0 %v6339_v56  ;;  %v6527_v16 = vpack.c.bf16 %v6512_v15, %v6508_v11  ;;  %v6514_v17 = vpop.f32.mrb[147].mxu1  ;;  %6218 = vmatprep.mubr.bf16.mxu0 %v15157_v54  ;;  %v14313_v11 = vld [vmem:[%s18514_s3 + $0x2a0] sm:$0xff]  }
 0xbde   : > { %6366 = vmatprep.subr.bf16.mxu0 %v6342_v60  ;;  %v6528_v19 = vpack.c.bf16 %v6514_v17, %v6510_v14 }
 0xbe1   : > { %6367 = vmatpush1.bf16.msra.mxu0 %v6341_v58 }
 0xbe2   : > { %6552 = vmatprep.subr.bf16.mxu0 %v6528_v19  ;;  %v6518_v22 = vpop.f32.mrb[148].mxu1 }
 0xbe3   : > { %v6520_v23 = vpop.f32.mrb[149].mxu1 }
 0xbe4   : > { %12126 = vmatmul.mubr.msk.bf16.gmra.mrb[52].mxu0 %vm691_vm1, %v14306_v10  ;;  %v6522_v40 = vpop.f32.mrb[150].mxu1 }
 0xbe5   : > { %v6529_v25 = vpack.c.bf16 %v6522_v40, %v6518_v22  ;;  %v6524_v26 = vpop.f32.mrb[151].mxu1  ;;  %6396 = vmatprep.mubr.bf16.mxu0 %v15157_v54  ;;  %v14315_v40 = vld [vmem:[%s18514_s3 + $0x2b0] sm:$0xff]  }
 0xbe6   : > { %v6530_v28 = vpack.c.bf16 %v6524_v26, %v6520_v23  ;;  %v14317_v26 = vld [vmem:[%s18514_s3 + $0x2c0] sm:$0xff]  }
 0xbea   : > { %v6696_v32 = vpop.f32.mrb[152].mxu1 }
 0xbeb   : > { %v6698_v33 = vpop.f32.mrb[153].mxu1 }
 0xbec   : > { %12151 = vmatmul.mubr.msk.bf16.vlgmr.msra.gmra.mrb[48].mxu0 %vm691_vm1, %v14307_v29  ;;  %v6700_v34 = vpop.f32.mrb[154].mxu1  ;;  %v14325_v29 = vld [vmem:[%s18522_s11 + $0x110] ss:$8 sps:$4 sm:$0xff]  }
 0xbed   : > { %6553 = vmatpush1.bf16.msra.mxu0 %v6527_v16  ;;  %v6715_v35 = vpack.c.bf16 %v6700_v34, %v6696_v32  ;;  %v6702_v36 = vpop.f32.mrb[155].mxu1  ;;  %6406 = vmatprep.mubr.bf16.mxu0 %v15157_v54  ;;  %v14318_v32 = vld [vmem:[%s18514_s3 + $0x2c8] sm:$0xff]   ;;  %v14339_v34 = vld [vmem:[%s18522_s11 + $0x134] ss:$8 sps:$4 sm:$0xff]  }
 0xbee   : > { %6554 = vmatprep.subr.bf16.mxu0 %v6530_v28  ;;  %v6716_v37 = vpack.c.bf16 %v6702_v36, %v6698_v33  ;;  %v14327_v28 = vld [vmem:[%s18522_s11 + $0x114] ss:$8 sps:$4 sm:$0xff]   ;;  %v14331_v33 = vld [vmem:[%s18522_s11 + $0x120] ss:$8 sps:$4 sm:$0xff]   ;;  %v14345_v36 = vld [vmem:[%s18522_s11 + $0x144] ss:$8 sps:$4 sm:$0xff]  }
 0xbf1   : > { %6555 = vmatpush1.bf16.msra.mxu0 %v6529_v25  ;;  %v14316_v25 = vld [vmem:[%s18514_s3 + $0x2b8] sm:$0xff]  }
 0xbf2   : > { %6740 = vmatprep.subr.bf16.mxu0 %v6716_v37  ;;  %v6706_v31 = vpop.f32.mrb[156].mxu1  ;;  %v14343_v37 = vld [vmem:[%s18522_s11 + $0x140] ss:$8 sps:$4 sm:$0xff]  }
 0xbf3   : > { %v6708_v41 = vpop.f32.mrb[157].mxu1 }
 0xbf4   : > { %12152 = vmatmul.mubr.msk.bf16.gmra.mrb[52].mxu0 %vm691_vm1, %v14308_v39  ;;  %v6710_v42 = vpop.f32.mrb[158].mxu1  ;;  %v14351_v39 = vld [vmem:[%s18522_s11 + $0x154] ss:$8 sps:$4 sm:$0xff]  }
 0xbf5   : > { %v6717_v44 = vpack.c.bf16 %v6710_v42, %v6706_v31  ;;  %v6712_v46 = vpop.f32.mrb[159].mxu1  ;;  %6584 = vmatprep.mubr.bf16.mxu0 %v15157_v54  ;;  %v14349_v31 = vld [vmem:[%s18522_s11 + $0x150] ss:$8 sps:$4 sm:$0xff]   ;;  %v14355_v42 = vld [vmem:[%s18522_s11 + $0x160] ss:$8 sps:$4 sm:$0xff]  }
 0xbf6   : > { %v6718_v47 = vpack.c.bf16 %v6712_v46, %v6708_v41  ;;  %v14357_v41 = vld [vmem:[%s18522_s11 + $0x164] ss:$8 sps:$4 sm:$0xff]   ;;  %v14361_v46 = vld [vmem:[%s18522_s11 + $0x170] ss:$8 sps:$4 sm:$0xff]  }
 0xbfa   : > { %v6884_v49 = vpop.f32.mrb[160].mxu1 }
 0xbfb   : > { %v6886_v50 = vpop.f32.mrb[161].mxu1 }
 0xbfc   : > { %12177 = vmatmul.mubr.msk.bf16.vlgmr.msra.gmra.mrb[48].mxu0 %vm691_vm1, %v14309_v48  ;;  %v6888_v43 = vpop.f32.mrb[162].mxu1  ;;  %v14367_v48 = vld [vmem:[%s18522_s11 + $0x180] ss:$8 sps:$4 sm:$0xff]  }
 0xbfd   : > { %6741 = vmatpush1.bf16.msra.mxu0 %v6715_v35  ;;  %v6903_v51 = vpack.c.bf16 %v6888_v43, %v6884_v49  ;;  %v6890_v45 = vpop.f32.mrb[163].mxu1  ;;  %6594 = vmatprep.mubr.bf16.mxu0 %v15157_v54  ;;  %v14337_v35 = vld [vmem:[%s18522_s11 + $0x130] ss:$8 sps:$4 sm:$0xff]   ;;  %v14375_v49 = vld [vmem:[%s18522_s11 + $0x194] ss:$8 sps:$4 sm:$0xff]  }
 0xbfe   : > { %6742 = vmatprep.subr.bf16.mxu0 %v6718_v47  ;;  %v6904_v52 = vpack.c.bf16 %v6890_v45, %v6886_v50  ;;  %v14369_v47 = vld [vmem:[%s18522_s11 + $0x184] ss:$8 sps:$4 sm:$0xff]   ;;  %v14373_v50 = vld [vmem:[%s18522_s11 + $0x190] ss:$8 sps:$4 sm:$0xff]  }
 0xbff   : > { %v14381_v43 = vld [vmem:[%s18522_s11 + $0x1a4] ss:$8 sps:$4 sm:$0xff]  }
 0xc00   : > { %v16532_v45 = vld [vmem:[%s18522_s11 + $0xa4] ss:$8 sps:$4 sm:$0xff]  }
 0xc01   : > { %6743 = vmatpush1.bf16.msra.mxu0 %v6717_v44  ;;  %v14363_v44 = vld [vmem:[%s18522_s11 + $0x174] ss:$8 sps:$4 sm:$0xff]   ;;  %7653 = vmatprep.subr.bf16.mxu1 %v16532_v45 }
 0xc02   : > { %6928 = vmatprep.subr.bf16.mxu0 %v6904_v52  ;;  %v6894_v6 = vpop.f32.mrb[164].mxu1  ;;  %v16537_v52 = vld [vmem:[%s18522_s11 + $0xa0] ss:$8 sps:$4 sm:$0xff]  }
 0xc03   : > { %v6896_v53 = vpop.f32.mrb[165].mxu1  ;;  %7654 = vmatpush1.bf16.msra.mxu1 %v16537_v52 }
 0xc04   : > { %12178 = vmatmul.mubr.msk.bf16.gmra.mrb[52].mxu0 %vm691_vm1, %v14310_v38  ;;  %v6898_v55 = vpop.f32.mrb[166].mxu1  ;;  %v14387_v38 = vld [vmem:[%s18522_s11 + $0x1b4] ss:$8 sps:$4 sm:$0xff]  }
 0xc05   : > { %v6905_v56 = vpack.c.bf16 %v6898_v55, %v6894_v6  ;;  %v6900_v57 = vpop.f32.mrb[167].mxu1  ;;  %6772 = vmatprep.mubr.bf16.mxu0 %v15157_v54  ;;  %v14385_v6 = vld [vmem:[%s18522_s11 + $0x1b0] ss:$8 sps:$4 sm:$0xff]  }
 0xc06   : > { %v6906_v7 = vpack.c.bf16 %v6900_v57, %v6896_v53  ;;  %v16550_v53 = vld [vmem:[%s18522_s11 + $0xb4] ss:$8 sps:$4 sm:$0xff]   ;;  %v16555_v55 = vld [vmem:[%s18522_s11 + $0xb0] ss:$8 sps:$4 sm:$0xff]   ;;  %v14391_v57 = vld [vmem:[%s18522_s11 + $0x1c0] ss:$8 sps:$4 sm:$0xff]  }
 0xc07   : > { %7655 = vmatprep.subr.bf16.mxu1 %v16550_v53 }
 0xc08   : > { %7656 = vmatpush1.bf16.msra.mxu1 %v16555_v55 }
 0xc0a   : > { %v7072_v62 = vpop.f32.mrb[168].mxu1 }
 0xc0b   : > { %v7074_v63 = vpop.f32.mrb[169].mxu1 }
 0xc0c   : > { %12203 = vmatmul.mubr.msk.bf16.vlgmr.msra.gmra.mrb[48].mxu0 %vm691_vm1, %v14311_v61  ;;  %v7076_v1 = vpop.f32.mrb[170].mxu1  ;;  %v16573_v61 = vld [vmem:[%s18522_s11 + $0xc0] ss:$8 sps:$4 sm:$0xff]  }
 0xc0d   : > { %6929 = vmatpush1.bf16.msra.mxu0 %v6903_v51  ;;  %v7091_v2 = vpack.c.bf16 %v7076_v1, %v7072_v62  ;;  %v7078_v3 = vpop.f32.mrb[171].mxu1  ;;  %6782 = vmatprep.mubr.bf16.mxu0 %v15157_v54  ;;  %v14379_v51 = vld [vmem:[%s18522_s11 + $0x1a0] ss:$8 sps:$4 sm:$0xff]   ;;  %v14399_v62 = vld [vmem:[%s18522_s11 + $0x1d4] ss:$8 sps:$4 sm:$0xff]  }
 0xc0e   : > { %6930 = vmatprep.subr.bf16.mxu0 %v6906_v7  ;;  %v7092_v8 = vpack.c.bf16 %v7078_v3, %v7074_v63  ;;  %v16568_v7 = vld [vmem:[%s18522_s11 + $0xc4] ss:$8 sps:$4 sm:$0xff]   ;;  %v14397_v63 = vld [vmem:[%s18522_s11 + $0x1d0] ss:$8 sps:$4 sm:$0xff]   ;;  %v16586_v1 = vld [vmem:[%s18522_s11 + $0xd4] ss:$8 sps:$4 sm:$0xff]  }
 0xc0f   : > { %7657 = vmatprep.subr.bf16.mxu1 %v16568_v7  ;;  %v14405_v3 = vld [vmem:[%s18522_s11 + $0x1e4] ss:$8 sps:$4 sm:$0xff]  }
 0xc10   : > { %7658 = vmatpush1.bf16.msra.mxu1 %v16573_v61 }
 0xc11   : > { %6931 = vmatpush1.bf16.msra.mxu0 %v6905_v56  ;;  %v14393_v56 = vld [vmem:[%s18522_s11 + $0x1c4] ss:$8 sps:$4 sm:$0xff]   ;;  %7659 = vmatprep.subr.bf16.mxu1 %v16586_v1 }
 0xc12   : > { %7116 = vmatprep.subr.bf16.mxu0 %v7092_v8  ;;  %v7082_v58 = vpop.f32.mrb[172].mxu1  ;;  %v14403_v8 = vld [vmem:[%s18522_s11 + $0x1e0] ss:$8 sps:$4 sm:$0xff]  }
 0xc13   : > { %v7084_v0 = vpop.f32.mrb[173].mxu1 }
 0xc14   : > { %12204 = vmatmul.mubr.msk.bf16.gmra.mrb[52].mxu0 %vm691_vm1, %v14312_v4  ;;  %v7086_v59 = vpop.f32.mrb[174].mxu1  ;;  %v16604_v4 = vld [vmem:[%s18522_s11 + $0xe4] ss:$8 sps:$4 sm:$0xff]  }
 0xc15   : > { %v7093_v60 = vpack.c.bf16 %v7086_v59, %v7082_v58  ;;  %v7088_v5 = vpop.f32.mrb[175].mxu1  ;;  %6960 = vmatprep.mubr.bf16.mxu0 %v15157_v54  ;;  %v16609_v58 = vld [vmem:[%s18522_s11 + $0xe0] ss:$8 sps:$4 sm:$0xff]   ;;  %v14409_v59 = vld [vmem:[%s18522_s11 + $0x1f0] ss:$8 sps:$4 sm:$0xff]  }
 0xc16   : > { %v7094_v9 = vpack.c.bf16 %v7088_v5, %v7084_v0  ;;  %v14411_v0 = vld [vmem:[%s18522_s11 + $0x1f4] ss:$8 sps:$4 sm:$0xff]   ;;  %v16627_v5 = vld [vmem:[%s18522_s11 + $0xf0] ss:$8 sps:$4 sm:$0xff]  }
 0xc1a   : > { %v7260_v12 = vpop.f32.mrb[176].mxu1 }
 0xc1b   : > { %v7262_v14 = vpop.f32.mrb[177].mxu1 }
 0xc1c   : > { %12229 = vmatmul.mubr.msk.bf16.vlgmr.msra.gmra.mrb[48].mxu0 %vm691_vm1, %v14313_v11  ;;  %v7264_v15 = vpop.f32.mrb[178].mxu1  ;;  %v7367_v11 = vpop.permute.xlu1 %7366 }
 0xc1d   : > { %7117 = vmatpush1.bf16.msra.mxu0 %v7091_v2  ;;  %v7279_v13 = vpack.c.bf16 %v7264_v15, %v7260_v12  ;;  %v7266_v16 = vpop.f32.mrb[179].mxu1  ;;  %6970 = vmatprep.mubr.bf16.mxu0 %v15157_v54  ;;  %v16591_v2 = vld [vmem:[%s18522_s11 + $0xd0] ss:$8 sps:$4 sm:$0xff]  }
 0xc1e   : > { %7118 = vmatprep.subr.bf16.mxu0 %v7094_v9  ;;  %v7280_v17 = vpack.c.bf16 %v7266_v16, %v7262_v14  ;;  %7660 = vmatpush1.bf16.msra.mxu1 %v16591_v2  ;;  %v14417_v9 = vld [vmem:[%s18522_s11 + $0x204] ss:$8 sps:$4 sm:$0xff]   ;;  %v7371_v14 = vpop.permute.xlu0 %7370 }
 0xc1f   : > { %7661 = vmatprep.subr.bf16.mxu1 %v16604_v4 }
 0xc21   : > { %7119 = vmatpush1.bf16.msra.mxu0 %v7093_v60  ;;  %v16622_v60 = vld [vmem:[%s18522_s11 + $0xf4] ss:$8 sps:$4 sm:$0xff]  }
 0xc22   : > { %7304 = vmatprep.subr.bf16.mxu0 %v7280_v17  ;;  %v7270_v19 = vpop.f32.mrb[180].mxu1  ;;  %7662 = vmatpush1.bf16.msra.mxu1 %v16609_v58 }
 0xc23   : > { %v7272_v10 = vpop.f32.mrb[181].mxu1  ;;  %7663 = vmatprep.subr.bf16.mxu1 %v16622_v60 }
 0xc24   : > { %12230 = vmatmul.mubr.msk.bf16.gmra.mrb[52].mxu0 %vm691_vm1, %v14314_v18  ;;  %v7274_v20 = vpop.f32.mrb[182].mxu1 }
 0xc25   : > { %v7281_v21 = vpack.c.bf16 %v7274_v20, %v7270_v19  ;;  %v7276_v22 = vpop.f32.mrb[183].mxu1  ;;  %7148 = vmatprep.mubr.bf16.mxu0 %v15157_v54  ;;  %v7375_v20 = vpop.permute.xlu1 %7374 }
 0xc26   : > { %v7282_v23 = vpack.c.bf16 %v7276_v22, %v7272_v10  ;;  %7664 = vmatpush1.bf16.msra.mxu1 %v16627_v5 }
 0xc2c   : > { %12255 = vmatmul.mubr.msk.bf16.vlgmr.msra.gmra.mrb[48].mxu0 %vm691_vm1, %v14315_v40 }
 0xc2d   : > { %7305 = vmatpush1.bf16.msra.mxu0 %v7279_v13  ;;  %7158 = vmatprep.mubr.bf16.mxu0 %v15157_v54 }
 0xc2e   : > { %7306 = vmatprep.subr.bf16.mxu0 %v7282_v23 }
 0xc31   : > { %7307 = vmatpush1.bf16.msra.mxu0 %v7281_v21 }
 0xc32   : > { %7888 = vmatprep.subr.bf16.mxu0 %v14321_v24 }
 0xc34   : > { %12256 = vmatmul.mubr.msk.bf16.gmra.mrb[52].mxu0 %vm691_vm1, %v14316_v25 }
 0xc35   : > { %7336 = vmatprep.mubr.bf16.mxu0 %v15157_v54 }
 0xc3c   : > { %12281 = vmatmul.mubr.msk.bf16.vlgmr.msra.gmra.mrb[48].mxu0 %vm691_vm1, %v14317_v26 }
 0xc3d   : > { %7346 = vmatprep.mubr.bf16.mxu0 %v15157_v54  ;;  %7889 = vmatpush1.bf16.msra.mxu0 %v14319_v27 }
 0xc3e   : > { %7890 = vmatprep.subr.bf16.mxu0 %v14327_v28 }
 0xc41   : > { %7891 = vmatpush1.bf16.msra.mxu0 %v14325_v29 }
 0xc42   : > { %7892 = vmatprep.subr.bf16.mxu0 %v14333_v30 }
 0xc44   : > { %12282 = vmatmul.mubr.msk.bf16.gmra.mrb[52].mxu0 %vm691_vm1, %v14318_v32  ;;  %v7379_v32 = vpop.permute.xlu1 %7378 }
 0xc45   : > { %7893 = vmatpush1.bf16.msra.mxu0 %v14331_v33 }
 0xc46   : > { %7894 = vmatprep.subr.bf16.mxu0 %v14339_v34 }
 0xc49   : > { %7895 = vmatpush1.bf16.msra.mxu0 %v14337_v35 }
 0xc4a   : > { %7896 = vmatprep.subr.bf16.mxu0 %v14345_v36 }
 0xc4d   : > { %7897 = vmatpush1.bf16.msra.mxu0 %v14343_v37 }
 0xc4e   : > { %7898 = vmatprep.subr.bf16.mxu0 %v14351_v39 }
 0xc51   : > { %7899 = vmatpush1.bf16.msra.mxu0 %v14349_v31 }
 0xc52   : > { %7900 = vmatprep.subr.bf16.mxu0 %v14357_v41 }
 0xc55   : > { %7901 = vmatpush1.bf16.msra.mxu0 %v14355_v42 }
 0xc56   : > { %7902 = vmatprep.subr.bf16.mxu0 %v14363_v44 }
 0xc59   : > { %7903 = vmatpush1.bf16.msra.mxu0 %v14361_v46 }
 0xc5a   : > { %7904 = vmatprep.subr.bf16.mxu0 %v14369_v47 }
 0xc5d   : > { %7905 = vmatpush1.bf16.msra.mxu0 %v14367_v48 }
 0xc5e   : > { %7906 = vmatprep.subr.bf16.mxu0 %v14375_v49 }
 0xc61   : > { %7907 = vmatpush1.bf16.msra.mxu0 %v14373_v50 }
 0xc62   : > { %7908 = vmatprep.subr.bf16.mxu0 %v14381_v43 }
 0xc65   : > { %7909 = vmatpush1.bf16.msra.mxu0 %v14379_v51 }
 0xc66   : > { %7910 = vmatprep.subr.bf16.mxu0 %v14387_v38 }
 0xc69   : > { %7911 = vmatpush1.bf16.msra.mxu0 %v14385_v6 }
 0xc6a   : > { %7912 = vmatprep.subr.bf16.mxu0 %v14393_v56 }
 0xc6d   : > { %7913 = vmatpush1.bf16.msra.mxu0 %v14391_v57 }
 0xc6e   : > { %7914 = vmatprep.subr.bf16.mxu0 %v14399_v62 }
 0xc71   : > { %7915 = vmatpush1.bf16.msra.mxu0 %v14397_v63 }
 0xc72   : > { %7916 = vmatprep.subr.bf16.mxu0 %v14405_v3 }
 0xc75   : > { %7917 = vmatpush1.bf16.msra.mxu0 %v14403_v8 }
 0xc76   : > { %7918 = vmatprep.subr.bf16.mxu0 %v14411_v0 }
 0xc79   : > { %7919 = vmatpush1.bf16.msra.mxu0 %v14409_v59 }
 0xc7a   : > { %8281 = vmatprep.subr.bf16.mxu0 %v14417_v9  ;;  %v14415_v9 = vld [vmem:[%s18522_s11 + $0x200] ss:$8 sps:$4 sm:$0xff]  }
 0xd0f   : > { %v7338_v12 = vpop.f32.mrb[48].mxu0 }
 0xd10   : > { %v7381_v15 = vadd.f32 %v7367_v11, %v7338_v12  ;;  %v7340_v13 = vpop.f32.mrb[49].mxu0  ;;  %v14420_v12 = vld [vmem:[%s18522_s11 + $0x214] ss:$8 sps:$4 sm:$0xff]  }
 0xd11   : > { %v7382_v16 = vadd.f32 %v7367_v11, %v7340_v13  ;;  %v7342_v17 = vpop.f32.mrb[50].mxu0 }
 0xd12   : > { %v7397_v18 = vmin.f32 %v7381_v15, 0.0  ;;  %v7383_v19 = vadd.f32 %v7371_v14, %v7342_v17  ;;  %v7344_v10 = vpop.f32.mrb[51].mxu0  ;;  %vm7389_vm4 = vcmp.gt.f32.partialorder %v7381_v15, 0.0 }
 0xd13   : > { %v7398_v21 = vmin.f32 %v7382_v16, 0.0  ;;  %v7384_v22 = vadd.f32 %v7371_v14, %v7344_v10  ;;  %vm7390_vm6 = vcmp.gt.f32.partialorder %v7382_v16, 0.0 }
 0xd14   : > { %v7405_v23 = vmul.f32 1.442695, %v7397_v18  ;;  %v7399_v40 = vmin.f32 %v7383_v19, 0.0  ;;  %vm7391_vm5 = vcmp.gt.f32.partialorder %v7383_v19, 0.0 }
 0xd15   : > { %v7407_v24 = vmul.f32 1.442695, %v7398_v21  ;;  %v7400_v25 = vmin.f32 %v7384_v22, 0.0  ;;  %vm7392_vm7 = vcmp.gt.f32.partialorder %v7384_v22, 0.0 }
 0xd16   : > { %14801 = vpow2.f32 %v7405_v23  ;;  %v7409_v26 = vmul.f32 1.442695, %v7399_v40 }
 0xd17   : > { %14803 = vpow2.f32 %v7407_v24  ;;  %v7411_v27 = vmul.f32 1.442695, %v7400_v25  ;;  %v7348_v28 = vpop.f32.mrb[52].mxu0 }
 0xd18   : > { %14805 = vpow2.f32 %v7409_v26  ;;  %v7385_v29 = vadd.f32 %v7375_v20, %v7348_v28  ;;  %v7350_v30 = vpop.f32.mrb[53].mxu0  ;;  %v14421_v26 = vld [vmem:[%s18522_s11 + $0x220] ss:$8 sps:$4 sm:$0xff]   ;;  %v14424_v28 = vld [vmem:[%s18522_s11 + $0x230] ss:$8 sps:$4 sm:$0xff]  }
 0xd19   : > { %14807 = vpow2.f32 %v7411_v27  ;;  %v7386_v33 = vadd.f32 %v7375_v20, %v7350_v30  ;;  %v7352_v34 = vpop.f32.mrb[54].mxu0  ;;  %v14423_v20 = vld [vmem:[%s18522_s11 + $0x224] ss:$8 sps:$4 sm:$0xff]   ;;  %v14426_v27 = vld [vmem:[%s18522_s11 + $0x234] ss:$8 sps:$4 sm:$0xff]  }
 0xd1a   : > { %v7401_v35 = vmin.f32 %v7385_v29, 0.0  ;;  %v7387_v36 = vadd.f32 %v7379_v32, %v7352_v34  ;;  %v7354_v37 = vpop.f32.mrb[55].mxu0  ;;  %vm7393_vm8 = vcmp.gt.f32.partialorder %v7385_v29, 0.0  ;;  %v14427_v30 = vld [vmem:[%s18522_s11 + $0x240] ss:$8 sps:$4 sm:$0xff]  }
 0xd1b   : > { %v7402_v39 = vmin.f32 %v7386_v33, 0.0  ;;  %v7388_v31 = vadd.f32 %v7379_v32, %v7354_v37  ;;  %vm7394_vm10 = vcmp.gt.f32.partialorder %v7386_v33, 0.0  ;;  %v14432_v32 = vld [vmem:[%s18522_s11 + $0x254] ss:$8 sps:$4 sm:$0xff]   ;;  %v14435_v34 = vld [vmem:[%s18522_s11 + $0x264] ss:$8 sps:$4 sm:$0xff]  }
 0xd1c   : > { %v7413_v41 = vmul.f32 1.442695, %v7401_v35  ;;  %v7403_v42 = vmin.f32 %v7387_v36, 0.0  ;;  %vm7395_vm9 = vcmp.gt.f32.partialorder %v7387_v36, 0.0  ;;  %v14433_v35 = vld [vmem:[%s18522_s11 + $0x260] ss:$8 sps:$4 sm:$0xff]  }
 0xd1d   : > { %v7415_v44 = vmul.f32 1.442695, %v7402_v39  ;;  %v7404_v46 = vmin.f32 %v7388_v31, 0.0  ;;  %vm7396_vm11 = vcmp.gt.f32.partialorder %v7388_v31, 0.0  ;;  %v14436_v37 = vld [vmem:[%s18522_s11 + $0x270] ss:$8 sps:$4 sm:$0xff]  }
 0xd1e   : > { %14809 = vpow2.f32 %v7413_v41  ;;  %v7417_v47 = vmul.f32 1.442695, %v7403_v42  ;;  %v14441_v39 = vld [vmem:[%s18522_s11 + $0x284] ss:$8 sps:$4 sm:$0xff]   ;;  %v14444_v41 = vld [vmem:[%s18522_s11 + $0x294] ss:$8 sps:$4 sm:$0xff]  }
 0xd1f   : > { %14811 = vpow2.f32 %v7415_v44  ;;  %v7419_v48 = vmul.f32 1.442695, %v7404_v46  ;;  %v14442_v42 = vld [vmem:[%s18522_s11 + $0x290] ss:$8 sps:$4 sm:$0xff]   ;;  %v14447_v44 = vld [vmem:[%s18522_s11 + $0x2a4] ss:$8 sps:$4 sm:$0xff]  }
 0xd20   : > { %v14802_v49 = vpop.eup %14801  ;;  %14813 = vpow2.f32 %v7417_v47  ;;  %v14445_v46 = vld [vmem:[%s18522_s11 + $0x2a0] ss:$8 sps:$4 sm:$0xff]   ;;  %v14450_v47 = vld [vmem:[%s18522_s11 + $0x2b4] ss:$8 sps:$4 sm:$0xff]  }
 0xd21   : > { %v14804_v50 = vpop.eup %14803  ;;  %v12283_v43 = vadd.f32 -1.0, %v14802_v49  ;;  %14815 = vpow2.f32 %v7419_v48  ;;  %v14448_v48 = vld [vmem:[%s18522_s11 + $0x2b0] ss:$8 sps:$4 sm:$0xff]   ;;  %v14453_v49 = vld [vmem:[%s18522_s11 + $0x2c4] ss:$8 sps:$4 sm:$0xff]  }
 0xd22   : > { %v14806_v51 = vpop.eup %14805  ;;  %v12284_v38 = vadd.f32 -1.0, %v14804_v50  ;;  %v14451_v50 = vld [vmem:[%s18522_s11 + $0x2c0] ss:$8 sps:$4 sm:$0xff]  }
 0xd23   : > { %v14808_v6 = vpop.eup %14807  ;;  %v12285_v56 = vadd.f32 -1.0, %v14806_v51  ;;  %v7429_v62 = vsel %vm7389_vm4, %v7381_v15, %v12283_v43  ;;  %v14456_v43 = vld [vmem:[%s18522_s11 + $0x2d4] ss:$8 sps:$4 sm:$0xff]   ;;  %v14454_v51 = vld [vmem:[%s18522_s11 + $0x2d0] ss:$8 sps:$4 sm:$0xff]  }
 0xd24   : > { %v12286_v57 = vadd.f32 -1.0, %v14808_v6  ;;  %v7430_v3 = vsel %vm7390_vm6, %v7382_v16, %v12284_v38  ;;  %v14459_v38 = vld [vmem:[%s18522_s11 + $0x2e4] ss:$8 sps:$4 sm:$0xff]   ;;  %v14457_v6 = vld [vmem:[%s18522_s11 + $0x2e0] ss:$8 sps:$4 sm:$0xff]  }
 0xd25   : > { %v7431_v63 = vsel %vm7391_vm5, %v7383_v19, %v12285_v56  ;;  %v14418_v19 = vld [vmem:[%s18522_s11 + $0x210] ss:$8 sps:$4 sm:$0xff]   ;;  %v14462_v56 = vld [vmem:[%s18522_s11 + $0x2f4] ss:$8 sps:$4 sm:$0xff]  }
 0xd26   : > { %v16634_v8 = vpack.c.bf16 %v7431_v63, %v7429_v62  ;;  %v7432_v0 = vsel %vm7392_vm7, %v7384_v22, %v12286_v57  ;;  %v14460_v57 = vld [vmem:[%s18522_s11 + $0x2f0] ss:$8 sps:$4 sm:$0xff]   ;;  %v14465_v62 = vld [vmem:[%s18522_s11 + $0x404] ss:$8 sps:$4 sm:$0xff]   ;;  %v14463_v63 = vld [vmem:[%s18522_s11 + $0x400] ss:$8 sps:$4 sm:$0xff]  }
 0xd27   : > { %v16636_v59 = vpack.c.bf16 %v7432_v0, %v7430_v3  ;;  %v14468_v3 = vld [vmem:[%s18522_s11 + $0x414] ss:$8 sps:$4 sm:$0xff]   ;;  %v14466_v0 = vld [vmem:[%s18522_s11 + $0x410] ss:$8 sps:$4 sm:$0xff]  }
 0xd28   : > { %v14810_v11 = vpop.eup %14809 }
 0xd29   : > { %v14812_v14 = vpop.eup %14811  ;;  %v12287_v15 = vadd.f32 -1.0, %v14810_v11  ;;  %7665 = vmatprep.mubr.bf16.mxu1 %v16636_v59  ;;  %7920 = vmatprep.mubr.bf16.mxu0 %v16636_v59  ;;  %v14469_v11 = vld [vmem:[%s18522_s11 + $0x420] ss:$8 sps:$4 sm:$0xff]  }
 0xd2a   : > { %v14814_v13 = vpop.eup %14813  ;;  %v12288_v16 = vadd.f32 -1.0, %v14812_v14  ;;  %7666 = vmatmul.mubr.bf16.vlgmr.msra.gmra.mrb[184].mxu1 %v16634_v8  ;;  %7921 = vmatmul.mubr.bf16.vlgmr.msra.gmra.mrb[56].mxu0 %v16634_v8  ;;  %v14472_v14 = vld [vmem:[%s18522_s11 + $0x430] ss:$8 sps:$4 sm:$0xff]  }
 0xd2b   : > { %v14816_v17 = vpop.eup %14815  ;;  %v12289_v18 = vadd.f32 -1.0, %v14814_v13  ;;  %8282 = vmatpush1.bf16.msra.mxu0 %v14415_v9  ;;  %v7433_v21 = vsel %vm7393_vm8, %v7385_v29, %v12287_v15  ;;  %v14429_v29 = vld [vmem:[%s18522_s11 + $0x244] ss:$8 sps:$4 sm:$0xff]   ;;  %v14475_v13 = vld [vmem:[%s18522_s11 + $0x440] ss:$8 sps:$4 sm:$0xff]  }
 0xd2c   : > { %v12290_v10 = vadd.f32 -1.0, %v14816_v17  ;;  %8283 = vmatprep.subr.bf16.mxu0 %v14420_v12  ;;  %v7434_v23 = vsel %vm7394_vm10, %v7386_v33, %v12288_v16  ;;  %v14430_v33 = vld [vmem:[%s18522_s11 + $0x250] ss:$8 sps:$4 sm:$0xff]   ;;  %v14471_v9 = vld [vmem:[%s18522_s11 + $0x424] ss:$8 sps:$4 sm:$0xff]  }
 0xd2d   : > { %v7435_v22 = vsel %vm7395_vm9, %v7387_v36, %v12289_v18  ;;  %v14438_v36 = vld [vmem:[%s18522_s11 + $0x274] ss:$8 sps:$4 sm:$0xff]   ;;  %v14477_v15 = vld [vmem:[%s18522_s11 + $0x444] ss:$8 sps:$4 sm:$0xff]   ;;  %v14478_v17 = vld [vmem:[%s18522_s11 + $0x450] ss:$8 sps:$4 sm:$0xff]  }
 0xd2e   : > { %v16654_v40 = vpack.c.bf16 %v7435_v22, %v7433_v21  ;;  %v7436_v24 = vsel %vm7396_vm11, %v7388_v31, %v12290_v10  ;;  %v14439_v31 = vld [vmem:[%s18522_s11 + $0x280] ss:$8 sps:$4 sm:$0xff]   ;;  %v14474_v12 = vld [vmem:[%s18522_s11 + $0x434] ss:$8 sps:$4 sm:$0xff]   ;;  %v14483_v18 = vld [vmem:[%s18522_s11 + $0x464] ss:$8 sps:$4 sm:$0xff]  }
 0xd2f   : > { %v16656_v25 = vpack.c.bf16 %v7436_v24, %v7434_v23  ;;  %8284 = vmatpush1.bf16.msra.mxu0 %v14418_v19  ;;  %v14480_v16 = vld [vmem:[%s18522_s11 + $0x454] ss:$8 sps:$4 sm:$0xff]   ;;  %v14481_v19 = vld [vmem:[%s18522_s11 + $0x460] ss:$8 sps:$4 sm:$0xff]   ;;  %v14489_v21 = vld [vmem:[%s18522_s11 + $0x484] ss:$8 sps:$4 sm:$0xff]  }
 0xd30   : > { %8285 = vmatprep.subr.bf16.mxu0 %v14423_v20  ;;  %v14486_v10 = vld [vmem:[%s18522_s11 + $0x474] ss:$8 sps:$4 sm:$0xff]   ;;  %v14484_v20 = vld [vmem:[%s18522_s11 + $0x470] ss:$8 sps:$4 sm:$0xff]   ;;  %v14487_v22 = vld [vmem:[%s18522_s11 + $0x480] ss:$8 sps:$4 sm:$0xff]  }
 0xd31   : > { %7675 = vmatprep.mubr.bf16.mxu1 %v16656_v25  ;;  %7930 = vmatprep.mubr.bf16.mxu0 %v16656_v25  ;;  %v14492_v23 = vld [vmem:[%s18522_s11 + $0x494] ss:$8 sps:$4 sm:$0xff]   ;;  %v14490_v24 = vld [vmem:[%s18522_s11 + $0x490] ss:$8 sps:$4 sm:$0xff]  }
 0xd32   : > { %7676 = vmatmul.mubr.bf16.gmra.mrb[188].mxu1 %v16654_v40  ;;  %7931 = vmatmul.mubr.bf16.gmra.mrb[60].mxu0 %v16654_v40 }
 0xd33   : > { %8286 = vmatpush1.bf16.msra.mxu0 %v14421_v26  ;;  %8313 = vmatprep.mubr.bf16.mxu0 %v16636_v59  ;;  %v14495_v26 = vld [vmem:[%s18522_s11 + $0x4a4] ss:$8 sps:$4 sm:$0xff]  }
 0xd34   : > { %8287 = vmatprep.subr.bf16.mxu0 %v14426_v27  ;;  %7998 = vmatprep.mubr.bf16.mxu1 %v15157_v54  ;;  %v14493_v27 = vld [vmem:[%s18522_s11 + $0x4a0] ss:$8 sps:$4 sm:$0xff]  }
 0xd37   : > { %8288 = vmatpush1.bf16.msra.mxu0 %v14424_v28  ;;  %v14498_v28 = vld [vmem:[%s18522_s11 + $0x4b4] ss:$8 sps:$4 sm:$0xff]  }
 0xd38   : > { %8289 = vmatprep.subr.bf16.mxu0 %v14429_v29  ;;  %v14496_v29 = vld [vmem:[%s18522_s11 + $0x4b0] ss:$8 sps:$4 sm:$0xff]  }
 0xd3b   : > { %8290 = vmatpush1.bf16.msra.mxu0 %v14427_v30  ;;  %v14501_v30 = vld [vmem:[%s18522_s11 + $0x4c4] ss:$8 sps:$4 sm:$0xff]  }
 0xd3c   : > { %8291 = vmatprep.subr.bf16.mxu0 %v14432_v32  ;;  %v14499_v32 = vld [vmem:[%s18522_s11 + $0x4c0] ss:$8 sps:$4 sm:$0xff]  }
 0xd3f   : > { %8292 = vmatpush1.bf16.msra.mxu0 %v14430_v33  ;;  %v14504_v33 = vld [vmem:[%s18522_s11 + $0x4d4] ss:$8 sps:$4 sm:$0xff]  }
 0xd40   : > { %8293 = vmatprep.subr.bf16.mxu0 %v14435_v34  ;;  %v14502_v34 = vld [vmem:[%s18522_s11 + $0x4d0] ss:$8 sps:$4 sm:$0xff]  }
 0xd43   : > { %8294 = vmatpush1.bf16.msra.mxu0 %v14433_v35  ;;  %v14507_v35 = vld [vmem:[%s18522_s11 + $0x4e4] ss:$8 sps:$4 sm:$0xff]  }
 0xd44   : > { %8295 = vmatprep.subr.bf16.mxu0 %v14438_v36  ;;  %v14505_v36 = vld [vmem:[%s18522_s11 + $0x4e0] ss:$8 sps:$4 sm:$0xff]  }
 0xd47   : > { %8296 = vmatpush1.bf16.msra.mxu0 %v14436_v37  ;;  %v14510_v37 = vld [vmem:[%s18522_s11 + $0x4f4] ss:$8 sps:$4 sm:$0xff]  }
 0xd48   : > { %8297 = vmatprep.subr.bf16.mxu0 %v14441_v39  ;;  %v14508_v39 = vld [vmem:[%s18522_s11 + $0x4f0] ss:$8 sps:$4 sm:$0xff]  }
 0xd4b   : > { %8298 = vmatpush1.bf16.msra.mxu0 %v14439_v31  ;;  %v14513_v31 = vld [vmem:[%s18522_s11 + $0x604] ss:$8 sps:$4 sm:$0xff]  }
 0xd4c   : > { %8299 = vmatprep.subr.bf16.mxu0 %v14444_v41  ;;  %v14511_v41 = vld [vmem:[%s18522_s11 + $0x600] ss:$8 sps:$4 sm:$0xff]  }
 0xd4f   : > { %8300 = vmatpush1.bf16.msra.mxu0 %v14442_v42  ;;  %v14516_v42 = vld [vmem:[%s18522_s11 + $0x614] ss:$8 sps:$4 sm:$0xff]  }
 0xd50   : > { %8301 = vmatprep.subr.bf16.mxu0 %v14447_v44  ;;  %v14514_v44 = vld [vmem:[%s18522_s11 + $0x610] ss:$8 sps:$4 sm:$0xff]  }
 0xd53   : > { %8302 = vmatpush1.bf16.msra.mxu0 %v14445_v46  ;;  %v14519_v46 = vld [vmem:[%s18522_s11 + $0x624] ss:$8 sps:$4 sm:$0xff]  }
 0xd54   : > { %8303 = vmatprep.subr.bf16.mxu0 %v14450_v47  ;;  %v14517_v47 = vld [vmem:[%s18522_s11 + $0x620] ss:$8 sps:$4 sm:$0xff]  }
 0xd57   : > { %8304 = vmatpush1.bf16.msra.mxu0 %v14448_v48  ;;  %v14522_v48 = vld [vmem:[%s18522_s11 + $0x634] ss:$8 sps:$4 sm:$0xff]  }
 0xd58   : > { %8305 = vmatprep.subr.bf16.mxu0 %v14453_v49  ;;  %v14520_v49 = vld [vmem:[%s18522_s11 + $0x630] ss:$8 sps:$4 sm:$0xff]  }
 0xd5b   : > { %8306 = vmatpush1.bf16.msra.mxu0 %v14451_v50  ;;  %v14525_v50 = vld [vmem:[%s18522_s11 + $0x644] ss:$8 sps:$4 sm:$0xff]  }
 0xd5c   : > { %8307 = vmatprep.subr.bf16.mxu0 %v14456_v43  ;;  %v14523_v43 = vld [vmem:[%s18522_s11 + $0x640] ss:$8 sps:$4 sm:$0xff]  }
 0xd5f   : > { %8308 = vmatpush1.bf16.msra.mxu0 %v14454_v51  ;;  %v14528_v51 = vld [vmem:[%s18522_s11 + $0x654] ss:$8 sps:$4 sm:$0xff]  }
 0xd60   : > { %8309 = vmatprep.subr.bf16.mxu0 %v14459_v38  ;;  %v14526_v38 = vld [vmem:[%s18522_s11 + $0x650] ss:$8 sps:$4 sm:$0xff]  }
 0xd63   : > { %8310 = vmatpush1.bf16.msra.mxu0 %v14457_v6  ;;  %v14531_v6 = vld [vmem:[%s18522_s11 + $0x664] ss:$8 sps:$4 sm:$0xff]  }
 0xd64   : > { %8311 = vmatprep.subr.bf16.mxu0 %v14462_v56  ;;  %v14529_v56 = vld [vmem:[%s18522_s11 + $0x660] ss:$8 sps:$4 sm:$0xff]  }
 0xd67   : > { %8312 = vmatpush1.bf16.msra.mxu0 %v14460_v57  ;;  %v14534_v57 = vld [vmem:[%s18522_s11 + $0x674] ss:$8 sps:$4 sm:$0xff]  }
 0xd68   : > { %8945 = vmatprep.subr.bf16.mxu0 %v14465_v62  ;;  %v14532_v62 = vld [vmem:[%s18522_s11 + $0x670] ss:$8 sps:$4 sm:$0xff]  }
 0xd6a   : > { %8314 = vmatmul.mubr.bf16.vlgmr.msra.gmra.mrb[64].mxu0 %v16634_v8 }
 0xd6b   : > { %8323 = vmatprep.mubr.bf16.mxu0 %v16656_v25  ;;  %8946 = vmatpush1.bf16.msra.mxu0 %v14463_v63  ;;  %v14537_v63 = vld [vmem:[%s18522_s11 + $0x684] ss:$8 sps:$4 sm:$0xff]  }
 0xd6c   : > { %8947 = vmatprep.subr.bf16.mxu0 %v14468_v3  ;;  %v14535_v3 = vld [vmem:[%s18522_s11 + $0x680] ss:$8 sps:$4 sm:$0xff]  }
 0xd6f   : > { %8948 = vmatpush1.bf16.msra.mxu0 %v14466_v0  ;;  %v14540_v0 = vld [vmem:[%s18522_s11 + $0x694] ss:$8 sps:$4 sm:$0xff]  }
 0xd70   : > { %8949 = vmatprep.subr.bf16.mxu0 %v14471_v9  ;;  %v14538_v9 = vld [vmem:[%s18522_s11 + $0x690] ss:$8 sps:$4 sm:$0xff]  }
 0xd72   : > { %8324 = vmatmul.mubr.bf16.gmra.mrb[68].mxu0 %v16654_v40 }
 0xd73   : > { %8950 = vmatpush1.bf16.msra.mxu0 %v14469_v11  ;;  %8977 = vmatprep.mubr.bf16.mxu0 %v16636_v59  ;;  %v14543_v11 = vld [vmem:[%s18522_s11 + $0x6a4] ss:$8 sps:$4 sm:$0xff]  }
 0xd74   : > { %8951 = vmatprep.subr.bf16.mxu0 %v14474_v12  ;;  %v14541_v12 = vld [vmem:[%s18522_s11 + $0x6a0] ss:$8 sps:$4 sm:$0xff]  }
 0xd77   : > { %8952 = vmatpush1.bf16.msra.mxu0 %v14472_v14  ;;  %v14546_v14 = vld [vmem:[%s18522_s11 + $0x6b4] ss:$8 sps:$4 sm:$0xff]  }
 0xd78   : > { %8953 = vmatprep.subr.bf16.mxu0 %v14477_v15  ;;  %v14544_v15 = vld [vmem:[%s18522_s11 + $0x6b0] ss:$8 sps:$4 sm:$0xff]  }
 0xd7b   : > { %8954 = vmatpush1.bf16.msra.mxu0 %v14475_v13  ;;  %v14549_v13 = vld [vmem:[%s18522_s11 + $0x6c4] ss:$8 sps:$4 sm:$0xff]  }
 0xd7c   : > { %8955 = vmatprep.subr.bf16.mxu0 %v14480_v16  ;;  %v14547_v16 = vld [vmem:[%s18522_s11 + $0x6c0] ss:$8 sps:$4 sm:$0xff]  }
 0xd7f   : > { %8956 = vmatpush1.bf16.msra.mxu0 %v14478_v17  ;;  %v14552_v17 = vld [vmem:[%s18522_s11 + $0x6d4] ss:$8 sps:$4 sm:$0xff]  }
 0xd80   : > { %8957 = vmatprep.subr.bf16.mxu0 %v14483_v18  ;;  %v14550_v18 = vld [vmem:[%s18522_s11 + $0x6d0] ss:$8 sps:$4 sm:$0xff]  }
 0xd83   : > { %8958 = vmatpush1.bf16.msra.mxu0 %v14481_v19  ;;  %v14555_v19 = vld [vmem:[%s18522_s11 + $0x6e4] ss:$8 sps:$4 sm:$0xff]  }
 0xd84   : > { %8959 = vmatprep.subr.bf16.mxu0 %v14486_v10  ;;  %v14553_v10 = vld [vmem:[%s18522_s11 + $0x6e0] ss:$8 sps:$4 sm:$0xff]  }
 0xd87   : > { %8960 = vmatpush1.bf16.msra.mxu0 %v14484_v20  ;;  %v14558_v20 = vld [vmem:[%s18522_s11 + $0x6f4] ss:$8 sps:$4 sm:$0xff]  }
 0xd88   : > { %8961 = vmatprep.subr.bf16.mxu0 %v14489_v21  ;;  %v14556_v21 = vld [vmem:[%s18522_s11 + $0x6f0] ss:$8 sps:$4 sm:$0xff]  }
 0xd8b   : > { %8962 = vmatpush1.bf16.msra.mxu0 %v14487_v22  ;;  %v14561_v22 = vld [vmem:[%s18522_s11 + $0x704] ss:$8 sps:$4 sm:$0xff]  }
 0xd8c   : > { %8963 = vmatprep.subr.bf16.mxu0 %v14492_v23  ;;  %v14559_v23 = vld [vmem:[%s18522_s11 + $0x700] ss:$8 sps:$4 sm:$0xff]  }
 0xd8f   : > { %8964 = vmatpush1.bf16.msra.mxu0 %v14490_v24  ;;  %v14564_v24 = vld [vmem:[%s18522_s11 + $0x714] ss:$8 sps:$4 sm:$0xff]  }
 0xd90   : > { %8965 = vmatprep.subr.bf16.mxu0 %v14495_v26  ;;  %v14562_v26 = vld [vmem:[%s18522_s11 + $0x710] ss:$8 sps:$4 sm:$0xff]  }
 0xd93   : > { %8966 = vmatpush1.bf16.msra.mxu0 %v14493_v27  ;;  %v14567_v27 = vld [vmem:[%s18522_s11 + $0x724] ss:$8 sps:$4 sm:$0xff]  }
 0xd94   : > { %8967 = vmatprep.subr.bf16.mxu0 %v14498_v28  ;;  %v14565_v28 = vld [vmem:[%s18522_s11 + $0x720] ss:$8 sps:$4 sm:$0xff]  }
 0xd97   : > { %8968 = vmatpush1.bf16.msra.mxu0 %v14496_v29  ;;  %v14570_v29 = vld [vmem:[%s18522_s11 + $0x734] ss:$8 sps:$4 sm:$0xff]  }
 0xd98   : > { %8969 = vmatprep.subr.bf16.mxu0 %v14501_v30  ;;  %v14568_v30 = vld [vmem:[%s18522_s11 + $0x730] ss:$8 sps:$4 sm:$0xff]  }
 0xd9b   : > { %8970 = vmatpush1.bf16.msra.mxu0 %v14499_v32  ;;  %v14573_v32 = vld [vmem:[%s18522_s11 + $0x744] ss:$8 sps:$4 sm:$0xff]  }
 0xd9c   : > { %8971 = vmatprep.subr.bf16.mxu0 %v14504_v33  ;;  %v14571_v33 = vld [vmem:[%s18522_s11 + $0x740] ss:$8 sps:$4 sm:$0xff]  }
 0xd9f   : > { %8972 = vmatpush1.bf16.msra.mxu0 %v14502_v34  ;;  %v14576_v34 = vld [vmem:[%s18522_s11 + $0x754] ss:$8 sps:$4 sm:$0xff]  }
 0xda0   : > { %8973 = vmatprep.subr.bf16.mxu0 %v14507_v35  ;;  %v14574_v35 = vld [vmem:[%s18522_s11 + $0x750] ss:$8 sps:$4 sm:$0xff]  }
 0xda3   : > { %8974 = vmatpush1.bf16.msra.mxu0 %v14505_v36  ;;  %v14579_v36 = vld [vmem:[%s18522_s11 + $0x764] ss:$8 sps:$4 sm:$0xff]  }
 0xda4   : > { %8975 = vmatprep.subr.bf16.mxu0 %v14510_v37 }
 0xda7   : > { %8976 = vmatpush1.bf16.msra.mxu0 %v14508_v39 }
 0xda8   : > { %9609 = vmatprep.subr.bf16.mxu0 %v14513_v31 }
 0xdaa   : > { %8978 = vmatmul.mubr.bf16.vlgmr.msra.gmra.mrb[72].mxu0 %v16634_v8 }
 0xdab   : > { %8987 = vmatprep.mubr.bf16.mxu0 %v16656_v25  ;;  %9610 = vmatpush1.bf16.msra.mxu0 %v14511_v41 }
 0xdac   : > { %9611 = vmatprep.subr.bf16.mxu0 %v14516_v42 }
 0xdaf   : > { %9612 = vmatpush1.bf16.msra.mxu0 %v14514_v44 }
 0xdb0   : > { %9613 = vmatprep.subr.bf16.mxu0 %v14519_v46  ;;  %v14577_v46 = vld [vmem:[%s18522_s11 + $0x760] ss:$8 sps:$4 sm:$0xff]  }
 0xdb2   : > { %8988 = vmatmul.mubr.bf16.gmra.mrb[76].mxu0 %v16654_v40 }
 0xdb3   : > { %9614 = vmatpush1.bf16.msra.mxu0 %v14517_v47  ;;  %9641 = vmatprep.mubr.bf16.mxu0 %v16636_v59 }
 0xdb4   : > { %9615 = vmatprep.subr.bf16.mxu0 %v14522_v48 }
 0xdb7   : > { %9616 = vmatpush1.bf16.msra.mxu0 %v14520_v49 }
 0xdb8   : > { %9617 = vmatprep.subr.bf16.mxu0 %v14525_v50 }
 0xdbb   : > { %9618 = vmatpush1.bf16.msra.mxu0 %v14523_v43  ;;  %v14582_v43 = vld [vmem:[%s18522_s11 + $0x774] ss:$8 sps:$4 sm:$0xff]  }
 0xdbc   : > { %9619 = vmatprep.subr.bf16.mxu0 %v14528_v51 }
 0xdbf   : > { %9620 = vmatpush1.bf16.msra.mxu0 %v14526_v38 }
 0xdc0   : > { %9621 = vmatprep.subr.bf16.mxu0 %v14531_v6  ;;  %v14580_v6 = vld [vmem:[%s18522_s11 + $0x770] ss:$8 sps:$4 sm:$0xff]  }
 0xdc3   : > { %9622 = vmatpush1.bf16.msra.mxu0 %v14529_v56  ;;  %v14585_v56 = vld [vmem:[%s18522_s11 + $0x784] ss:$8 sps:$4 sm:$0xff]  }
 0xdc4   : > { %9623 = vmatprep.subr.bf16.mxu0 %v14534_v57 }
 0xdc7   : > { %9624 = vmatpush1.bf16.msra.mxu0 %v14532_v62 }
 0xdc8   : > { %9625 = vmatprep.subr.bf16.mxu0 %v14537_v63 }
 0xdcb   : > { %9626 = vmatpush1.bf16.msra.mxu0 %v14535_v3 }
 0xdcc   : > { %9627 = vmatprep.subr.bf16.mxu0 %v14540_v0 }
 0xdcf   : > { %9628 = vmatpush1.bf16.msra.mxu0 %v14538_v9 }
 0xdd0   : > { %9629 = vmatprep.subr.bf16.mxu0 %v14543_v11  ;;  %v14583_v11 = vld [vmem:[%s18522_s11 + $0x780] ss:$8 sps:$4 sm:$0xff]  }
 0xdd3   : > { %9630 = vmatpush1.bf16.msra.mxu0 %v14541_v12 }
 0xdd4   : > { %9631 = vmatprep.subr.bf16.mxu0 %v14546_v14 }
 0xdd7   : > { %9632 = vmatpush1.bf16.msra.mxu0 %v14544_v15 }
 0xdd8   : > { %9633 = vmatprep.subr.bf16.mxu0 %v14549_v13 }
 0xddb   : > { %9634 = vmatpush1.bf16.msra.mxu0 %v14547_v16  ;;  %v14588_v16 = vld [vmem:[%s18522_s11 + $0x794] ss:$8 sps:$4 sm:$0xff]  }
 0xddc   : > { %9635 = vmatprep.subr.bf16.mxu0 %v14552_v17 }
 0xddf   : > { %9636 = vmatpush1.bf16.msra.mxu0 %v14550_v18 }
 0xde0   : > { %9637 = vmatprep.subr.bf16.mxu0 %v14555_v19  ;;  %v14586_v19 = vld [vmem:[%s18522_s11 + $0x790] ss:$8 sps:$4 sm:$0xff]  }
 0xde3   : > { %9638 = vmatpush1.bf16.msra.mxu0 %v14553_v10  ;;  %v14589_v10 = vld [vmem:[%s18514_s3 + $0x2e0] sm:$0xff]  }
 0xde4   : > { %9639 = vmatprep.subr.bf16.mxu0 %v14558_v20  ;;  %v14592_v20 = vld [vmem:[%s18522_s11 + $0x7a4] ss:$8 sps:$4 sm:$0xff]  }
 0xde7   : > { %9640 = vmatpush1.bf16.msra.mxu0 %v14556_v21  ;;  %v14590_v21 = vld [vmem:[%s18522_s11 + $0x7a0] ss:$8 sps:$4 sm:$0xff]  }
 0xde8   : > { %9941 = vmatprep.subr.bf16.mxu0 %v14561_v22  ;;  %v14595_v22 = vld [vmem:[%s18522_s11 + $0x7b4] ss:$8 sps:$4 sm:$0xff]  }
 0xdea   : > { %9642 = vmatmul.mubr.bf16.vlgmr.msra.gmra.mrb[80].mxu0 %v16634_v8 }
 0xdeb   : > { %9651 = vmatprep.mubr.bf16.mxu0 %v16656_v25  ;;  %9942 = vmatpush1.bf16.msra.mxu0 %v14559_v23  ;;  %v14593_v23 = vld [vmem:[%s18522_s11 + $0x7b0] ss:$8 sps:$4 sm:$0xff]  }
 0xdec   : > { %9943 = vmatprep.subr.bf16.mxu0 %v14564_v24  ;;  %v14608_v24 = vld [vmem:[%s18514_s3 + $0x2e8] sm:$0xff]  }
 0xdef   : > { %9944 = vmatpush1.bf16.msra.mxu0 %v14562_v26  ;;  %v14598_v26 = vld [vmem:[%s18522_s11 + $0x7c4] ss:$8 sps:$4 sm:$0xff]  }
 0xdf0   : > { %9945 = vmatprep.subr.bf16.mxu0 %v14567_v27  ;;  %v14596_v27 = vld [vmem:[%s18522_s11 + $0x7c0] ss:$8 sps:$4 sm:$0xff]  }
 0xdf2   : > { %9652 = vmatmul.mubr.bf16.gmra.mrb[84].mxu0 %v16654_v40 }
 0xdf3   : > { %9946 = vmatpush1.bf16.msra.mxu0 %v14565_v28  ;;  %9973 = vmatprep.mubr.bf16.mxu0 %v16636_v59  ;;  %v14601_v28 = vld [vmem:[%s18522_s11 + $0x7d4] ss:$8 sps:$4 sm:$0xff]  }
 0xdf4   : > { %9947 = vmatprep.subr.bf16.mxu0 %v14570_v29  ;;  %v14599_v29 = vld [vmem:[%s18522_s11 + $0x7d0] ss:$8 sps:$4 sm:$0xff]  }
 0xdf7   : > { %9948 = vmatpush1.bf16.msra.mxu0 %v14568_v30  ;;  %v14609_v30 = vld [vmem:[%s18514_s3 + $0x2d0] sm:$0xff]  }
 0xdf8   : > { %9949 = vmatprep.subr.bf16.mxu0 %v14573_v32  ;;  %v14604_v32 = vld [vmem:[%s18522_s11 + $0x7e4] ss:$8 sps:$4 sm:$0xff]  }
 0xdfb   : > { %9950 = vmatpush1.bf16.msra.mxu0 %v14571_v33  ;;  %v14602_v33 = vld [vmem:[%s18522_s11 + $0x7e0] ss:$8 sps:$4 sm:$0xff]  }
 0xdfc   : > { %9951 = vmatprep.subr.bf16.mxu0 %v14576_v34  ;;  %v14607_v34 = vld [vmem:[%s18522_s11 + $0x7f4] ss:$8 sps:$4 sm:$0xff]  }
 0xdfd   : > { %v7667_v37 = vpop.f32.mrb[184].mxu1  ;;  %v7922_v39 = vpop.f32.mrb[56].mxu0 }
 0xdfe   : > { %v7669_v31 = vpop.f32.mrb[185].mxu1  ;;  %v7924_v41 = vpop.f32.mrb[57].mxu0 }
 0xdff   : > { %9952 = vmatpush1.bf16.msra.mxu0 %v14574_v35  ;;  %v7671_v42 = vpop.f32.mrb[186].mxu1  ;;  %v7926_v44 = vpop.f32.mrb[58].mxu0  ;;  %v14605_v35 = vld [vmem:[%s18522_s11 + $0x7f0] ss:$8 sps:$4 sm:$0xff]  }
 0xe00   : > { %v7686_v47 = vpack.c.bf16 %v7671_v42, %v7667_v37  ;;  %v7941_v48 = vpack.c.bf16 %v7926_v44, %v7922_v39  ;;  %v7673_v49 = vpop.f32.mrb[187].mxu1  ;;  %v7928_v50 = vpop.f32.mrb[59].mxu0  ;;  %9953 = vmatprep.subr.bf16.mxu0 %v14579_v36  ;;  %v14610_v36 = vld [vmem:[%s18514_s3 + $0x2d8] sm:$0xff]   ;;  %v14849_v37 = vld [vmem:[%s18522_s11 + $0x4] ss:$8 sps:$4 sm:$0xff]  }
 0xe01   : > { %v7687_v51 = vpack.c.bf16 %v7673_v49, %v7669_v31  ;;  %v7942_v38 = vpack.c.bf16 %v7928_v50, %v7924_v41  ;;  %v14850_v39 = vld [vmem:[%s18522_s11] ss:$8 sps:$4 sm:$0xff]   ;;  %v14851_v31 = vld [vmem:[%s18522_s11 + $0x14] ss:$8 sps:$4 sm:$0xff]   ;;  %v14852_v41 = vld [vmem:[%s18522_s11 + $0x10] ss:$8 sps:$4 sm:$0xff]  }
 0xe02   : > { %v14853_v42 = vld [vmem:[%s18522_s11 + $0x24] ss:$8 sps:$4 sm:$0xff]   ;;  %v14854_v44 = vld [vmem:[%s18522_s11 + $0x20] ss:$8 sps:$4 sm:$0xff]   ;;  %v14859_v50 = vld [vmem:[%s18522_s11 + $0x54] ss:$8 sps:$4 sm:$0xff]  }
 0xe03   : > { %9954 = vmatpush1.bf16.msra.mxu0 %v14577_v46  ;;  %7966 = vmatprep.subr.bf16.mxu1 %v7942_v38  ;;  %v14855_v46 = vld [vmem:[%s18522_s11 + $0x34] ss:$8 sps:$4 sm:$0xff]   ;;  %v14858_v49 = vld [vmem:[%s18522_s11 + $0x40] ss:$8 sps:$4 sm:$0xff]  }
 0xe04   : > { %7967 = vmatpush1.bf16.msra.mxu1 %v7941_v48  ;;  %9955 = vmatprep.subr.bf16.mxu0 %v14582_v43  ;;  %v14857_v48 = vld [vmem:[%s18522_s11 + $0x44] ss:$8 sps:$4 sm:$0xff]  }
 0xe05   : > { %v7677_v57 = vpop.f32.mrb[188].mxu1  ;;  %v7932_v62 = vpop.f32.mrb[60].mxu0 }
 0xe06   : > { %v7679_v63 = vpop.f32.mrb[189].mxu1  ;;  %v7934_v3 = vpop.f32.mrb[61].mxu0 }
 0xe07   : > { %9956 = vmatpush1.bf16.msra.mxu0 %v14580_v6  ;;  %v7681_v0 = vpop.f32.mrb[190].mxu1  ;;  %v7936_v9 = vpop.f32.mrb[62].mxu0  ;;  %v14860_v6 = vld [vmem:[%s18522_s11 + $0x50] ss:$8 sps:$4 sm:$0xff]  }
 0xe08   : > { %v7688_v12 = vpack.c.bf16 %v7681_v0, %v7677_v57  ;;  %v7943_v14 = vpack.c.bf16 %v7936_v9, %v7932_v62  ;;  %v7683_v15 = vpop.f32.mrb[191].mxu1  ;;  %v7938_v13 = vpop.f32.mrb[63].mxu0  ;;  %9957 = vmatprep.subr.bf16.mxu0 %v14585_v56  ;;  %v14861_v62 = vld [vmem:[%s18522_s11 + $0x64] ss:$8 sps:$4 sm:$0xff]   ;;  %v14863_v0 = vld [vmem:[%s18522_s11 + $0x74] ss:$8 sps:$4 sm:$0xff]  }
 0xe09   : > { %v7689_v17 = vpack.c.bf16 %v7683_v15, %v7679_v63  ;;  %v7944_v18 = vpack.c.bf16 %v7938_v13, %v7934_v3  ;;  %v14862_v3 = vld [vmem:[%s18522_s11 + $0x60] ss:$8 sps:$4 sm:$0xff]  }
 0xe0b   : > { %9958 = vmatpush1.bf16.msra.mxu0 %v14583_v11  ;;  %7968 = vmatprep.subr.bf16.mxu1 %v7944_v18  ;;  %v14614_v18 = vld [vmem:[%s18522_s11 + $0x304] ss:$8 sps:$4 sm:$0xff]  }
 0xe0c   : > { %7969 = vmatpush1.bf16.msra.mxu1 %v7943_v14  ;;  %9959 = vmatprep.subr.bf16.mxu0 %v14588_v16  ;;  %v14864_v14 = vld [vmem:[%s18522_s11 + $0x70] ss:$8 sps:$4 sm:$0xff]   ;;  %v14865_v16 = vld [vmem:[%s18522_s11 + $0x84] ss:$8 sps:$4 sm:$0xff]  }
 0xe0d   : > { %8035 = vmatprep.subr.bf16.mxu1 %v7687_v51 }
 0xe0f   : > { %9960 = vmatpush1.bf16.msra.mxu0 %v14586_v19  ;;  %12397 = vmatmul.mubr.msk.bf16.vlgmr.msra.gmra.mrb[192].mxu1 %vm691_vm1, %v14589_v10  ;;  %v14611_v19 = vld [vmem:[%s18514_s3 + $0x2f0] sm:$0xff]   ;;  %v14866_v10 = vld [vmem:[%s18522_s11 + $0x80] ss:$8 sps:$4 sm:$0xff]  }
 0xe10   : > { %8036 = vmatpush1.bf16.msra.mxu1 %v7686_v47  ;;  %9961 = vmatprep.subr.bf16.mxu0 %v14592_v20  ;;  %v14856_v47 = vld [vmem:[%s18522_s11 + $0x30] ss:$8 sps:$4 sm:$0xff]   ;;  %v14612_v20 = vld [vmem:[%s18522_s11 + $0x300] ss:$8 sps:$4 sm:$0xff]  }
 0xe11   : > { %8037 = vmatprep.subr.bf16.mxu1 %v7689_v17  ;;  %8008 = vmatprep.mubr.bf16.mxu1 %v15157_v54 }
 0xe13   : > { %9962 = vmatpush1.bf16.msra.mxu0 %v14590_v21  ;;  %v14867_v21 = vld [vmem:[%s18522_s11 + $0x94] ss:$8 sps:$4 sm:$0xff]  }
 0xe14   : > { %8038 = vmatpush1.bf16.msra.mxu1 %v7688_v12  ;;  %9963 = vmatprep.subr.bf16.mxu0 %v14595_v22  ;;  %v14617_v22 = vld [vmem:[%s18522_s11 + $0x314] ss:$8 sps:$4 sm:$0xff]  }
 0xe17   : > { %9964 = vmatpush1.bf16.msra.mxu0 %v14593_v23  ;;  %12398 = vmatmul.mubr.msk.bf16.gmra.mrb[196].mxu1 %vm691_vm1, %v14608_v24  ;;  %v14868_v23 = vld [vmem:[%s18522_s11 + $0x90] ss:$8 sps:$4 sm:$0xff]  }
 0xe18   : > { %9965 = vmatprep.subr.bf16.mxu0 %v14598_v26  ;;  %8067 = vmatprep.mubr.bf16.mxu1 %v15157_v54  ;;  %v14615_v24 = vld [vmem:[%s18522_s11 + $0x310] ss:$8 sps:$4 sm:$0xff]   ;;  %v14621_v26 = vld [vmem:[%s18522_s11 + $0x324] ss:$8 sps:$4 sm:$0xff]  }
 0xe1b   : > { %9966 = vmatpush1.bf16.msra.mxu0 %v14596_v27  ;;  %v14618_v27 = vld [vmem:[%s18514_s3 + $0x2f8] sm:$0xff]  }
 0xe1c   : > { %9967 = vmatprep.subr.bf16.mxu0 %v14601_v28  ;;  %v14619_v28 = vld [vmem:[%s18522_s11 + $0x320] ss:$8 sps:$4 sm:$0xff]  }
 0xe1f   : > { %9968 = vmatpush1.bf16.msra.mxu0 %v14599_v29  ;;  %12401 = vmatmul.mubr.msk.bf16.vlgmr.msra.gmra.mrb[192].mxu1 %vm691_vm1, %v14609_v30  ;;  %v14624_v29 = vld [vmem:[%s18522_s11 + $0x334] ss:$8 sps:$4 sm:$0xff]   ;;  %v14640_v30 = vld [vmem:[%s18522_s11 + $0x390] ss:$8 sps:$4 sm:$0xff]  }
 0xe20   : > { %9969 = vmatprep.subr.bf16.mxu0 %v14604_v32  ;;  %8077 = vmatprep.mubr.bf16.mxu1 %v15157_v54  ;;  %v14645_v32 = vld [vmem:[%s18522_s11 + $0x3a4] ss:$8 sps:$4 sm:$0xff]  }
 0xe23   : > { %9970 = vmatpush1.bf16.msra.mxu0 %v14602_v33  ;;  %v14643_v33 = vld [vmem:[%s18522_s11 + $0x3a0] ss:$8 sps:$4 sm:$0xff]  }
 0xe24   : > { %9971 = vmatprep.subr.bf16.mxu0 %v14607_v34  ;;  %v14648_v34 = vld [vmem:[%s18522_s11 + $0x3b4] ss:$8 sps:$4 sm:$0xff]  }
 0xe27   : > { %9972 = vmatpush1.bf16.msra.mxu0 %v14605_v35  ;;  %12402 = vmatmul.mubr.msk.bf16.gmra.mrb[196].mxu1 %vm691_vm1, %v14610_v36  ;;  %v14646_v35 = vld [vmem:[%s18522_s11 + $0x3b0] ss:$8 sps:$4 sm:$0xff]   ;;  %v14651_v36 = vld [vmem:[%s18522_s11 + $0x3c4] ss:$8 sps:$4 sm:$0xff]  }
 0xe28   : > { %8391 = vmatprep.mubr.bf16.mxu1 %v15157_v54  ;;  %10489 = vmatprep.subr.bf16.mxu0 %v14849_v37  ;;  %v14649_v37 = vld [vmem:[%s18522_s11 + $0x3c0] ss:$8 sps:$4 sm:$0xff]  }
 0xe2a   : > { %9974 = vmatmul.mubr.bf16.vlgmr.msra.gmra.mrb[88].mxu0 %v16634_v8 }
 0xe2b   : > { %9983 = vmatprep.mubr.bf16.mxu0 %v16656_v25  ;;  %10490 = vmatpush1.bf16.msra.mxu0 %v14850_v39 }
 0xe2c   : > { %10491 = vmatprep.subr.bf16.mxu0 %v14851_v31  ;;  %v14654_v31 = vld [vmem:[%s18522_s11 + $0x3d4] ss:$8 sps:$4 sm:$0xff]  }
 0xe2f   : > { %10492 = vmatpush1.bf16.msra.mxu0 %v14852_v41 }
 0xe30   : > { %10493 = vmatprep.subr.bf16.mxu0 %v14853_v42 }
 0xe32   : > { %9984 = vmatmul.mubr.bf16.gmra.mrb[92].mxu0 %v16654_v40 }
 0xe33   : > { %10494 = vmatpush1.bf16.msra.mxu0 %v14854_v44 }
 0xe34   : > { %10495 = vmatprep.subr.bf16.mxu0 %v14855_v46 }
 0xe37   : > { %10496 = vmatpush1.bf16.msra.mxu0 %v14856_v47  ;;  %v14652_v47 = vld [vmem:[%s18522_s11 + $0x3d0] ss:$8 sps:$4 sm:$0xff]  }
 0xe38   : > { %10497 = vmatprep.subr.bf16.mxu0 %v14857_v48 }
 0xe3b   : > { %10498 = vmatpush1.bf16.msra.mxu0 %v14858_v49  ;;  %v14657_v49 = vld [vmem:[%s18522_s11 + $0x3e4] ss:$8 sps:$4 sm:$0xff]  }
 0xe3c   : > { %10499 = vmatprep.subr.bf16.mxu0 %v14859_v50  ;;  %v14655_v50 = vld [vmem:[%s18522_s11 + $0x3e0] ss:$8 sps:$4 sm:$0xff]  }
 0xe3d   : > { %v8315_v43 = vpop.f32.mrb[64].mxu0 }
 0xe3e   : > { %v8317_v51 = vpop.f32.mrb[65].mxu0 }
 0xe3f   : > { %v8319_v38 = vpop.f32.mrb[66].mxu0  ;;  %10500 = vmatpush1.bf16.msra.mxu0 %v14860_v6 }
 0xe40   : > { %v8334_v56 = vpack.c.bf16 %v8319_v38, %v8315_v43  ;;  %v8321_v57 = vpop.f32.mrb[67].mxu0  ;;  %10501 = vmatprep.subr.bf16.mxu0 %v14861_v62  ;;  %v14658_v62 = vld [vmem:[%s18522_s11 + $0x3f0] ss:$8 sps:$4 sm:$0xff]  }
 0xe41   : > { %v8335_v63 = vpack.c.bf16 %v8321_v57, %v8317_v51  ;;  %v14660_v51 = vld [vmem:[%s18522_s11 + $0x3f4] ss:$8 sps:$4 sm:$0xff]  }
 0xe43   : > { %8359 = vmatprep.subr.bf16.mxu1 %v8335_v63  ;;  %10502 = vmatpush1.bf16.msra.mxu0 %v14862_v3 }
 0xe44   : > { %8360 = vmatpush1.bf16.msra.mxu1 %v8334_v56  ;;  %10503 = vmatprep.subr.bf16.mxu0 %v14863_v0 }
 0xe45   : > { %v8325_v9 = vpop.f32.mrb[68].mxu0 }
 0xe46   : > { %v8327_v11 = vpop.f32.mrb[69].mxu0 }
 0xe47   : > { %v8329_v12 = vpop.f32.mrb[70].mxu0  ;;  %10504 = vmatpush1.bf16.msra.mxu0 %v14864_v14 }
 0xe48   : > { %v8336_v15 = vpack.c.bf16 %v8329_v12, %v8325_v9  ;;  %v8331_v13 = vpop.f32.mrb[71].mxu0  ;;  %10505 = vmatprep.subr.bf16.mxu0 %v14865_v16 }
 0xe49   : > { %v8337_v17 = vpack.c.bf16 %v8331_v13, %v8327_v11 }
 0xe4b   : > { %8361 = vmatprep.subr.bf16.mxu1 %v8337_v17  ;;  %10506 = vmatpush1.bf16.msra.mxu0 %v14866_v10 }
 0xe4c   : > { %8362 = vmatpush1.bf16.msra.mxu1 %v8336_v15  ;;  %10507 = vmatprep.subr.bf16.mxu0 %v14867_v21 }
 0xe4d   : > { %8613 = vmatprep.subr.bf16.mxu1 %v14614_v18 }
 0xe4f   : > { %12473 = vmatmul.mubr.msk.bf16.vlgmr.msra.gmra.mrb[192].mxu1 %vm691_vm1, %v14611_v19  ;;  %10508 = vmatpush1.bf16.msra.mxu0 %v14868_v23 }
 0xe50   : > { %8614 = vmatpush1.bf16.msra.mxu1 %v14612_v20  ;;  %8401 = vmatprep.mubr.bf16.mxu1 %v15157_v54 }
 0xe51   : > { %8615 = vmatprep.subr.bf16.mxu1 %v14617_v22  ;;  %10509 = vmatprep.subr.bf16.mxu0 %v16532_v45  ;;  %v14622_v45 = vld [vmem:[%s18522_s11 + $0x330] ss:$8 sps:$4 sm:$0xff]  }
 0xe53   : > { %10510 = vmatpush1.bf16.msra.mxu0 %v16537_v52  ;;  %v14627_v52 = vld [vmem:[%s18522_s11 + $0x344] ss:$8 sps:$4 sm:$0xff]  }
 0xe54   : > { %8616 = vmatpush1.bf16.msra.mxu1 %v14615_v24  ;;  %10511 = vmatprep.subr.bf16.mxu0 %v16550_v53  ;;  %v14625_v53 = vld [vmem:[%s18522_s11 + $0x340] ss:$8 sps:$4 sm:$0xff]  }
 0xe55   : > { %8617 = vmatprep.subr.bf16.mxu1 %v14621_v26 }
 0xe57   : > { %12474 = vmatmul.mubr.msk.bf16.gmra.mrb[196].mxu1 %vm691_vm1, %v14618_v27  ;;  %10512 = vmatpush1.bf16.msra.mxu0 %v16555_v55  ;;  %v14630_v55 = vld [vmem:[%s18522_s11 + $0x354] ss:$8 sps:$4 sm:$0xff]  }
 0xe58   : > { %8618 = vmatpush1.bf16.msra.mxu1 %v14619_v28  ;;  %8645 = vmatprep.mubr.bf16.mxu1 %v16636_v59 }
 0xe59   : > { %8619 = vmatprep.subr.bf16.mxu1 %v14624_v29  ;;  %10513 = vmatprep.subr.bf16.mxu0 %v16568_v7  ;;  %v14628_v7 = vld [vmem:[%s18522_s11 + $0x350] ss:$8 sps:$4 sm:$0xff]  }
 0xe5b   : > { %10514 = vmatpush1.bf16.msra.mxu0 %v16573_v61  ;;  %v14633_v61 = vld [vmem:[%s18522_s11 + $0x364] ss:$8 sps:$4 sm:$0xff]  }
 0xe5c   : > { %8620 = vmatpush1.bf16.msra.mxu1 %v14622_v45  ;;  %10515 = vmatprep.subr.bf16.mxu0 %v16586_v1  ;;  %v14631_v1 = vld [vmem:[%s18522_s11 + $0x360] ss:$8 sps:$4 sm:$0xff]  }
 0xe5d   : > { %8621 = vmatprep.subr.bf16.mxu1 %v14627_v52 }
 0xe5f   : > { %10516 = vmatpush1.bf16.msra.mxu0 %v16591_v2  ;;  %v14636_v2 = vld [vmem:[%s18522_s11 + $0x374] ss:$8 sps:$4 sm:$0xff]  }
 0xe60   : > { %8622 = vmatpush1.bf16.msra.mxu1 %v14625_v53  ;;  %10517 = vmatprep.subr.bf16.mxu0 %v16604_v4  ;;  %v14634_v4 = vld [vmem:[%s18522_s11 + $0x370] ss:$8 sps:$4 sm:$0xff]  }
 0xe61   : > { %8623 = vmatprep.subr.bf16.mxu1 %v14630_v55 }
 0xe63   : > { %10518 = vmatpush1.bf16.msra.mxu0 %v16609_v58  ;;  %v14639_v58 = vld [vmem:[%s18522_s11 + $0x384] ss:$8 sps:$4 sm:$0xff]  }
 0xe64   : > { %8624 = vmatpush1.bf16.msra.mxu1 %v14628_v7  ;;  %10519 = vmatprep.subr.bf16.mxu0 %v16622_v60  ;;  %v14637_v60 = vld [vmem:[%s18522_s11 + $0x380] ss:$8 sps:$4 sm:$0xff]  }
 0xe65   : > { %8625 = vmatprep.subr.bf16.mxu1 %v14633_v61 }
 0xe67   : > { %10520 = vmatpush1.bf16.msra.mxu0 %v16627_v5  ;;  %v14642_v5 = vld [vmem:[%s18522_s11 + $0x394] ss:$8 sps:$4 sm:$0xff]  }
 0xe68   : > { %8626 = vmatpush1.bf16.msra.mxu1 %v14631_v1 }
 0xe69   : > { %8627 = vmatprep.subr.bf16.mxu1 %v14636_v2 }
 0xe6c   : > { %8628 = vmatpush1.bf16.msra.mxu1 %v14634_v4 }
 0xe6d   : > { %8629 = vmatprep.subr.bf16.mxu1 %v14639_v58 }
 0xe70   : > { %8630 = vmatpush1.bf16.msra.mxu1 %v14637_v60 }
 0xe71   : > { %8631 = vmatprep.subr.bf16.mxu1 %v14642_v5 }
 0xe74   : > { %8632 = vmatpush1.bf16.msra.mxu1 %v14640_v30 }
 0xe75   : > { %8633 = vmatprep.subr.bf16.mxu1 %v14645_v32 }
 0xe78   : > { %8634 = vmatpush1.bf16.msra.mxu1 %v14643_v33  ;;  %v14661_v33 = vld [vmem:[%s18514_s3 + $0x300] sm:$0xff]  }
 0xe79   : > { %8635 = vmatprep.subr.bf16.mxu1 %v14648_v34  ;;  %v14665_v34 = vld [vmem:[%s18522_s11 + $0x504] ss:$8 sps:$4 sm:$0xff]  }
 0xe7c   : > { %8636 = vmatpush1.bf16.msra.mxu1 %v14646_v35  ;;  %v14662_v35 = vld [vmem:[%s18514_s3 + $0x308] sm:$0xff]  }
 0xe7d   : > { %v17228_v39 = vpop.f32.mrb[72].mxu0  ;;  %8637 = vmatprep.subr.bf16.mxu1 %v14651_v36  ;;  %v14666_v36 = vld [vmem:[%s18514_s3 + $0x310] sm:$0xff]  }
 0xe7e   : > { %v17233_v41 = vpop.f32.mrb[73].mxu0 }
 0xe7f   : > { %v17235_v42 = vpop.f32.mrb[74].mxu0 }
 0xe80   : > { %v8998_v44 = vpack.c.bf16 %v17235_v42, %v17228_v39  ;;  %8638 = vmatpush1.bf16.msra.mxu1 %v14649_v37  ;;  %v17239_v46 = vpop.f32.mrb[75].mxu0  ;;  %v14663_v37 = vld [vmem:[%s18522_s11 + $0x500] ss:$8 sps:$4 sm:$0xff]   ;;  %v14669_v39 = vld [vmem:[%s18522_s11 + $0x514] ss:$8 sps:$4 sm:$0xff]  }
 0xe81   : > { %v8999_v48 = vpack.c.bf16 %v17239_v46, %v17233_v41  ;;  %8639 = vmatprep.subr.bf16.mxu1 %v14654_v31  ;;  %v14667_v31 = vld [vmem:[%s18522_s11 + $0x510] ss:$8 sps:$4 sm:$0xff]   ;;  %v14672_v41 = vld [vmem:[%s18522_s11 + $0x524] ss:$8 sps:$4 sm:$0xff]   ;;  %v14676_v46 = vld [vmem:[%s18522_s11 + $0x534] ss:$8 sps:$4 sm:$0xff]  }
 0xe82   : > { %v14673_v42 = vld [vmem:[%s18514_s3 + $0x318] sm:$0xff]  }
 0xe84   : > { %8640 = vmatpush1.bf16.msra.mxu1 %v14652_v47  ;;  %v14674_v47 = vld [vmem:[%s18522_s11 + $0x530] ss:$8 sps:$4 sm:$0xff]  }
 0xe85   : > { %v17252_v43 = vpop.f32.mrb[76].mxu0  ;;  %8641 = vmatprep.subr.bf16.mxu1 %v14657_v49  ;;  %v14677_v49 = vld [vmem:[%s18522_s11 + $0x540] ss:$8 sps:$4 sm:$0xff]  }
 0xe86   : > { %v8991_v38 = vpop.f32.mrb[77].mxu0 }
 0xe87   : > { %v8993_v6 = vpop.f32.mrb[78].mxu0 }
 0xe88   : > { %v9000_v56 = vpack.c.bf16 %v8993_v6, %v17252_v43  ;;  %8642 = vmatpush1.bf16.msra.mxu1 %v14655_v50  ;;  %v8995_v57 = vpop.f32.mrb[79].mxu0  ;;  %v14682_v50 = vld [vmem:[%s18522_s11 + $0x554] ss:$8 sps:$4 sm:$0xff]   ;;  %v14680_v43 = vld [vmem:[%s18522_s11 + $0x550] ss:$8 sps:$4 sm:$0xff]  }
 0xe89   : > { %v9001_v63 = vpack.c.bf16 %v8995_v57, %v8991_v38  ;;  %8643 = vmatprep.subr.bf16.mxu1 %v14660_v51  ;;  %v14685_v51 = vld [vmem:[%s18522_s11 + $0x564] ss:$8 sps:$4 sm:$0xff]   ;;  %v14683_v38 = vld [vmem:[%s18522_s11 + $0x560] ss:$8 sps:$4 sm:$0xff]   ;;  %v14688_v6 = vld [vmem:[%s18522_s11 + $0x574] ss:$8 sps:$4 sm:$0xff]  }
 0xe8a   : > { %v14691_v57 = vld [vmem:[%s18522_s11 + $0x584] ss:$8 sps:$4 sm:$0xff]  }
 0xe8c   : > { %8644 = vmatpush1.bf16.msra.mxu1 %v14658_v62  ;;  %v14689_v62 = vld [vmem:[%s18522_s11 + $0x580] ss:$8 sps:$4 sm:$0xff]  }
 0xe8f   : > { %8646 = vmatmul.mubr.bf16.vlgmr.msra.gmra.mrb[200].mxu1 %v16634_v8 }
 0xe90   : > { %8655 = vmatprep.mubr.bf16.mxu1 %v16656_v25 }
 0xe97   : > { %8656 = vmatmul.mubr.bf16.gmra.mrb[204].mxu1 %v16654_v40 }
 0xe98   : > { %8723 = vmatprep.mubr.bf16.mxu1 %v15157_v54 }
 0xebd   : > { %v17265_v3 = vpop.f32.mrb[80].mxu0 }
 0xebe   : > { %v17267_v0 = vpop.f32.mrb[81].mxu0 }
 0xebf   : > { %v17269_v9 = vpop.f32.mrb[82].mxu0 }
 0xec0   : > { %v9662_v11 = vpack.c.bf16 %v17269_v9, %v17265_v3  ;;  %v17273_v12 = vpop.f32.mrb[83].mxu0  ;;  %v14715_v3 = vld [vmem:[%s18514_s3 + $0x330] sm:$0xff]   ;;  %v14716_v9 = vld [vmem:[%s18514_s3 + $0x338] sm:$0xff]  }
 0xec1   : > { %v9663_v14 = vpack.c.bf16 %v17273_v12, %v17267_v0  ;;  %v14719_v0 = vld [vmem:[%s18522_s11 + $0x804] ss:$8 sps:$4 sm:$0xff]   ;;  %v14717_v12 = vld [vmem:[%s18522_s11 + $0x800] ss:$8 sps:$4 sm:$0xff]  }
 0xec5   : > { %v17277_v15 = vpop.f32.mrb[84].mxu0 }
 0xec6   : > { %v17279_v13 = vpop.f32.mrb[85].mxu0 }
 0xec7   : > { %v17281_v16 = vpop.f32.mrb[86].mxu0 }
 0xec8   : > { %v9664_v17 = vpack.c.bf16 %v17281_v16, %v17277_v15  ;;  %v17285_v18 = vpop.f32.mrb[87].mxu0  ;;  %v14721_v15 = vld [vmem:[%s18522_s11 + $0x810] ss:$8 sps:$4 sm:$0xff]   ;;  %v14727_v16 = vld [vmem:[%s18514_s3 + $0x348] sm:$0xff]  }
 0xec9   : > { %v9665_v19 = vpack.c.bf16 %v17285_v18, %v17279_v13  ;;  %v14726_v13 = vld [vmem:[%s18522_s11 + $0x824] ss:$8 sps:$4 sm:$0xff]   ;;  %v14730_v18 = vld [vmem:[%s18522_s11 + $0x834] ss:$8 sps:$4 sm:$0xff]  }
 0xefd   : > { %v17289_v10 = vpop.f32.mrb[88].mxu0 }
 0xefe   : > { %v17291_v20 = vpop.f32.mrb[89].mxu0 }
 0xeff   : > { %v17293_v21 = vpop.f32.mrb[90].mxu0 }
 0xf00   : > { %v9994_v22 = vpack.c.bf16 %v17293_v21, %v17289_v10  ;;  %v17297_v23 = vpop.f32.mrb[91].mxu0  ;;  %v14733_v10 = vld [vmem:[%s18522_s11 + $0x844] ss:$8 sps:$4 sm:$0xff]   ;;  %v14736_v21 = vld [vmem:[%s18522_s11 + $0x854] ss:$8 sps:$4 sm:$0xff]  }
 0xf01   : > { %v9995_v24 = vpack.c.bf16 %v17297_v23, %v17291_v20  ;;  %v14731_v20 = vld [vmem:[%s18522_s11 + $0x840] ss:$8 sps:$4 sm:$0xff]  }
 0xf02   : > { %v14737_v23 = vld [vmem:[%s18522_s11 + $0x860] ss:$8 sps:$4 sm:$0xff]  }
 0xf05   : > { %v17301_v26 = vpop.f32.mrb[92].mxu0 }
 0xf06   : > { %v17303_v27 = vpop.f32.mrb[93].mxu0 }
 0xf07   : > { %v17305_v28 = vpop.f32.mrb[94].mxu0 }
 0xf08   : > { %v9996_v29 = vpack.c.bf16 %v17305_v28, %v17301_v26  ;;  %v17309_v45 = vpop.f32.mrb[95].mxu0  ;;  %v14740_v26 = vld [vmem:[%s18522_s11 + $0x870] ss:$8 sps:$4 sm:$0xff]   ;;  %v14743_v28 = vld [vmem:[%s18522_s11 + $0x880] ss:$8 sps:$4 sm:$0xff]  }
 0xf09   : > { %v9997_v52 = vpack.c.bf16 %v17309_v45, %v17303_v27  ;;  %v14745_v27 = vld [vmem:[%s18522_s11 + $0x884] ss:$8 sps:$4 sm:$0xff]   ;;  %v14746_v45 = vld [vmem:[%s18522_s11 + $0x890] ss:$8 sps:$4 sm:$0xff]  }
 0xf62   : > { %v8647_v53 = vpop.f32.mrb[200].mxu1 }
 0xf63   : > { %v8649_v55 = vpop.f32.mrb[201].mxu1 }
 0xf64   : > { %v8651_v7 = vpop.f32.mrb[202].mxu1 }
 0xf65   : > { %v8666_v61 = vpack.c.bf16 %v8651_v7, %v8647_v53  ;;  %v8653_v1 = vpop.f32.mrb[203].mxu1  ;;  %v14692_v53 = vld [vmem:[%s18522_s11 + $0x590] ss:$8 sps:$4 sm:$0xff]   ;;  %v14695_v7 = vld [vmem:[%s18522_s11 + $0x5a0] ss:$8 sps:$4 sm:$0xff]  }
 0xf66   : > { %v8667_v2 = vpack.c.bf16 %v8653_v1, %v8649_v55  ;;  %v14697_v55 = vld [vmem:[%s18522_s11 + $0x5a4] ss:$8 sps:$4 sm:$0xff]   ;;  %v14698_v1 = vld [vmem:[%s18522_s11 + $0x5b0] ss:$8 sps:$4 sm:$0xff]  }
 0xf68   : > { %8691 = vmatprep.subr.bf16.mxu1 %v8667_v2  ;;  %v14703_v2 = vld [vmem:[%s18522_s11 + $0x5c4] ss:$8 sps:$4 sm:$0xff]  }
 0xf69   : > { %8692 = vmatpush1.bf16.msra.mxu1 %v8666_v61  ;;  %v14700_v61 = vld [vmem:[%s18522_s11 + $0x5b4] ss:$8 sps:$4 sm:$0xff]  }
 0xf6a   : > { %v8657_v4 = vpop.f32.mrb[204].mxu1 }
 0xf6b   : > { %v8659_v58 = vpop.f32.mrb[205].mxu1 }
 0xf6c   : > { %v8661_v60 = vpop.f32.mrb[206].mxu1 }
 0xf6d   : > { %v8668_v5 = vpack.c.bf16 %v8661_v60, %v8657_v4  ;;  %v8663_v30 = vpop.f32.mrb[207].mxu1  ;;  %v14701_v4 = vld [vmem:[%s18522_s11 + $0x5c0] ss:$8 sps:$4 sm:$0xff]   ;;  %v14704_v60 = vld [vmem:[%s18522_s11 + $0x5d0] ss:$8 sps:$4 sm:$0xff]  }
 0xf6e   : > { %v8669_v32 = vpack.c.bf16 %v8663_v30, %v8659_v58  ;;  %v14706_v58 = vld [vmem:[%s18522_s11 + $0x5d4] ss:$8 sps:$4 sm:$0xff]   ;;  %v14707_v30 = vld [vmem:[%s18522_s11 + $0x5e0] ss:$8 sps:$4 sm:$0xff]  }
 0xf70   : > { %8693 = vmatprep.subr.bf16.mxu1 %v8669_v32  ;;  %v14712_v32 = vld [vmem:[%s18522_s11 + $0x5f4] ss:$8 sps:$4 sm:$0xff]  }
 0xf71   : > { %8694 = vmatpush1.bf16.msra.mxu1 %v8668_v5  ;;  %v14709_v5 = vld [vmem:[%s18522_s11 + $0x5e4] ss:$8 sps:$4 sm:$0xff]  }
 0xf72   : > { %9023 = vmatprep.subr.bf16.mxu1 %v8999_v48  ;;  %v14679_v48 = vld [vmem:[%s18522_s11 + $0x544] ss:$8 sps:$4 sm:$0xff]  }
 0xf74   : > { %12545 = vmatmul.mubr.msk.bf16.vlgmr.msra.gmra.mrb[192].mxu1 %vm691_vm1, %v14661_v33  ;;  %v14710_v33 = vld [vmem:[%s18522_s11 + $0x5f0] ss:$8 sps:$4 sm:$0xff]  }
 0xf75   : > { %9024 = vmatpush1.bf16.msra.mxu1 %v8998_v44  ;;  %8733 = vmatprep.mubr.bf16.mxu1 %v15157_v54  ;;  %v14670_v44 = vld [vmem:[%s18522_s11 + $0x520] ss:$8 sps:$4 sm:$0xff]  }
 0xf76   : > { %9025 = vmatprep.subr.bf16.mxu1 %v9001_v63  ;;  %v14694_v63 = vld [vmem:[%s18522_s11 + $0x594] ss:$8 sps:$4 sm:$0xff]  }
 0xf79   : > { %9026 = vmatpush1.bf16.msra.mxu1 %v9000_v56  ;;  %v14686_v56 = vld [vmem:[%s18522_s11 + $0x570] ss:$8 sps:$4 sm:$0xff]  }
 0xf7a   : > { %9277 = vmatprep.subr.bf16.mxu1 %v14665_v34 }
 0xf7c   : > { %12546 = vmatmul.mubr.msk.bf16.gmra.mrb[196].mxu1 %vm691_vm1, %v14662_v35 }
 0xf7d   : > { %9055 = vmatprep.mubr.bf16.mxu1 %v15157_v54 }
 0xf84   : > { %12617 = vmatmul.mubr.msk.bf16.vlgmr.msra.gmra.mrb[192].mxu1 %vm691_vm1, %v14666_v36 }
 0xf85   : > { %9278 = vmatpush1.bf16.msra.mxu1 %v14663_v37  ;;  %9065 = vmatprep.mubr.bf16.mxu1 %v15157_v54 }
 0xf86   : > { %9279 = vmatprep.subr.bf16.mxu1 %v14669_v39 }
 0xf89   : > { %9280 = vmatpush1.bf16.msra.mxu1 %v14667_v31 }
 0xf8a   : > { %9281 = vmatprep.subr.bf16.mxu1 %v14672_v41 }
 0xf8c   : > { %12618 = vmatmul.mubr.msk.bf16.gmra.mrb[196].mxu1 %vm691_vm1, %v14673_v42 }
 0xf8d   : > { %9282 = vmatpush1.bf16.msra.mxu1 %v14670_v44  ;;  %9309 = vmatprep.mubr.bf16.mxu1 %v16636_v59 }
 0xf8e   : > { %9283 = vmatprep.subr.bf16.mxu1 %v14676_v46 }
 0xf91   : > { %9284 = vmatpush1.bf16.msra.mxu1 %v14674_v47 }
 0xf92   : > { %9285 = vmatprep.subr.bf16.mxu1 %v14679_v48 }
 0xf95   : > { %9286 = vmatpush1.bf16.msra.mxu1 %v14677_v49  ;;  %v14713_v49 = vld [vmem:[%s18514_s3 + $0x320] sm:$0xff]  }
 0xf96   : > { %9287 = vmatprep.subr.bf16.mxu1 %v14682_v50  ;;  %v14714_v50 = vld [vmem:[%s18514_s3 + $0x328] sm:$0xff]  }
 0xf99   : > { %9288 = vmatpush1.bf16.msra.mxu1 %v14680_v43  ;;  %v14749_v43 = vld [vmem:[%s18522_s11 + $0x8a0] ss:$8 sps:$4 sm:$0xff]  }
 0xf9a   : > { %9289 = vmatprep.subr.bf16.mxu1 %v14685_v51  ;;  %v14754_v51 = vld [vmem:[%s18522_s11 + $0x8b4] ss:$8 sps:$4 sm:$0xff]  }
 0xf9d   : > { %9290 = vmatpush1.bf16.msra.mxu1 %v14683_v38  ;;  %v14752_v38 = vld [vmem:[%s18522_s11 + $0x8b0] ss:$8 sps:$4 sm:$0xff]  }
 0xf9e   : > { %9291 = vmatprep.subr.bf16.mxu1 %v14688_v6  ;;  %v14757_v6 = vld [vmem:[%s18522_s11 + $0x8c4] ss:$8 sps:$4 sm:$0xff]  }
 0xfa1   : > { %9292 = vmatpush1.bf16.msra.mxu1 %v14686_v56  ;;  %v14755_v56 = vld [vmem:[%s18522_s11 + $0x8c0] ss:$8 sps:$4 sm:$0xff]  }
 0xfa2   : > { %9293 = vmatprep.subr.bf16.mxu1 %v14691_v57  ;;  %v14760_v57 = vld [vmem:[%s18522_s11 + $0x8d4] ss:$8 sps:$4 sm:$0xff]  }
 0xfa5   : > { %9294 = vmatpush1.bf16.msra.mxu1 %v14689_v62  ;;  %v14758_v62 = vld [vmem:[%s18522_s11 + $0x8d0] ss:$8 sps:$4 sm:$0xff]  }
 0xfa6   : > { %9295 = vmatprep.subr.bf16.mxu1 %v14694_v63  ;;  %v14763_v63 = vld [vmem:[%s18522_s11 + $0x8e4] ss:$8 sps:$4 sm:$0xff]  }
 0xfa9   : > { %9296 = vmatpush1.bf16.msra.mxu1 %v14692_v53  ;;  %v14761_v53 = vld [vmem:[%s18522_s11 + $0x8e0] ss:$8 sps:$4 sm:$0xff]  }
 0xfaa   : > { %9297 = vmatprep.subr.bf16.mxu1 %v14697_v55  ;;  %v14766_v55 = vld [vmem:[%s18522_s11 + $0x8f4] ss:$8 sps:$4 sm:$0xff]  }
 0xfad   : > { %9298 = vmatpush1.bf16.msra.mxu1 %v14695_v7  ;;  %v14764_v7 = vld [vmem:[%s18522_s11 + $0x8f0] ss:$8 sps:$4 sm:$0xff]  }
 0xfae   : > { %9299 = vmatprep.subr.bf16.mxu1 %v14700_v61  ;;  %v15162_v61 = vmov 5  }
 0xfaf   : > { %14064 = vset.pattern.permute.xlu1 %v15162_v61  ;;  %14063 = vset.pattern.permute.xlu0 %v15162_v61 }
 0xfb1   : > { %9300 = vmatpush1.bf16.msra.mxu1 %v14698_v1  ;;  %v14869_v1 = vld [vmem:[%s18515_s4 + $0x8] sm:$0xff] }
 0xfb2   : > { %9301 = vmatprep.subr.bf16.mxu1 %v14703_v2  ;;  %10417 = vperm.xlu1 %14064, %v14869_v1   ;;  %v14870_v2 = vld [vmem:[%s18515_s4] sm:$0xff] }
 0xfb3   : > { %10413 = vperm.xlu0 %14063, %v14870_v2  }
 0xfb5   : > { %9302 = vmatpush1.bf16.msra.mxu1 %v14701_v4 }
 0xfb6   : > { %9303 = vmatprep.subr.bf16.mxu1 %v14706_v58 }
 0xfb9   : > { %9304 = vmatpush1.bf16.msra.mxu1 %v14704_v60 }
 0xfba   : > { %9305 = vmatprep.subr.bf16.mxu1 %v14709_v5 }
 0xfbd   : > { %9306 = vmatpush1.bf16.msra.mxu1 %v14707_v30 }
 0xfbe   : > { %9307 = vmatprep.subr.bf16.mxu1 %v14712_v32 }
 0xfc1   : > { %9308 = vmatpush1.bf16.msra.mxu1 %v14710_v33 }
 0xfc4   : > { %9310 = vmatmul.mubr.bf16.vlgmr.msra.gmra.mrb[208].mxu1 %v16634_v8 }
 0xfc5   : > { %9319 = vmatprep.mubr.bf16.mxu1 %v16656_v25 }
 0xfcc   : > { %9320 = vmatmul.mubr.bf16.gmra.mrb[212].mxu1 %v16654_v40 }
 0xfcd   : > { %9387 = vmatprep.mubr.bf16.mxu1 %v15157_v54 }
0x1097   : > { %v9311_v34 = vpop.f32.mrb[208].mxu1 }
0x1098   : > { %v9313_v35 = vpop.f32.mrb[209].mxu1 }
0x1099   : > { %v9315_v36 = vpop.f32.mrb[210].mxu1 }
0x109a   : > { %v9330_v37 = vpack.c.bf16 %v9315_v36, %v9311_v34  ;;  %v9317_v39 = vpop.f32.mrb[211].mxu1 }
0x109b   : > { %v9331_v31 = vpack.c.bf16 %v9317_v39, %v9313_v35  ;;  %v14767_v39 = vld [vmem:[%s18514_s3 + $0x350] sm:$0xff]  }
0x109d   : > { %9355 = vmatprep.subr.bf16.mxu1 %v9331_v31  ;;  %v14873_v31 = vld [vmem:[%s18522_s11 + $0x104] ss:$8 sps:$4 sm:$0xff]  }
0x109e   : > { %9356 = vmatpush1.bf16.msra.mxu1 %v9330_v37 }
0x109f   : > { %v9321_v41 = vpop.f32.mrb[212].mxu1 }
0x10a0   : > { %v9323_v42 = vpop.f32.mrb[213].mxu1 }
0x10a1   : > { %v9325_v44 = vpop.f32.mrb[214].mxu1 }
0x10a2   : > { %v9332_v46 = vpack.c.bf16 %v9325_v44, %v9321_v41  ;;  %v9327_v47 = vpop.f32.mrb[215].mxu1  ;;  %v14874_v41 = vld [vmem:[%s18522_s11 + $0x100] ss:$8 sps:$4 sm:$0xff]   ;;  %v14768_v44 = vld [vmem:[%s18514_s3 + $0x358] sm:$0xff]  }
0x10a3   : > { %v9333_v48 = vpack.c.bf16 %v9327_v47, %v9323_v42  ;;  %v14875_v42 = vld [vmem:[%s18522_s11 + $0x114] ss:$8 sps:$4 sm:$0xff]   ;;  %v14877_v47 = vld [vmem:[%s18522_s11 + $0x124] ss:$8 sps:$4 sm:$0xff]  }
0x10a5   : > { %9357 = vmatprep.subr.bf16.mxu1 %v9333_v48  ;;  %v14878_v48 = vld [vmem:[%s18522_s11 + $0x120] ss:$8 sps:$4 sm:$0xff]  }
0x10a6   : > { %9358 = vmatpush1.bf16.msra.mxu1 %v9332_v46  ;;  %v14876_v46 = vld [vmem:[%s18522_s11 + $0x110] ss:$8 sps:$4 sm:$0xff]  }
0x10a7   : > { %9687 = vmatprep.subr.bf16.mxu1 %v9663_v14  ;;  %v14723_v14 = vld [vmem:[%s18522_s11 + $0x814] ss:$8 sps:$4 sm:$0xff]  }
0x10a9   : > { %12689 = vmatmul.mubr.msk.bf16.vlgmr.msra.gmra.mrb[192].mxu1 %vm691_vm1, %v14713_v49  ;;  %v14879_v49 = vld [vmem:[%s18522_s11 + $0x134] ss:$8 sps:$4 sm:$0xff]  }
0x10aa   : > { %9688 = vmatpush1.bf16.msra.mxu1 %v9662_v11  ;;  %9397 = vmatprep.mubr.bf16.mxu1 %v15157_v54  ;;  %v14720_v11 = vld [vmem:[%s18514_s3 + $0x340] sm:$0xff]  }
0x10ab   : > { %9689 = vmatprep.subr.bf16.mxu1 %v9665_v19  ;;  %v14728_v19 = vld [vmem:[%s18522_s11 + $0x830] ss:$8 sps:$4 sm:$0xff]  }
0x10ae   : > { %9690 = vmatpush1.bf16.msra.mxu1 %v9664_v17  ;;  %v14724_v17 = vld [vmem:[%s18522_s11 + $0x820] ss:$8 sps:$4 sm:$0xff]  }
0x10af   : > { %10019 = vmatprep.subr.bf16.mxu1 %v9995_v24  ;;  %v14742_v24 = vld [vmem:[%s18522_s11 + $0x874] ss:$8 sps:$4 sm:$0xff]  }
0x10b1   : > { %12690 = vmatmul.mubr.msk.bf16.gmra.mrb[196].mxu1 %vm691_vm1, %v14714_v50  ;;  %v14880_v50 = vld [vmem:[%s18522_s11 + $0x130] ss:$8 sps:$4 sm:$0xff]  }
0x10b2   : > { %9719 = vmatprep.mubr.bf16.mxu1 %v15157_v54 }
0x10b9   : > { %12761 = vmatmul.mubr.msk.bf16.vlgmr.msra.gmra.mrb[192].mxu1 %vm691_vm1, %v14715_v3  ;;  %v14881_v3 = vld [vmem:[%s18522_s11 + $0x144] ss:$8 sps:$4 sm:$0xff]  }
0x10ba   : > { %10020 = vmatpush1.bf16.msra.mxu1 %v9994_v22  ;;  %9729 = vmatprep.mubr.bf16.mxu1 %v15157_v54  ;;  %v14739_v22 = vld [vmem:[%s18522_s11 + $0x864] ss:$8 sps:$4 sm:$0xff]  }
0x10bb   : > { %10021 = vmatprep.subr.bf16.mxu1 %v9997_v52  ;;  %v14751_v52 = vld [vmem:[%s18522_s11 + $0x8a4] ss:$8 sps:$4 sm:$0xff]  }
0x10be   : > { %10022 = vmatpush1.bf16.msra.mxu1 %v9996_v29  ;;  %v14748_v29 = vld [vmem:[%s18522_s11 + $0x894] ss:$8 sps:$4 sm:$0xff]  }
0x10bf   : > { %10273 = vmatprep.subr.bf16.mxu1 %v14719_v0  ;;  %v14882_v0 = vld [vmem:[%s18522_s11 + $0x140] ss:$8 sps:$4 sm:$0xff]  }
0x10c1   : > { %12762 = vmatmul.mubr.msk.bf16.gmra.mrb[196].mxu1 %vm691_vm1, %v14716_v9  ;;  %v14883_v9 = vld [vmem:[%s18522_s11 + $0x154] ss:$8 sps:$4 sm:$0xff]  }
0x10c2   : > { %10051 = vmatprep.mubr.bf16.mxu1 %v15157_v54 }
0x10c9   : > { %12833 = vmatmul.mubr.msk.bf16.vlgmr.msra.gmra.mrb[192].mxu1 %vm691_vm1, %v14720_v11  ;;  %v14884_v11 = vld [vmem:[%s18522_s11 + $0x150] ss:$8 sps:$4 sm:$0xff]  }
0x10ca   : > { %10274 = vmatpush1.bf16.msra.mxu1 %v14717_v12  ;;  %10061 = vmatprep.mubr.bf16.mxu1 %v15157_v54  ;;  %v14885_v12 = vld [vmem:[%s18522_s11 + $0x164] ss:$8 sps:$4 sm:$0xff]  }
0x10cb   : > { %10275 = vmatprep.subr.bf16.mxu1 %v14723_v14  ;;  %v14886_v14 = vld [vmem:[%s18522_s11 + $0x160] ss:$8 sps:$4 sm:$0xff]  }
0x10ce   : > { %10276 = vmatpush1.bf16.msra.mxu1 %v14721_v15  ;;  %v14887_v15 = vld [vmem:[%s18522_s11 + $0x174] ss:$8 sps:$4 sm:$0xff]  }
0x10cf   : > { %10277 = vmatprep.subr.bf16.mxu1 %v14726_v13  ;;  %v14888_v13 = vld [vmem:[%s18522_s11 + $0x170] ss:$8 sps:$4 sm:$0xff]  }
0x10d1   : > { %12834 = vmatmul.mubr.msk.bf16.gmra.mrb[196].mxu1 %vm691_vm1, %v14727_v16  ;;  %v14889_v16 = vld [vmem:[%s18522_s11 + $0x184] ss:$8 sps:$4 sm:$0xff]  }
0x10d2   : > { %10278 = vmatpush1.bf16.msra.mxu1 %v14724_v17  ;;  %10305 = vmatprep.mubr.bf16.mxu1 %v16636_v59  ;;  %v14734_v59 = vld [vmem:[%s18522_s11 + $0x850] ss:$8 sps:$4 sm:$0xff]   ;;  %v14890_v17 = vld [vmem:[%s18522_s11 + $0x180] ss:$8 sps:$4 sm:$0xff]  }
0x10d3   : > { %10279 = vmatprep.subr.bf16.mxu1 %v14730_v18  ;;  %v14891_v18 = vld [vmem:[%s18522_s11 + $0x194] ss:$8 sps:$4 sm:$0xff]  }
0x10d6   : > { %10280 = vmatpush1.bf16.msra.mxu1 %v14728_v19  ;;  %v14892_v19 = vld [vmem:[%s18522_s11 + $0x190] ss:$8 sps:$4 sm:$0xff]  }
0x10d7   : > { %10281 = vmatprep.subr.bf16.mxu1 %v14733_v10  ;;  %v14893_v10 = vld [vmem:[%s18522_s11 + $0x1a4] ss:$8 sps:$4 sm:$0xff]  }
0x10da   : > { %10282 = vmatpush1.bf16.msra.mxu1 %v14731_v20  ;;  %v14894_v20 = vld [vmem:[%s18522_s11 + $0x1a0] ss:$8 sps:$4 sm:$0xff]  }
0x10db   : > { %10283 = vmatprep.subr.bf16.mxu1 %v14736_v21  ;;  %v14895_v21 = vld [vmem:[%s18522_s11 + $0x1b4] ss:$8 sps:$4 sm:$0xff]  }
0x10de   : > { %10284 = vmatpush1.bf16.msra.mxu1 %v14734_v59  ;;  %v14896_v59 = vld [vmem:[%s18522_s11 + $0x1b0] ss:$8 sps:$4 sm:$0xff]  }
0x10df   : > { %10285 = vmatprep.subr.bf16.mxu1 %v14739_v22  ;;  %v14897_v22 = vld [vmem:[%s18522_s11 + $0x1c4] ss:$8 sps:$4 sm:$0xff]  }
0x10e2   : > { %10286 = vmatpush1.bf16.msra.mxu1 %v14737_v23  ;;  %v14898_v23 = vld [vmem:[%s18522_s11 + $0x1c0] ss:$8 sps:$4 sm:$0xff]  }
0x10e3   : > { %10287 = vmatprep.subr.bf16.mxu1 %v14742_v24  ;;  %v14899_v24 = vld [vmem:[%s18522_s11 + $0x1d4] ss:$8 sps:$4 sm:$0xff]  }
0x10e6   : > { %10288 = vmatpush1.bf16.msra.mxu1 %v14740_v26  ;;  %v14900_v26 = vld [vmem:[%s18522_s11 + $0x1d0] ss:$8 sps:$4 sm:$0xff]  }
0x10e7   : > { %10289 = vmatprep.subr.bf16.mxu1 %v14745_v27  ;;  %v14901_v27 = vld [vmem:[%s18522_s11 + $0x1e4] ss:$8 sps:$4 sm:$0xff]  }
0x10ea   : > { %10290 = vmatpush1.bf16.msra.mxu1 %v14743_v28  ;;  %v14902_v28 = vld [vmem:[%s18522_s11 + $0x1e0] ss:$8 sps:$4 sm:$0xff]  }
0x10eb   : > { %10291 = vmatprep.subr.bf16.mxu1 %v14748_v29  ;;  %v14903_v29 = vld [vmem:[%s18522_s11 + $0x1f4] ss:$8 sps:$4 sm:$0xff]  }
0x10ee   : > { %10292 = vmatpush1.bf16.msra.mxu1 %v14746_v45  ;;  %v14904_v45 = vld [vmem:[%s18522_s11 + $0x1f0] ss:$8 sps:$4 sm:$0xff]  }
0x10ef   : > { %10293 = vmatprep.subr.bf16.mxu1 %v14751_v52  ;;  %v10414_v52 = vpop.permute.xlu0 %10413 }
0x10f2   : > { %10294 = vmatpush1.bf16.msra.mxu1 %v14749_v43 }
0x10f3   : > { %10295 = vmatprep.subr.bf16.mxu1 %v14754_v51 }
0x10f6   : > { %10296 = vmatpush1.bf16.msra.mxu1 %v14752_v38 }
0x10f7   : > { %10297 = vmatprep.subr.bf16.mxu1 %v14757_v6  ;;  %v10418_v6 = vpop.permute.xlu1 %10417 }
0x10fa   : > { %10298 = vmatpush1.bf16.msra.mxu1 %v14755_v56 }
0x10fb   : > { %10299 = vmatprep.subr.bf16.mxu1 %v14760_v57 }
0x10fe   : > { %10300 = vmatpush1.bf16.msra.mxu1 %v14758_v62 }
0x10ff   : > { %10301 = vmatprep.subr.bf16.mxu1 %v14763_v63 }
0x1102   : > { %10302 = vmatpush1.bf16.msra.mxu1 %v14761_v53 }
0x1103   : > { %10303 = vmatprep.subr.bf16.mxu1 %v14766_v55 }
0x1106   : > { %10304 = vmatpush1.bf16.msra.mxu1 %v14764_v7 }
0x1109   : > { %10306 = vmatmul.mubr.bf16.vlgmr.msra.gmra.mrb[216].mxu1 %v16634_v8  ;;  %v14871_v8 = vld [vmem:[%s18515_s4 + $0x10] sm:$0xff] }
0x110a   : > { %10315 = vmatprep.mubr.bf16.mxu1 %v16656_v25  ;;  %10421 = vperm.xlu1 %14064, %v14871_v8  }
0x110e   : > { %14065 = vset.pattern.permute.xlu1 %v15157_v54 }
0x1111   : > { %10316 = vmatmul.mubr.bf16.gmra.mrb[220].mxu1 %v16654_v40  ;;  %v14872_v40 = vld [vmem:[%s18515_s4 + $0x18] sm:$0xff] }
0x1112   : > { %10383 = vmatprep.mubr.bf16.mxu1 %v15157_v54  ;;  %10425 = vperm.xlu0 %14063, %v14872_v40  }
0x1116   : > { %14066 = vset.pattern.permute.xlu0 %v15157_v54 }
0x11dc   : > { %v10307_v25 = vpop.f32.mrb[216].mxu1 }
0x11dd   : > { %v10309_v4 = vpop.f32.mrb[217].mxu1 }
0x11de   : > { %v10311_v58 = vpop.f32.mrb[218].mxu1 }
0x11df   : > { %v10326_v60 = vpack.c.bf16 %v10311_v58, %v10307_v25  ;;  %v10313_v5 = vpop.f32.mrb[219].mxu1  ;;  %v10422_v25 = vpop.permute.xlu1 %10421 }
0x11e0   : > { %v10327_v30 = vpack.c.bf16 %v10313_v5, %v10309_v4 }
0x11e2   : > { %10351 = vmatprep.subr.bf16.mxu1 %v10327_v30  ;;  %v10426_v30 = vpop.permute.xlu0 %10425 }
0x11e3   : > { %10352 = vmatpush1.bf16.msra.mxu1 %v10326_v60 }
0x11e4   : > { %v10317_v32 = vpop.f32.mrb[220].mxu1 }
0x11e5   : > { %v10319_v33 = vpop.f32.mrb[221].mxu1 }
0x11e6   : > { %v10321_v34 = vpop.f32.mrb[222].mxu1 }
0x11e7   : > { %v10328_v35 = vpack.c.bf16 %v10321_v34, %v10317_v32  ;;  %v10323_v36 = vpop.f32.mrb[223].mxu1 }
0x11e8   : > { %v10329_v37 = vpack.c.bf16 %v10323_v36, %v10319_v33 }
0x11ea   : > { %10353 = vmatprep.subr.bf16.mxu1 %v10329_v37 }
0x11eb   : > { %10354 = vmatpush1.bf16.msra.mxu1 %v10328_v35 }
0x11ec   : > { %10547 = vmatprep.subr.bf16.mxu1 %v14873_v31 }
0x11ee   : > { %12905 = vmatmul.mubr.msk.bf16.vlgmr.msra.gmra.mrb[192].mxu1 %vm691_vm1, %v14767_v39 }
0x11ef   : > { %10393 = vmatprep.mubr.bf16.mxu1 %v15157_v54  ;;  %10548 = vmatpush1.bf16.msra.mxu1 %v14874_v41 }
0x11f0   : > { %10549 = vmatprep.subr.bf16.mxu1 %v14875_v42 }
0x11f3   : > { %10550 = vmatpush1.bf16.msra.mxu1 %v14876_v46 }
0x11f4   : > { %10551 = vmatprep.subr.bf16.mxu1 %v14877_v47 }
0x11f6   : > { %12906 = vmatmul.mubr.msk.bf16.gmra.mrb[196].mxu1 %vm691_vm1, %v14768_v44 }
0x11f7   : > { %10552 = vmatpush1.bf16.msra.mxu1 %v14878_v48 }
0x11f8   : > { %10553 = vmatprep.subr.bf16.mxu1 %v14879_v49 }
0x11fb   : > { %10554 = vmatpush1.bf16.msra.mxu1 %v14880_v50 }
0x11fc   : > { %10555 = vmatprep.subr.bf16.mxu1 %v14881_v3 }
0x11ff   : > { %10556 = vmatpush1.bf16.msra.mxu1 %v14882_v0 }
0x1200   : > { %10557 = vmatprep.subr.bf16.mxu1 %v14883_v9 }
0x1203   : > { %10558 = vmatpush1.bf16.msra.mxu1 %v14884_v11 }
0x1204   : > { %10559 = vmatprep.subr.bf16.mxu1 %v14885_v12 }
0x1207   : > { %10560 = vmatpush1.bf16.msra.mxu1 %v14886_v14 }
0x1208   : > { %10561 = vmatprep.subr.bf16.mxu1 %v14887_v15 }
0x120b   : > { %10562 = vmatpush1.bf16.msra.mxu1 %v14888_v13 }
0x120c   : > { %10563 = vmatprep.subr.bf16.mxu1 %v14889_v16 }
0x120f   : > { %10564 = vmatpush1.bf16.msra.mxu1 %v14890_v17 }
0x1210   : > { %10565 = vmatprep.subr.bf16.mxu1 %v14891_v18 }
0x1213   : > { %10566 = vmatpush1.bf16.msra.mxu1 %v14892_v19 }
0x1214   : > { %10567 = vmatprep.subr.bf16.mxu1 %v14893_v10 }
0x1217   : > { %10568 = vmatpush1.bf16.msra.mxu1 %v14894_v20 }
0x1218   : > { %10569 = vmatprep.subr.bf16.mxu1 %v14895_v21 }
0x121b   : > { %10570 = vmatpush1.bf16.msra.mxu1 %v14896_v59 }
0x121c   : > { %10571 = vmatprep.subr.bf16.mxu1 %v14897_v22 }
0x121f   : > { %10572 = vmatpush1.bf16.msra.mxu1 %v14898_v23 }
0x1220   : > { %10573 = vmatprep.subr.bf16.mxu1 %v14899_v24 }
0x1223   : > { %10574 = vmatpush1.bf16.msra.mxu1 %v14900_v26 }
0x1224   : > { %10575 = vmatprep.subr.bf16.mxu1 %v14901_v27 }
0x1227   : > { %10576 = vmatpush1.bf16.msra.mxu1 %v14902_v28 }
0x1228   : > { %10577 = vmatprep.subr.bf16.mxu1 %v14903_v29 }
0x122b   : > { %10578 = vmatpush1.bf16.msra.mxu1 %v14904_v45 }
0x12c1   : > { %v10385_v43 = vpop.f32.mrb[192].mxu1 }
0x12c2   : > { %v10428_v51 = vadd.f32 %v10414_v52, %v10385_v43  ;;  %v10387_v38 = vpop.f32.mrb[193].mxu1 }
0x12c3   : > { %v10429_v56 = vadd.f32 %v10414_v52, %v10387_v38  ;;  %v10389_v57 = vpop.f32.mrb[194].mxu1 }
0x12c4   : > { %v10444_v62 = vmin.f32 %v10428_v51, 0.0  ;;  %v10430_v63 = vadd.f32 %v10418_v6, %v10389_v57  ;;  %v10391_v53 = vpop.f32.mrb[195].mxu1  ;;  %vm10436_vm12 = vcmp.gt.f32.partialorder %v10428_v51, 0.0 }
0x12c5   : > { %v10445_v55 = vmin.f32 %v10429_v56, 0.0  ;;  %v10431_v7 = vadd.f32 %v10418_v6, %v10391_v53  ;;  %vm10437_vm14 = vcmp.gt.f32.partialorder %v10429_v56, 0.0 }
0x12c6   : > { %v10452_v61 = vmul.f32 1.442695, %v10444_v62  ;;  %v10446_v1 = vmin.f32 %v10430_v63, 0.0  ;;  %vm10438_vm13 = vcmp.gt.f32.partialorder %v10430_v63, 0.0 }
0x12c7   : > { %v10454_v2 = vmul.f32 1.442695, %v10445_v55  ;;  %v10447_v8 = vmin.f32 %v10431_v7, 0.0  ;;  %vm10439_vm15 = vcmp.gt.f32.partialorder %v10431_v7, 0.0 }
0x12c8   : > { %14817 = vpow2.f32 %v10452_v61  ;;  %v10456_v40 = vmul.f32 1.442695, %v10446_v1 }
0x12c9   : > { %14819 = vpow2.f32 %v10454_v2  ;;  %v10458_v4 = vmul.f32 1.442695, %v10447_v8  ;;  %v10395_v58 = vpop.f32.mrb[196].mxu1 }
0x12ca   : > { %14821 = vpow2.f32 %v10456_v40  ;;  %v10432_v60 = vadd.f32 %v10422_v25, %v10395_v58  ;;  %v10397_v5 = vpop.f32.mrb[197].mxu1 }
0x12cb   : > { %14823 = vpow2.f32 %v10458_v4  ;;  %v10433_v32 = vadd.f32 %v10422_v25, %v10397_v5  ;;  %v10399_v33 = vpop.f32.mrb[198].mxu1 }
0x12cc   : > { %v10448_v34 = vmin.f32 %v10432_v60, 0.0  ;;  %v10434_v35 = vadd.f32 %v10426_v30, %v10399_v33  ;;  %v10401_v36 = vpop.f32.mrb[199].mxu1  ;;  %vm10440_vm0 = vcmp.gt.f32.partialorder %v10432_v60, 0.0 }
0x12cd   : > { %v10449_v37 = vmin.f32 %v10433_v32, 0.0  ;;  %v10435_v39 = vadd.f32 %v10426_v30, %v10401_v36  ;;  %vm10441_vm3 = vcmp.gt.f32.partialorder %v10433_v32, 0.0  ;;  %v14905_v36 = vld [vmem:[%s18522_s11 + $0x204] ss:$8 sps:$4 sm:$0xff]  }
0x12ce   : > { %v10460_v31 = vmul.f32 1.442695, %v10448_v34  ;;  %v10450_v41 = vmin.f32 %v10434_v35, 0.0  ;;  %vm10442_vm2 = vcmp.gt.f32.partialorder %v10434_v35, 0.0  ;;  %v12915_v34 = vld [vmem:[%s18516_s5 + $0x2] sm:$0x3] }
0x12cf   : > { %v10462_v42 = vmul.f32 1.442695, %v10449_v37  ;;  %v10451_v44 = vmin.f32 %v10435_v39, 0.0  ;;  %vm10443_vm4 = vcmp.gt.f32.partialorder %v10435_v39, 0.0  ;;  %v14906_v37 = vld [vmem:[%s18522_s11 + $0x200] ss:$8 sps:$4 sm:$0xff]  }
0x12d0   : > { %14825 = vpow2.f32 %v10460_v31  ;;  %v10464_v46 = vmul.f32 1.442695, %v10450_v41  ;;  %v14908_v31 = vld [vmem:[%s18522_s11 + $0x210] ss:$8 sps:$4 sm:$0xff]   ;;  %v14909_v41 = vld [vmem:[%s18522_s11 + $0x224] ss:$8 sps:$4 sm:$0xff]  }
0x12d1   : > { %14827 = vpow2.f32 %v10462_v42  ;;  %v10466_v47 = vmul.f32 1.442695, %v10451_v44  ;;  %v14910_v42 = vld [vmem:[%s18522_s11 + $0x220] ss:$8 sps:$4 sm:$0xff]   ;;  %v14911_v44 = vld [vmem:[%s18522_s11 + $0x234] ss:$8 sps:$4 sm:$0xff]  }
0x12d2   : > { %v14818_v48 = vpop.eup %14817  ;;  %14829 = vpow2.f32 %v10464_v46  ;;  %v14912_v46 = vld [vmem:[%s18522_s11 + $0x230] ss:$8 sps:$4 sm:$0xff]  }
0x12d3   : > { %v14820_v49 = vpop.eup %14819  ;;  %v12907_v50 = vadd.f32 -1.0, %v14818_v48  ;;  %14831 = vpow2.f32 %v10466_v47  ;;  %v14913_v47 = vld [vmem:[%s18522_s11 + $0x244] ss:$8 sps:$4 sm:$0xff]   ;;  %v14914_v48 = vld [vmem:[%s18522_s11 + $0x240] ss:$8 sps:$4 sm:$0xff]  }
0x12d4   : > { %v14822_v3 = vpop.eup %14821  ;;  %v12908_v0 = vadd.f32 -1.0, %v14820_v49  ;;  %v14915_v49 = vld [vmem:[%s18522_s11 + $0x254] ss:$8 sps:$4 sm:$0xff]  }
0x12d5   : > { %v14824_v9 = vpop.eup %14823  ;;  %v12909_v11 = vadd.f32 -1.0, %v14822_v3  ;;  %v10476_v14 = vsel %vm10436_vm12, %v10428_v51, %v12907_v50  ;;  %v14916_v50 = vld [vmem:[%s18522_s11 + $0x250] ss:$8 sps:$4 sm:$0xff]   ;;  %v14917_v3 = vld [vmem:[%s18522_s11 + $0x264] ss:$8 sps:$4 sm:$0xff]  }
0x12d6   : > { %v12910_v12 = vadd.f32 -1.0, %v14824_v9  ;;  %v10477_v13 = vsel %vm10437_vm14, %v10429_v56, %v12908_v0  ;;  %v14918_v0 = vld [vmem:[%s18522_s11 + $0x260] ss:$8 sps:$4 sm:$0xff]   ;;  %v14919_v9 = vld [vmem:[%s18522_s11 + $0x274] ss:$8 sps:$4 sm:$0xff]  }
0x12d7   : > { %v10478_v15 = vsel %vm10438_vm13, %v10430_v63, %v12909_v11  ;;  %v14920_v11 = vld [vmem:[%s18522_s11 + $0x270] ss:$8 sps:$4 sm:$0xff]  }
0x12d8   : > { %v17709_v16 = vpack.c.bf16 %v10478_v15, %v10476_v14  ;;  %v10479_v17 = vsel %vm10439_vm15, %v10431_v7, %v12910_v12  ;;  %v14921_v12 = vld [vmem:[%s18522_s11 + $0x284] ss:$8 sps:$4 sm:$0xff]   ;;  %v14922_v14 = vld [vmem:[%s18522_s11 + $0x280] ss:$8 sps:$4 sm:$0xff]   ;;  %v14923_v15 = vld [vmem:[%s18522_s11 + $0x294] ss:$8 sps:$4 sm:$0xff]  }
0x12d9   : > { %v17711_v18 = vpack.c.bf16 %v10479_v17, %v10477_v13  ;;  %v14924_v13 = vld [vmem:[%s18522_s11 + $0x290] ss:$8 sps:$4 sm:$0xff]   ;;  %v14925_v17 = vld [vmem:[%s18522_s11 + $0x2a4] ss:$8 sps:$4 sm:$0xff]  }
0x12da   : > { %v14826_v19 = vpop.eup %14825 }
0x12db   : > { %v14828_v10 = vpop.eup %14827  ;;  %v12911_v20 = vadd.f32 -1.0, %v14826_v19  ;;  %10521 = vmatprep.mubr.bf16.mxu0 %v17711_v18  ;;  %10579 = vmatprep.mubr.bf16.mxu1 %v17711_v18  ;;  %v14926_v19 = vld [vmem:[%s18522_s11 + $0x2a0] ss:$8 sps:$4 sm:$0xff]  }
0x12dc   : > { %v14830_v21 = vpop.eup %14829  ;;  %v12912_v59 = vadd.f32 -1.0, %v14828_v10  ;;  %10522 = vmatmul.mubr.bf16.vlgmr.msra.gmra.mrb[96].mxu0 %v17709_v16  ;;  %10580 = vmatmul.mubr.bf16.vlgmr.msra.gmra.mrb[224].mxu1 %v17709_v16  ;;  %v14927_v10 = vld [vmem:[%s18522_s11 + $0x2b4] ss:$8 sps:$4 sm:$0xff]  }
0x12dd   : > { %v14832_v22 = vpop.eup %14831  ;;  %v12913_v23 = vadd.f32 -1.0, %v14830_v21  ;;  %v10480_v26 = vsel %vm10440_vm0, %v10432_v60, %v12911_v20  ;;  %v14928_v20 = vld [vmem:[%s18522_s11 + $0x2b0] ss:$8 sps:$4 sm:$0xff]   ;;  %v14929_v21 = vld [vmem:[%s18522_s11 + $0x2c4] ss:$8 sps:$4 sm:$0xff]  }
0x12de   : > { %v12914_v24 = vadd.f32 -1.0, %v14832_v22  ;;  %v10481_v28 = vsel %vm10441_vm3, %v10433_v32, %v12912_v59  ;;  %v14930_v59 = vld [vmem:[%s18522_s11 + $0x2c0] ss:$8 sps:$4 sm:$0xff]   ;;  %v14931_v22 = vld [vmem:[%s18522_s11 + $0x2d4] ss:$8 sps:$4 sm:$0xff]  }
0x12df   : > { %v10482_v27 = vsel %vm10442_vm2, %v10434_v35, %v12913_v23  ;;  %v10546_v35 = vld [vmem:[%s18516_s5] sm:$0x3]  ;;  %v14932_v23 = vld [vmem:[%s18522_s11 + $0x2d0] ss:$8 sps:$4 sm:$0xff]  }
0x12e0   : > { %v17717_v29 = vpack.c.bf16 %v10482_v27, %v10480_v26  ;;  %v10483_v45 = vsel %vm10443_vm4, %v10435_v39, %v12914_v24  ;;  %v14907_v39 = vld [vmem:[%s18522_s11 + $0x214] ss:$8 sps:$4 sm:$0xff]   ;;  %v14933_v24 = vld [vmem:[%s18522_s11 + $0x2e4] ss:$8 sps:$4 sm:$0xff]   ;;  %v14934_v26 = vld [vmem:[%s18522_s11 + $0x2e0] ss:$8 sps:$4 sm:$0xff]  }
0x12e1   : > { %v17719_v52 = vpack.c.bf16 %v10483_v45, %v10481_v28  ;;  %v14935_v27 = vld [vmem:[%s18522_s11 + $0x2f4] ss:$8 sps:$4 sm:$0xff]   ;;  %v14936_v28 = vld [vmem:[%s18522_s11 + $0x2f0] ss:$8 sps:$4 sm:$0xff]   ;;  %v14937_v45 = vld [vmem:[%s18522_s11 + $0x404] ss:$8 sps:$4 sm:$0xff]  }
0x12e3   : > { %10531 = vmatprep.mubr.bf16.mxu0 %v17719_v52  ;;  %10589 = vmatprep.mubr.bf16.mxu1 %v17719_v52 }
0x12e4   : > { %10532 = vmatmul.mubr.bf16.gmra.mrb[100].mxu0 %v17717_v29  ;;  %10590 = vmatmul.mubr.bf16.gmra.mrb[228].mxu1 %v17717_v29 }
0x12e5   : > { %10641 = vmatprep.mubr.bf16.mxu0 %v15157_v54  ;;  %10788 = vmatprep.mubr.bf16.mxu1 %v15157_v54 }
0x13af   : > { %v10523_v43 = vpop.f32.mrb[96].mxu0  ;;  %v10581_v51 = vpop.f32.mrb[224].mxu1 }
0x13b0   : > { %v10525_v38 = vpop.f32.mrb[97].mxu0  ;;  %v10583_v6 = vpop.f32.mrb[225].mxu1 }
0x13b1   : > { %v10527_v56 = vpop.f32.mrb[98].mxu0  ;;  %v10585_v57 = vpop.f32.mrb[226].mxu1 }
0x13b2   : > { %v10542_v62 = vpack.c.bf16 %v10527_v56, %v10523_v43  ;;  %v10600_v63 = vpack.c.bf16 %v10585_v57, %v10581_v51  ;;  %v10529_v53 = vpop.f32.mrb[99].mxu0  ;;  %v10587_v55 = vpop.f32.mrb[227].mxu1  ;;  %v14938_v43 = vld [vmem:[%s18522_s11 + $0x400] ss:$8 sps:$4 sm:$0xff]   ;;  %v14939_v51 = vld [vmem:[%s18522_s11 + $0x414] ss:$8 sps:$4 sm:$0xff]  }
0x13b3   : > { %v10543_v7 = vpack.c.bf16 %v10529_v53, %v10525_v38  ;;  %v10601_v61 = vpack.c.bf16 %v10587_v55, %v10583_v6  ;;  %v14940_v38 = vld [vmem:[%s18522_s11 + $0x410] ss:$8 sps:$4 sm:$0xff]   ;;  %v14941_v6 = vld [vmem:[%s18522_s11 + $0x424] ss:$8 sps:$4 sm:$0xff]   ;;  %v14942_v56 = vld [vmem:[%s18522_s11 + $0x420] ss:$8 sps:$4 sm:$0xff]  }
0x13b4   : > { %v14943_v57 = vld [vmem:[%s18522_s11 + $0x434] ss:$8 sps:$4 sm:$0xff]   ;;  %v14946_v53 = vld [vmem:[%s18522_s11 + $0x440] ss:$8 sps:$4 sm:$0xff]  }
0x13b5   : > { %10609 = vmatprep.subr.bf16.mxu0 %v10601_v61  ;;  %v14947_v55 = vld [vmem:[%s18522_s11 + $0x454] ss:$8 sps:$4 sm:$0xff]   ;;  %v14949_v61 = vld [vmem:[%s18522_s11 + $0x464] ss:$8 sps:$4 sm:$0xff]  }
0x13b6   : > { %10610 = vmatpush1.bf16.msra.mxu0 %v10600_v63  ;;  %v14945_v63 = vld [vmem:[%s18522_s11 + $0x444] ss:$8 sps:$4 sm:$0xff]  }
0x13b7   : > { %v10533_v1 = vpop.f32.mrb[100].mxu0  ;;  %v10591_v2 = vpop.f32.mrb[228].mxu1 }
0x13b8   : > { %v10535_v8 = vpop.f32.mrb[101].mxu0  ;;  %v10593_v40 = vpop.f32.mrb[229].mxu1 }
0x13b9   : > { %v10537_v25 = vpop.f32.mrb[102].mxu0  ;;  %v10595_v4 = vpop.f32.mrb[230].mxu1 }
0x13ba   : > { %v10544_v58 = vpack.c.bf16 %v10537_v25, %v10533_v1  ;;  %v10602_v60 = vpack.c.bf16 %v10595_v4, %v10591_v2  ;;  %v10539_v5 = vpop.f32.mrb[103].mxu0  ;;  %v10597_v30 = vpop.f32.mrb[231].mxu1  ;;  %v14950_v1 = vld [vmem:[%s18522_s11 + $0x460] ss:$8 sps:$4 sm:$0xff]   ;;  %v14951_v2 = vld [vmem:[%s18522_s11 + $0x474] ss:$8 sps:$4 sm:$0xff]  }
0x13bb   : > { %v10545_v32 = vpack.c.bf16 %v10539_v5, %v10535_v8  ;;  %v10603_v33 = vpack.c.bf16 %v10597_v30, %v10593_v40  ;;  %v14952_v8 = vld [vmem:[%s18522_s11 + $0x470] ss:$8 sps:$4 sm:$0xff]   ;;  %v14953_v40 = vld [vmem:[%s18522_s11 + $0x484] ss:$8 sps:$4 sm:$0xff]   ;;  %v14954_v25 = vld [vmem:[%s18522_s11 + $0x480] ss:$8 sps:$4 sm:$0xff]  }
0x13bc   : > { %v14955_v4 = vld [vmem:[%s18522_s11 + $0x494] ss:$8 sps:$4 sm:$0xff]   ;;  %v14958_v5 = vld [vmem:[%s18522_s11 + $0x4a0] ss:$8 sps:$4 sm:$0xff]  }
0x13bd   : > { %10611 = vmatprep.subr.bf16.mxu0 %v10603_v33  ;;  %v14959_v30 = vld [vmem:[%s18522_s11 + $0x4b4] ss:$8 sps:$4 sm:$0xff]   ;;  %v14961_v33 = vld [vmem:[%s18522_s11 + $0x4c4] ss:$8 sps:$4 sm:$0xff]  }
0x13be   : > { %10612 = vmatpush1.bf16.msra.mxu0 %v10602_v60  ;;  %v14957_v60 = vld [vmem:[%s18522_s11 + $0x4a4] ss:$8 sps:$4 sm:$0xff]  }
0x13bf   : > { %10653 = vmatprep.subr.bf16.mxu0 %v10543_v7  ;;  %v14948_v7 = vld [vmem:[%s18522_s11 + $0x450] ss:$8 sps:$4 sm:$0xff]  }
0x13c1   : > { %12916 = vmatmul.mubr.msk.bf16.vlgmr.msra.gmra.mrb[104].mxu0 %vm691_vm1, %v12915_v34  ;;  %v14962_v34 = vld [vmem:[%s18522_s11 + $0x4c0] ss:$8 sps:$4 sm:$0xff]  }
0x13c2   : > { %10654 = vmatpush1.bf16.msra.mxu0 %v10542_v62  ;;  %10685 = vmatprep.mubr.bf16.mxu0 %v15157_v54  ;;  %v14944_v62 = vld [vmem:[%s18522_s11 + $0x430] ss:$8 sps:$4 sm:$0xff]  }
0x13c3   : > { %10655 = vmatprep.subr.bf16.mxu0 %v10545_v32  ;;  %v14960_v32 = vld [vmem:[%s18522_s11 + $0x4b0] ss:$8 sps:$4 sm:$0xff]  }
0x13c6   : > { %10656 = vmatpush1.bf16.msra.mxu0 %v10544_v58  ;;  %v14956_v58 = vld [vmem:[%s18522_s11 + $0x490] ss:$8 sps:$4 sm:$0xff]  }
0x13c7   : > { %10694 = vmatprep.subr.bf16.mxu0 %v14905_v36  ;;  %v14964_v36 = vld [vmem:[%s18522_s11 + $0x4d0] ss:$8 sps:$4 sm:$0xff]  }
0x13c9   : > { %12917 = vmatmul.mubr.msk.bf16.vlgmr.msra.gmra.mrb[108].mxu0 %vm691_vm1, %v10546_v35  ;;  %v14963_v35 = vld [vmem:[%s18522_s11 + $0x4d4] ss:$8 sps:$4 sm:$0xff]  }
0x13ca   : > { %10695 = vmatpush1.bf16.msra.mxu0 %v14906_v37  ;;  %10726 = vmatprep.mubr.bf16.mxu0 %v17711_v18  ;;  %v14965_v37 = vld [vmem:[%s18522_s11 + $0x4e4] ss:$8 sps:$4 sm:$0xff]  }
0x13cb   : > { %10696 = vmatprep.subr.bf16.mxu0 %v14907_v39  ;;  %v14966_v39 = vld [vmem:[%s18522_s11 + $0x4e0] ss:$8 sps:$4 sm:$0xff]  }
0x13ce   : > { %10697 = vmatpush1.bf16.msra.mxu0 %v14908_v31  ;;  %v14967_v31 = vld [vmem:[%s18522_s11 + $0x4f4] ss:$8 sps:$4 sm:$0xff]  }
0x13cf   : > { %10698 = vmatprep.subr.bf16.mxu0 %v14909_v41  ;;  %v14968_v41 = vld [vmem:[%s18522_s11 + $0x4f0] ss:$8 sps:$4 sm:$0xff]  }
0x13d2   : > { %10699 = vmatpush1.bf16.msra.mxu0 %v14910_v42 }
0x13d3   : > { %10700 = vmatprep.subr.bf16.mxu0 %v14911_v44 }
0x13d6   : > { %10701 = vmatpush1.bf16.msra.mxu0 %v14912_v46 }
0x13d7   : > { %10702 = vmatprep.subr.bf16.mxu0 %v14913_v47 }
0x13da   : > { %10703 = vmatpush1.bf16.msra.mxu0 %v14914_v48 }
0x13db   : > { %10704 = vmatprep.subr.bf16.mxu0 %v14915_v49 }
0x13de   : > { %10705 = vmatpush1.bf16.msra.mxu0 %v14916_v50 }
0x13df   : > { %10706 = vmatprep.subr.bf16.mxu0 %v14917_v3 }
0x13e2   : > { %10707 = vmatpush1.bf16.msra.mxu0 %v14918_v0 }
0x13e3   : > { %10708 = vmatprep.subr.bf16.mxu0 %v14919_v9 }
0x13e6   : > { %10709 = vmatpush1.bf16.msra.mxu0 %v14920_v11 }
0x13e7   : > { %10710 = vmatprep.subr.bf16.mxu0 %v14921_v12 }
0x13ea   : > { %10711 = vmatpush1.bf16.msra.mxu0 %v14922_v14 }
0x13eb   : > { %10712 = vmatprep.subr.bf16.mxu0 %v14923_v15 }
0x13ee   : > { %10713 = vmatpush1.bf16.msra.mxu0 %v14924_v13 }
0x13ef   : > { %10714 = vmatprep.subr.bf16.mxu0 %v14925_v17 }
0x13f2   : > { %10715 = vmatpush1.bf16.msra.mxu0 %v14926_v19 }
0x13f3   : > { %10716 = vmatprep.subr.bf16.mxu0 %v14927_v10 }
0x13f6   : > { %10717 = vmatpush1.bf16.msra.mxu0 %v14928_v20 }
0x13f7   : > { %10718 = vmatprep.subr.bf16.mxu0 %v14929_v21 }
0x13fa   : > { %10719 = vmatpush1.bf16.msra.mxu0 %v14930_v59 }
0x13fb   : > { %10720 = vmatprep.subr.bf16.mxu0 %v14931_v22 }
0x13fe   : > { %10721 = vmatpush1.bf16.msra.mxu0 %v14932_v23  ;;  %v12918_v23 = vld [vmem:[%s18516_s5 + $0x4] sm:$0x3] }
0x13ff   : > { %10722 = vmatprep.subr.bf16.mxu0 %v14933_v24  ;;  %v14969_v24 = vld [vmem:[%s18522_s11 + $0x304] ss:$8 sps:$4 sm:$0xff]  }
0x1402   : > { %10723 = vmatpush1.bf16.msra.mxu0 %v14934_v26  ;;  %v14970_v26 = vld [vmem:[%s18522_s11 + $0x300] ss:$8 sps:$4 sm:$0xff]  }
0x1403   : > { %10724 = vmatprep.subr.bf16.mxu0 %v14935_v27  ;;  %v14971_v27 = vld [vmem:[%s18522_s11 + $0x314] ss:$8 sps:$4 sm:$0xff]  }
0x1406   : > { %10725 = vmatpush1.bf16.msra.mxu0 %v14936_v28  ;;  %v14972_v28 = vld [vmem:[%s18522_s11 + $0x310] ss:$8 sps:$4 sm:$0xff]  }
0x1407   : > { %10904 = vmatprep.subr.bf16.mxu0 %v14937_v45  ;;  %v14973_v45 = vld [vmem:[%s18522_s11 + $0x324] ss:$8 sps:$4 sm:$0xff]  }
0x1409   : > { %10727 = vmatmul.mubr.bf16.vlgmr.msra.gmra.mrb[112].mxu0 %v17709_v16 }
0x140a   : > { %10736 = vmatprep.mubr.bf16.mxu0 %v17719_v52  ;;  %10905 = vmatpush1.bf16.msra.mxu0 %v14938_v43  ;;  %v14974_v43 = vld [vmem:[%s18522_s11 + $0x320] ss:$8 sps:$4 sm:$0xff]  }
0x140b   : > { %10906 = vmatprep.subr.bf16.mxu0 %v14939_v51  ;;  %v14975_v51 = vld [vmem:[%s18522_s11 + $0x334] ss:$8 sps:$4 sm:$0xff]  }
0x140e   : > { %10907 = vmatpush1.bf16.msra.mxu0 %v14940_v38  ;;  %v14976_v38 = vld [vmem:[%s18522_s11 + $0x330] ss:$8 sps:$4 sm:$0xff]  }
0x140f   : > { %10908 = vmatprep.subr.bf16.mxu0 %v14941_v6  ;;  %v14977_v6 = vld [vmem:[%s18522_s11 + $0x344] ss:$8 sps:$4 sm:$0xff]  }
0x1411   : > { %10737 = vmatmul.mubr.bf16.gmra.mrb[116].mxu0 %v17717_v29 }
0x1412   : > { %10909 = vmatpush1.bf16.msra.mxu0 %v14942_v56  ;;  %10936 = vmatprep.mubr.bf16.mxu0 %v17711_v18  ;;  %v14978_v56 = vld [vmem:[%s18522_s11 + $0x340] ss:$8 sps:$4 sm:$0xff]  }
0x1413   : > { %10910 = vmatprep.subr.bf16.mxu0 %v14943_v57  ;;  %v14979_v57 = vld [vmem:[%s18522_s11 + $0x354] ss:$8 sps:$4 sm:$0xff]  }
0x1416   : > { %10911 = vmatpush1.bf16.msra.mxu0 %v14944_v62  ;;  %v14980_v62 = vld [vmem:[%s18522_s11 + $0x350] ss:$8 sps:$4 sm:$0xff]  }
0x1417   : > { %10912 = vmatprep.subr.bf16.mxu0 %v14945_v63  ;;  %v14981_v63 = vld [vmem:[%s18522_s11 + $0x364] ss:$8 sps:$4 sm:$0xff]  }
0x141a   : > { %10913 = vmatpush1.bf16.msra.mxu0 %v14946_v53  ;;  %v14982_v53 = vld [vmem:[%s18522_s11 + $0x360] ss:$8 sps:$4 sm:$0xff]  }
0x141b   : > { %10914 = vmatprep.subr.bf16.mxu0 %v14947_v55  ;;  %v14983_v55 = vld [vmem:[%s18522_s11 + $0x374] ss:$8 sps:$4 sm:$0xff]  }
0x141e   : > { %10915 = vmatpush1.bf16.msra.mxu0 %v14948_v7  ;;  %v14984_v7 = vld [vmem:[%s18522_s11 + $0x370] ss:$8 sps:$4 sm:$0xff]  }
0x141f   : > { %10916 = vmatprep.subr.bf16.mxu0 %v14949_v61  ;;  %v14985_v61 = vld [vmem:[%s18522_s11 + $0x384] ss:$8 sps:$4 sm:$0xff]  }
0x1422   : > { %10917 = vmatpush1.bf16.msra.mxu0 %v14950_v1  ;;  %v14986_v1 = vld [vmem:[%s18522_s11 + $0x380] ss:$8 sps:$4 sm:$0xff]  }
0x1423   : > { %10918 = vmatprep.subr.bf16.mxu0 %v14951_v2  ;;  %v14987_v2 = vld [vmem:[%s18522_s11 + $0x394] ss:$8 sps:$4 sm:$0xff]  }
0x1426   : > { %10919 = vmatpush1.bf16.msra.mxu0 %v14952_v8  ;;  %v14988_v8 = vld [vmem:[%s18522_s11 + $0x390] ss:$8 sps:$4 sm:$0xff]  }
0x1427   : > { %10920 = vmatprep.subr.bf16.mxu0 %v14953_v40  ;;  %v14989_v40 = vld [vmem:[%s18522_s11 + $0x3a4] ss:$8 sps:$4 sm:$0xff]  }
0x142a   : > { %10921 = vmatpush1.bf16.msra.mxu0 %v14954_v25  ;;  %v14990_v25 = vld [vmem:[%s18522_s11 + $0x3a0] ss:$8 sps:$4 sm:$0xff]  }
0x142b   : > { %10922 = vmatprep.subr.bf16.mxu0 %v14955_v4  ;;  %v14991_v4 = vld [vmem:[%s18522_s11 + $0x3b4] ss:$8 sps:$4 sm:$0xff]  }
0x142e   : > { %10923 = vmatpush1.bf16.msra.mxu0 %v14956_v58  ;;  %v14992_v58 = vld [vmem:[%s18522_s11 + $0x3b0] ss:$8 sps:$4 sm:$0xff]  }
0x142f   : > { %10924 = vmatprep.subr.bf16.mxu0 %v14957_v60 }
0x1432   : > { %10925 = vmatpush1.bf16.msra.mxu0 %v14958_v5  ;;  %v14993_v5 = vld [vmem:[%s18522_s11 + $0x3c4] ss:$8 sps:$4 sm:$0xff]  }
0x1433   : > { %10926 = vmatprep.subr.bf16.mxu0 %v14959_v30 }
0x1436   : > { %10927 = vmatpush1.bf16.msra.mxu0 %v14960_v32 }
0x1437   : > { %10928 = vmatprep.subr.bf16.mxu0 %v14961_v33 }
0x143a   : > { %10929 = vmatpush1.bf16.msra.mxu0 %v14962_v34  ;;  %v14994_v34 = vld [vmem:[%s18522_s11 + $0x3c0] ss:$8 sps:$4 sm:$0xff]  }
0x143b   : > { %10930 = vmatprep.subr.bf16.mxu0 %v14963_v35 }
0x143e   : > { %10931 = vmatpush1.bf16.msra.mxu0 %v14964_v36 }
0x143f   : > { %10932 = vmatprep.subr.bf16.mxu0 %v14965_v37  ;;  %v14995_v37 = vld [vmem:[%s18522_s11 + $0x3d4] ss:$8 sps:$4 sm:$0xff]  }
0x1442   : > { %10933 = vmatpush1.bf16.msra.mxu0 %v14966_v39  ;;  %v14996_v39 = vld [vmem:[%s18522_s11 + $0x3d0] ss:$8 sps:$4 sm:$0xff]  }
0x1443   : > { %10934 = vmatprep.subr.bf16.mxu0 %v14967_v31 }
0x1446   : > { %10935 = vmatpush1.bf16.msra.mxu0 %v14968_v41  ;;  %v14997_v41 = vld [vmem:[%s18522_s11 + $0x3e4] ss:$8 sps:$4 sm:$0xff]  }
0x1449   : > { %10937 = vmatmul.mubr.bf16.vlgmr.msra.gmra.mrb[120].mxu0 %v17709_v16 }
0x144a   : > { %10946 = vmatprep.mubr.bf16.mxu0 %v17719_v52 }
0x1451   : > { %10947 = vmatmul.mubr.bf16.gmra.mrb[124].mxu0 %v17717_v29 }
0x1452   : > { %11103 = vmatprep.mubr.bf16.mxu0 %v15157_v54 }
0x1494   : > { %v10643_v42 = vpop.f32.mrb[104].mxu0 }
0x1495   : > { %v10645_v44 = vpop.f32.mrb[105].mxu0 }
0x1496   : > { %v10647_v46 = vpop.f32.mrb[106].mxu0 }
0x1497   : > { %v10648_v47 = vpop.f32.mrb[107].mxu0 }
0x1498   : > { %v14998_v47 = vld [vmem:[%s18522_s11 + $0x3e0] ss:$8 sps:$4 sm:$0xff]  }
0x149c   : > { %v10687_v48 = vpop.f32.mrb[108].mxu0 }
0x149d   : > { %v17937_v49 = vadd.f32 %v10687_v48, %v10643_v42  ;;  %v10689_v50 = vpop.f32.mrb[109].mxu0 }
0x149e   : > { %v17939_v3 = vadd.f32 %v10689_v50, %v10645_v44  ;;  %v10691_v0 = vpop.f32.mrb[110].mxu0 }
0x149f   : > { %v10692_v9 = vpop.f32.mrb[111].mxu0  ;;  %v14999_v0 = vld [vmem:[%s18522_s11 + $0x3f4] ss:$8 sps:$4 sm:$0xff]  }
0x14a0   : > { %v15000_v9 = vld [vmem:[%s18522_s11 + $0x3f0] ss:$8 sps:$4 sm:$0xff]  }
0x14dc   : > { %v10728_v11 = vpop.f32.mrb[112].mxu0 }
0x14dd   : > { %v10730_v12 = vpop.f32.mrb[113].mxu0 }
0x14de   : > { %v10732_v14 = vpop.f32.mrb[114].mxu0 }
0x14df   : > { %v10747_v15 = vpack.c.bf16 %v10732_v14, %v10728_v11  ;;  %v10734_v13 = vpop.f32.mrb[115].mxu0 }
0x14e0   : > { %v10748_v17 = vpack.c.bf16 %v10734_v13, %v10730_v12 }
0x14e2   : > { %10756 = vmatprep.subr.bf16.mxu1 %v10748_v17 }
0x14e3   : > { %10757 = vmatpush1.bf16.msra.mxu1 %v10747_v15 }
0x14e4   : > { %v10738_v19 = vpop.f32.mrb[116].mxu0 }
0x14e5   : > { %v10740_v10 = vpop.f32.mrb[117].mxu0 }
0x14e6   : > { %v10742_v20 = vpop.f32.mrb[118].mxu0 }
0x14e7   : > { %v10749_v21 = vpack.c.bf16 %v10742_v20, %v10738_v19  ;;  %v10744_v59 = vpop.f32.mrb[119].mxu0 }
0x14e8   : > { %v10750_v22 = vpack.c.bf16 %v10744_v59, %v10740_v10 }
0x14ea   : > { %10758 = vmatprep.subr.bf16.mxu1 %v10750_v22 }
0x14eb   : > { %10759 = vmatpush1.bf16.msra.mxu1 %v10749_v21 }
0x14ec   : > { %10799 = vmatprep.subr.bf16.mxu1 %v14969_v24 }
0x14ee   : > { %12919 = vmatmul.mubr.msk.bf16.vlgmr.msra.gmra.mrb[232].mxu1 %vm691_vm1, %v12918_v23 }
0x14ef   : > { %10800 = vmatpush1.bf16.msra.mxu1 %v14970_v26  ;;  %10831 = vmatprep.mubr.bf16.mxu1 %v17711_v18 }
0x14f0   : > { %10801 = vmatprep.subr.bf16.mxu1 %v14971_v27 }
0x14f3   : > { %10802 = vmatpush1.bf16.msra.mxu1 %v14972_v28 }
0x14f4   : > { %10803 = vmatprep.subr.bf16.mxu1 %v14973_v45  ;;  %v12922_v45 = vld [vmem:[%s18516_s5 + $0x8] sm:$0x3] }
0x14f7   : > { %10804 = vmatpush1.bf16.msra.mxu1 %v14974_v43  ;;  %v15001_v43 = vld [vmem:[%s18522_s11 + $0x504] ss:$8 sps:$4 sm:$0xff]  }
0x14f8   : > { %10805 = vmatprep.subr.bf16.mxu1 %v14975_v51  ;;  %v15002_v51 = vld [vmem:[%s18522_s11 + $0x500] ss:$8 sps:$4 sm:$0xff]  }
0x14fb   : > { %10806 = vmatpush1.bf16.msra.mxu1 %v14976_v38  ;;  %v15003_v38 = vld [vmem:[%s18522_s11 + $0x514] ss:$8 sps:$4 sm:$0xff]  }
0x14fc   : > { %10807 = vmatprep.subr.bf16.mxu1 %v14977_v6  ;;  %v15004_v6 = vld [vmem:[%s18522_s11 + $0x510] ss:$8 sps:$4 sm:$0xff]  }
0x14ff   : > { %10808 = vmatpush1.bf16.msra.mxu1 %v14978_v56  ;;  %v15005_v56 = vld [vmem:[%s18522_s11 + $0x524] ss:$8 sps:$4 sm:$0xff]  }
0x1500   : > { %10809 = vmatprep.subr.bf16.mxu1 %v14979_v57  ;;  %v15006_v57 = vld [vmem:[%s18522_s11 + $0x520] ss:$8 sps:$4 sm:$0xff]  }
0x1503   : > { %10810 = vmatpush1.bf16.msra.mxu1 %v14980_v62  ;;  %v15007_v62 = vld [vmem:[%s18522_s11 + $0x534] ss:$8 sps:$4 sm:$0xff]  }
0x1504   : > { %10811 = vmatprep.subr.bf16.mxu1 %v14981_v63  ;;  %v15008_v63 = vld [vmem:[%s18522_s11 + $0x530] ss:$8 sps:$4 sm:$0xff]  }
0x1507   : > { %10812 = vmatpush1.bf16.msra.mxu1 %v14982_v53  ;;  %v15009_v53 = vld [vmem:[%s18522_s11 + $0x544] ss:$8 sps:$4 sm:$0xff]  }
0x1508   : > { %10813 = vmatprep.subr.bf16.mxu1 %v14983_v55  ;;  %v15010_v55 = vld [vmem:[%s18522_s11 + $0x540] ss:$8 sps:$4 sm:$0xff]  }
0x150b   : > { %10814 = vmatpush1.bf16.msra.mxu1 %v14984_v7  ;;  %v15011_v7 = vld [vmem:[%s18522_s11 + $0x554] ss:$8 sps:$4 sm:$0xff]  }
0x150c   : > { %10815 = vmatprep.subr.bf16.mxu1 %v14985_v61  ;;  %v15012_v61 = vld [vmem:[%s18522_s11 + $0x550] ss:$8 sps:$4 sm:$0xff]  }
0x150f   : > { %10816 = vmatpush1.bf16.msra.mxu1 %v14986_v1  ;;  %v15013_v1 = vld [vmem:[%s18522_s11 + $0x564] ss:$8 sps:$4 sm:$0xff]  }
0x1510   : > { %10817 = vmatprep.subr.bf16.mxu1 %v14987_v2  ;;  %v15014_v2 = vld [vmem:[%s18522_s11 + $0x560] ss:$8 sps:$4 sm:$0xff]  }
0x1513   : > { %10818 = vmatpush1.bf16.msra.mxu1 %v14988_v8  ;;  %v15015_v8 = vld [vmem:[%s18522_s11 + $0x574] ss:$8 sps:$4 sm:$0xff]  }
0x1514   : > { %10819 = vmatprep.subr.bf16.mxu1 %v14989_v40  ;;  %v15016_v40 = vld [vmem:[%s18522_s11 + $0x570] ss:$8 sps:$4 sm:$0xff]  }
0x1517   : > { %10820 = vmatpush1.bf16.msra.mxu1 %v14990_v25  ;;  %v15017_v25 = vld [vmem:[%s18522_s11 + $0x584] ss:$8 sps:$4 sm:$0xff]  }
0x1518   : > { %10821 = vmatprep.subr.bf16.mxu1 %v14991_v4  ;;  %v15018_v4 = vld [vmem:[%s18522_s11 + $0x580] ss:$8 sps:$4 sm:$0xff]  }
0x151b   : > { %10822 = vmatpush1.bf16.msra.mxu1 %v14992_v58  ;;  %v15019_v58 = vld [vmem:[%s18522_s11 + $0x594] ss:$8 sps:$4 sm:$0xff]  }
0x151c   : > { %v10938_v60 = vpop.f32.mrb[120].mxu0  ;;  %10823 = vmatprep.subr.bf16.mxu1 %v14993_v5  ;;  %v15021_v5 = vld [vmem:[%s18522_s11 + $0x5a4] ss:$8 sps:$4 sm:$0xff]  }
0x151d   : > { %v10940_v30 = vpop.f32.mrb[121].mxu0 }
0x151e   : > { %v10942_v32 = vpop.f32.mrb[122].mxu0 }
0x151f   : > { %v10957_v33 = vpack.c.bf16 %v10942_v32, %v10938_v60  ;;  %10824 = vmatpush1.bf16.msra.mxu1 %v14994_v34  ;;  %v10944_v35 = vpop.f32.mrb[123].mxu0  ;;  %v15020_v60 = vld [vmem:[%s18522_s11 + $0x590] ss:$8 sps:$4 sm:$0xff]   ;;  %v15023_v32 = vld [vmem:[%s18522_s11 + $0x5b4] ss:$8 sps:$4 sm:$0xff]  }
0x1520   : > { %v10958_v36 = vpack.c.bf16 %v10944_v35, %v10940_v30  ;;  %10825 = vmatprep.subr.bf16.mxu1 %v14995_v37  ;;  %v15022_v30 = vld [vmem:[%s18522_s11 + $0x5a0] ss:$8 sps:$4 sm:$0xff]   ;;  %v15025_v34 = vld [vmem:[%s18522_s11 + $0x5c4] ss:$8 sps:$4 sm:$0xff]   ;;  %v15028_v37 = vld [vmem:[%s18522_s11 + $0x5d0] ss:$8 sps:$4 sm:$0xff]  }
0x1521   : > { %v15026_v35 = vld [vmem:[%s18522_s11 + $0x5c0] ss:$8 sps:$4 sm:$0xff]  }
0x1523   : > { %10826 = vmatpush1.bf16.msra.mxu1 %v14996_v39  ;;  %v15029_v39 = vld [vmem:[%s18522_s11 + $0x5e4] ss:$8 sps:$4 sm:$0xff]  }
0x1524   : > { %v10948_v31 = vpop.f32.mrb[124].mxu0  ;;  %10827 = vmatprep.subr.bf16.mxu1 %v14997_v41  ;;  %v15031_v41 = vld [vmem:[%s18522_s11 + $0x5f4] ss:$8 sps:$4 sm:$0xff]  }
0x1525   : > { %v10950_v42 = vpop.f32.mrb[125].mxu0 }
0x1526   : > { %v10952_v44 = vpop.f32.mrb[126].mxu0 }
0x1527   : > { %v10959_v46 = vpack.c.bf16 %v10952_v44, %v10948_v31  ;;  %10828 = vmatpush1.bf16.msra.mxu1 %v14998_v47  ;;  %v10954_v48 = vpop.f32.mrb[127].mxu0  ;;  %v15030_v31 = vld [vmem:[%s18522_s11 + $0x5e0] ss:$8 sps:$4 sm:$0xff]  }
0x1528   : > { %v10960_v50 = vpack.c.bf16 %v10954_v48, %v10950_v42  ;;  %10829 = vmatprep.subr.bf16.mxu1 %v14999_v0  ;;  %v15032_v42 = vld [vmem:[%s18522_s11 + $0x5f0] ss:$8 sps:$4 sm:$0xff]  }
0x152b   : > { %10830 = vmatpush1.bf16.msra.mxu1 %v15000_v9 }
0x152e   : > { %10832 = vmatmul.mubr.bf16.vlgmr.msra.gmra.mrb[236].mxu1 %v17709_v16 }
0x152f   : > { %10841 = vmatprep.mubr.bf16.mxu1 %v17719_v52 }
0x1536   : > { %10842 = vmatmul.mubr.bf16.gmra.mrb[240].mxu1 %v17717_v29 }
0x1537   : > { %10893 = vmatprep.mubr.bf16.mxu1 %v15157_v54 }
0x15c1   : > { %v10790_v11 = vpop.f32.mrb[232].mxu1 }
0x15c2   : > { %v18047_v12 = vadd.f32 %v10790_v11, %v17937_v49  ;;  %v10792_v14 = vpop.f32.mrb[233].mxu1 }
0x15c3   : > { %v18050_v15 = vadd.f32 %v10792_v14, %v17939_v3  ;;  %v10794_v13 = vpop.f32.mrb[234].mxu1  ;;  %v12920_v3 = vld [vmem:[%s18516_s5 + $0x6] sm:$0x3] }
0x15c4   : > { %v10795_v17 = vpop.f32.mrb[235].mxu1 }
0x1601   : > { %v10833_v19 = vpop.f32.mrb[236].mxu1 }
0x1602   : > { %v10835_v10 = vpop.f32.mrb[237].mxu1 }
0x1603   : > { %v10837_v20 = vpop.f32.mrb[238].mxu1 }
0x1604   : > { %v10852_v21 = vpack.c.bf16 %v10837_v20, %v10833_v19  ;;  %v10839_v59 = vpop.f32.mrb[239].mxu1 }
0x1605   : > { %v10853_v22 = vpack.c.bf16 %v10839_v59, %v10835_v10 }
0x1607   : > { %10861 = vmatprep.subr.bf16.mxu1 %v10853_v22 }
0x1608   : > { %10862 = vmatpush1.bf16.msra.mxu1 %v10852_v21 }
0x1609   : > { %v10843_v23 = vpop.f32.mrb[240].mxu1 }
0x160a   : > { %v10845_v24 = vpop.f32.mrb[241].mxu1 }
0x160b   : > { %v10847_v26 = vpop.f32.mrb[242].mxu1 }
0x160c   : > { %v10854_v27 = vpack.c.bf16 %v10847_v26, %v10843_v23  ;;  %v10849_v49 = vpop.f32.mrb[243].mxu1 }
0x160d   : > { %v10855_v28 = vpack.c.bf16 %v10849_v49, %v10845_v24 }
0x160f   : > { %10863 = vmatprep.subr.bf16.mxu1 %v10855_v28  ;;  %v12924_v28 = vld [vmem:[%s18516_s5 + $0xa] sm:$0x3] }
0x1610   : > { %10864 = vmatpush1.bf16.msra.mxu1 %v10854_v27 }
0x1611   : > { %10966 = vmatprep.subr.bf16.mxu1 %v10958_v36  ;;  %v15027_v36 = vld [vmem:[%s18522_s11 + $0x5d4] ss:$8 sps:$4 sm:$0xff]  }
0x1613   : > { %12921 = vmatmul.mubr.msk.bf16.vlgmr.msra.gmra.mrb[244].mxu1 %vm691_vm1, %v12920_v3  ;;  %v15033_v3 = vld [vmem:[%s18522_s11 + $0x604] ss:$8 sps:$4 sm:$0xff]  }
0x1614   : > { %10967 = vmatpush1.bf16.msra.mxu1 %v10957_v33  ;;  %10998 = vmatprep.mubr.bf16.mxu1 %v15157_v54  ;;  %v15024_v33 = vld [vmem:[%s18522_s11 + $0x5b0] ss:$8 sps:$4 sm:$0xff]  }
0x1615   : > { %10968 = vmatprep.subr.bf16.mxu1 %v10960_v50 }
0x1618   : > { %10969 = vmatpush1.bf16.msra.mxu1 %v10959_v46 }
0x1619   : > { %11009 = vmatprep.subr.bf16.mxu1 %v15001_v43  ;;  %v15035_v43 = vld [vmem:[%s18522_s11 + $0x614] ss:$8 sps:$4 sm:$0xff]  }
0x161b   : > { %12923 = vmatmul.mubr.msk.bf16.vlgmr.msra.gmra.mrb[248].mxu1 %vm691_vm1, %v12922_v45  ;;  %v15034_v45 = vld [vmem:[%s18522_s11 + $0x600] ss:$8 sps:$4 sm:$0xff]  }
0x161c   : > { %11010 = vmatpush1.bf16.msra.mxu1 %v15002_v51  ;;  %11041 = vmatprep.mubr.bf16.mxu1 %v17711_v18  ;;  %v15036_v51 = vld [vmem:[%s18522_s11 + $0x610] ss:$8 sps:$4 sm:$0xff]  }
0x161d   : > { %11011 = vmatprep.subr.bf16.mxu1 %v15003_v38  ;;  %v15037_v38 = vld [vmem:[%s18522_s11 + $0x624] ss:$8 sps:$4 sm:$0xff]  }
0x1620   : > { %11012 = vmatpush1.bf16.msra.mxu1 %v15004_v6  ;;  %v15038_v6 = vld [vmem:[%s18522_s11 + $0x620] ss:$8 sps:$4 sm:$0xff]  }
0x1621   : > { %11013 = vmatprep.subr.bf16.mxu1 %v15005_v56  ;;  %v15039_v56 = vld [vmem:[%s18522_s11 + $0x634] ss:$8 sps:$4 sm:$0xff]  }
0x1624   : > { %11014 = vmatpush1.bf16.msra.mxu1 %v15006_v57  ;;  %v15040_v57 = vld [vmem:[%s18522_s11 + $0x630] ss:$8 sps:$4 sm:$0xff]  }
0x1625   : > { %11015 = vmatprep.subr.bf16.mxu1 %v15007_v62  ;;  %v15041_v62 = vld [vmem:[%s18522_s11 + $0x644] ss:$8 sps:$4 sm:$0xff]  }
0x1628   : > { %11016 = vmatpush1.bf16.msra.mxu1 %v15008_v63  ;;  %v15042_v63 = vld [vmem:[%s18522_s11 + $0x640] ss:$8 sps:$4 sm:$0xff]  }
0x1629   : > { %11017 = vmatprep.subr.bf16.mxu1 %v15009_v53  ;;  %v15043_v53 = vld [vmem:[%s18522_s11 + $0x654] ss:$8 sps:$4 sm:$0xff]  }
0x162c   : > { %11018 = vmatpush1.bf16.msra.mxu1 %v15010_v55  ;;  %v15044_v55 = vld [vmem:[%s18522_s11 + $0x650] ss:$8 sps:$4 sm:$0xff]  }
0x162d   : > { %11019 = vmatprep.subr.bf16.mxu1 %v15011_v7  ;;  %v15045_v7 = vld [vmem:[%s18522_s11 + $0x664] ss:$8 sps:$4 sm:$0xff]  }
0x1630   : > { %11020 = vmatpush1.bf16.msra.mxu1 %v15012_v61  ;;  %v15046_v61 = vld [vmem:[%s18522_s11 + $0x660] ss:$8 sps:$4 sm:$0xff]  }
0x1631   : > { %11021 = vmatprep.subr.bf16.mxu1 %v15013_v1  ;;  %v15047_v1 = vld [vmem:[%s18522_s11 + $0x674] ss:$8 sps:$4 sm:$0xff]  }
0x1634   : > { %11022 = vmatpush1.bf16.msra.mxu1 %v15014_v2  ;;  %v15048_v2 = vld [vmem:[%s18522_s11 + $0x670] ss:$8 sps:$4 sm:$0xff]  }
0x1635   : > { %11023 = vmatprep.subr.bf16.mxu1 %v15015_v8  ;;  %v15049_v8 = vld [vmem:[%s18522_s11 + $0x684] ss:$8 sps:$4 sm:$0xff]  }
0x1638   : > { %11024 = vmatpush1.bf16.msra.mxu1 %v15016_v40  ;;  %v15050_v40 = vld [vmem:[%s18522_s11 + $0x680] ss:$8 sps:$4 sm:$0xff]  }
0x1639   : > { %11025 = vmatprep.subr.bf16.mxu1 %v15017_v25  ;;  %v15051_v25 = vld [vmem:[%s18522_s11 + $0x694] ss:$8 sps:$4 sm:$0xff]  }
0x163c   : > { %11026 = vmatpush1.bf16.msra.mxu1 %v15018_v4  ;;  %v15052_v4 = vld [vmem:[%s18522_s11 + $0x690] ss:$8 sps:$4 sm:$0xff]  }
0x163d   : > { %11027 = vmatprep.subr.bf16.mxu1 %v15019_v58  ;;  %v15053_v58 = vld [vmem:[%s18522_s11 + $0x6a4] ss:$8 sps:$4 sm:$0xff]  }
0x1640   : > { %11028 = vmatpush1.bf16.msra.mxu1 %v15020_v60  ;;  %v15054_v60 = vld [vmem:[%s18522_s11 + $0x6a0] ss:$8 sps:$4 sm:$0xff]  }
0x1641   : > { %11029 = vmatprep.subr.bf16.mxu1 %v15021_v5  ;;  %v15055_v5 = vld [vmem:[%s18522_s11 + $0x6b4] ss:$8 sps:$4 sm:$0xff]  }
0x1644   : > { %11030 = vmatpush1.bf16.msra.mxu1 %v15022_v30  ;;  %v15056_v30 = vld [vmem:[%s18522_s11 + $0x6b0] ss:$8 sps:$4 sm:$0xff]  }
0x1645   : > { %11031 = vmatprep.subr.bf16.mxu1 %v15023_v32  ;;  %v15057_v32 = vld [vmem:[%s18522_s11 + $0x6c4] ss:$8 sps:$4 sm:$0xff]  }
0x1648   : > { %11032 = vmatpush1.bf16.msra.mxu1 %v15024_v33  ;;  %v15058_v33 = vld [vmem:[%s18522_s11 + $0x6c0] ss:$8 sps:$4 sm:$0xff]  }
0x1649   : > { %11033 = vmatprep.subr.bf16.mxu1 %v15025_v34  ;;  %v15059_v34 = vld [vmem:[%s18522_s11 + $0x6d4] ss:$8 sps:$4 sm:$0xff]  }
0x164c   : > { %11034 = vmatpush1.bf16.msra.mxu1 %v15026_v35  ;;  %v15060_v35 = vld [vmem:[%s18522_s11 + $0x6d0] ss:$8 sps:$4 sm:$0xff]  }
0x164d   : > { %11035 = vmatprep.subr.bf16.mxu1 %v15027_v36  ;;  %v15061_v36 = vld [vmem:[%s18522_s11 + $0x6e4] ss:$8 sps:$4 sm:$0xff]  }
0x1650   : > { %11036 = vmatpush1.bf16.msra.mxu1 %v15028_v37  ;;  %v15062_v37 = vld [vmem:[%s18522_s11 + $0x6e0] ss:$8 sps:$4 sm:$0xff]  }
0x1651   : > { %11037 = vmatprep.subr.bf16.mxu1 %v15029_v39  ;;  %v15063_v39 = vld [vmem:[%s18522_s11 + $0x6f4] ss:$8 sps:$4 sm:$0xff]  }
0x1654   : > { %11038 = vmatpush1.bf16.msra.mxu1 %v15030_v31  ;;  %v15064_v31 = vld [vmem:[%s18522_s11 + $0x6f0] ss:$8 sps:$4 sm:$0xff]  }
0x1655   : > { %11039 = vmatprep.subr.bf16.mxu1 %v15031_v41 }
0x1658   : > { %11040 = vmatpush1.bf16.msra.mxu1 %v15032_v42 }
0x165b   : > { %11042 = vmatmul.mubr.bf16.vlgmr.msra.gmra.mrb[252].mxu1 %v17709_v16 }
0x165c   : > { %11051 = vmatprep.mubr.bf16.mxu1 %v17719_v52 }
0x1663   : > { %11052 = vmatmul.mubr.bf16.gmra.mrb[0].mxu1 %v17717_v29 }
0x1664   : > { %11208 = vmatprep.mubr.bf16.mxu1 %v15157_v54 }
0x16e6   : > { %v10895_v44 = vpop.f32.mrb[244].mxu1 }
0x16e7   : > { %v10902_v46 = vadd.f32 %v10895_v44, %v18047_v12  ;;  %v10897_v47 = vpop.f32.mrb[245].mxu1 }
0x16e8   : > { %v10903_v48 = vadd.f32 %v10897_v47, %v18050_v15  ;;  %v10899_v50 = vpop.f32.mrb[246].mxu1 }
0x16e9   : > { %v10900_v0 = vpop.f32.mrb[247].mxu1 }
0x16ee   : > { %v11000_v9 = vpop.f32.mrb[248].mxu1 }
0x16ef   : > { %v18164_v11 = vadd.f32 %v11000_v9, %v10902_v46  ;;  %v11002_v14 = vpop.f32.mrb[249].mxu1 }
0x16f0   : > { %v18166_v13 = vadd.f32 %v11002_v14, %v10903_v48  ;;  %v11004_v17 = vpop.f32.mrb[250].mxu1 }
0x16f1   : > { %v11005_v19 = vpop.f32.mrb[251].mxu1 }
0x172e   : > { %v11043_v10 = vpop.f32.mrb[252].mxu1 }
0x172f   : > { %v11045_v20 = vpop.f32.mrb[253].mxu1 }
0x1730   : > { %v11047_v21 = vpop.f32.mrb[254].mxu1 }
0x1731   : > { %v11062_v59 = vpack.c.bf16 %v11047_v21, %v11043_v10  ;;  %v11049_v22 = vpop.f32.mrb[255].mxu1 }
0x1732   : > { %v11063_v23 = vpack.c.bf16 %v11049_v22, %v11045_v20 }
0x1734   : > { %11071 = vmatprep.subr.bf16.mxu0 %v11063_v23  ;;  %v15065_v23 = vld [vmem:[%s18522_s11 + $0x704] ss:$8 sps:$4 sm:$0xff]  }
0x1735   : > { %11072 = vmatpush1.bf16.msra.mxu0 %v11062_v59 }
0x1736   : > { %v11053_v12 = vpop.f32.mrb[0].mxu1 }
0x1737   : > { %v11055_v15 = vpop.f32.mrb[1].mxu1 }
0x1738   : > { %v11057_v24 = vpop.f32.mrb[2].mxu1 }
0x1739   : > { %v11064_v26 = vpack.c.bf16 %v11057_v24, %v11053_v12  ;;  %v11059_v27 = vpop.f32.mrb[3].mxu1  ;;  %v15066_v12 = vld [vmem:[%s18522_s11 + $0x700] ss:$8 sps:$4 sm:$0xff]   ;;  %v15068_v24 = vld [vmem:[%s18522_s11 + $0x710] ss:$8 sps:$4 sm:$0xff]  }
0x173a   : > { %v11065_v49 = vpack.c.bf16 %v11059_v27, %v11055_v15  ;;  %v15067_v15 = vld [vmem:[%s18522_s11 + $0x714] ss:$8 sps:$4 sm:$0xff]   ;;  %v15070_v27 = vld [vmem:[%s18522_s11 + $0x720] ss:$8 sps:$4 sm:$0xff]  }
0x173c   : > { %11073 = vmatprep.subr.bf16.mxu0 %v11065_v49  ;;  %v15071_v49 = vld [vmem:[%s18522_s11 + $0x734] ss:$8 sps:$4 sm:$0xff]  }
0x173d   : > { %11074 = vmatpush1.bf16.msra.mxu0 %v11064_v26  ;;  %v15069_v26 = vld [vmem:[%s18522_s11 + $0x724] ss:$8 sps:$4 sm:$0xff]  }
0x173e   : > { %11114 = vmatprep.subr.bf16.mxu0 %v15033_v3  ;;  %v15073_v3 = vld [vmem:[%s18522_s11 + $0x744] ss:$8 sps:$4 sm:$0xff]  }
0x1740   : > { %12925 = vmatmul.mubr.msk.bf16.vlgmr.msra.gmra.mrb[128].mxu0 %vm691_vm1, %v12924_v28  ;;  %v15072_v28 = vld [vmem:[%s18522_s11 + $0x730] ss:$8 sps:$4 sm:$0xff]  }
0x1741   : > { %11115 = vmatpush1.bf16.msra.mxu0 %v15034_v45  ;;  %11146 = vmatprep.mubr.bf16.mxu0 %v17711_v18  ;;  %v15074_v45 = vld [vmem:[%s18522_s11 + $0x740] ss:$8 sps:$4 sm:$0xff]  }
0x1742   : > { %11116 = vmatprep.subr.bf16.mxu0 %v15035_v43  ;;  %v15075_v43 = vld [vmem:[%s18522_s11 + $0x754] ss:$8 sps:$4 sm:$0xff]  }
0x1745   : > { %11117 = vmatpush1.bf16.msra.mxu0 %v15036_v51  ;;  %v15076_v51 = vld [vmem:[%s18522_s11 + $0x750] ss:$8 sps:$4 sm:$0xff]  }
0x1746   : > { %11118 = vmatprep.subr.bf16.mxu0 %v15037_v38  ;;  %v15077_v38 = vld [vmem:[%s18522_s11 + $0x764] ss:$8 sps:$4 sm:$0xff]  }
0x1749   : > { %11119 = vmatpush1.bf16.msra.mxu0 %v15038_v6  ;;  %v15078_v6 = vld [vmem:[%s18522_s11 + $0x760] ss:$8 sps:$4 sm:$0xff]  }
0x174a   : > { %11120 = vmatprep.subr.bf16.mxu0 %v15039_v56  ;;  %v15079_v56 = vld [vmem:[%s18522_s11 + $0x774] ss:$8 sps:$4 sm:$0xff]  }
0x174d   : > { %11121 = vmatpush1.bf16.msra.mxu0 %v15040_v57  ;;  %v15080_v57 = vld [vmem:[%s18522_s11 + $0x770] ss:$8 sps:$4 sm:$0xff]  }
0x174e   : > { %11122 = vmatprep.subr.bf16.mxu0 %v15041_v62  ;;  %v15081_v62 = vld [vmem:[%s18522_s11 + $0x784] ss:$8 sps:$4 sm:$0xff]  }
0x1751   : > { %11123 = vmatpush1.bf16.msra.mxu0 %v15042_v63  ;;  %v15082_v63 = vld [vmem:[%s18522_s11 + $0x780] ss:$8 sps:$4 sm:$0xff]  }
0x1752   : > { %11124 = vmatprep.subr.bf16.mxu0 %v15043_v53  ;;  %v15083_v53 = vld [vmem:[%s18522_s11 + $0x794] ss:$8 sps:$4 sm:$0xff]  }
0x1755   : > { %11125 = vmatpush1.bf16.msra.mxu0 %v15044_v55  ;;  %v15084_v55 = vld [vmem:[%s18522_s11 + $0x790] ss:$8 sps:$4 sm:$0xff]  }
0x1756   : > { %11126 = vmatprep.subr.bf16.mxu0 %v15045_v7  ;;  %v15085_v7 = vld [vmem:[%s18522_s11 + $0x7a4] ss:$8 sps:$4 sm:$0xff]  }
0x1759   : > { %11127 = vmatpush1.bf16.msra.mxu0 %v15046_v61  ;;  %v15086_v61 = vld [vmem:[%s18522_s11 + $0x7a0] ss:$8 sps:$4 sm:$0xff]  }
0x175a   : > { %11128 = vmatprep.subr.bf16.mxu0 %v15047_v1  ;;  %v15087_v1 = vld [vmem:[%s18522_s11 + $0x7b4] ss:$8 sps:$4 sm:$0xff]  }
0x175d   : > { %11129 = vmatpush1.bf16.msra.mxu0 %v15048_v2  ;;  %v15088_v2 = vld [vmem:[%s18522_s11 + $0x7b0] ss:$8 sps:$4 sm:$0xff]  }
0x175e   : > { %11130 = vmatprep.subr.bf16.mxu0 %v15049_v8  ;;  %v15089_v8 = vld [vmem:[%s18522_s11 + $0x7c4] ss:$8 sps:$4 sm:$0xff]  }
0x1761   : > { %11131 = vmatpush1.bf16.msra.mxu0 %v15050_v40  ;;  %v15090_v40 = vld [vmem:[%s18522_s11 + $0x7c0] ss:$8 sps:$4 sm:$0xff]  }
0x1762   : > { %11132 = vmatprep.subr.bf16.mxu0 %v15051_v25  ;;  %v15091_v25 = vld [vmem:[%s18522_s11 + $0x7d4] ss:$8 sps:$4 sm:$0xff]  }
0x1765   : > { %11133 = vmatpush1.bf16.msra.mxu0 %v15052_v4  ;;  %v15092_v4 = vld [vmem:[%s18522_s11 + $0x7d0] ss:$8 sps:$4 sm:$0xff]  }
0x1766   : > { %11134 = vmatprep.subr.bf16.mxu0 %v15053_v58  ;;  %v15093_v58 = vld [vmem:[%s18522_s11 + $0x7e4] ss:$8 sps:$4 sm:$0xff]  }
0x1769   : > { %11135 = vmatpush1.bf16.msra.mxu0 %v15054_v60  ;;  %v15094_v60 = vld [vmem:[%s18522_s11 + $0x7e0] ss:$8 sps:$4 sm:$0xff]  }
0x176a   : > { %11136 = vmatprep.subr.bf16.mxu0 %v15055_v5  ;;  %v15095_v5 = vld [vmem:[%s18522_s11 + $0x7f4] ss:$8 sps:$4 sm:$0xff]  }
0x176d   : > { %11137 = vmatpush1.bf16.msra.mxu0 %v15056_v30  ;;  %v15096_v30 = vld [vmem:[%s18522_s11 + $0x7f0] ss:$8 sps:$4 sm:$0xff]  }
0x176e   : > { %11138 = vmatprep.subr.bf16.mxu0 %v15057_v32 }
0x1771   : > { %11139 = vmatpush1.bf16.msra.mxu0 %v15058_v33 }
0x1772   : > { %11140 = vmatprep.subr.bf16.mxu0 %v15059_v34 }
0x1775   : > { %11141 = vmatpush1.bf16.msra.mxu0 %v15060_v35 }
0x1776   : > { %11142 = vmatprep.subr.bf16.mxu0 %v15061_v36 }
0x1779   : > { %11143 = vmatpush1.bf16.msra.mxu0 %v15062_v37 }
0x177a   : > { %11144 = vmatprep.subr.bf16.mxu0 %v15063_v39 }
0x177d   : > { %11145 = vmatpush1.bf16.msra.mxu0 %v15064_v31 }
0x1780   : > { %11147 = vmatmul.mubr.bf16.vlgmr.msra.gmra.mrb[132].mxu0 %v17709_v16 }
0x1781   : > { %11156 = vmatprep.mubr.bf16.mxu0 %v17719_v52 }
0x1788   : > { %11157 = vmatmul.mubr.bf16.gmra.mrb[136].mxu0 %v17717_v29 }
0x1789   : > { %11313 = vmatprep.mubr.bf16.mxu0 %v15157_v54 }
0x1813   : > { %v11105_v41 = vpop.f32.mrb[128].mxu0 }
0x1814   : > { %v18274_v42 = vadd.f32 %v11105_v41, %v18164_v11  ;;  %v11107_v44 = vpop.f32.mrb[129].mxu0 }
0x1815   : > { %v18277_v46 = vadd.f32 %v11107_v44, %v18166_v13  ;;  %v11109_v47 = vpop.f32.mrb[130].mxu0  ;;  %v12926_v13 = vld [vmem:[%s18516_s5 + $0xc] sm:$0x3] }
0x1816   : > { %v11110_v48 = vpop.f32.mrb[131].mxu0 }
0x1853   : > { %v11148_v50 = vpop.f32.mrb[132].mxu0 }
0x1854   : > { %v11150_v0 = vpop.f32.mrb[133].mxu0 }
0x1855   : > { %v11152_v9 = vpop.f32.mrb[134].mxu0 }
0x1856   : > { %v11167_v14 = vpack.c.bf16 %v11152_v9, %v11148_v50  ;;  %v11154_v17 = vpop.f32.mrb[135].mxu0 }
0x1857   : > { %v11168_v19 = vpack.c.bf16 %v11154_v17, %v11150_v0  ;;  %v15097_v17 = vld [vmem:[%s18522_s11 + $0x804] ss:$8 sps:$4 sm:$0xff]  }
0x1859   : > { %11176 = vmatprep.subr.bf16.mxu1 %v11168_v19  ;;  %v15098_v19 = vld [vmem:[%s18522_s11 + $0x800] ss:$8 sps:$4 sm:$0xff]  }
0x185a   : > { %11177 = vmatpush1.bf16.msra.mxu1 %v11167_v14 }
0x185b   : > { %v11158_v10 = vpop.f32.mrb[136].mxu0 }
0x185c   : > { %v11160_v20 = vpop.f32.mrb[137].mxu0 }
0x185d   : > { %v11162_v21 = vpop.f32.mrb[138].mxu0 }
0x185e   : > { %v11169_v59 = vpack.c.bf16 %v11162_v21, %v11158_v10  ;;  %v11164_v11 = vpop.f32.mrb[139].mxu0  ;;  %v15099_v10 = vld [vmem:[%s18522_s11 + $0x814] ss:$8 sps:$4 sm:$0xff]   ;;  %v15101_v21 = vld [vmem:[%s18522_s11 + $0x824] ss:$8 sps:$4 sm:$0xff]  }
0x185f   : > { %v11170_v22 = vpack.c.bf16 %v11164_v11, %v11160_v20  ;;  %v15100_v20 = vld [vmem:[%s18522_s11 + $0x810] ss:$8 sps:$4 sm:$0xff]  }
0x1860   : > { %v15104_v11 = vld [vmem:[%s18522_s11 + $0x830] ss:$8 sps:$4 sm:$0xff]  }
0x1861   : > { %11178 = vmatprep.subr.bf16.mxu1 %v11170_v22  ;;  %v15105_v22 = vld [vmem:[%s18522_s11 + $0x844] ss:$8 sps:$4 sm:$0xff]  }
0x1862   : > { %11179 = vmatpush1.bf16.msra.mxu1 %v11169_v59  ;;  %v15102_v59 = vld [vmem:[%s18522_s11 + $0x820] ss:$8 sps:$4 sm:$0xff]  }
0x1863   : > { %11219 = vmatprep.subr.bf16.mxu1 %v15065_v23  ;;  %v15107_v23 = vld [vmem:[%s18522_s11 + $0x854] ss:$8 sps:$4 sm:$0xff]  }
0x1865   : > { %12927 = vmatmul.mubr.msk.bf16.vlgmr.msra.gmra.mrb[4].mxu1 %vm691_vm1, %v12926_v13  ;;  %v15106_v13 = vld [vmem:[%s18522_s11 + $0x840] ss:$8 sps:$4 sm:$0xff]  }
0x1866   : > { %11220 = vmatpush1.bf16.msra.mxu1 %v15066_v12  ;;  %11251 = vmatprep.mubr.bf16.mxu1 %v17711_v18  ;;  %v15108_v12 = vld [vmem:[%s18522_s11 + $0x850] ss:$8 sps:$4 sm:$0xff]  }
0x1867   : > { %11221 = vmatprep.subr.bf16.mxu1 %v15067_v15  ;;  %v15109_v15 = vld [vmem:[%s18522_s11 + $0x864] ss:$8 sps:$4 sm:$0xff]  }
0x186a   : > { %11222 = vmatpush1.bf16.msra.mxu1 %v15068_v24  ;;  %v15110_v24 = vld [vmem:[%s18522_s11 + $0x860] ss:$8 sps:$4 sm:$0xff]  }
0x186b   : > { %11223 = vmatprep.subr.bf16.mxu1 %v15069_v26  ;;  %v15111_v26 = vld [vmem:[%s18522_s11 + $0x874] ss:$8 sps:$4 sm:$0xff]  }
0x186e   : > { %11224 = vmatpush1.bf16.msra.mxu1 %v15070_v27  ;;  %v15112_v27 = vld [vmem:[%s18522_s11 + $0x870] ss:$8 sps:$4 sm:$0xff]  }
0x186f   : > { %11225 = vmatprep.subr.bf16.mxu1 %v15071_v49  ;;  %v15113_v49 = vld [vmem:[%s18522_s11 + $0x884] ss:$8 sps:$4 sm:$0xff]  }
0x1872   : > { %11226 = vmatpush1.bf16.msra.mxu1 %v15072_v28  ;;  %v15114_v28 = vld [vmem:[%s18522_s11 + $0x880] ss:$8 sps:$4 sm:$0xff]  }
0x1873   : > { %11227 = vmatprep.subr.bf16.mxu1 %v15073_v3  ;;  %v15115_v3 = vld [vmem:[%s18522_s11 + $0x894] ss:$8 sps:$4 sm:$0xff]  }
0x1876   : > { %11228 = vmatpush1.bf16.msra.mxu1 %v15074_v45  ;;  %v15116_v45 = vld [vmem:[%s18522_s11 + $0x890] ss:$8 sps:$4 sm:$0xff]  }
0x1877   : > { %11229 = vmatprep.subr.bf16.mxu1 %v15075_v43  ;;  %v15117_v43 = vld [vmem:[%s18522_s11 + $0x8a4] ss:$8 sps:$4 sm:$0xff]  }
0x187a   : > { %11230 = vmatpush1.bf16.msra.mxu1 %v15076_v51  ;;  %v15118_v51 = vld [vmem:[%s18522_s11 + $0x8a0] ss:$8 sps:$4 sm:$0xff]  }
0x187b   : > { %11231 = vmatprep.subr.bf16.mxu1 %v15077_v38  ;;  %v15119_v38 = vld [vmem:[%s18522_s11 + $0x8b4] ss:$8 sps:$4 sm:$0xff]  }
0x187e   : > { %11232 = vmatpush1.bf16.msra.mxu1 %v15078_v6  ;;  %v15120_v6 = vld [vmem:[%s18522_s11 + $0x8b0] ss:$8 sps:$4 sm:$0xff]  }
0x187f   : > { %11233 = vmatprep.subr.bf16.mxu1 %v15079_v56  ;;  %v15121_v56 = vld [vmem:[%s18522_s11 + $0x8c4] ss:$8 sps:$4 sm:$0xff]  }
0x1882   : > { %11234 = vmatpush1.bf16.msra.mxu1 %v15080_v57  ;;  %v15122_v57 = vld [vmem:[%s18522_s11 + $0x8c0] ss:$8 sps:$4 sm:$0xff]  }
0x1883   : > { %11235 = vmatprep.subr.bf16.mxu1 %v15081_v62  ;;  %v15123_v62 = vld [vmem:[%s18522_s11 + $0x8d4] ss:$8 sps:$4 sm:$0xff]  }
0x1886   : > { %11236 = vmatpush1.bf16.msra.mxu1 %v15082_v63  ;;  %v15124_v63 = vld [vmem:[%s18522_s11 + $0x8d0] ss:$8 sps:$4 sm:$0xff]  }
0x1887   : > { %11237 = vmatprep.subr.bf16.mxu1 %v15083_v53  ;;  %v15125_v53 = vld [vmem:[%s18522_s11 + $0x8e4] ss:$8 sps:$4 sm:$0xff]  }
0x188a   : > { %11238 = vmatpush1.bf16.msra.mxu1 %v15084_v55  ;;  %v15126_v55 = vld [vmem:[%s18522_s11 + $0x8e0] ss:$8 sps:$4 sm:$0xff]  }
0x188b   : > { %11239 = vmatprep.subr.bf16.mxu1 %v15085_v7  ;;  %v15127_v7 = vld [vmem:[%s18522_s11 + $0x8f4] ss:$8 sps:$4 sm:$0xff]  }
0x188e   : > { %11240 = vmatpush1.bf16.msra.mxu1 %v15086_v61  ;;  %v15128_v61 = vld [vmem:[%s18522_s11 + $0x8f0] ss:$8 sps:$4 sm:$0xff]  }
0x188f   : > { %11241 = vmatprep.subr.bf16.mxu1 %v15087_v1  ;;  %v10484_v1 = vld [vmem:[%s18517_s6] sm:$0x7] }
0x1890   : > { %11431 = vperm.xlu1 %14065, %v10484_v1  }
0x1892   : > { %11242 = vmatpush1.bf16.msra.mxu1 %v15088_v2 }
0x1893   : > { %11243 = vmatprep.subr.bf16.mxu1 %v15089_v8 }
0x1896   : > { %11244 = vmatpush1.bf16.msra.mxu1 %v15090_v40 }
0x1897   : > { %11245 = vmatprep.subr.bf16.mxu1 %v15091_v25 }
0x189a   : > { %11246 = vmatpush1.bf16.msra.mxu1 %v15092_v4 }
0x189b   : > { %11247 = vmatprep.subr.bf16.mxu1 %v15093_v58 }
0x189e   : > { %11248 = vmatpush1.bf16.msra.mxu1 %v15094_v60 }
0x189f   : > { %11249 = vmatprep.subr.bf16.mxu1 %v15095_v5 }
0x18a2   : > { %11250 = vmatpush1.bf16.msra.mxu1 %v15096_v30 }
0x18a5   : > { %11252 = vmatmul.mubr.bf16.vlgmr.msra.gmra.mrb[8].mxu1 %v17709_v16 }
0x18a6   : > { %11261 = vmatprep.mubr.bf16.mxu1 %v17719_v52 }
0x18ad   : > { %11262 = vmatmul.mubr.bf16.gmra.mrb[12].mxu1 %v17717_v29 }
0x18ae   : > { %11418 = vmatprep.mubr.bf16.mxu1 %v15157_v54 }
0x1938   : > { %v11210_v32 = vpop.f32.mrb[4].mxu1 }
0x1939   : > { %v18385_v33 = vadd.f32 %v11210_v32, %v18274_v42  ;;  %v11212_v34 = vpop.f32.mrb[5].mxu1 }
0x193a   : > { %v18388_v35 = vadd.f32 %v11212_v34, %v18277_v46  ;;  %v11214_v36 = vpop.f32.mrb[6].mxu1  ;;  %v12928_v46 = vld [vmem:[%s18516_s5 + $0xe] sm:$0x3] }
0x193b   : > { %v11215_v37 = vpop.f32.mrb[7].mxu1 }
0x1978   : > { %v11253_v39 = vpop.f32.mrb[8].mxu1 }
0x1979   : > { %v11255_v31 = vpop.f32.mrb[9].mxu1 }
0x197a   : > { %v11257_v41 = vpop.f32.mrb[10].mxu1 }
0x197b   : > { %v11272_v44 = vpack.c.bf16 %v11257_v41, %v11253_v39  ;;  %v11259_v47 = vpop.f32.mrb[11].mxu1  ;;  %v11432_v41 = vpop.permute.xlu1 %11431 }
0x197c   : > { %v11273_v48 = vpack.c.bf16 %v11259_v47, %v11255_v31 }
0x197e   : > { %11281 = vmatprep.subr.bf16.mxu0 %v11273_v48 }
0x197f   : > { %11282 = vmatpush1.bf16.msra.mxu0 %v11272_v44 }
0x1980   : > { %v11263_v50 = vpop.f32.mrb[12].mxu1 }
0x1981   : > { %v11265_v54 = vpop.f32.mrb[13].mxu1 }
0x1982   : > { %v11267_v0 = vpop.f32.mrb[14].mxu1 }
0x1983   : > { %v11274_v9 = vpack.c.bf16 %v11267_v0, %v11263_v50  ;;  %v11269_v42 = vpop.f32.mrb[15].mxu1 }
0x1984   : > { %v11275_v14 = vpack.c.bf16 %v11269_v42, %v11265_v54 }
0x1986   : > { %11283 = vmatprep.subr.bf16.mxu0 %v11275_v14 }
0x1987   : > { %11284 = vmatpush1.bf16.msra.mxu0 %v11274_v9 }
0x1988   : > { %11324 = vmatprep.subr.bf16.mxu0 %v15097_v17 }
0x198a   : > { %12929 = vmatmul.mubr.msk.bf16.vlgmr.msra.gmra.mrb[140].mxu0 %vm691_vm1, %v12928_v46 }
0x198b   : > { %11325 = vmatpush1.bf16.msra.mxu0 %v15098_v19  ;;  %11356 = vmatprep.mubr.bf16.mxu0 %v17711_v18  ;;  %v15103_v18 = vld [vmem:[%s18522_s11 + $0x834] ss:$8 sps:$4 sm:$0xff]  }
0x198c   : > { %11326 = vmatprep.subr.bf16.mxu0 %v15099_v10 }
0x198f   : > { %11327 = vmatpush1.bf16.msra.mxu0 %v15100_v20 }
0x1990   : > { %11328 = vmatprep.subr.bf16.mxu0 %v15101_v21 }
0x1993   : > { %11329 = vmatpush1.bf16.msra.mxu0 %v15102_v59 }
0x1994   : > { %11330 = vmatprep.subr.bf16.mxu0 %v15103_v18 }
0x1997   : > { %11331 = vmatpush1.bf16.msra.mxu0 %v15104_v11 }
0x1998   : > { %11332 = vmatprep.subr.bf16.mxu0 %v15105_v22 }
0x199b   : > { %11333 = vmatpush1.bf16.msra.mxu0 %v15106_v13 }
0x199c   : > { %11334 = vmatprep.subr.bf16.mxu0 %v15107_v23 }
0x199f   : > { %11335 = vmatpush1.bf16.msra.mxu0 %v15108_v12 }
0x19a0   : > { %11336 = vmatprep.subr.bf16.mxu0 %v15109_v15 }
0x19a3   : > { %11337 = vmatpush1.bf16.msra.mxu0 %v15110_v24 }
0x19a4   : > { %11338 = vmatprep.subr.bf16.mxu0 %v15111_v26 }
0x19a7   : > { %11339 = vmatpush1.bf16.msra.mxu0 %v15112_v27 }
0x19a8   : > { %11340 = vmatprep.subr.bf16.mxu0 %v15113_v49 }
0x19ab   : > { %11341 = vmatpush1.bf16.msra.mxu0 %v15114_v28 }
0x19ac   : > { %11342 = vmatprep.subr.bf16.mxu0 %v15115_v3 }
0x19af   : > { %11343 = vmatpush1.bf16.msra.mxu0 %v15116_v45 }
0x19b0   : > { %11344 = vmatprep.subr.bf16.mxu0 %v15117_v43 }
0x19b3   : > { %11345 = vmatpush1.bf16.msra.mxu0 %v15118_v51 }
0x19b4   : > { %11346 = vmatprep.subr.bf16.mxu0 %v15119_v38 }
0x19b7   : > { %11347 = vmatpush1.bf16.msra.mxu0 %v15120_v6 }
0x19b8   : > { %11348 = vmatprep.subr.bf16.mxu0 %v15121_v56 }
0x19bb   : > { %11349 = vmatpush1.bf16.msra.mxu0 %v15122_v57 }
0x19bc   : > { %11350 = vmatprep.subr.bf16.mxu0 %v15123_v62 }
0x19bf   : > { %11351 = vmatpush1.bf16.msra.mxu0 %v15124_v63 }
0x19c0   : > { %11352 = vmatprep.subr.bf16.mxu0 %v15125_v53 }
0x19c3   : > { %11353 = vmatpush1.bf16.msra.mxu0 %v15126_v55 }
0x19c4   : > { %11354 = vmatprep.subr.bf16.mxu0 %v15127_v7 }
0x19c7   : > { %11355 = vmatpush1.bf16.msra.mxu0 %v15128_v61 }
0x19ca   : > { %11357 = vmatmul.mubr.bf16.vlgmr.msra.gmra.mrb[144].mxu0 %v17709_v16 }
0x19cb   : > { %11366 = vmatprep.mubr.bf16.mxu0 %v17719_v52 }
0x19d2   : > { %11367 = vmatmul.mubr.bf16.gmra.mrb[148].mxu0 %v17717_v29 }
0x1a5d   : > { %v11315_v2 = vpop.f32.mrb[140].mxu0 }
0x1a5e   : > { %v11322_v8 = vadd.f32 %v11315_v2, %v18385_v33  ;;  %v11317_v40 = vpop.f32.mrb[141].mxu0 }
0x1a5f   : > { %v11323_v25 = vadd.f32 %v11317_v40, %v18388_v35  ;;  %v11319_v4 = vpop.f32.mrb[142].mxu0  ;;  %v12930_v35 = vld [vmem:[%s18516_s5 + $0x10] sm:$0x3] }
0x1a60   : > { %v11320_v58 = vpop.f32.mrb[143].mxu0 }
0x1a9d   : > { %v11358_v60 = vpop.f32.mrb[144].mxu0 }
0x1a9e   : > { %v11360_v5 = vpop.f32.mrb[145].mxu0 }
0x1a9f   : > { %v11362_v16 = vpop.f32.mrb[146].mxu0 }
0x1aa0   : > { %v11377_v30 = vpack.c.bf16 %v11362_v16, %v11358_v60  ;;  %v11364_v52 = vpop.f32.mrb[147].mxu0 }
0x1aa1   : > { %v11378_v32 = vpack.c.bf16 %v11364_v52, %v11360_v5 }
0x1aa3   : > { %11386 = vmatprep.subr.bf16.mxu1 %v11378_v32 }
0x1aa4   : > { %11387 = vmatpush1.bf16.msra.mxu1 %v11377_v30 }
0x1aa5   : > { %v11368_v29 = vpop.f32.mrb[148].mxu0 }
0x1aa6   : > { %v11370_v34 = vpop.f32.mrb[149].mxu0 }
0x1aa7   : > { %v11372_v36 = vpop.f32.mrb[150].mxu0 }
0x1aa8   : > { %v11379_v37 = vpack.c.bf16 %v11372_v36, %v11368_v29  ;;  %v11374_v39 = vpop.f32.mrb[151].mxu0 }
0x1aa9   : > { %v11380_v33 = vpack.c.bf16 %v11374_v39, %v11370_v34 }
0x1aab   : > { %11388 = vmatprep.subr.bf16.mxu1 %v11380_v33 }
0x1aac   : > { %11389 = vmatpush1.bf16.msra.mxu1 %v11379_v37 }
0x1aaf   : > { %12931 = vmatmul.mubr.msk.bf16.vlgmr.msra.gmra.mrb[16].mxu1 %vm691_vm1, %v12930_v35 }
0x1b82   : > { %v11420_v31 = vpop.f32.mrb[16].mxu1 }
0x1b83   : > { %v11427_v44 = vadd.f32 %v11420_v31, %v11322_v8  ;;  %v11422_v47 = vpop.f32.mrb[17].mxu1 }
0x1b84   : > { %v11428_v48 = vadd.f32 %v11422_v47, %v11323_v25  ;;  %v11424_v50 = vpop.f32.mrb[18].mxu1 }
0x1b85   : > { %v11434_v54 = vadd.f32 %v11432_v41, %v11427_v44  ;;  %v11425_v0 = vpop.f32.mrb[19].mxu1 }
0x1b86   : > { %v11435_v9 = vadd.f32 %v11432_v41, %v11428_v48 }
0x1b87   : > { %14833 = vtanh.f32 %v11434_v54 }
0x1b88   : > { %14835 = vtanh.f32 %v11435_v9 }
0x1b91   : > { %v14834_v42 = vpop.eup %14833 }
0x1b92   : > { %v14836_v14 = vpop.eup %14835 }
0x1b93   : > { %v11440_v46 = vcombine.low %v14834_v42, %v14836_v14 }
0x1b95   : > { %11442 = vst [vmem:[%s407_s23] sm:$0x77] %v11440_v46 }
0x1b96 PF: > { %s18531_s20 = sld [smem:[#allocation5_spill]] }
0x1b9c   : > { %s23_s21 = sadd.s32 1, %s18531_s20  }
0x1b9d   : > { %p20_p1 = scmp.ge.s32.totalorder %s23_s21, 4  }
0x1b9f   :  { %22 = sbr.rel (!%p20_p1) target bundleno = 4 (0x4), region = 208 }
0x1ba6   :  { %11464 = vsyncpa [#allocation3], 1 }
0x1ba7   :  { %11466 = vsyncpa [#allocation3 + $0x1], 1 }

</bundles_post_ra>
